<compile_context>
chip_gen: v6e
topology: v6e:2x2x1
jax: 0.10.0
libtpu: 0.0.40
codegen_flags: <defaults>
</compile_context>

<pallas_src>
import numpy as np
import jax
import jax.numpy as jnp
from jax import lax
from jax.experimental import pallas as pl
from jax.experimental.pallas import tpu as pltpu

# ----------------------------- configuration ------------------------------
OUT_DIMS = 3
HIDDEN = [32, 32, 32, 32]
DIR_INSERT = (0, 2)
POS_INSERT = (0,)
D_DIR = 3            # identity embedder -> 3 dims, no extra features
D_POS = 3
FIRST_OMEGA = 30.0
INIT_OUTPUT = 1.0    # last bias = log(init_output) = 0.0 for Exponential act
H = 32               # hidden width


def build_dims():
    dims = [0] + list(HIDDEN) + [OUT_DIMS]
    if 0 in DIR_INSERT:
        dims[0] += D_DIR
    if 0 in POS_INSERT:
        dims[0] += D_POS
    return dims


def init_params(key):
    """Deterministic init mirroring NeILFMLP.__init__ (SIREN + last linear).

    Returns a list of (W [out, in], b [out]) in PyTorch layout.
    """
    dims = build_dims()              # [6, 32, 32, 32, 32, 3]
    num_layers = len(dims)
    keys = jax.random.split(key, num_layers - 1)
    params = []
    for l in range(num_layers - 1):
        in_dim = dims[l]
        out_dim = dims[l + 1]
        if (l + 1) in DIR_INSERT:
            out_dim -= D_DIR
        if (l + 1) in POS_INSERT:
            out_dim -= D_POS
        is_last = l == num_layers - 2
        if is_last:
            # nn.init.uniform_(w, -1e-5, 1e-5); bias = log(init_output)
            w = jax.random.uniform(keys[l], (out_dim, in_dim), jnp.float32, -1e-5, 1e-5)
            b = jnp.full((out_dim,), np.log(INIT_OUTPUT), jnp.float32)
        else:
            # siren_is_first only for l == 0 (identity embedders)
            lim = FIRST_OMEGA / in_dim if l == 0 else float(np.sqrt(3.0 / in_dim))
            w = jax.random.uniform(keys[l], (out_dim, in_dim), jnp.float32, -lim, lim)
            b = jnp.zeros((out_dim,), jnp.float32)
        # weight_norm: effective W = g * v / ||v||; at init g = ||v|| -> identity.
        g = jnp.linalg.norm(w, axis=1, keepdims=True)
        w = g * w / jnp.maximum(g, 1e-12)
        params.append((w, b))
    return params


# ------------------------- host-side weight repack --------------------------
def repack_params(params):
    """Repack (W, b) pairs into kernel-friendly constant slabs.

    w_in  [64, 8]   : stacked LHS applied to the raw point slab
                      (slab rows: pos0..2, dir0..2, 1, 0)
        rows  0:32  = layer-0 weight, input columns permuted (orig input is
                      [dir, pos]), with b0 folded into column 6 (the 1-row)
        rows 32:64  = layer-2 "view" sub-block W2[:, 29:32] on the dir rows
                      (its output is added at layer 2)
    w_h   [4,32,32] : hidden matrices
        [0] layer 1 (out rows padded 29->32 with zeros)
        [1] layer 2 x-part (in cols padded 29->32 with zeros)
        [2] layer 3
        [3] layer 4, rows 0:3 = W4 and rows 4:7 = W4 (duplicate rows carry the
            exp() copy of the output), rest zero
    b_sl  [4,32,1]  : biases for layers 1..4 (b0 is folded into w_in), padded
                      to match the weight padding above.
    """
    (W0, b0), (W1, b1), (W2, b2), (W3, b3), (W4, b4) = params

    w_in = jnp.zeros((2 * H, 8), jnp.float32)
    w_in = w_in.at[0:H, 0:3].set(W0[:, 3:6])        # pos coeffs -> slab rows 0:3
    w_in = w_in.at[0:H, 3:6].set(W0[:, 0:3])        # dir coeffs -> slab rows 3:6
    w_in = w_in.at[0:H, 6].set(b0)                  # layer-0 bias fold (row 6 == 1)
    w_in = w_in.at[H:2 * H, 3:6].set(W2[:, 29:32])  # layer-2 view sub-block

    w_h = jnp.zeros((4, H, H), jnp.float32)
    w_h = w_h.at[0, 0:29, :].set(W1)                # layer 1 (29 -> 32 rows, pad rows 0)
    w_h = w_h.at[1, :, 0:29].set(W2[:, 0:29])       # layer 2 x-part (cols 29:32 stay 0)
    w_h = w_h.at[2].set(W3)                         # layer 3
    w_h = w_h.at[3, 0:OUT_DIMS, :].set(W4)          # layer 4 -> pre rows 0:3
    w_h = w_h.at[3, 4:4 + OUT_DIMS, :].set(W4)      # duplicate -> rows 4:7 (exp copy)

    b_sl = jnp.zeros((4, H, 1), jnp.float32)
    b_sl = b_sl.at[0, 0:29, 0].set(b1)
    b_sl = b_sl.at[1, :, 0].set(b2)
    b_sl = b_sl.at[2, :, 0].set(b3)
    b_sl = b_sl.at[3, 0:OUT_DIMS, 0].set(b4)
    b_sl = b_sl.at[3, 4:4 + OUT_DIMS, 0].set(b4)
    return w_in, w_h, b_sl


# ------------------------------ Pallas kernel ------------------------------
def neilf_kernel(pts_ref, w_in_ref, w_h_ref, b_ref, out_ref):
    f32 = jnp.float32
    mmd = w_h_ref.dtype            # matmul operand dtype (f32 by default)

    x_in = pts_ref[...]            # [8, B]: rows = pos0..2, dir0..2, 1, 0
    x_mm = x_in.astype(mmd)

    # Layer 0 + layer-2 view contribution: one stacked [64,8] @ [8,B] matmul
    # (shared RHS, b0 folded into the constant-1 input row).
    z = jnp.dot(w_in_ref[...], x_mm, preferred_element_type=f32)      # [64, B]
    h = jnp.sin(z[0:H, :])                                            # layer 0 (SIREN)
    v = z[H:2 * H, :]                                                 # W2[:,29:32] @ dir

    # layer 1: out rows 29:31 are sin(0)=0 (killed by zero cols of w_h[1])
    h = jnp.sin(jnp.dot(w_h_ref[0], h.astype(mmd), preferred_element_type=f32) + b_ref[0])
    # layer 2: concat([h(29), view(3)]) == w_h[1] @ h + v
    h = jnp.sin(jnp.dot(w_h_ref[1], h.astype(mmd), preferred_element_type=f32) + v + b_ref[1])
    # layer 3
    h = jnp.sin(jnp.dot(w_h_ref[2], h.astype(mmd), preferred_element_type=f32) + b_ref[2])
    # layer 4 (last, plain linear); rows 0:3 = pre, rows 4:7 = identical copy
    y = jnp.dot(w_h_ref[3], h.astype(mmd), preferred_element_type=f32) + b_ref[3]   # [32, B]

    # Packed output: rows 0:3 = pre-activation, rows 4:7 = exp(pre)
    y8 = y[0:8, :]                                                    # tile-aligned slice
    row = lax.broadcasted_iota(jnp.int32, y8.shape, 0)
    out_ref[...] = jnp.where(row < 4, y8, jnp.exp(y8))                # full unmasked store


def neilf_forward(points, params, block_n=None, block_cap=8192,
                  matmul_dtype=jnp.float32):
    """points: [N, 6] f32 (xyz position | xyz direction). Returns (exp(pre), pre)."""
    N = points.shape[0]
    w_in, w_h, b_sl = repack_params(params)
    w_in = w_in.astype(matmul_dtype)   # bf16 optional (accuracy-gated); biases stay f32
    w_h = w_h.astype(matmul_dtype)

    if block_n is None:
        # Target >= 2 grid steps (v7x megacore sharding) while amortizing the
        # ~0.35 us per-step overhead; cap at 8192 (few-MiB VMEM footprint, well
        # under the 16 MiB v5e scoped default, so no vmem_limit override needed).
        half = pl.cdiv(N, 2)
        block_n = min(block_cap, max(128, ((half + 127) // 128) * 128))
    block_n = max(128, (block_n // 128) * 128)
    grid_n = pl.cdiv(N, block_n)
    n_pad = grid_n * block_n

    # Feature-on-sublane / batch-on-lane input slab [8, n_pad]:
    # rows 0:3 = pos, rows 3:6 = dir, row 6 = 1.0 (bias fold), row 7 = 0.
    pts_t = jnp.zeros((8, n_pad), jnp.float32)
    pts_t = pts_t.at[0:6, 0:N].set(points.astype(jnp.float32).T)
    pts_t = pts_t.at[6, :].set(1.0)

    packed = pl.pallas_call(
        neilf_kernel,
        grid=(grid_n,),
        in_specs=[
            pl.BlockSpec((8, block_n), lambda i: (0, i)),
            pl.BlockSpec((2 * H, 8), lambda i: (0, 0)),      # constant slabs:
            pl.BlockSpec((4, H, H), lambda i: (0, 0, 0)),    # fetched once,
            pl.BlockSpec((4, H, 1), lambda i: (0, 0, 0)),    # VMEM-resident
        ],
        out_specs=pl.BlockSpec((8, block_n), lambda i: (0, i)),
        out_shape=jax.ShapeDtypeStruct((8, n_pad), jnp.float32),
        compiler_params=pltpu.CompilerParams(dimension_semantics=("parallel",)),
    )(pts_t, w_in, w_h, b_sl)

    # Module contract is [N, 3]; consumers happy with feature-major [3, N] data
    # can slice `packed` directly and skip these transposes.
    pre = packed[0:OUT_DIMS, 0:N].T
    out = packed[4:4 + OUT_DIMS, 0:N].T
    return out, pre


# --------------------------- pure-JAX reference ----------------------------
def neilf_reference(points, params):
    view = points[:, 3:6]
    pos = points[:, 0:3]
    n_layers = len(params)
    x = jnp.zeros((points.shape[0], 0), jnp.float32)
    for l, (w, b) in enumerate(params):
        pieces = [x]
        if l in DIR_INSERT:
            pieces.append(view)
        if l in POS_INSERT:
            pieces.append(pos)
        x = jnp.concatenate(pieces, axis=1)
        y = x @ w.T + b
        x = jnp.sin(y) if l < n_layers - 1 else y
    return jnp.exp(x), x


# ----------------------------------- main -----------------------------------
if __name__ == "__main__":
    key = jax.random.PRNGKey(0)
    k_pts, k_par = jax.random.split(key)

    N = 1024
    points = jax.random.normal(k_pts, (N, 6), jnp.float32)   # [xyz position | xyz direction]
    params = init_params(k_par)

    # default block policy -> block_n=512, grid_n=2 at N=1024
    out, pre = neilf_forward(points, params)
    jax.block_until_ready((out, pre))

    ref_out, ref_pre = neilf_reference(points, params)
    np.testing.assert_allclose(np.asarray(pre), np.asarray(ref_pre), rtol=1e-4, atol=1e-5)
    np.testing.assert_allclose(np.asarray(out), np.asarray(ref_out), rtol=1e-4, atol=1e-5)

    print("KERNEL_OK")
</pallas_src>

<mosaic_0001>
module attributes {stable_mosaic.version = 11 : i64} {
  func.func @neilf_kernel(%arg0: i32, %arg1: memref<8x512xf32, #tpu.memory_space<vmem>>, %arg2: memref<64x8xf32, #tpu.memory_space<vmem>>, %arg3: memref<4x32x32xf32, #tpu.memory_space<vmem>>, %arg4: memref<4x32x1xf32, #tpu.memory_space<vmem>>, %arg5: memref<8x512xf32, #tpu.memory_space<vmem>>) attributes {dimension_semantics = [#tpu.dimension_semantics<parallel>], iteration_bounds = array<i64: 2>, scalar_prefetch = 0 : i64, scratch_operands = 0 : i64, tpu.core_type = #tpu.core_type<tc>, window_params = [{transform_indices = @transform_0, window_bounds = array<i64: 8, 512>}, {pipeline_mode = #tpu.pipeline_mode<synchronous>, transform_indices = @transform_1, window_bounds = array<i64: 64, 8>}, {pipeline_mode = #tpu.pipeline_mode<synchronous>, transform_indices = @transform_2, window_bounds = array<i64: 4, 32, 32>}, {pipeline_mode = #tpu.pipeline_mode<synchronous>, transform_indices = @transform_3, window_bounds = array<i64: 4, 32, 1>}, {transform_indices = @transform_4, window_bounds = array<i64: 8, 512>}]} {
    %c0 = arith.constant 0 : index
    %c0_0 = arith.constant 0 : index
    %0 = vector.load %arg1[%c0, %c0_0] : memref<8x512xf32, #tpu.memory_space<vmem>>, vector<8x512xf32>
    %c0_1 = arith.constant 0 : index
    %c0_2 = arith.constant 0 : index
    %1 = vector.load %arg2[%c0_1, %c0_2] : memref<64x8xf32, #tpu.memory_space<vmem>>, vector<64x8xf32>
    %cst = arith.constant dense<0.000000e+00> : vector<64x512xf32>
    %2 = tpu.matmul %1, %0, %cst {dimension_numbers = #tpu.dot_dimension_numbers<[1], [0], [0], [1], [0, 0, 1, 1], [], []>} : vector<64x8xf32>, vector<8x512xf32>, vector<64x512xf32> -> vector<64x512xf32>
    %3 = vector.extract_strided_slice %2 {offsets = [0, 0], sizes = [32, 512], strides = [1, 1]} : vector<64x512xf32> to vector<32x512xf32>
    %4 = math.sin %3 : vector<32x512xf32>
    %5 = vector.extract_strided_slice %2 {offsets = [32, 0], sizes = [32, 512], strides = [1, 1]} : vector<64x512xf32> to vector<32x512xf32>
    %c0_3 = arith.constant 0 : index
    %c0_4 = arith.constant 0 : index
    %c0_5 = arith.constant 0 : index
    %6 = vector.load %arg3[%c0_3, %c0_4, %c0_5] : memref<4x32x32xf32, #tpu.memory_space<vmem>>, vector<1x32x32xf32>
    %7 = vector.shape_cast %6 : vector<1x32x32xf32> to vector<32x32xf32>
    %cst_6 = arith.constant dense<0.000000e+00> : vector<32x512xf32>
    %8 = tpu.matmul %7, %4, %cst_6 {dimension_numbers = #tpu.dot_dimension_numbers<[1], [0], [0], [1], [0, 0, 1, 1], [], []>} : vector<32x32xf32>, vector<32x512xf32>, vector<32x512xf32> -> vector<32x512xf32>
    %c0_7 = arith.constant 0 : index
    %c0_8 = arith.constant 0 : index
    %c0_9 = arith.constant 0 : index
    %9 = vector.load %arg4[%c0_7, %c0_8, %c0_9] : memref<4x32x1xf32, #tpu.memory_space<vmem>>, vector<1x32x1xf32>
    %10 = vector.shape_cast %9 : vector<1x32x1xf32> to vector<32x1xf32>
    %11 = vector.broadcast %10 : vector<32x1xf32> to vector<32x512xf32>
    %12 = arith.addf %8, %11 : vector<32x512xf32>
    %13 = math.sin %12 : vector<32x512xf32>
    %c1 = arith.constant 1 : index
    %c0_10 = arith.constant 0 : index
    %c0_11 = arith.constant 0 : index
    %14 = vector.load %arg3[%c1, %c0_10, %c0_11] : memref<4x32x32xf32, #tpu.memory_space<vmem>>, vector<1x32x32xf32>
    %15 = vector.shape_cast %14 : vector<1x32x32xf32> to vector<32x32xf32>
    %cst_12 = arith.constant dense<0.000000e+00> : vector<32x512xf32>
    %16 = tpu.matmul %15, %13, %cst_12 {dimension_numbers = #tpu.dot_dimension_numbers<[1], [0], [0], [1], [0, 0, 1, 1], [], []>} : vector<32x32xf32>, vector<32x512xf32>, vector<32x512xf32> -> vector<32x512xf32>
    %17 = arith.addf %16, %5 : vector<32x512xf32>
    %c1_13 = arith.constant 1 : index
    %c0_14 = arith.constant 0 : index
    %c0_15 = arith.constant 0 : index
    %18 = vector.load %arg4[%c1_13, %c0_14, %c0_15] : memref<4x32x1xf32, #tpu.memory_space<vmem>>, vector<1x32x1xf32>
    %19 = vector.shape_cast %18 : vector<1x32x1xf32> to vector<32x1xf32>
    %20 = vector.broadcast %19 : vector<32x1xf32> to vector<32x512xf32>
    %21 = arith.addf %17, %20 : vector<32x512xf32>
    %22 = math.sin %21 : vector<32x512xf32>
    %c2 = arith.constant 2 : index
    %c0_16 = arith.constant 0 : index
    %c0_17 = arith.constant 0 : index
    %23 = vector.load %arg3[%c2, %c0_16, %c0_17] : memref<4x32x32xf32, #tpu.memory_space<vmem>>, vector<1x32x32xf32>
    %24 = vector.shape_cast %23 : vector<1x32x32xf32> to vector<32x32xf32>
    %cst_18 = arith.constant dense<0.000000e+00> : vector<32x512xf32>
    %25 = tpu.matmul %24, %22, %cst_18 {dimension_numbers = #tpu.dot_dimension_numbers<[1], [0], [0], [1], [0, 0, 1, 1], [], []>} : vector<32x32xf32>, vector<32x512xf32>, vector<32x512xf32> -> vector<32x512xf32>
    %c2_19 = arith.constant 2 : index
    %c0_20 = arith.constant 0 : index
    %c0_21 = arith.constant 0 : index
    %26 = vector.load %arg4[%c2_19, %c0_20, %c0_21] : memref<4x32x1xf32, #tpu.memory_space<vmem>>, vector<1x32x1xf32>
    %27 = vector.shape_cast %26 : vector<1x32x1xf32> to vector<32x1xf32>
    %28 = vector.broadcast %27 : vector<32x1xf32> to vector<32x512xf32>
    %29 = arith.addf %25, %28 : vector<32x512xf32>
    %30 = math.sin %29 : vector<32x512xf32>
    %c3 = arith.constant 3 : index
    %c0_22 = arith.constant 0 : index
    %c0_23 = arith.constant 0 : index
    %31 = vector.load %arg3[%c3, %c0_22, %c0_23] : memref<4x32x32xf32, #tpu.memory_space<vmem>>, vector<1x32x32xf32>
    %32 = vector.shape_cast %31 : vector<1x32x32xf32> to vector<32x32xf32>
    %cst_24 = arith.constant dense<0.000000e+00> : vector<32x512xf32>
    %33 = tpu.matmul %32, %30, %cst_24 {dimension_numbers = #tpu.dot_dimension_numbers<[1], [0], [0], [1], [0, 0, 1, 1], [], []>} : vector<32x32xf32>, vector<32x512xf32>, vector<32x512xf32> -> vector<32x512xf32>
    %c3_25 = arith.constant 3 : index
    %c0_26 = arith.constant 0 : index
    %c0_27 = arith.constant 0 : index
    %34 = vector.load %arg4[%c3_25, %c0_26, %c0_27] : memref<4x32x1xf32, #tpu.memory_space<vmem>>, vector<1x32x1xf32>
    %35 = vector.shape_cast %34 : vector<1x32x1xf32> to vector<32x1xf32>
    %36 = vector.broadcast %35 : vector<32x1xf32> to vector<32x512xf32>
    %37 = arith.addf %33, %36 : vector<32x512xf32>
    %38 = vector.extract_strided_slice %37 {offsets = [0, 0], sizes = [8, 512], strides = [1, 1]} : vector<32x512xf32> to vector<8x512xf32>
    %39 = tpu.iota {dimensions = array<i32: 0>} : vector<8x512xi32>
    %c4_i32 = arith.constant 4 : i32
    %40 = vector.broadcast %c4_i32 : i32 to vector<8x512xi32>
    %41 = arith.cmpi slt, %39, %40 : vector<8x512xi32>
    %42 = math.exp %38 : vector<8x512xf32>
    %43 = arith.select %41, %38, %42 : vector<8x512xi1>, vector<8x512xf32>
    %c0_28 = arith.constant 0 : index
    %c0_29 = arith.constant 0 : index
    %44 = vector.load %arg5[%c0_28, %c0_29] : memref<8x512xf32, #tpu.memory_space<vmem>>, vector<8x512xf32>
    tpu.vector_store %arg5[%c0_28, %c0_29], %43 {strides = array<i32>} : memref<8x512xf32, #tpu.memory_space<vmem>>, vector<8x512xf32>,
    return
  }
  func.func @transform_0(%arg0: i32) -> (i32, i32) {
    %c0_i32 = arith.constant 0 : i32
    %c0_i32_0 = arith.constant 0 : i32
    return %c0_i32, %arg0 : i32, i32
  }
  func.func @transform_1(%arg0: i32) -> (i32, i32) {
    %c0_i32 = arith.constant 0 : i32
    %c0_i32_0 = arith.constant 0 : i32
    %c0_i32_1 = arith.constant 0 : i32
    return %c0_i32, %c0_i32_0 : i32, i32
  }
  func.func @transform_2(%arg0: i32) -> (i32, i32, i32) {
    %c0_i32 = arith.constant 0 : i32
    %c0_i32_0 = arith.constant 0 : i32
    %c0_i32_1 = arith.constant 0 : i32
    %c0_i32_2 = arith.constant 0 : i32
    return %c0_i32, %c0_i32_0, %c0_i32_1 : i32, i32, i32
  }
  func.func @transform_3(%arg0: i32) -> (i32, i32, i32) {
    %c0_i32 = arith.constant 0 : i32
    %c0_i32_0 = arith.constant 0 : i32
    %c0_i32_1 = arith.constant 0 : i32
    %c0_i32_2 = arith.constant 0 : i32
    return %c0_i32, %c0_i32_0, %c0_i32_1 : i32, i32, i32
  }
  func.func @transform_4(%arg0: i32) -> (i32, i32) {
    %c0_i32 = arith.constant 0 : i32
    %c0_i32_0 = arith.constant 0 : i32
    return %c0_i32, %arg0 : i32, i32
  }
}

</mosaic_0001>

<bundles_post_ra>
// kernel: tpu_custom_call.1
= control target key start
LH: loop header
LB: loop body
LE: loop exit
PB: predicated region body
PF: predicated region fallthrough
CT: control target
= control target key end

     0   :  { %9 = vsyncpa [#allocation3], 0  ;;  %s15973_s0 = inlined_call_operand.vmem [shape: f32[8,1024], index: 0, kind: input, shape index: {}]   ;;  %s15974_s1 = inlined_call_operand.vmem [shape: f32[64,8], index: 1, kind: input, shape index: {}]   ;;  %s15975_s2 = inlined_call_operand.vmem [shape: f32[4,32,32], index: 2, kind: input, shape index: {}]   ;;  %s15976_s3 = inlined_call_operand.vmem [shape: f32[4,32,1], index: 3, kind: input, shape index: {}]   ;;  %s15977_s4 = inlined_call_operand.hbm [shape: f32[8,1024], index: 4, kind: output, shape index: {}]  }
   0x1   :  { %11 = vsyncpa [#allocation3 + $0x1], 0  ;;  %s9097_s15 = smov 0   ;;  %s9099_s16 = smov 0  }
   0x2   :  { %s9101_s17 = smov 0   ;;  %s9103_s18 = smov 0  }
   0x3 LB: > { %s9118_s19 = sadd.s32 4294967295, %s9061_s18   ;;  %s8091_s20 = sadd.s32 4294967294, %s9061_s18   ;;  %s9061_s18 = sphi %s9103_s18, %s16927_s18   ;;  %s9057_s17 = sphi %s9101_s17, %s16926_s17   ;;  %s9053_s16 = sphi %s9099_s16, %s16925_s16   ;;  %s9049_s15 = sphi %s9097_s15, %s16924_s15  }
   0x4   : > { %s9122_s21 = sadd.s32 1, %s9061_s18   ;;  %s113_s22 = sadd.s32 1, %s9057_s17 }
   0x5   : > { %s110_s23 = ssub.s32 %s9061_s18, %s9122_s21  ;;  %p123_p0 = scmp.ne.s32.totalorder %s9057_s17, %s9053_s16 }
   0x6   : > { %p111_p1 = scmp.eq.s32.totalorder %s110_s23, 0  ;;  %p124_p2 = scmp.eq.s32.totalorder %s9118_s19, 1 }
   0x7   : > { %p129_p3 = scmp.ne.s32.totalorder %s9053_s16, %s9049_s15  ;;  %p130_p4 = scmp.eq.s32.totalorder %s8091_s20, 1 }
   0x8   : > { %s9133_s24 = scalar_select %p111_p1, %s9057_s17, %s113_s22  }
   0x9   : > { %p9135_p5 = por %p124_p2, %p123_p0  ;;  %p9139_p6 = por %p130_p4, %p129_p3 }
   0xa   : > { %p8094_p7 = scmp.ge.s32.totalorder %s9061_s18, 1  ;;  %p166_p8 = scmp.lt.s32.totalorder %s9061_s18, 3 }
   0xc   : > { %p167_p9 = pnand %p8094_p7, %p166_p8 }
   0xe   : > { %170 = sbr.rel (%p167_p9) target bundleno = 2679 (0xa77), region = 36 }
  0x13   : > { %s8096_s27 = sshll.u32 %s9118_s19, 2  ;;  %v15978_v0 = vmov 0.0   ;;  %v203_v1 = vld [vmem:[%s15974_s1] sm:$0xff]  ;;  %vm211_vm0 = vcmask 64512   ;;  %v204_v6 = vld [vmem:[%s15974_s1 + $0x8] sm:$0xff]  ;;  %v205_v7 = vld [vmem:[%s15974_s1 + $0x10] sm:$0xff] }
  0x14   : > { %p193_p10 = scmp.lt.s32.totalorder %s8096_s27, 7  ;;  %300 = vmatprep.mubr.f32.mxu0 %v15978_v0  ;;  %413 = vmatprep.mubr.f32.mxu1 %v15978_v0  ;;  %v206_v8 = vld [vmem:[%s15974_s1 + $0x18] sm:$0xff]  ;;  %v15995_v37 = vmov 683565275   ;;  %v15989_v41 = vmov 2475754826  }
  0x15   : > { %v15984_v43 = vmov 2131351028   ;;  %v15986_v45 = vmov 2102212464   ;;  %v16000_v47 = vmov 920167782  }
  0x16   : > { %s16929_s27 = smov (!%p193_p10, %s8096_s27), 7  ;;  %v15992_v54 = vmov 1326507024   ;;  %s189_s12 = sand.u32 1, %s9053_s16  }
  0x17   : > { %s8097_s28 = sshll.u32 %s16929_s27, 3  ;;  %s8095_s13 = sshll.u32 %s189_s12, 5 }
  0x18   : > { %s196_s5 = scalar_lea.vmem %s15973_s0, %s8097_s28  ;;  %s191_s14 = scalar_lea.vmem [#allocation2], %s8095_s13 }
  0x19   : > { %v200_v2 = vld [vmem:[%s196_s5 + $0x8] sm:$0xff]  ;;  %v202_v3 = vld [vmem:[%s196_s5 + $0x18] sm:$0xff]  ;;  %v199_v4 = vld [vmem:[%s196_s5] sm:$0xff]  ;;  %s8431_s20 = sshll.u32 %s9118_s19, 9  ;;  %s8032_s22 = sshll.u32 %s191_s14, 4  ;;  %s8033_s22 = int_to_ptr.vmem [resolvable:$true] %s8032_s22 }
  0x1a   : > { %266 = vmatprep.subr.mxu0 %v200_v2  ;;  %379 = vmatprep.subr.mxu1 %v202_v3  ;;  %v201_v5 = vld [vmem:[%s196_s5 + $0x10] sm:$0xff]  ;;  %s15935_s28 = scalar_lea.hbm %s15977_s4, %s8431_s20  ;;  %s8018_s29 = scalar_lea.sflag [#allocation3], %s189_s12 }
  0x1b   : > { %267 = vmatpush1.msra.mxu0 %v199_v4  ;;  %380 = vmatpush1.msra.mxu1 %v201_v5  ;;  %s9001_s30 = scalar_lea.vmem %s8033_s22, 512  ;;  %s9071_s19 = smov [#allocation2]  }
  0x1c   : > { %8098 = vmatmul.mubr.msk.f32.vlgmr.msra.gmra.mxu0 %vm211_vm0, %v203_v1  ;;  %8106 = vmatmul.mubr.msk.f32.vlgmr.msra.gmra.mxu1 %vm211_vm0, %v203_v1  ;;  %p9002_p11 = scmp.ne.s32.totalorder %s8033_s22, %s9001_s30  ;;  %s9005_s5 = sshll.u32 %s9071_s19, 4  ;;  %s9006_s5 = int_to_ptr.vmem [resolvable:$false] %s9005_s5 }
  0x1d   : > { %306 = vmatprep.mubr.f32.mxu0 %v15978_v0  ;;  %419 = vmatprep.mubr.f32.mxu1 %v15978_v0  ;;  %s9007_s6 = scalar_lea.vmem %s9006_s5, 1024  ;;  %p9008_p0 = scmp.lt.s32.totalorder %s8033_s22, %s9006_s5 }
  0x1e   : > { %p9003_p12 = pnand %p9002_p11, %p9135_p5  ;;  %p9009_p1 = scmp.lt.s32.totalorder %s9007_s6, %s9001_s30 }
  0x20   : > { %8099 = vmatmul.mubr.msk.f32.gmra.mxu0 %vm211_vm0, %v204_v6  ;;  %8107 = vmatmul.mubr.msk.f32.gmra.mxu1 %vm211_vm0, %v204_v6  ;;  %p9004_p13 = pneg %p9003_p12  ;;  %p9010_p2 = por %p9009_p1, %p9008_p0 }
  0x21   : > { %312 = vmatprep.mubr.f32.mxu0 %v15978_v0  ;;  %425 = vmatprep.mubr.f32.mxu1 %v15978_v0 }
  0x22   : > { %p9011_p3 = pnand %p9010_p2, %p9004_p13 }
  0x24   : > { %8100 = vmatmul.mubr.msk.f32.gmra.mxu0 %vm211_vm0, %v205_v7  ;;  %8108 = vmatmul.mubr.msk.f32.gmra.mxu1 %vm211_vm0, %v205_v7 }
  0x25   : > { %318 = vmatprep.mubr.f32.mxu0 %v15978_v0  ;;  %431 = vmatprep.mubr.f32.mxu1 %v15978_v0 }
  0x28   : > { %8101 = vmatmul.mubr.msk.f32.gmra.mxu0 %vm211_vm0, %v206_v8  ;;  %8109 = vmatmul.mubr.msk.f32.gmra.mxu1 %vm211_vm0, %v206_v8 }
  0x29   : > { %324 = vmatprep.mubr.f32.mxu0 %v15978_v0  ;;  %437 = vmatprep.mubr.f32.mxu1 %v15978_v0 }
  0xdc   : > { %v9179_v9 = vpop.f32.mrf.mxu0  ;;  %v9181_v10 = vpop.f32.mrf.mxu1 }
  0xdd   : > { %16266 = vst [vmem:[#allocation5_spill] sm:$0xff] %v9179_v9  ;;  %16267 = vst [vmem:[#allocation6_spill] sm:$0xff] %v9181_v10  ;;  %v462_v11 = vand.u32 2147483647, %v9179_v9  ;;  %v465_v12 = vand.u32 2139095040, %v9179_v9  ;;  %v673_v14 = vand.u32 2139095040, %v9181_v10 }
  0xde   : > { %v670_v13 = vand.u32 2147483647, %v9181_v10  ;;  %v9187_v15 = vpop.f32.mrf.mxu0 }
  0xdf   : > { %16268 = vst [vmem:[#allocation7_spill] sm:$0xff] %v9187_v15  ;;  %v466_v16 = vshrl.u32 %v465_v12, 23  ;;  %v469_v17 = vand.u32 8388607, %v462_v11  ;;  %v674_v18 = vshrl.u32 %v673_v14, 23  ;;  %v569_v20 = vand.u32 2139095040, %v9187_v15 }
  0xe0   : > { %v677_v19 = vand.u32 8388607, %v670_v13 }
  0xe1   : > { %v8114_v21 = vadd.s32 4294967169, %v466_v16  ;;  %v8122_v22 = vadd.s32 4294967169, %v674_v18  ;;  %v570_v23 = vshrl.u32 %v569_v20, 23  ;;  %v470_v25 = vor.u32 8388608, %v469_v17 }
  0xe2   : > { %v678_v26 = vor.u32 8388608, %v677_v19 }
  0xe3   : > { %v472_v24 = vadd.s32 1, %v8114_v21  ;;  %v680_v27 = vadd.s32 1, %v8122_v22  ;;  %v8118_v28 = vadd.s32 4294967169, %v570_v23  ;;  %v9194_v33 = vshll.u32 %v470_v25, 8 }
  0xe4   : > { %v9196_v34 = vshll.u32 %v678_v26, 8 }
  0xe5   : > { %vm473_vm1 = vcmp.gt.s32.totalorder %v472_v24, 0  ;;  %vm681_vm2 = vcmp.gt.s32.totalorder %v680_v27, 0  ;;  %v9198_v35 = vadd.s32 1, %v8118_v28 }
  0xe6   : > { %v474_v29 = vsel %vm473_vm1, %v472_v24, 0  ;;  %v682_v32 = vsel %vm681_vm2, %v680_v27, 0 }
  0xe7   : > { %v475_v30 = vshrl.u32 %v474_v29, 5  ;;  %v476_v31 = vand.u32 31, %v474_v29  ;;  %v9201_v39 = vshrl.u32 %v682_v32, 5  ;;  %v684_v40 = vand.u32 31, %v682_v32 }
  0xe8   : > { %vm577_vm7 = vcmp.gt.s32.totalorder %v9198_v35, 0 }
  0xe9   : > { %v477_v36 = vsub.s32 32, %v476_v31  ;;  %v479_v38 = vshll.u32 %v15995_v37, %v476_v31  ;;  %v482_v42 = vshll.u32 %v15989_v41, %v476_v31  ;;  %v485_v44 = vshll.u32 %v15984_v43, %v476_v31 }
  0xea   : > { %v488_v46 = vshll.u32 %v15986_v45, %v476_v31  ;;  %v491_v48 = vshll.u32 %v16000_v47, %v476_v31  ;;  %vm494_vm3 = vcmp.lt.s32.totalorder %v475_v30, 1  ;;  %vm495_vm4 = vcmp.lt.s32.totalorder %v475_v30, 2 }
  0xeb   : > { %v480_v49 = vshrl.u32 %v15989_v41, %v477_v36  ;;  %v483_v50 = vshrl.u32 %v15984_v43, %v477_v36  ;;  %v486_v51 = vshrl.u32 %v15986_v45, %v477_v36  ;;  %v478_v52 = vshrl.u32 %v15995_v37, %v477_v36 }
  0xec   : > { %v489_v53 = vshrl.u32 %v16000_v47, %v477_v36  ;;  %v492_v55 = vshrl.u32 %v15992_v54, %v477_v36  ;;  %v685_v59 = vsub.s32 32, %v684_v40  ;;  %vm496_vm5 = vcmp.lt.s32.totalorder %v475_v30, 3 }
  0xed   : > { %v481_v56 = vor.u32 %v480_v49, %v479_v38  ;;  %v484_v57 = vor.u32 %v483_v50, %v482_v42  ;;  %v487_v58 = vor.u32 %v486_v51, %v485_v44  ;;  %vm497_vm6 = vcmp.lt.s32.totalorder %v475_v30, 4 }
  0xee   : > { %v490_v60 = vor.u32 %v489_v53, %v488_v46  ;;  %v493_v61 = vor.u32 %v492_v55, %v491_v48  ;;  %v687_v6 = vshll.u32 %v15995_v37, %v684_v40  ;;  %v688_v12 = vshrl.u32 %v15989_v41, %v685_v59 }
  0xef   : > { %v498_v62 = vsel %vm494_vm3, %v478_v52, %v481_v56  ;;  %v499_v63 = vsel %vm497_vm6, %v487_v58, 2102212464  ;;  %v502_v1 = vsel %vm494_vm3, %v481_v56, %v484_v57  ;;  %v506_v2 = vsel %vm494_vm3, %v484_v57, %v487_v58 }
  0xf0   : > { %v500_v3 = vsel %vm496_vm5, %v484_v57, %v499_v63  ;;  %v503_v4 = vsel %vm497_vm6, %v490_v60, 920167782  ;;  %v507_v5 = vsel %vm497_vm6, %v493_v61, 1326507024  ;;  %v690_v14 = vshll.u32 %v15989_v41, %v684_v40 }
  0xf1   : > { %v504_v7 = vsel %vm496_vm5, %v487_v58, %v503_v4  ;;  %v508_v8 = vsel %vm496_vm5, %v490_v60, %v507_v5  ;;  %v501_v16 = vsel %vm495_vm4, %v498_v62, %v500_v3  ;;  %v691_v19 = vshrl.u32 %v15984_v43, %v685_v59  ;;  %v9254_v60 = vpop.f32.mrf.mxu1 }
  0xf2   : > { %v505_v17 = vsel %vm495_vm4, %v502_v1, %v504_v7  ;;  %v509_v18 = vsel %vm495_vm4, %v506_v2, %v508_v8  ;;  %v689_v24 = vor.u32 %v688_v12, %v687_v6  ;;  %v693_v26 = vshll.u32 %v15984_v43, %v684_v40  ;;  %16269 = vst [vmem:[#allocation8_spill] sm:$0xff] %v9254_v60 }
  0xf3   : > { %v9225_v20 = vmul.u32.u64.low %v9194_v33, %v509_v18  ;;  %v9226_v21 = vmul.u32.u64.high %v9194_v33, %v509_v18, %v9225_v20  ;;  %v9229_v22 = vmul.u32.u64.low %v9194_v33, %v505_v17  ;;  %v9230_v23 = vmul.u32.u64.high %v9194_v33, %v505_v17, %v9229_v22 }
  0xf4   : > { %v692_v25 = vor.u32 %v691_v19, %v690_v14  ;;  %v694_v27 = vshrl.u32 %v15986_v45, %v685_v59  ;;  %v686_v28 = vshrl.u32 %v15995_v37, %v685_v59  ;;  %v696_v29 = vshll.u32 %v15986_v45, %v684_v40 }
  0xf5   : > { %v697_v30 = vshrl.u32 %v16000_v47, %v685_v59  ;;  %v700_v31 = vshrl.u32 %v15992_v54, %v685_v59  ;;  %v517_v32 = vmul.u32 %v9194_v33, %v501_v16  ;;  %v699_v38 = vshll.u32 %v16000_v47, %v684_v40 }
  0xf6   : > { %v695_v36 = vor.u32 %v694_v27, %v693_v26  ;;  %vm702_vm8 = vcmp.lt.s32.totalorder %v9201_v39, 1  ;;  %vm519_vm9 = vc.u32 %v9226_v21, %v9229_v22  ;;  %v520_v42 = vadd.s32 1, %v9230_v23 }
  0xf7   : > { %v698_v44 = vor.u32 %v697_v30, %v696_v29  ;;  %vm703_vm10 = vcmp.lt.s32.totalorder %v9201_v39, 2  ;;  %v701_v46 = vor.u32 %v700_v31, %v699_v38  ;;  %vm704_vm11 = vcmp.lt.s32.totalorder %v9201_v39, 3 }
  0xf8   : > { %vm705_vm12 = vcmp.lt.s32.totalorder %v9201_v39, 4  ;;  %v710_v48 = vsel %vm702_vm8, %v689_v24, %v692_v25  ;;  %v521_v33 = vsel %vm519_vm9, %v520_v42, %v9230_v23  ;;  %v714_v50 = vsel %vm702_vm8, %v692_v25, %v695_v36 }
  0xf9   : > { %v707_v49 = vsel %vm705_vm12, %v695_v36, 2102212464  ;;  %v711_v40 = vsel %vm705_vm12, %v698_v44, 920167782  ;;  %v522_v51 = vadd.s32 %v521_v33, %v517_v32  ;;  %v706_v52 = vsel %vm702_vm8, %v686_v28, %v689_v24 }
  0xfa   : > { %v712_v53 = vsel %vm704_vm11, %v695_v36, %v711_v40  ;;  %v715_v55 = vsel %vm705_vm12, %v701_v46, 1326507024  ;;  %v708_v56 = vsel %vm704_vm11, %v692_v25, %v707_v49  ;;  %v578_v59 = vsel %vm577_vm7, %v9198_v35, 0 }
  0xfb   : > { %v713_v57 = vsel %vm703_vm10, %v710_v48, %v712_v53  ;;  %v716_v58 = vsel %vm704_vm11, %v698_v44, %v715_v55  ;;  %v523_v61 = vadd.s32 536870912, %v522_v51  ;;  %v566_v4 = vand.u32 2147483647, %v9187_v15 }
  0xfc   : > { %v717_v62 = vsel %vm703_vm10, %v714_v50, %v716_v58  ;;  %v9259_v63 = vmul.u32.u64.low %v9196_v34, %v713_v57  ;;  %v9260_v1 = vmul.u32.u64.high %v9196_v34, %v713_v57, %v9259_v63  ;;  %v580_v35 = vand.u32 31, %v578_v59 }
  0xfd   : > { %v9264_v2 = vmul.u32.u64.low %v9196_v34, %v717_v62  ;;  %v9265_v3 = vmul.u32.u64.high %v9196_v34, %v717_v62, %v9264_v2  ;;  %v9268_v5 = vshrl.u32 %v523_v61, 30  ;;  %v777_v6 = vand.u32 2139095040, %v9254_v60 }
  0xfe   : > { %v709_v7 = vsel %vm703_vm10, %v706_v52, %v708_v56  ;;  %v728_v12 = vadd.s32 1, %v9260_v1  ;;  %v581_v14 = vsub.s32 32, %v580_v35  ;;  %v573_v16 = vand.u32 8388607, %v566_v4 }
  0xff   : > { %v525_v8 = vshll.u32 %v9268_v5, 30  ;;  %vm727_vm13 = vc.u32 %v9265_v3, %v9259_v63  ;;  %v725_v18 = vmul.u32 %v9196_v34, %v709_v7  ;;  %v583_v19 = vshll.u32 %v15995_v37, %v580_v35 }
 0x100   : > { %v778_v20 = vshrl.u32 %v777_v6, 23  ;;  %v729_v39 = vsel %vm727_vm13, %v728_v12, %v9260_v1  ;;  %v584_v23 = vshrl.u32 %v15989_v41, %v581_v14  ;;  %v586_v24 = vshll.u32 %v15989_v41, %v580_v35 }
 0x101   : > { %v9279_v17 = vsub.s32 %v522_v51, %v525_v8  ;;  %v587_v25 = vshrl.u32 %v15984_v43, %v581_v14  ;;  %v579_v27 = vshrl.u32 %v578_v59, 5  ;;  %v589_v28 = vshll.u32 %v15984_v43, %v580_v35 }
 0x102   : > { %v590_v29 = vshrl.u32 %v15986_v45, %v581_v14  ;;  %v585_v30 = vor.u32 %v584_v23, %v583_v19  ;;  %v592_v31 = vshll.u32 %v15986_v45, %v580_v35  ;;  %v593_v32 = vshrl.u32 %v16000_v47, %v581_v14 }
 0x103   : > { %v528_v26 = vsub.s32 0, %v9279_v17  ;;  %v588_v34 = vor.u32 %v587_v25, %v586_v24  ;;  %v730_v36 = vadd.s32 %v729_v39, %v725_v18  ;;  %v595_v42 = vshll.u32 %v16000_v47, %v580_v35 }
 0x104   : > { %v591_v38 = vor.u32 %v590_v29, %v589_v28  ;;  %v596_v44 = vshrl.u32 %v15992_v54, %v581_v14  ;;  %v574_v46 = vor.u32 8388608, %v573_v16  ;;  %v594_v48 = vor.u32 %v593_v32, %v592_v31 }
 0x105   : > { %v8115_v33 = vmin.u32 %v528_v26, %v9279_v17  ;;  %vm598_vm14 = vcmp.lt.s32.totalorder %v579_v27, 1  ;;  %vm601_vm15 = vcmp.lt.s32.totalorder %v579_v27, 4  ;;  %vm600_vm1 = vcmp.lt.s32.totalorder %v579_v27, 3 }
 0x106   : > { %v597_v49 = vor.u32 %v596_v44, %v595_v42  ;;  %v606_v40 = vsel %vm598_vm14, %v585_v30, %v588_v34  ;;  %v607_v50 = vsel %vm601_vm15, %v594_v48, 920167782  ;;  %v610_v51 = vsel %vm598_vm14, %v588_v34, %v591_v38 }
 0x107   : > { %v731_v52 = vadd.s32 536870912, %v730_v36  ;;  %v608_v53 = vsel %vm600_vm1, %v591_v38, %v607_v50  ;;  %v8126_v56 = vadd.s32 4294967169, %v778_v20  ;;  %vm599_vm2 = vcmp.lt.s32.totalorder %v579_v27, 2 }
 0x108   : > { %v611_v55 = vsel %vm601_vm15, %v597_v49, 1326507024  ;;  %v614_v58 = vshll.u32 %v574_v46, 8  ;;  %v530_v59 = vclz %v8115_v33  ;;  %v609_v61 = vsel %vm599_vm2, %v606_v40, %v608_v53 }
 0x109   : > { %v612_v57 = vsel %vm600_vm1, %v594_v48, %v611_v55  ;;  %v603_v1 = vsel %vm601_vm15, %v591_v38, 2102212464  ;;  %v9304_v6 = vshrl.u32 %v731_v52, 30  ;;  %v582_v7 = vshrl.u32 %v15995_v37, %v581_v14 }
 0x10a   : > { %v613_v62 = vsel %vm599_vm2, %v610_v51, %v612_v57  ;;  %v784_v8 = vadd.s32 1, %v8126_v56  ;;  %v9307_v12 = vmul.u32.u64.low %v614_v58, %v609_v61  ;;  %v9308_v16 = vmul.u32.u64.high %v614_v58, %v609_v61, %v9307_v12 }
 0x10b   : > { %v9301_v2 = vmul.u32.u64.low %v614_v58, %v613_v62  ;;  %v9302_v35 = vmul.u32.u64.high %v614_v58, %v613_v62, %v9301_v2  ;;  %v8116_v18 = vadd.s32 4294967294, %v530_v59  ;;  %v602_v19 = vsel %vm598_vm14, %v582_v7, %v585_v30 }
 0x10c   : > { %v604_v20 = vsel %vm600_vm1, %v588_v34, %v603_v1  ;;  %vm785_vm3 = vcmp.gt.s32.totalorder %v784_v8, 0  ;;  %v733_v23 = vshll.u32 %v9304_v6, 30  ;;  %v15982_v24 = vand.u32 2147483647, %v9254_v60  ;;  %v9340_v1 = vpop.f32.mrf.mxu0 }
 0x10d   : > { %v786_v39 = vsel %vm785_vm3, %v784_v8, 0  ;;  %vm623_vm4 = vc.u32 %v9302_v35, %v9307_v12  ;;  %v605_v25 = vsel %vm599_vm2, %v602_v19, %v604_v20  ;;  %v624_v26 = vadd.s32 1, %v9308_v16  ;;  %16270 = vst [vmem:[#allocation9_spill] sm:$0xff] %v9340_v1 }
 0x10e   : > { %v788_v14 = vand.u32 31, %v786_v39  ;;  %vm8117_vm5 = vcmp.lt.s32.totalorder %v8116_v18, 0  ;;  %v9320_v30 = vsub.s32 %v730_v36, %v733_v23  ;;  %v621_v34 = vmul.u32 %v614_v58, %v605_v25 }
 0x10f   : > { %v625_v28 = vsel %vm623_vm4, %v624_v26, %v9308_v16  ;;  %v781_v31 = vand.u32 8388607, %v15982_v24  ;;  %v9324_v32 = vsel %vm8117_vm5, 0, %v8116_v18  ;;  %v787_v52 = vshrl.u32 %v786_v39, 5 }
 0x110   : > { %v789_v29 = vsub.s32 32, %v788_v14  ;;  %v626_v38 = vadd.s32 %v625_v28, %v621_v34  ;;  %v538_v44 = vsub.s32 4294967266, %v9324_v32  ;;  %v736_v46 = vsub.s32 0, %v9320_v30 }
 0x111   : > { %v782_v48 = vor.u32 8388608, %v781_v31  ;;  %v791_v36 = vshll.u32 %v15995_v37, %v788_v14  ;;  %v794_v49 = vshll.u32 %v15989_v41, %v788_v14  ;;  %v800_v40 = vshll.u32 %v15986_v45, %v788_v14 }
 0x112   : > { %v792_v42 = vshrl.u32 %v15989_v41, %v789_v29  ;;  %v795_v27 = vshrl.u32 %v15984_v43, %v789_v29  ;;  %v798_v33 = vshrl.u32 %v15986_v45, %v789_v29  ;;  %v801_v50 = vshrl.u32 %v16000_v47, %v789_v29 }
 0x113   : > { %v627_v51 = vadd.s32 536870912, %v626_v38  ;;  %v797_v53 = vshll.u32 %v15984_v43, %v788_v14  ;;  %v804_v55 = vshrl.u32 %v15992_v54, %v789_v29  ;;  %v803_v59 = vshll.u32 %v16000_v47, %v788_v14 }
 0x114   : > { %v793_v56 = vor.u32 %v792_v42, %v791_v36  ;;  %v796_v57 = vor.u32 %v795_v27, %v794_v49  ;;  %v802_v58 = vor.u32 %v801_v50, %v800_v40  ;;  %v518_v61 = vadd.s32 %v9229_v22, %v9226_v21 }
 0x115   : > { %v799_v62 = vor.u32 %v798_v33, %v797_v53  ;;  %v534_v2 = vsub.s32 32, %v9324_v32  ;;  %v8123_v7 = vmin.u32 %v736_v46, %v9320_v30  ;;  %v805_v8 = vor.u32 %v804_v55, %v803_v59 }
 0x116   : > { %v822_v16 = vshll.u32 %v782_v48, 8  ;;  %v539_v18 = vadd.s32 127, %v538_v44  ;;  %v9344_v19 = vshrl.u32 %v627_v51, 30  ;;  %vm806_vm6 = vcmp.lt.s32.totalorder %v787_v52, 1 }
 0x117   : > { %vm809_vm7 = vcmp.lt.s32.totalorder %v787_v52, 4  ;;  %vm808_vm8 = vcmp.lt.s32.totalorder %v787_v52, 3  ;;  %v814_v20 = vsel %vm806_vm6, %v793_v56, %v796_v57  ;;  %v881_v21 = vand.u32 2139095040, %v9340_v1 }
 0x118   : > { %v815_v39 = vsel %vm809_vm7, %v802_v58, 920167782  ;;  %vm807_vm9 = vcmp.lt.s32.totalorder %v787_v52, 2  ;;  %v811_v22 = vsel %vm809_vm7, %v799_v62, 2102212464  ;;  %v818_v14 = vsel %vm806_vm6, %v796_v57, %v799_v62 }
 0x119   : > { %v816_v23 = vsel %vm808_vm8, %v799_v62, %v815_v39  ;;  %v738_v25 = vclz %v8123_v7  ;;  %v790_v26 = vshrl.u32 %v15995_v37, %v789_v29  ;;  %v819_v34 = vsel %vm809_vm7, %v805_v8, 1326507024 }
 0x11a   : > { %v817_v28 = vsel %vm807_vm9, %v814_v20, %v816_v23  ;;  %v629_v31 = vshll.u32 %v9344_v19, 30  ;;  %v820_v42 = vsel %vm808_vm8, %v802_v58, %v819_v34  ;;  %v812_v48 = vsel %vm808_vm8, %v796_v57, %v811_v22 }
 0x11b   : > { %v9354_v27 = vmul.u32.u64.low %v822_v16, %v817_v28  ;;  %v9355_v44 = vmul.u32.u64.high %v822_v16, %v817_v28, %v9354_v27  ;;  %v810_v46 = vsel %vm806_vm6, %v790_v26, %v793_v56  ;;  %v821_v33 = vsel %vm807_vm9, %v818_v14, %v820_v42 }
 0x11c   : > { %v882_v36 = vshrl.u32 %v881_v21, 23  ;;  %v536_v49 = vshrl.u32 %v518_v61, %v534_v2  ;;  %v9361_v29 = vmul.u32.u64.low %v822_v16, %v821_v33  ;;  %v9362_v40 = vmul.u32.u64.high %v822_v16, %v821_v33, %v9361_v29 }
 0x11d   : > { %v540_v50 = vshll.u32 %v539_v18, 23  ;;  %v535_v53 = vshll.u32 %v9279_v17, %v9324_v32  ;;  %v9366_v55 = vsub.s32 %v626_v38, %v629_v31  ;;  %v813_v58 = vsel %vm807_vm9, %v810_v46, %v812_v48 }
 0x11e   : > { %v8130_v51 = vadd.s32 4294967169, %v882_v36  ;;  %v832_v56 = vadd.s32 1, %v9355_v44  ;;  %v8124_v59 = vadd.s32 4294967294, %v738_v25  ;;  %v829_v8 = vmul.u32 %v822_v16, %v813_v58  ;;  %v9381_v25 = vpop.f32.mrf.mxu1 }
 0x11f   : > { %v537_v62 = vor.u32 %v536_v49, %v535_v53  ;;  %v541_v7 = vor.u32 4788187, %v540_v50  ;;  %vm831_vm10 = vc.u32 %v9362_v40, %v9354_v27  ;;  %v632_v61 = vsub.s32 0, %v9366_v55  ;;  %16271 = vst [vmem:[#allocation10_spill] sm:$0xff] %v9381_v25 }
 0x120   : > { %v888_v57 = vadd.s32 1, %v8130_v51  ;;  %v833_v2 = vsel %vm831_vm10, %v832_v56, %v9355_v44  ;;  %v15981_v17 = vand.u32 2147483647, %v9340_v1  ;;  %vm8125_vm12 = vcmp.lt.s32.totalorder %v8124_v59, 0 }
 0x121   : > { %v834_v38 = vadd.s32 %v833_v2, %v829_v8  ;;  %v542_v18 = vand.u32 2147483647, %v541_v7  ;;  %v544_v20 = vcvt.s32.f32 %v537_v62  ;;  %v9375_v22 = vsel %vm8125_vm12, 0, %v8124_v59 }
 0x122   : > { %vm889_vm11 = vcmp.gt.s32.totalorder %v888_v57, 0  ;;  %v8119_v16 = vmin.u32 %v632_v61, %v9366_v55  ;;  %v885_v23 = vand.u32 8388607, %v15981_v17  ;;  %v1089_v29 = vand.u32 2139095040, %v9381_v25 }
 0x123   : > { %v890_v32 = vsel %vm889_vm11, %v888_v57, 0  ;;  %v835_v39 = vadd.s32 536870912, %v834_v38  ;;  %v726_v56 = vadd.s32 %v9259_v63, %v9265_v3  ;;  %v742_v59 = vsub.s32 32, %v9375_v22 }
 0x124   : > { %v892_v52 = vand.u32 31, %v890_v32  ;;  %v891_v42 = vshrl.u32 %v890_v32, 5  ;;  %v746_v57 = vsub.s32 4294967266, %v9375_v22  ;;  %v545_v7 = vmul.f32 %v544_v20, %v542_v18 }
 0x125   : > { %v9383_v26 = vshrl.u32 %v835_v39, 30  ;;  %v886_v8 = vor.u32 8388608, %v885_v23  ;;  %v634_v2 = vclz %v8119_v16  ;;  %v1090_v39 = vshrl.u32 %v1089_v29, 23 }
 0x126   : > { %v893_v21 = vsub.s32 32, %v892_v52  ;;  %v895_v14 = vshll.u32 %v15995_v37, %v892_v52  ;;  %v898_v34 = vshll.u32 %v15989_v41, %v892_v52  ;;  %v904_v46 = vshll.u32 %v15986_v45, %v892_v52 }
 0x127   : > { %v901_v49 = vshll.u32 %v15984_v43, %v892_v52  ;;  %v837_v50 = vshll.u32 %v9383_v26, 30  ;;  %v907_v53 = vshll.u32 %v16000_v47, %v892_v52  ;;  %vm910_vm13 = vcmp.lt.s32.totalorder %v891_v42, 1 }
 0x128   : > { %v896_v28 = vshrl.u32 %v15989_v41, %v893_v21  ;;  %v899_v31 = vshrl.u32 %v15984_v43, %v893_v21  ;;  %v902_v44 = vshrl.u32 %v15986_v45, %v893_v21  ;;  %v905_v48 = vshrl.u32 %v16000_v47, %v893_v21 }
 0x129   : > { %v908_v58 = vshrl.u32 %v15992_v54, %v893_v21  ;;  %vm913_vm14 = vcmp.lt.s32.totalorder %v891_v42, 4  ;;  %v9401_v52 = vsub.s32 %v834_v38, %v837_v50  ;;  %vm912_vm15 = vcmp.lt.s32.totalorder %v891_v42, 3 }
 0x12a   : > { %v897_v33 = vor.u32 %v896_v28, %v895_v14  ;;  %v900_v36 = vor.u32 %v899_v31, %v898_v34  ;;  %v906_v51 = vor.u32 %v905_v48, %v904_v46  ;;  %v903_v62 = vor.u32 %v902_v44, %v901_v49 }
 0x12b   : > { %v909_v61 = vor.u32 %v908_v58, %v907_v53  ;;  %v894_v14 = vshrl.u32 %v15995_v37, %v893_v21  ;;  %vm911_vm1 = vcmp.lt.s32.totalorder %v891_v42, 2  ;;  %v747_v18 = vadd.s32 127, %v746_v57 }
 0x12c   : > { %v918_v32 = vsel %vm910_vm13, %v897_v33, %v900_v36  ;;  %v919_v63 = vsel %vm913_vm14, %v906_v51, 920167782  ;;  %v915_v3 = vsel %vm913_vm14, %v903_v62, 2102212464  ;;  %v922_v34 = vsel %vm910_vm13, %v900_v36, %v903_v62 }
 0x12d   : > { %v920_v28 = vsel %vm912_vm15, %v903_v62, %v919_v63  ;;  %v923_v23 = vsel %vm913_vm14, %v909_v61, 1326507024  ;;  %v926_v16 = vshll.u32 %v886_v8, 8  ;;  %v8120_v31 = vadd.s32 4294967294, %v634_v2 }
 0x12e   : > { %v921_v20 = vsel %vm911_vm1, %v918_v32, %v920_v28  ;;  %v914_v44 = vsel %vm910_vm13, %v894_v14, %v897_v33  ;;  %v924_v46 = vsel %vm912_vm15, %v906_v51, %v923_v23  ;;  %v8138_v38 = vadd.s32 4294967169, %v1090_v39 }
 0x12f   : > { %v916_v48 = vsel %vm912_vm15, %v900_v36, %v915_v3  ;;  %v925_v21 = vsel %vm911_vm1, %v922_v34, %v924_v46  ;;  %v9408_v49 = vmul.u32.u64.low %v926_v16, %v921_v20  ;;  %v9409_v29 = vmul.u32.u64.high %v926_v16, %v921_v20, %v9408_v49  ;;  %v9429_v3 = vpop.f32.mrf.mxu0 }
 0x130   : > { %v840_v50 = vsub.s32 0, %v9401_v52  ;;  %v9413_v53 = vmul.u32.u64.low %v926_v16, %v925_v21  ;;  %v9414_v58 = vmul.u32.u64.high %v926_v16, %v925_v21, %v9413_v53  ;;  %v1096_v57 = vadd.s32 1, %v8138_v38  ;;  %16272 = vst [vmem:[#allocation11_spill] sm:$0xff] %v9429_v3 }
 0x131   : > { %vm464_vm2 = vcmp.lt.s32.totalorder %v9179_v9, 0  ;;  %v744_v62 = vshrl.u32 %v726_v56, %v742_v59  ;;  %v546_v8 = vxor.u32 2147483648, %v545_v7  ;;  %vm8121_vm3 = vcmp.lt.s32.totalorder %v8120_v31, 0 }
 0x132   : > { %v917_v33 = vsel %vm911_vm1, %v914_v44, %v916_v48  ;;  %vm1097_vm4 = vcmp.gt.s32.totalorder %v1096_v57, 0  ;;  %v748_v36 = vshll.u32 %v747_v18, 23  ;;  %v936_v51 = vadd.s32 1, %v9409_v29 }
 0x133   : > { %v15980_v61 = vand.u32 2147483647, %v9381_v25  ;;  %v1098_v2 = vsel %vm1097_vm4, %v1096_v57, 0  ;;  %v548_v32 = vsub.s32 4, %v9268_v5  ;;  %v743_v39 = vshll.u32 %v9320_v30, %v9375_v22 }
 0x134   : > { %v756_v14 = vsub.s32 4, %v9304_v6  ;;  %v8127_v56 = vmin.u32 %v840_v50, %v9401_v52  ;;  %v9425_v59 = vsel %vm8121_vm3, 0, %v8120_v31  ;;  %v933_v42 = vmul.u32 %v926_v16, %v917_v33 }
 0x135   : > { %vm935_vm5 = vc.u32 %v9414_v58, %v9408_v49  ;;  %v1100_v63 = vand.u32 31, %v1098_v2  ;;  %v9433_v28 = vsel %vm464_vm2, %v546_v8, %v545_v7  ;;  %v9435_v34 = vor.u32 %v744_v62, %v743_v39 }
 0x136   : > { %v622_v30 = vadd.s32 %v9307_v12, %v9302_v35  ;;  %v937_v22 = vsel %vm935_vm5, %v936_v51, %v9409_v29  ;;  %v9440_v18 = vor.u32 4788187, %v748_v36  ;;  %v1093_v23 = vand.u32 8388607, %v15980_v61 }
 0x137   : > { %v938_v20 = vadd.s32 %v937_v22, %v933_v42  ;;  %v1101_v16 = vsub.s32 32, %v1100_v63  ;;  %v638_v31 = vsub.s32 32, %v9425_v59  ;;  %v642_v44 = vsub.s32 4294967266, %v9425_v59 }
 0x138   : > { %v842_v7 = vclz %v8127_v56  ;;  %v985_v46 = vand.u32 2139095040, %v9429_v3  ;;  %v1103_v48 = vshll.u32 %v15995_v37, %v1100_v63  ;;  %v1106_v21 = vshll.u32 %v15989_v41, %v1100_v63 }
 0x139   : > { %v939_v38 = vadd.s32 536870912, %v938_v20  ;;  %v1104_v35 = vshrl.u32 %v15989_v41, %v1101_v16  ;;  %v1107_v12 = vshrl.u32 %v15984_v43, %v1101_v16  ;;  %v1109_v29 = vshll.u32 %v15984_v43, %v1100_v63 }
 0x13a   : > { %v1110_v50 = vshrl.u32 %v15986_v45, %v1101_v16  ;;  %v1113_v53 = vshrl.u32 %v16000_v47, %v1101_v16  ;;  %v1094_v57 = vor.u32 8388608, %v1093_v23  ;;  %v1099_v62 = vshrl.u32 %v1098_v2, 5 }
 0x13b   : > { %v1105_v8 = vor.u32 %v1104_v35, %v1103_v48  ;;  %v1112_v33 = vshll.u32 %v15986_v45, %v1100_v63  ;;  %v1108_v36 = vor.u32 %v1107_v12, %v1106_v21  ;;  %v1115_v39 = vshll.u32 %v16000_v47, %v1100_v63 }
 0x13c   : > { %v1111_v51 = vor.u32 %v1110_v50, %v1109_v29  ;;  %v1116_v56 = vshrl.u32 %v15992_v54, %v1101_v16  ;;  %vm672_vm6 = vcmp.lt.s32.totalorder %v9181_v10, 0  ;;  %v750_v42 = vand.u32 2147483647, %v9440_v18 }
 0x13d   : > { %v752_v22 = vcvt.s32.f32 %v9435_v34  ;;  %v9460_v0 = vshrl.u32 %v939_v38, 30  ;;  %v1114_v61 = vor.u32 %v1113_v53, %v1112_v33  ;;  %vm9464_vm7 = vcmp.le.f32.partialorder %v462_v11, 0.7853982 }
 0x13e   : > { %v16273_v2 = vmov 0  ;;  %v639_v63 = vshll.u32 %v9366_v55, %v9425_v59  ;;  %v640_v23 = vshrl.u32 %v622_v30, %v638_v31  ;;  %v1117_v48 = vor.u32 %v1116_v56, %v1115_v39 }
 0x13f   : > { %v16274_v2 = vsel %vm9464_vm7, 4294967295, %v16273_v2  ;;  %v986_v35 = vshrl.u32 %v985_v46, 23  ;;  %v643_v12 = vadd.s32 127, %v642_v44  ;;  %v8128_v21 = vadd.s32 4294967294, %v842_v7 }
 0x140   : > { %16275 = vst [vmem:[#allocation12_spill] sm:$0xff] %v16274_v2  ;;  %vm1118_vm8 = vcmp.lt.s32.totalorder %v1099_v62, 1  ;;  %vm1121_vm9 = vcmp.lt.s32.totalorder %v1099_v62, 4  ;;  %v1102_v34 = vshrl.u32 %v15995_v37, %v1101_v16  ;;  %v1134_v29 = vshll.u32 %v1094_v57, 8 }
 0x141   : > { %v1123_v18 = vsel %vm1121_vm9, %v1111_v51, 2102212464  ;;  %v1126_v38 = vsel %vm1118_vm8, %v1105_v8, %v1108_v36  ;;  %vm9473_vm10 = vcmp.le.f32.partialorder %v670_v13, 0.7853982  ;;  %v16276_v11 = vmov 0 }
 0x142   : > { %v16277_v11 = vsel %vm9473_vm10, 4294967295, %v16276_v11  ;;  %v941_v55 = vshll.u32 %v9460_v0, 30  ;;  %vm1120_vm11 = vcmp.lt.s32.totalorder %v1099_v62, 3  ;;  %v1127_v59 = vsel %vm1121_vm9, %v1114_v61, 920167782 }
 0x143   : > { %16278 = vst [vmem:[#allocation13_spill] sm:$0xff] %v16277_v11  ;;  %v1130_v30 = vsel %vm1118_vm8, %v1108_v36, %v1111_v51  ;;  %vm1119_vm12 = vcmp.lt.s32.totalorder %v1099_v62, 2  ;;  %v1128_v31 = vsel %vm1120_vm11, %v1111_v51, %v1127_v59  ;;  %v1131_v44 = vsel %vm1121_vm9, %v1117_v48, 1326507024 }
 0x144   : > { %v8134_v7 = vadd.s32 4294967169, %v986_v35  ;;  %v1122_v46 = vsel %vm1118_vm8, %v1102_v34, %v1105_v8  ;;  %v1124_v16 = vsel %vm1120_vm11, %v1108_v36, %v1123_v18  ;;  %v1129_v50 = vsel %vm1119_vm12, %v1126_v38, %v1128_v31 }
 0x145   : > { %v1132_v53 = vsel %vm1120_vm11, %v1114_v61, %v1131_v44  ;;  %v644_v57 = vshll.u32 %v643_v12, 23  ;;  %v9480_v33 = vmul.u32.u64.low %v1134_v29, %v1129_v50  ;;  %v9481_v39 = vmul.u32.u64.high %v1134_v29, %v1129_v50, %v9480_v33 }
 0x146   : > { %v1133_v13 = vsel %vm1119_vm12, %v1130_v30, %v1132_v53  ;;  %vm8129_vm13 = vcmp.lt.s32.totalorder %v8128_v21, 0  ;;  %v9484_v56 = vsub.s32 %v938_v20, %v941_v55  ;;  %v9494_v8 = vsel %vm464_vm2, %v548_v32, %v9268_v5 }
 0x147   : > { %v9486_v17 = vmul.u32.u64.low %v1134_v29, %v1133_v13  ;;  %v9487_v24 = vmul.u32.u64.high %v1134_v29, %v1133_v13, %v9486_v17  ;;  %16279 = vst [vmem:[#allocation14_spill] sm:$0xff] %v9494_v8  ;;  %v9501_v61 = vsel %vm672_vm6, %v756_v14, %v9304_v6  ;;  %v1125_v20 = vsel %vm1119_vm12, %v1122_v46, %v1124_v16 }
 0x148   : > { %16280 = vst [vmem:[#allocation15_spill] sm:$0xff] %v9501_v61  ;;  %v992_v36 = vadd.s32 1, %v8134_v7  ;;  %v9508_v17 = vsel %vm9464_vm7, %v9179_v9, %v9433_v28  ;;  %v9510_v51 = vmul.f32 %v752_v22, %v750_v42  ;;  %v641_v5 = vor.u32 %v640_v23, %v639_v63 }
 0x149   : > { %v15983_v32 = vand.u32 2147483647, %v9429_v3  ;;  %v645_v48 = vor.u32 4788187, %v644_v57  ;;  %v9513_v35 = vsel %vm8129_vm13, 0, %v8128_v21  ;;  %v1144_v6 = vadd.s32 1, %v9481_v39 }
 0x14a   : > { %vm993_vm14 = vcmp.gt.s32.totalorder %v992_v36, 0  ;;  %v944_v14 = vsub.s32 0, %v9484_v56  ;;  %v1141_v62 = vmul.u32 %v1134_v29, %v1125_v20  ;;  %vm1143_vm15 = vc.u32 %v9487_v24, %v9480_v33 }
 0x14b   : > { %v994_v12 = vsel %vm993_vm14, %v992_v36, 0  ;;  %v1145_v22 = vsel %vm1143_vm15, %v1144_v6, %v9481_v39  ;;  %8737 = vcosq.f32 %v9508_v17  ;;  %v754_v23 = vxor.u32 2147483648, %v9510_v51 }
 0x14c   : > { %v996_v63 = vand.u32 31, %v994_v12  ;;  %v652_v21 = vsub.s32 4, %v9344_v19  ;;  %v1146_v34 = vadd.s32 %v1145_v22, %v1141_v62  ;;  %v648_v18 = vcvt.s32.f32 %v641_v5  ;;  %v9547_v62 = vpop.f32.mrf.mxu1 }
 0x14d   : > { %v830_v38 = vadd.s32 %v9354_v27, %v9362_v40  ;;  %v850_v29 = vsub.s32 4294967266, %v9513_v35  ;;  %v646_v59 = vand.u32 2147483647, %v645_v48  ;;  %v8131_v30 = vmin.u32 %v944_v14, %v9484_v56  ;;  %16281 = vst [vmem:[#allocation16_spill] sm:$0xff] %v9547_v62 }
 0x14e   : > { %v997_v55 = vsub.s32 32, %v996_v63  ;;  %v1147_v31 = vadd.s32 536870912, %v1146_v34  ;;  %v989_v44 = vand.u32 8388607, %v15983_v32  ;;  %v846_v7 = vsub.s32 32, %v9513_v35 }
 0x14f   : > { %v999_v27 = vshll.u32 %v15995_v37, %v996_v63  ;;  %v1002_v40 = vshll.u32 %v15989_v41, %v996_v63  ;;  %v851_v13 = vadd.s32 127, %v850_v29  ;;  %v995_v39 = vshrl.u32 %v994_v12, 5 }
 0x150   : > { %v1000_v46 = vshrl.u32 %v15989_v41, %v997_v55  ;;  %v1003_v16 = vshrl.u32 %v15984_v43, %v997_v55  ;;  %v1006_v50 = vshrl.u32 %v15986_v45, %v997_v55  ;;  %v9539_v53 = vshrl.u32 %v1147_v31, 30 }
 0x151   : > { %v1009_v57 = vshrl.u32 %v16000_v47, %v997_v55  ;;  %v1005_v20 = vshll.u32 %v15984_v43, %v996_v63  ;;  %v1008_v36 = vshll.u32 %v15986_v45, %v996_v63  ;;  %v946_v5 = vclz %v8131_v30 }
 0x152   : > { %v1149_v48 = vshll.u32 %v9539_v53, 30  ;;  %v1001_v6 = vor.u32 %v1000_v46, %v999_v27  ;;  %v1004_v14 = vor.u32 %v1003_v16, %v1002_v40  ;;  %v1011_v42 = vshll.u32 %v16000_v47, %v996_v63 }
 0x153   : > { %v1007_v22 = vor.u32 %v1006_v50, %v1005_v20  ;;  %v1010_v31 = vor.u32 %v1009_v57, %v1008_v36  ;;  %v1012_v28 = vshrl.u32 %v15992_v54, %v997_v55  ;;  %v649_v32 = vmul.f32 %v648_v18, %v646_v59 }
 0x154   : > { %v847_v12 = vshll.u32 %v9401_v52, %v9513_v35  ;;  %v848_v29 = vshrl.u32 %v830_v38, %v846_v7  ;;  %v990_v43 = vor.u32 8388608, %v989_v44  ;;  %v852_v45 = vshll.u32 %v851_v13, 23 }
 0x155   : > { %v1013_v30 = vor.u32 %v1012_v28, %v1011_v42  ;;  %vm1014_vm1 = vcmp.lt.s32.totalorder %v995_v39, 1  ;;  %v1193_v46 = vand.u32 2139095040, %v9547_v62  ;;  %vm568_vm2 = vcmp.lt.s32.totalorder %v9187_v15, 0 }
 0x156   : > { %v8132_v16 = vadd.s32 4294967294, %v946_v5  ;;  %v9555_v50 = vsub.s32 %v1146_v34, %v1149_v48  ;;  %vm1017_vm3 = vcmp.lt.s32.totalorder %v995_v39, 4  ;;  %v1022_v63 = vsel %vm1014_vm1, %v1001_v6, %v1004_v14  ;;  %v9578_v48 = vpop.f32.mrf.mxu0 }
 0x157   : > { %vm1016_vm4 = vcmp.lt.s32.totalorder %v995_v39, 3  ;;  %v1023_v18 = vsel %vm1017_vm3, %v1010_v31, 920167782  ;;  %v1026_v59 = vsel %vm1014_vm1, %v1004_v14, %v1007_v22  ;;  %v1027_v52 = vsel %vm1017_vm3, %v1013_v30, 1326507024 }
 0x158   : > { %v998_v35 = vshrl.u32 %v15995_v37, %v997_v55  ;;  %vm1015_vm5 = vcmp.lt.s32.totalorder %v995_v39, 2  ;;  %v1019_v28 = vsel %vm1017_vm3, %v1007_v22, 2102212464  ;;  %v1024_v42 = vsel %vm1016_vm4, %v1007_v22, %v1023_v18  ;;  %v9561_v38 = vpop.eup %8737 }
 0x159   : > { %16282 = vst [vmem:[#allocation17_spill] sm:$0xff] %v9561_v38  ;;  %v1025_v44 = vsel %vm1015_vm5, %v1022_v63, %v1024_v42  ;;  %v1028_v34 = vsel %vm1016_vm4, %v1010_v31, %v1027_v52  ;;  %v1030_v7 = vshll.u32 %v990_v43, 8  ;;  %v1194_v27 = vshrl.u32 %v1193_v46, 23 }
 0x15a   : > { %vm8133_vm8 = vcmp.lt.s32.totalorder %v8132_v16, 0  ;;  %v1152_v40 = vsub.s32 0, %v9555_v50  ;;  %v1018_v57 = vsel %vm1014_vm1, %v998_v35, %v1001_v6  ;;  %v1029_v13 = vsel %vm1015_vm5, %v1026_v59, %v1028_v34 }
 0x15b   : > { %vm9570_vm9 = vcmp.le.f32.partialorder %v566_v4, 0.7853982  ;;  %v16283_v55 = vmov 0  ;;  %v1020_v20 = vsel %vm1016_vm4, %v1004_v14, %v1019_v28  ;;  %v8142_v43 = vadd.s32 4294967169, %v1194_v27 }
 0x15c   : > { %v16284_v55 = vsel %vm9570_vm9, 4294967295, %v16283_v55  ;;  %v9575_v36 = vmul.u32.u64.low %v1030_v7, %v1029_v13  ;;  %v9576_v5 = vmul.u32.u64.high %v1030_v7, %v1029_v13, %v9575_v36  ;;  %v650_v22 = vxor.u32 2147483648, %v649_v32 }
 0x15d   : > { %16285 = vst [vmem:[#allocation18_spill] sm:$0xff] %v16284_v55  ;;  %v853_v31 = vor.u32 4788187, %v852_v45  ;;  %v9580_v30 = vmul.u32.u64.low %v1030_v7, %v1025_v44  ;;  %v9581_v6 = vmul.u32.u64.high %v1030_v7, %v1025_v44, %v9580_v30  ;;  %v755_v4 = vsel %vm672_vm6, %v754_v23, %v9510_v51 }
 0x15e   : > { %v849_v46 = vor.u32 %v848_v29, %v847_v12  ;;  %v15988_v14 = vand.u32 2147483647, %v9547_v62  ;;  %v1200_v63 = vadd.s32 1, %v8142_v43  ;;  %v9591_v18 = vsel %vm8133_vm8, 0, %v8132_v16 }
 0x15f   : > { %v8139_v59 = vmin.u32 %v1152_v40, %v9555_v50  ;;  %v1021_v45 = vsel %vm1015_vm5, %v1018_v57, %v1020_v20  ;;  %v1297_v52 = vand.u32 2139095040, %v9578_v48  ;;  %8739 = vsinq.f32 %v9508_v17 }
 0x160   : > { %v9602_v51 = vsel %vm568_vm2, %v652_v21, %v9344_v19  ;;  %vm1039_vm6 = vc.u32 %v9576_v5, %v9580_v30  ;;  %vm1201_vm11 = vcmp.gt.s32.totalorder %v1200_v63, 0  ;;  %v9609_v23 = vsel %vm9473_vm10, %v9181_v10, %v755_v4 }
 0x161   : > { %16286 = vst [vmem:[#allocation19_spill] sm:$0xff] %v9602_v51  ;;  %v651_v39 = vsel %vm568_vm2, %v650_v22, %v649_v32  ;;  %v854_v17 = vand.u32 2147483647, %v853_v31  ;;  %v1040_v12 = vadd.s32 1, %v9581_v6  ;;  %v950_v29 = vsub.s32 32, %v9591_v18 }
 0x162   : > { %v1037_v16 = vmul.u32 %v1030_v7, %v1021_v45  ;;  %v1197_v19 = vand.u32 8388607, %v15988_v14  ;;  %v1202_v21 = vsel %vm1201_vm11, %v1200_v63, 0  ;;  %v856_v35 = vcvt.s32.f32 %v849_v46 }
 0x163   : > { %v1154_v28 = vclz %v8139_v59  ;;  %v1041_v42 = vsel %vm1039_vm6, %v1040_v12, %v9581_v6  ;;  %v1298_v44 = vshrl.u32 %v1297_v52, 23  ;;  %8741 = vcosq.f32 %v9609_v23 }
 0x164   : > { %v934_v32 = vadd.s32 %v9408_v49, %v9414_v58  ;;  %v1042_v34 = vadd.s32 %v1041_v42, %v1037_v16  ;;  %v1204_v27 = vand.u32 31, %v1202_v21  ;;  %v9624_v7 = vsel %vm9570_vm9, %v9187_v15, %v651_v39 }
 0x165   : > { %v9626_v40 = vmul.f32 %v856_v35, %v854_v17  ;;  %v954_v13 = vsub.s32 4294967266, %v9591_v18  ;;  %v1198_v43 = vor.u32 8388608, %v1197_v19  ;;  %v8140_v31 = vadd.s32 4294967294, %v1154_v28 }
 0x166   : > { %v952_v20 = vshrl.u32 %v934_v32, %v950_v29  ;;  %v1043_v36 = vadd.s32 536870912, %v1042_v34  ;;  %v1205_v22 = vsub.s32 32, %v1204_v27  ;;  %v1203_v6 = vshrl.u32 %v1202_v21, 5 }
 0x167   : > { %v1207_v49 = vshll.u32 %v15995_v37, %v1204_v27  ;;  %v8146_v58 = vadd.s32 4294967169, %v1298_v44  ;;  %v1210_v63 = vshll.u32 %v15989_v41, %v1204_v27  ;;  %v16287_v59 = vmov 2131351028  }
 0x168   : > { %v9631_v4 = vshrl.u32 %v1043_v36, 30  ;;  %v1208_v46 = vshrl.u32 %v15989_v41, %v1205_v22  ;;  %v1211_v45 = vshrl.u32 %v16287_v59, %v1205_v22  ;;  %v1213_v52 = vshll.u32 %v16287_v59, %v1204_v27 }
 0x169   : > { %v16288_v39 = vmov 2102212464   ;;  %v1217_v29 = vshrl.u32 %v16000_v47, %v1205_v22  ;;  %v955_v16 = vadd.s32 127, %v954_v13  ;;  %v1219_v44 = vshll.u32 %v16000_v47, %v1204_v27 }
 0x16a   : > { %v1214_v17 = vshrl.u32 %v16288_v39, %v1205_v22  ;;  %v1216_v12 = vshll.u32 %v16288_v39, %v1204_v27  ;;  %v1045_v19 = vshll.u32 %v9631_v4, 30  ;;  %v1209_v21 = vor.u32 %v1208_v46, %v1207_v49 }
 0x16b   : > { %v1212_v35 = vor.u32 %v1211_v45, %v1210_v63  ;;  %v1220_v32 = vshrl.u32 %v15992_v54, %v1205_v22  ;;  %vm8141_vm12 = vcmp.lt.s32.totalorder %v8140_v31, 0  ;;  %v1238_v14 = vshll.u32 %v1198_v43, 8 }
 0x16c   : > { %v1215_v28 = vor.u32 %v1214_v17, %v1213_v52  ;;  %v1218_v42 = vor.u32 %v1217_v29, %v1216_v12  ;;  %v9643_v36 = vsub.s32 %v1042_v34, %v1045_v19  ;;  %v1304_v41 = vadd.s32 1, %v8146_v58  ;;  %v9645_v57 = vpop.eup %8739 }
 0x16d   : > { %16289 = vst [vmem:[#allocation20_spill] sm:$0xff] %v9645_v57  ;;  %vm776_vm13 = vcmp.lt.s32.totalorder %v9254_v60, 0  ;;  %v1206_v13 = vshrl.u32 %v15995_v37, %v1205_v22  ;;  %v1221_v10 = vor.u32 %v1220_v32, %v1219_v44  ;;  %vm1222_vm14 = vcmp.lt.s32.totalorder %v1203_v6, 1 }
 0x16e   : > { %vm1225_vm15 = vcmp.lt.s32.totalorder %v1203_v6, 4  ;;  %vm1224_vm1 = vcmp.lt.s32.totalorder %v1203_v6, 3  ;;  %v1230_v46 = vsel %vm1222_vm14, %v1209_v21, %v1212_v35  ;;  %v1048_v63 = vsub.s32 0, %v9643_v36 }
 0x16f   : > { %v1227_v49 = vsel %vm1225_vm15, %v1215_v28, 2102212464  ;;  %v1231_v27 = vsel %vm1225_vm15, %v1218_v42, 920167782  ;;  %vm1223_vm2 = vcmp.lt.s32.totalorder %v1203_v6, 2  ;;  %v1234_v45 = vsel %vm1222_vm14, %v1212_v35, %v1215_v28 }
 0x170   : > { %v1232_v34 = vsel %vm1224_vm1, %v1215_v28, %v1231_v27  ;;  %v956_v43 = vshll.u32 %v955_v16, 23  ;;  %v1226_v58 = vsel %vm1222_vm14, %v1206_v13, %v1209_v21  ;;  %v1235_v17 = vsel %vm1225_vm15, %v1221_v10, 1326507024  ;;  %v9651_v12 = vpop.eup %8741 }
 0x171   : > { %v1233_v52 = vsel %vm1223_vm2, %v1230_v46, %v1232_v34  ;;  %16290 = vst [vmem:[#allocation21_spill] sm:$0xff] %v9651_v12  ;;  %v1228_v22 = vsel %vm1224_vm1, %v1212_v35, %v1227_v49  ;;  %v1236_v29 = vsel %vm1224_vm1, %v1218_v42, %v1235_v17  ;;  %v951_v32 = vshll.u32 %v9484_v56, %v9591_v18 }
 0x172   : > { %v9653_v19 = vmul.u32.u64.low %v1238_v14, %v1233_v52  ;;  %v9654_v44 = vmul.u32.u64.high %v1238_v14, %v1233_v52, %v9653_v19  ;;  %v9660_v54 = vsel %vm8141_vm12, 0, %v8140_v31  ;;  %v1237_v16 = vsel %vm1223_vm2, %v1234_v45, %v1236_v29  ;;  %v9702_v29 = vpop.f32.mrf.mxu1 }
 0x173   : > { %v15994_v21 = vand.u32 2147483647, %v9578_v48  ;;  %v8135_v10 = vmin.u32 %v1048_v63, %v9643_v36  ;;  %v9665_v28 = vmul.u32.u64.low %v1238_v14, %v1237_v16  ;;  %v9666_v13 = vmul.u32.u64.high %v1238_v14, %v1237_v16, %v9665_v28 }
 0x174   : > { %vm1305_vm3 = vcmp.gt.s32.totalorder %v1304_v41, 0  ;;  %v858_v35 = vxor.u32 2147483648, %v9626_v40  ;;  %v9669_v42 = vor.u32 %v952_v20, %v951_v32  ;;  %v1229_v49 = vsel %vm1223_vm2, %v1226_v58, %v1228_v22 }
 0x175   : > { %v1306_v56 = vsel %vm1305_vm3, %v1304_v41, 0  ;;  %8743 = vsinq.f32 %v9609_v23  ;;  %v9673_v18 = vor.u32 4788187, %v956_v43  ;;  %v1248_v31 = vadd.s32 1, %v9654_v44 }
 0x176   : > { %v1308_v46 = vand.u32 31, %v1306_v56  ;;  %8745 = vcosq.f32 %v9624_v7  ;;  %v16291_v27 = vsub.s32 4, %v9383_v26  ;;  %v1162_v20 = vsub.s32 4294967266, %v9660_v54 }
 0x177   : > { %v1301_v41 = vand.u32 8388607, %v15994_v21  ;;  %v1050_v23 = vclz %v8135_v10  ;;  %v1245_v6 = vmul.u32 %v1238_v14, %v1229_v49  ;;  %vm1247_vm4 = vc.u32 %v9666_v13, %v9653_v19 }
 0x178   : > { %v9682_v63 = vsel %vm776_vm13, %v16291_v27, %v9383_v26  ;;  %v1309_v34 = vsub.s32 32, %v1308_v46  ;;  %v9692_v45 = vsel %vm776_vm13, %v858_v35, %v9626_v40  ;;  %v960_v43 = vcvt.s32.f32 %v9669_v42 }
 0x179   : > { %16292 = vst [vmem:[#allocation22_spill] sm:$0xff] %v9682_v63  ;;  %v1142_v26 = vadd.s32 %v9480_v33, %v9487_v24  ;;  %v1249_v58 = vsel %vm1247_vm4, %v1248_v31, %v9654_v44  ;;  %v958_v52 = vand.u32 2147483647, %v9673_v18  ;;  %v1158_v14 = vsub.s32 32, %v9660_v54 }
 0x17a   : > { %v1159_v17 = vshll.u32 %v9555_v50, %v9660_v54  ;;  %v1250_v22 = vadd.s32 %v1249_v58, %v1245_v6  ;;  %v1163_v32 = vadd.s32 127, %v1162_v20  ;;  %v1302_v40 = vor.u32 8388608, %v1301_v41 }
 0x17b   : > { %v16293_v16 = vmov 2475754826   ;;  %v1315_v28 = vshrl.u32 %v16287_v59, %v1309_v34  ;;  %v8136_v35 = vadd.s32 4294967294, %v1050_v23  ;;  %v1317_v33 = vshll.u32 %v16287_v59, %v1308_v46 }
 0x17c   : > { %v1312_v10 = vshrl.u32 %v16293_v16, %v1309_v34  ;;  %v1251_v24 = vadd.s32 536870912, %v1250_v22  ;;  %v1318_v44 = vshrl.u32 %v16288_v39, %v1309_v34  ;;  %v1307_v42 = vshrl.u32 %v1306_v56, 5 }
 0x17d   : > { %v1311_v49 = vshll.u32 %v15995_v37, %v1308_v46  ;;  %v1314_v54 = vshll.u32 %v16293_v16, %v1308_v46  ;;  %v1505_v50 = vand.u32 2139095040, %v9702_v29  ;;  %v1320_v27 = vshll.u32 %v16288_v39, %v1308_v46 }
 0x17e   : > { %v9711_v18 = vshrl.u32 %v1251_v24, 30  ;;  %v1319_v31 = vor.u32 %v1318_v44, %v1317_v33  ;;  %v1321_v20 = vshrl.u32 %v16000_v47, %v1309_v34  ;;  %v1323_v6 = vshll.u32 %v16000_v47, %v1308_v46 }
 0x17f   : > { %v1313_v41 = vor.u32 %v1312_v10, %v1311_v49  ;;  %v1316_v23 = vor.u32 %v1315_v28, %v1314_v54  ;;  %v16294_v58 = vmov 1326507024   ;;  %v1160_v56 = vshrl.u32 %v1142_v26, %v1158_v14 }
 0x180   : > { %v1324_v21 = vshrl.u32 %v16294_v58, %v1309_v34  ;;  %v1253_v37 = vshll.u32 %v9711_v18, 30  ;;  %v1322_v12 = vor.u32 %v1321_v20, %v1320_v27  ;;  %v1342_v9 = vshll.u32 %v1302_v40, 8 }
 0x181   : > { %v16295_v61 = vand.u32 2147483647, %v9254_v60  ;;  %v16296_v24 = vmov 0  ;;  %v1164_v33 = vshll.u32 %v1163_v32, 23  ;;  %vm8137_vm8 = vcmp.lt.s32.totalorder %v8136_v35, 0 }
 0x182   : > { %v1325_v44 = vor.u32 %v1324_v21, %v1323_v6  ;;  %vm1329_vm6 = vcmp.lt.s32.totalorder %v1307_v42, 4  ;;  %v9724_v10 = vsub.s32 %v1250_v22, %v1253_v37  ;;  %vm1326_vm11 = vcmp.lt.s32.totalorder %v1307_v42, 1  ;;  %v9727_v14 = vpop.eup %8743 }
 0x183   : > { %vm9720_vm5 = vcmp.le.f32.partialorder %v16295_v61, 0.7853982  ;;  %v1331_v46 = vsel %vm1329_vm6, %v1319_v31, 2102212464  ;;  %v1506_v26 = vshrl.u32 %v1505_v50, 23  ;;  %16299 = vst [vmem:[#allocation24_spill] sm:$0xff] %v9727_v14  ;;  %v1334_v49 = vsel %vm1326_vm11, %v1313_v41, %v1316_v23  ;;  %v9731_v54 = vpop.eup %8745 }
 0x184   : > { %v16297_v24 = vsel %vm9720_vm5, 4294967295, %v16296_v24  ;;  %v16300_v28 = vmov 683565275   ;;  %vm1328_vm12 = vcmp.lt.s32.totalorder %v1307_v42, 3  ;;  %v1335_v61 = vsel %vm1329_vm6, %v1322_v12, 920167782 }
 0x185   : > { %16298 = vst [vmem:[#allocation23_spill] sm:$0xff] %v16297_v24  ;;  %v1310_v40 = vshrl.u32 %v16300_v28, %v1309_v34  ;;  %16301 = vst [vmem:[#allocation25_spill] sm:$0xff] %v9731_v54  ;;  %v1256_v32 = vsub.s32 0, %v9724_v10  ;;  %vm1327_vm13 = vcmp.lt.s32.totalorder %v1307_v42, 2  ;;  %v1336_v21 = vsel %vm1328_vm12, %v1319_v31, %v1335_v61 }
 0x186   : > { %v1338_v37 = vsel %vm1326_vm11, %v1316_v23, %v1319_v31  ;;  %vm880_vm14 = vcmp.lt.s32.totalorder %v9340_v1, 0  ;;  %vm1088_vm15 = vcmp.lt.s32.totalorder %v9381_v25, 0  ;;  %v1332_v50 = vsel %vm1328_vm12, %v1316_v23, %v1331_v46 }
 0x187   : > { %v1330_v22 = vsel %vm1326_vm11, %v1310_v40, %v1313_v41  ;;  %v1337_v27 = vsel %vm1327_vm13, %v1334_v49, %v1336_v21  ;;  %v1339_v34 = vsel %vm1329_vm6, %v1325_v44, 1326507024  ;;  %v8143_v20 = vmin.u32 %v1256_v32, %v9724_v10 }
 0x188   : > { %v1340_v6 = vsel %vm1328_vm12, %v1322_v12, %v1339_v34  ;;  %v9739_v47 = vmul.u32.u64.low %v1342_v9, %v1337_v27  ;;  %v9740_v14 = vmul.u32.u64.high %v1342_v9, %v1337_v27, %v9739_v47  ;;  %v961_v11 = vmul.f32 %v960_v43, %v958_v52 }
 0x189   : > { %v1165_v61 = vor.u32 4788187, %v1164_v33  ;;  %v1341_v31 = vsel %vm1327_vm13, %v1338_v37, %v1340_v6  ;;  %v8154_v15 = vadd.s32 4294967169, %v1506_v26  ;;  %8747 = vsinq.f32 %v9624_v7 }
 0x18a   : > { %v1161_v41 = vor.u32 %v1160_v56, %v1159_v17  ;;  %v9745_v23 = vmul.u32.u64.low %v1342_v9, %v1341_v31  ;;  %v9746_v46 = vmul.u32.u64.high %v1342_v9, %v1341_v31, %v9745_v23  ;;  %v9749_v44 = vsel %vm8137_vm8, 0, %v8136_v35 }
 0x18b   : > { %v1258_v40 = vclz %v8143_v20  ;;  %v1333_v12 = vsel %vm1327_vm13, %v1330_v22, %v1332_v50  ;;  %v1512_v49 = vadd.s32 1, %v8154_v15  ;;  %v9756_v43 = vsel %vm9720_vm5, %v9254_v60, %v9692_v45 }
 0x18c   : > { %v964_v52 = vsub.s32 4, %v9460_v0  ;;  %v1172_v7 = vsub.s32 4, %v9539_v53  ;;  %v1352_v17 = vadd.s32 1, %v9740_v14  ;;  %v962_v56 = vxor.u32 2147483648, %v961_v11 }
 0x18d   : > { %v1166_v33 = vand.u32 2147483647, %v1165_v61  ;;  %v16005_v35 = vand.u32 2147483647, %v9702_v29  ;;  %vm1513_vm1 = vcmp.gt.s32.totalorder %v1512_v49, 0  ;;  %v1058_v42 = vsub.s32 4294967266, %v9749_v44 }
 0x18e   : > { %v1349_v15 = vmul.u32 %v1342_v9, %v1333_v12  ;;  %vm1351_vm2 = vc.u32 %v9746_v46, %v9739_v47  ;;  %v1514_v26 = vsel %vm1513_vm1, %v1512_v49, 0  ;;  %v1168_v45 = vcvt.s32.f32 %v1161_v41 }
 0x18f   : > { %v8144_v32 = vadd.s32 4294967294, %v1258_v40  ;;  %v1353_v21 = vsel %vm1351_vm2, %v1352_v17, %v9740_v14  ;;  %v1516_v37 = vand.u32 31, %v1514_v26  ;;  %8749 = vcosq.f32 %v9756_v43 }
 0x190   : > { %v9770_v22 = vsel %vm880_vm14, %v964_v52, %v9460_v0  ;;  %v9775_v9 = vsel %vm1088_vm15, %v1172_v7, %v9539_v53  ;;  %v1354_v50 = vadd.s32 %v1353_v21, %v1349_v15  ;;  %v9779_v27 = vsel %vm880_vm14, %v962_v56, %v961_v11  ;;  %v9788_v53 = vpop.f32.mrf.mxu0 }
 0x191   : > { %16302 = vst [vmem:[#allocation26_spill] sm:$0xff] %v9775_v9  ;;  %v9781_v34 = vmul.f32 %v1168_v45, %v1166_v33  ;;  %v1038_v14 = vadd.s32 %v9580_v30, %v9576_v5  ;;  %v1517_v20 = vsub.s32 32, %v1516_v37  ;;  %v1054_v6 = vsub.s32 32, %v9749_v44 }
 0x192   : > { %v1059_v0 = vadd.s32 127, %v1058_v42  ;;  %v1355_v61 = vadd.s32 536870912, %v1354_v50  ;;  %v1509_v31 = vand.u32 8388607, %v16005_v35  ;;  %vm8145_vm3 = vcmp.lt.s32.totalorder %v8144_v32, 0 }
 0x193   : > { %v1520_v41 = vshrl.u32 %v16293_v16, %v1517_v20  ;;  %v1523_v11 = vshrl.u32 %v16287_v59, %v1517_v20  ;;  %v1526_v23 = vshrl.u32 %v16288_v39, %v1517_v20  ;;  %v1519_v5 = vshll.u32 %v16300_v28, %v1516_v37 }
 0x194   : > { %v9793_v40 = vshrl.u32 %v1355_v61, 30  ;;  %v1522_v30 = vshll.u32 %v16293_v16, %v1516_v37  ;;  %v16303_v12 = vmov 920167782   ;;  %v1515_v52 = vshrl.u32 %v1514_v26, 5 }
 0x195   : > { %v1529_v49 = vshrl.u32 %v16303_v12, %v1517_v20  ;;  %v1525_v7 = vshll.u32 %v16287_v59, %v1516_v37  ;;  %v1528_v17 = vshll.u32 %v16288_v39, %v1516_v37  ;;  %v1401_v56 = vand.u32 2139095040, %v9788_v53 }
 0x196   : > { %v9801_v33 = vsel %vm8145_vm3, 0, %v8144_v32  ;;  %v1521_v42 = vor.u32 %v1520_v41, %v1519_v5  ;;  %v1524_v15 = vor.u32 %v1523_v11, %v1522_v30  ;;  %v9804_v21 = vpop.eup %8747  ;;  %v1531_v60 = vshll.u32 %v16303_v12, %v1516_v37 }
 0x197   : > { %16304 = vst [vmem:[#allocation27_spill] sm:$0xff] %v9804_v21  ;;  %v1527_v61 = vor.u32 %v1526_v23, %v1525_v7  ;;  %v1530_v35 = vor.u32 %v1529_v49, %v1528_v17  ;;  %v1532_v26 = vshrl.u32 %v16294_v58, %v1517_v20  ;;  %v16305_v38 = vand.u32 2147483647, %v9340_v1 }
 0x198   : > { %v16308_v32 = vand.u32 2147483647, %v9381_v25  ;;  %v16309_v41 = vmov 0  ;;  %v1055_v11 = vshll.u32 %v9643_v36, %v9749_v44  ;;  %v1056_v23 = vshrl.u32 %v1038_v14, %v1054_v6 }
 0x199   : > { %vm9810_vm4 = vcmp.le.f32.partialorder %v16305_v38, 0.7853982  ;;  %v1357_v37 = vshll.u32 %v9793_v40, 30  ;;  %v1510_v5 = vor.u32 8388608, %v1509_v31  ;;  %v1060_v30 = vshll.u32 %v1059_v0, 23 }
 0x19a   : > { %vm9816_vm8 = vcmp.le.f32.partialorder %v16308_v32, 0.7853982  ;;  %v1533_v49 = vor.u32 %v1532_v26, %v1531_v60  ;;  %vm1534_vm6 = vcmp.lt.s32.totalorder %v1515_v52, 1  ;;  %v1402_v38 = vshrl.u32 %v1401_v56, 23 }
 0x19b   : > { %v16310_v41 = vsel %vm9816_vm8, 4294967295, %v16309_v41  ;;  %v1266_v7 = vsub.s32 4294967266, %v9801_v33  ;;  %v1518_v17 = vshrl.u32 %v16300_v28, %v1517_v20  ;;  %vm1537_vm11 = vcmp.lt.s32.totalorder %v1515_v52, 4 }
 0x19c   : > { %16311 = vst [vmem:[#allocation28_spill] sm:$0xff] %v16310_v41  ;;  %v1542_v32 = vsel %vm1534_vm6, %v1521_v42, %v1524_v15  ;;  %vm1536_vm12 = vcmp.lt.s32.totalorder %v1515_v52, 3  ;;  %v1543_v45 = vsel %vm1537_vm11, %v1530_v35, 920167782  ;;  %v1546_v8 = vsel %vm1534_vm6, %v1524_v15, %v1527_v61  ;;  %v9830_v6 = vpop.eup %8749 }
 0x19d   : > { %v1547_v36 = vsel %vm1537_vm11, %v1533_v49, 1326507024  ;;  %v9827_v44 = vsub.s32 %v1354_v50, %v1357_v37  ;;  %vm1535_vm13 = vcmp.lt.s32.totalorder %v1515_v52, 2  ;;  %v1539_v14 = vsel %vm1537_vm11, %v1527_v61, 2102212464  ;;  %16312 = vst [vmem:[#allocation29_spill] sm:$0xff] %v9830_v6 }
 0x19e   : > { %v1544_v60 = vsel %vm1536_vm12, %v1527_v61, %v1543_v45  ;;  %v1548_v20 = vsel %vm1536_vm12, %v1530_v35, %v1547_v36  ;;  %v1550_v31 = vshll.u32 %v1510_v5, 8  ;;  %v8150_v56 = vadd.s32 4294967169, %v1402_v38 }
 0x19f   : > { %v1545_v0 = vsel %vm1535_vm13, %v1542_v32, %v1544_v60  ;;  %v1057_v26 = vor.u32 %v1056_v23, %v1055_v11  ;;  %v1061_v2 = vor.u32 4788187, %v1060_v30  ;;  %v1538_v24 = vsel %vm1534_vm6, %v1518_v17, %v1521_v42 }
 0x1a0   : > { %v1549_v49 = vsel %vm1535_vm13, %v1546_v8, %v1548_v20  ;;  %v1540_v50 = vsel %vm1536_vm12, %v1524_v15, %v1539_v14  ;;  %v1408_v45 = vadd.s32 1, %v8150_v56  ;;  %v1267_v61 = vadd.s32 127, %v1266_v7 }
 0x1a1   : > { %v9837_v37 = vmul.u32.u64.low %v1550_v31, %v1549_v49  ;;  %v9838_v63 = vmul.u32.u64.high %v1550_v31, %v1549_v49, %v9837_v37  ;;  %v1360_v6 = vsub.s32 0, %v9827_v44  ;;  %8751 = vsinq.f32 %v9756_v43 }
 0x1a2   : > { %v9841_v32 = vmul.u32.u64.low %v1550_v31, %v1545_v0  ;;  %v9842_v60 = vmul.u32.u64.high %v1550_v31, %v1545_v0, %v9841_v32  ;;  %vm1409_vm14 = vcmp.gt.s32.totalorder %v1408_v45, 0  ;;  %v1170_v42 = vxor.u32 2147483648, %v9781_v34 }
 0x1a3   : > { %v1062_v15 = vand.u32 2147483647, %v1061_v2  ;;  %v1541_v11 = vsel %vm1535_vm13, %v1538_v24, %v1540_v50  ;;  %v1410_v23 = vsel %vm1409_vm14, %v1408_v45, 0  ;;  %v9858_v43 = vsel %vm9810_vm4, %v9340_v1, %v9779_v27 }
 0x1a4   : > { %v1064_v5 = vcvt.s32.f32 %v1057_v26  ;;  %v1262_v30 = vsub.s32 32, %v9801_v33  ;;  %vm1559_vm1 = vc.u32 %v9838_v63, %v9841_v32  ;;  %v1268_v38 = vshll.u32 %v1267_v61, 23 }
 0x1a5   : > { %v8147_v7 = vmin.u32 %v1360_v6, %v9827_v44  ;;  %v1560_v2 = vadd.s32 1, %v9842_v60  ;;  %v16313_v24 = vand.u32 2147483647, %v9788_v53  ;;  %v1068_v17 = vsub.s32 4, %v9631_v4 }
 0x1a6   : > { %v1246_v27 = vadd.s32 %v9653_v19, %v9666_v13  ;;  %v1557_v36 = vmul.u32 %v1550_v31, %v1541_v11  ;;  %v1412_v14 = vand.u32 31, %v1410_v23  ;;  %v9873_v0 = vsel %vm1088_vm15, %v1170_v42, %v9781_v34 }
 0x1a7   : > { %v1405_v52 = vand.u32 8388607, %v16313_v24  ;;  %v9875_v20 = vmul.f32 %v1064_v5, %v1062_v15  ;;  %v1263_v6 = vshll.u32 %v9724_v10, %v9801_v33  ;;  %v1561_v56 = vsel %vm1559_vm1, %v1560_v2, %v9842_v60 }
 0x1a8   : > { %v1264_v26 = vshrl.u32 %v1246_v27, %v1262_v30  ;;  %v1562_v49 = vadd.s32 %v1561_v56, %v1557_v36  ;;  %v9880_v50 = vshrl.u32 %v1410_v23, 5  ;;  %v1413_v37 = vsub.s32 32, %v1412_v14  ;;  %v9892_v23 = vpop.f32.mrf.mxu1 }
 0x1a9   : > { %v9882_v19 = vor.u32 4788187, %v1268_v38  ;;  %v1362_v13 = vclz %v8147_v7  ;;  %v1406_v31 = vor.u32 8388608, %v1405_v52  ;;  %v1415_v45 = vshll.u32 %v16300_v28, %v1412_v14 }
 0x1aa   : > { %v1563_v34 = vadd.s32 536870912, %v1562_v49  ;;  %v1416_v61 = vshrl.u32 %v16293_v16, %v1413_v37  ;;  %v1418_v42 = vshll.u32 %v16293_v16, %v1412_v14  ;;  %v1419_v10 = vshrl.u32 %v16287_v59, %v1413_v37 }
 0x1ab   : > { %v1421_v33 = vshll.u32 %v16287_v59, %v1412_v14  ;;  %v1422_v60 = vshrl.u32 %v16288_v39, %v1413_v37  ;;  %v1424_v15 = vshll.u32 %v16288_v39, %v1412_v14  ;;  %v1425_v11 = vshrl.u32 %v16303_v12, %v1413_v37 }
 0x1ac   : > { %v9894_v5 = vshrl.u32 %v1563_v34, 30  ;;  %v1417_v30 = vor.u32 %v1416_v61, %v1415_v45  ;;  %v1420_v38 = vor.u32 %v1419_v10, %v1418_v42  ;;  %vm1430_vm15 = vcmp.lt.s32.totalorder %v9880_v50, 1 }
 0x1ad   : > { %v1423_v7 = vor.u32 %v1422_v60, %v1421_v33  ;;  %v1426_v2 = vor.u32 %v1425_v11, %v1424_v15  ;;  %v1427_v24 = vshll.u32 %v16303_v12, %v1412_v14  ;;  %v1428_v52 = vshrl.u32 %v16294_v58, %v1413_v37 }
 0x1ae   : > { %vm984_vm2 = vcmp.lt.s32.totalorder %v9429_v3, 0  ;;  %v8148_v27 = vadd.s32 4294967294, %v1362_v13  ;;  %vm1433_vm3 = vcmp.lt.s32.totalorder %v9880_v50, 4  ;;  %v1438_v36 = vsel %vm1430_vm15, %v1417_v30, %v1420_v38  ;;  %v9904_v45 = vpop.eup %8751 }
 0x1af   : > { %v1609_v56 = vand.u32 2139095040, %v9892_v23  ;;  %16314 = vst [vmem:[#allocation30_spill] sm:$0xff] %v9904_v45  ;;  %v1429_v34 = vor.u32 %v1428_v52, %v1427_v24  ;;  %vm1431_vm6 = vcmp.lt.s32.totalorder %v9880_v50, 2  ;;  %vm1432_vm11 = vcmp.lt.s32.totalorder %v9880_v50, 3 }
 0x1b0   : > { %v1439_v14 = vsel %vm1433_vm3, %v1426_v2, 920167782  ;;  %v1565_v61 = vshll.u32 %v9894_v5, 30  ;;  %v1414_v13 = vshrl.u32 %v16300_v28, %v1413_v37  ;;  %v1435_v42 = vsel %vm1433_vm3, %v1423_v7, 2102212464 }
 0x1b1   : > { %v1440_v10 = vsel %vm1432_vm11, %v1423_v7, %v1439_v14  ;;  %v1265_v33 = vor.u32 %v1264_v26, %v1263_v6  ;;  %v1270_v60 = vand.u32 2147483647, %v9882_v19  ;;  %v1446_v11 = vshll.u32 %v1406_v31, 8 }
 0x1b2   : > { %v1441_v15 = vsel %vm1431_vm6, %v1438_v36, %v1440_v10  ;;  %vm8149_vm12 = vcmp.lt.s32.totalorder %v8148_v27, 0  ;;  %v1434_v24 = vsel %vm1430_vm15, %v1414_v13, %v1417_v30  ;;  %v1442_v52 = vsel %vm1430_vm15, %v1420_v38, %v1423_v7 }
 0x1b3   : > { %v1443_v37 = vsel %vm1433_vm3, %v1429_v34, 1326507024  ;;  %v1436_v8 = vsel %vm1432_vm11, %v1420_v38, %v1435_v42  ;;  %v9923_v14 = vmul.u32.u64.low %v1446_v11, %v1441_v15  ;;  %v9924_v6 = vmul.u32.u64.high %v1446_v11, %v1441_v15, %v9923_v14 }
 0x1b4   : > { %v1444_v35 = vsel %vm1432_vm11, %v1426_v2, %v1443_v37  ;;  %v9927_v26 = vsub.s32 %v1562_v49, %v1565_v61  ;;  %v16013_v31 = vand.u32 2147483647, %v9892_v23  ;;  %v1610_v30 = vshrl.u32 %v1609_v56, 23 }
 0x1b5   : > { %v1445_v19 = vsel %vm1431_vm6, %v1442_v52, %v1444_v35  ;;  %v16315_v36 = vand.u32 2147483647, %v9429_v3  ;;  %vm1192_vm14 = vcmp.lt.s32.totalorder %v9547_v62, 0  ;;  %v1272_v38 = vcvt.s32.f32 %v1265_v33 }
 0x1b6   : > { %vm1296_vm1 = vcmp.lt.s32.totalorder %v9578_v48, 0  ;;  %v9940_v2 = vsel %vm8149_vm12, 0, %v8148_v27  ;;  %v9942_v49 = vmul.u32.u64.low %v1446_v11, %v1445_v19  ;;  %v9943_v34 = vmul.u32.u64.high %v1446_v11, %v1445_v19, %v9942_v49 }
 0x1b7   : > { %vm9934_vm13 = vcmp.le.f32.partialorder %v16315_v36, 0.7853982  ;;  %8753 = vcosq.f32 %v9858_v43  ;;  %v1066_v35 = vxor.u32 2147483648, %v9875_v20  ;;  %v1437_v56 = vsel %vm1431_vm6, %v1434_v24, %v1436_v8 }
 0x1b8   : > { %v8158_v61 = vadd.s32 4294967169, %v1610_v30  ;;  %8755 = vsinq.f32 %v9858_v43  ;;  %v9955_v27 = vsel %vm984_vm2, %v1068_v17, %v9631_v4  ;;  %v1273_v13 = vmul.f32 %v1272_v38, %v1270_v60  ;;  %v9969_v17 = vpop.f32.mrf.mxu0 }
 0x1b9   : > { %v1456_v42 = vadd.s32 1, %v9924_v6  ;;  %v1174_v10 = vsel %vm9816_vm8, %v9381_v25, %v9873_v0  ;;  %v1370_v8 = vsub.s32 4294967266, %v9940_v2  ;;  %v1568_v50 = vsub.s32 0, %v9927_v26 }
 0x1ba   : > { %v1616_v43 = vadd.s32 1, %v8158_v61  ;;  %v1276_v33 = vsub.s32 4, %v9711_v18  ;;  %v1453_v15 = vmul.u32 %v1446_v11, %v1437_v56  ;;  %vm1455_vm15 = vc.u32 %v9943_v34, %v9923_v14 }
 0x1bb   : > { %v1613_v4 = vand.u32 8388607, %v16013_v31  ;;  %v1067_v0 = vsel %vm984_vm2, %v1066_v35, %v9875_v20  ;;  %v1380_v60 = vsub.s32 4, %v9793_v40  ;;  %v1457_v24 = vsel %vm1455_vm15, %v1456_v42, %v9924_v6 }
 0x1bc   : > { %vm1617_vm3 = vcmp.gt.s32.totalorder %v1616_v43, 0  ;;  %v1274_v52 = vxor.u32 2147483648, %v1273_v13  ;;  %v1366_v11 = vsub.s32 32, %v9940_v2  ;;  %v1458_v37 = vadd.s32 %v1457_v24, %v1453_v15 }
 0x1bd   : > { %v1618_v19 = vsel %vm1617_vm3, %v1616_v43, 0  ;;  %8757 = vcosq.f32 %v1174_v10  ;;  %v9977_v30 = vadd.s32 127, %v1370_v8  ;;  %v9980_v36 = vmin.u32 %v1568_v50, %v9927_v26 }
 0x1be   : > { %v1713_v38 = vand.u32 2139095040, %v9969_v17  ;;  %v1350_v20 = vadd.s32 %v9739_v47, %v9746_v46  ;;  %v1459_v49 = vadd.s32 536870912, %v1458_v37  ;;  %v1614_v35 = vor.u32 8388608, %v1613_v4 }
 0x1bf   : > { %v1620_v6 = vand.u32 31, %v1618_v19  ;;  %8759 = vsinq.f32 %v1174_v10  ;;  %v9988_v56 = vsel %vm9934_vm13, %v9429_v3, %v1067_v0  ;;  %v9993_v61 = vsel %vm1192_vm14, %v1276_v33, %v9711_v18 }
 0x1c0   : > { %16318 = vst [vmem:[#allocation31_spill] sm:$0xff] %v9993_v61  ;;  %v9998_v42 = vsel %vm1296_vm1, %v1380_v60, %v9793_v40  ;;  %v10002_v47 = vsel %vm1192_vm14, %v1274_v52, %v1273_v13  ;;  %v1368_v46 = vshrl.u32 %v1350_v20, %v1366_v11  ;;  %v10004_v10 = vshrl.u32 %v1459_v49, 30 }
 0x1c1   : > { %v1621_v8 = vsub.s32 32, %v1620_v6  ;;  %v1372_v50 = vshll.u32 %v9977_v30, 23  ;;  %v1570_v43 = vclz %v9980_v36  ;;  %v1619_v15 = vshrl.u32 %v1618_v19, 5 }
 0x1c2   : > { %v1714_v18 = vshrl.u32 %v1713_v38, 23  ;;  %v1461_v33 = vshll.u32 %v10004_v10, 30  ;;  %v1623_v4 = vshll.u32 %v16300_v28, %v1620_v6  ;;  %v10011_v0 = vshll.u32 %v1614_v35, 8 }
 0x1c3   : > { %v1624_v40 = vshrl.u32 %v16293_v16, %v1621_v8  ;;  %v1626_v13 = vshll.u32 %v16293_v16, %v1620_v6  ;;  %v1627_v60 = vshrl.u32 %v16287_v59, %v1621_v8  ;;  %v1629_v24 = vshll.u32 %v16287_v59, %v1620_v6 }
 0x1c4   : > { %v1630_v52 = vshrl.u32 %v16288_v39, %v1621_v8  ;;  %v10017_v11 = vpop.eup %8753  ;;  %v10019_v19 = vsub.s32 %v1458_v37, %v1461_v33  ;;  %v1632_v36 = vshll.u32 %v16288_v39, %v1620_v6  ;;  %v1633_v38 = vshrl.u32 %v16303_v12, %v1621_v8 }
 0x1c5   : > { %16319 = vst [vmem:[#allocation32_spill] sm:$0xff] %v10017_v11  ;;  %v1625_v30 = vor.u32 %v1624_v40, %v1623_v4  ;;  %v10023_v20 = vpop.eup %8755  ;;  %v1628_v49 = vor.u32 %v1627_v60, %v1626_v13  ;;  %vm1638_vm2 = vcmp.lt.s32.totalorder %v1619_v15, 1  ;;  %v8162_v31 = vadd.s32 4294967169, %v1714_v18 }
 0x1c6   : > { %16320 = vst [vmem:[#allocation33_spill] sm:$0xff] %v10023_v20  ;;  %v1631_v35 = vor.u32 %v1630_v52, %v1629_v24  ;;  %v1464_v25 = vsub.s32 0, %v10019_v19  ;;  %v1634_v45 = vor.u32 %v1633_v38, %v1632_v36  ;;  %v1635_v9 = vshll.u32 %v16303_v12, %v1620_v6 }
 0x1c7   : > { %v1636_v41 = vshrl.u32 %v16294_v58, %v1621_v8  ;;  %v16321_v37 = vand.u32 2147483647, %v9547_v62  ;;  %v16322_v33 = vmov 0  ;;  %v16325_v4 = vand.u32 2147483647, %v9578_v48 }
 0x1c8   : > { %v1622_v18 = vshrl.u32 %v16300_v28, %v1621_v8  ;;  %vm1640_vm12 = vcmp.lt.s32.totalorder %v1619_v15, 3  ;;  %vm1641_vm14 = vcmp.lt.s32.totalorder %v1619_v15, 4  ;;  %v1646_v6 = vsel %vm1638_vm2, %v1625_v30, %v1628_v49 }
 0x1c9   : > { %vm10030_vm6 = vcmp.le.f32.partialorder %v16321_v37, 0.7853982  ;;  %vm10036_vm11 = vcmp.le.f32.partialorder %v16325_v4, 0.7853982  ;;  %v8151_v13 = vmin.u32 %v1464_v25, %v10019_v19  ;;  %v1637_v60 = vor.u32 %v1636_v41, %v1635_v9 }
 0x1ca   : > { %v16323_v33 = vsel %vm10030_vm6, 4294967295, %v16322_v33  ;;  %v1643_v24 = vsel %vm1641_vm14, %v1631_v35, 2102212464  ;;  %v1647_v52 = vsel %vm1641_vm14, %v1634_v45, 920167782  ;;  %vm1639_vm15 = vcmp.lt.s32.totalorder %v1619_v15, 2  ;;  %v10045_v4 = vpop.eup %8757 }
 0x1cb   : > { %16324 = vst [vmem:[#allocation34_spill] sm:$0xff] %v16323_v33  ;;  %v1648_v36 = vsel %vm1640_vm12, %v1631_v35, %v1647_v52  ;;  %v1650_v38 = vsel %vm1638_vm2, %v1628_v49, %v1631_v35  ;;  %v1720_v37 = vadd.s32 1, %v8162_v31  ;;  %16328 = vst [vmem:[#allocation35_spill] sm:$0xff] %v10045_v4  ;;  %v1466_v54 = vclz %v8151_v13 }
 0x1cc   : > { %v1642_v8 = vsel %vm1638_vm2, %v1622_v18, %v1625_v30  ;;  %v1649_v21 = vsel %vm1639_vm15, %v1646_v6, %v1648_v36  ;;  %v1651_v55 = vsel %vm1641_vm14, %v1637_v60, 1326507024  ;;  %v1644_v51 = vsel %vm1640_vm12, %v1628_v49, %v1643_v24  ;;  %v10056_v52 = vpop.eup %8759 }
 0x1cd   : > { %v1652_v25 = vsel %vm1640_vm12, %v1634_v45, %v1651_v55  ;;  %v10052_v9 = vmul.u32.u64.low %v10011_v0, %v1649_v21  ;;  %v10053_v41 = vmul.u32.u64.high %v10011_v0, %v1649_v21, %v10052_v9  ;;  %16329 = vst [vmem:[#allocation36_spill] sm:$0xff] %v10056_v52  ;;  %v1367_v31 = vshll.u32 %v9827_v44, %v9940_v2 }
 0x1ce   : > { %v8152_v35 = vadd.s32 4294967294, %v1466_v54  ;;  %v1653_v30 = vsel %vm1639_vm15, %v1650_v38, %v1652_v25  ;;  %v16021_v18 = vand.u32 2147483647, %v9969_v17  ;;  %v8156_v6 = vadd.s32 4294967294, %v1570_v43 }
 0x1cf   : > { %v10063_v49 = vmul.u32.u64.low %v10011_v0, %v1653_v30  ;;  %v10064_v13 = vmul.u32.u64.high %v10011_v0, %v1653_v30, %v10063_v49  ;;  %vm1721_vm3 = vcmp.gt.s32.totalorder %v1720_v37, 0  ;;  %v1369_v55 = vor.u32 %v1368_v46, %v1367_v31 }
 0x1d0   : > { %v1373_v21 = vor.u32 4788187, %v1372_v50  ;;  %v1645_v45 = vsel %vm1639_vm15, %v1642_v8, %v1644_v51  ;;  %v1722_v60 = vsel %vm1721_vm3, %v1720_v37, 0  ;;  %8761 = vcosq.f32 %v9988_v56  ;;  %v207_v50 = vld [vmem:[%s15974_s1 + $0x20] sm:$0xff] }
 0x1d1   : > { %vm8153_vm2 = vcmp.lt.s32.totalorder %v8152_v35, 0  ;;  %v1664_v54 = vadd.s32 1, %v10053_v41  ;;  %v1724_v44 = vand.u32 31, %v1722_v60  ;;  %8763 = vsinq.f32 %v9988_v56  ;;  %8102 = vmatmul.mubr.msk.f32.gmra.mxu0 %vm211_vm0, %v207_v50  ;;  %8110 = vmatmul.mubr.msk.f32.gmra.mxu1 %vm211_vm0, %v207_v50 }
 0x1d2   : > { %v10074_v2 = vsel %vm10030_vm6, %v9547_v62, %v10002_v47  ;;  %v1717_v51 = vand.u32 8388607, %v16021_v18  ;;  %vm8157_vm12 = vcmp.lt.s32.totalorder %v8156_v6, 0  ;;  %v1661_v56 = vmul.u32 %v10011_v0, %v1645_v45  ;;  %v208_v0 = vld [vmem:[%s15974_s1 + $0x28] sm:$0xff] }
 0x1d3   : > { %vm1663_vm14 = vc.u32 %v10064_v13, %v10052_v9  ;;  %v1725_v43 = vsub.s32 32, %v1724_v44  ;;  %v1374_v47 = vand.u32 2147483647, %v1373_v21  ;;  %v1376_v15 = vcvt.s32.f32 %v1369_v55 }
 0x1d4   : > { %v10090_v24 = vsel %vm8153_vm2, 0, %v8152_v35  ;;  %v1665_v36 = vsel %vm1663_vm14, %v1664_v54, %v10053_v41  ;;  %v16330_v38 = vmov 0.0   ;;  %v1727_v8 = vshll.u32 %v16300_v28, %v1724_v44 }
 0x1d5   : > { %330 = vmatprep.mubr.f32.mxu0 %v16330_v38  ;;  %443 = vmatprep.mubr.f32.mxu1 %v16330_v38  ;;  %v1666_v37 = vadd.s32 %v1665_v36, %v1661_v56  ;;  %v1728_v25 = vshrl.u32 %v16293_v16, %v1725_v43  ;;  %v1731_v31 = vshrl.u32 %v16287_v59, %v1725_v43  ;;  %v10102_v35 = vsel %vm8157_vm12, 0, %v8156_v6 }
 0x1d6   : > { %v1718_v30 = vor.u32 8388608, %v1717_v51  ;;  %v1730_v41 = vshll.u32 %v16293_v16, %v1724_v44  ;;  %v1734_v49 = vshrl.u32 %v16288_v39, %v1725_v43  ;;  %v1723_v21 = vshrl.u32 %v1722_v60, 5  ;;  %8103 = vmatmul.mubr.msk.f32.gmra.mxu0 %vm211_vm0, %v208_v0  ;;  %8111 = vmatmul.mubr.msk.f32.gmra.mxu1 %vm211_vm0, %v208_v0  ;;  %v209_v60 = vld [vmem:[%s15974_s1 + $0x30] sm:$0xff] }
 0x1d7   : > { %v1667_v55 = vadd.s32 536870912, %v1666_v37  ;;  %v1729_v45 = vor.u32 %v1728_v25, %v1727_v8  ;;  %v1733_v54 = vshll.u32 %v16287_v59, %v1724_v44  ;;  %v1474_v50 = vsub.s32 4294967266, %v10090_v24  ;;  %336 = vmatprep.mubr.f32.mxu0 %v16330_v38  ;;  %449 = vmatprep.mubr.f32.mxu1 %v16330_v38 }
 0x1d8   : > { %v1732_v56 = vor.u32 %v1731_v31, %v1730_v41  ;;  %v1736_v6 = vshll.u32 %v16288_v39, %v1724_v44  ;;  %v1737_v51 = vshrl.u32 %v16303_v12, %v1725_v43  ;;  %v1739_v0 = vshll.u32 %v16303_v12, %v1724_v44 }
 0x1d9   : > { %v10117_v36 = vshrl.u32 %v1667_v55, 30  ;;  %v1735_v8 = vor.u32 %v1734_v49, %v1733_v54  ;;  %v1740_v25 = vshrl.u32 %v16294_v58, %v1725_v43  ;;  %v1377_v31 = vmul.f32 %v1376_v15, %v1374_v47 }
 0x1da   : > { %v1578_v41 = vsub.s32 4294967266, %v10102_v35  ;;  %v1454_v46 = vadd.s32 %v9923_v14, %v9943_v34  ;;  %v1738_v18 = vor.u32 %v1737_v51, %v1736_v6  ;;  %vm1742_vm15 = vcmp.lt.s32.totalorder %v1723_v21, 1  ;;  %8104 = vmatmul.mubr.msk.f32.gmra.mxu0 %vm211_vm0, %v209_v60  ;;  %8112 = vmatmul.mubr.msk.f32.gmra.mxu1 %vm211_vm0, %v209_v60 }
 0x1db   : > { %v1669_v62 = vshll.u32 %v10117_v36, 30  ;;  %v1741_v4 = vor.u32 %v1740_v25, %v1739_v0  ;;  %v1758_v52 = vshll.u32 %v1718_v30, 8  ;;  %v1475_v49 = vadd.s32 127, %v1474_v50  ;;  %342 = vmatprep.mubr.f32.mxu0 %v16330_v38  ;;  %455 = vmatprep.mubr.f32.mxu1 %v16330_v38  ;;  %v10139_v50 = vpop.f32.mrf.mxu1 }
 0x1dc   : > { %v1726_v44 = vshrl.u32 %v16300_v28, %v1725_v43  ;;  %vm1745_vm3 = vcmp.lt.s32.totalorder %v1723_v21, 4  ;;  %v1750_v47 = vsel %vm1742_vm15, %v1729_v45, %v1732_v56  ;;  %vm1744_vm2 = vcmp.lt.s32.totalorder %v1723_v21, 3 }
 0x1dd   : > { %v10131_v14 = vsub.s32 %v1666_v37, %v1669_v62  ;;  %v1747_v34 = vsel %vm1745_vm3, %v1735_v8, 2102212464  ;;  %v1751_v15 = vsel %vm1745_vm3, %v1738_v18, 920167782  ;;  %v10135_v30 = vpop.eup %8761  ;;  %v1470_v55 = vsub.s32 32, %v10090_v24 }
 0x1de   : > { %vm1743_vm12 = vcmp.lt.s32.totalorder %v1723_v21, 2  ;;  %v1752_v43 = vsel %vm1744_vm2, %v1735_v8, %v1751_v15  ;;  %v1754_v54 = vsel %vm1742_vm15, %v1732_v56, %v1735_v8  ;;  %v10141_v6 = vpop.eup %8763  ;;  %v1746_v37 = vsel %vm1742_vm15, %v1726_v44, %v1729_v45 }
 0x1df   : > { %v1672_v62 = vsub.s32 0, %v10131_v14  ;;  %v1753_v51 = vsel %vm1743_vm12, %v1750_v47, %v1752_v43  ;;  %v1755_v60 = vsel %vm1745_vm3, %v1741_v4, 1326507024  ;;  %v1748_v0 = vsel %vm1744_vm2, %v1732_v56, %v1747_v34  ;;  %v10158_v34 = vpop.f32.mrf.mxu0 }
 0x1e0   : > { %v1756_v25 = vsel %vm1744_vm2, %v1738_v18, %v1755_v60  ;;  %v10147_v1 = vmul.u32.u64.low %v1758_v52, %v1753_v51  ;;  %v10148_v33 = vmul.u32.u64.high %v1758_v52, %v1753_v51, %v10147_v1  ;;  %v1476_v15 = vshll.u32 %v1475_v49, 23 }
 0x1e1   : > { %v8159_v8 = vmin.u32 %v1672_v62, %v10131_v14  ;;  %v1757_v61 = vsel %vm1743_vm12, %v1754_v54, %v1756_v25  ;;  %v1921_v3 = vand.u32 2139095040, %v10139_v50  ;;  %8765 = vcosq.f32 %v10074_v2 }
 0x1e2   : > { %v1378_v11 = vxor.u32 2147483648, %v1377_v31  ;;  %v10154_v45 = vmul.u32.u64.low %v1758_v52, %v1757_v61  ;;  %v10155_v44 = vmul.u32.u64.high %v1758_v52, %v1757_v61, %v10154_v45  ;;  %v1472_v47 = vshrl.u32 %v1454_v46, %v1470_v55 }
 0x1e3   : > { %v1674_v4 = vclz %v8159_v8  ;;  %v1749_v18 = vsel %vm1743_vm12, %v1746_v37, %v1748_v0  ;;  %v1922_v56 = vshrl.u32 %v1921_v3, 23  ;;  %v1574_v49 = vsub.s32 32, %v10102_v35 }
 0x1e4   : > { %v1579_v43 = vadd.s32 127, %v1578_v41  ;;  %v1768_v54 = vadd.s32 1, %v10148_v33  ;;  %v16030_v62 = vand.u32 2147483647, %v10139_v50  ;;  %v1471_v51 = vshll.u32 %v10019_v19, %v10090_v24 }
 0x1e5   : > { %v1477_v60 = vor.u32 4788187, %v1476_v15  ;;  %v8160_v61 = vadd.s32 4294967294, %v1674_v4  ;;  %v8170_v25 = vadd.s32 4294967169, %v1922_v56  ;;  %v1558_v46 = vadd.s32 %v9841_v32, %v9838_v63  ;;  %v210_v63 = vld [vmem:[%s15974_s1 + $0x38] sm:$0xff] }
 0x1e6   : > { %v1765_v21 = vmul.u32 %v1758_v52, %v1749_v18  ;;  %vm1767_vm14 = vc.u32 %v10155_v44, %v10147_v1  ;;  %v1817_v3 = vand.u32 2139095040, %v10158_v34  ;;  %v1379_v41 = vsel %vm1296_vm1, %v1378_v11, %v1377_v31  ;;  %8105 = vmatmul.mubr.msk.f32.gmra.mxu0 %vm211_vm0, %v210_v63  ;;  %8113 = vmatmul.mubr.msk.f32.gmra.mxu1 %vm211_vm0, %v210_v63 }
 0x1e7   : > { %v1473_v55 = vor.u32 %v1472_v47, %v1471_v51  ;;  %v1769_v37 = vsel %vm1767_vm14, %v1768_v54, %v10148_v33  ;;  %v1928_v0 = vadd.s32 1, %v8170_v25  ;;  %v1575_v19 = vshll.u32 %v9927_v26, %v10102_v35  ;;  %2231 = vmatprep.mubr.f32.mxu0 %v16330_v38  ;;  %2320 = vmatprep.mubr.f32.mxu1 %v16330_v38 }
 0x1e8   : > { %v1576_v24 = vshrl.u32 %v1558_v46, %v1574_v49  ;;  %v1580_v15 = vshll.u32 %v1579_v43, 23  ;;  %v1770_v8 = vadd.s32 %v1769_v37, %v1765_v21  ;;  %v1478_v32 = vand.u32 2147483647, %v1477_v60 }
 0x1e9   : > { %vm8161_vm15 = vcmp.lt.s32.totalorder %v8160_v61, 0  ;;  %v1925_v52 = vand.u32 8388607, %v16030_v62  ;;  %vm1929_vm1 = vcmp.gt.s32.totalorder %v1928_v0, 0  ;;  %v16029_v26 = vand.u32 2147483647, %v10158_v34 }
 0x1ea   : > { %v1771_v11 = vadd.s32 536870912, %v1770_v8  ;;  %v1930_v33 = vsel %vm1929_vm1, %v1928_v0, 0  ;;  %v1818_v35 = vshrl.u32 %v1817_v3, 23  ;;  %8767 = vsinq.f32 %v10074_v2 }
 0x1eb   : > { %v10188_v31 = vsel %vm10036_vm11, %v9578_v48, %v1379_v41  ;;  %v1480_v45 = vcvt.s32.f32 %v1473_v55  ;;  %v1932_v47 = vand.u32 31, %v1930_v33  ;;  %v10190_v4 = vor.u32 %v1576_v24, %v1575_v19 }
 0x1ec   : > { %v10192_v18 = vor.u32 4788187, %v1580_v15  ;;  %v10195_v56 = vsel %vm8161_vm15, 0, %v8160_v61  ;;  %v10197_v49 = vshrl.u32 %v1771_v11, 30  ;;  %v10203_v2 = vadd.s32 %v10052_v9, %v10064_v13 }
 0x1ed   : > { %v10199_v43 = vmul.f32 %v1480_v45, %v1478_v32  ;;  %v1926_v54 = vor.u32 8388608, %v1925_v52  ;;  %v1933_v51 = vsub.s32 32, %v1932_v47  ;;  %v10206_v60 = vadd.s32 %v10147_v1, %v10155_v44 }
 0x1ee   : > { %v1773_v25 = vshll.u32 %v10197_v49, 30  ;;  %v8166_v46 = vadd.s32 4294967169, %v1818_v35  ;;  %v1821_v61 = vand.u32 8388607, %v16029_v26  ;;  %v10211_v21 = vpop.eup %8765  ;;  %v1682_v3 = vsub.s32 4294967266, %v10195_v56 }
 0x1ef   : > { %16331 = vst [vmem:[#allocation37_spill] sm:$0xff] %v10211_v21  ;;  %v1935_v41 = vshll.u32 %v16300_v28, %v1932_v47  ;;  %v1936_v9 = vshrl.u32 %v16293_v16, %v1933_v51  ;;  %v1938_v13 = vshll.u32 %v16293_v16, %v1932_v47  ;;  %v1939_v1 = vshrl.u32 %v16287_v59, %v1933_v51 }
 0x1f0   : > { %v10217_v55 = vsub.s32 %v1770_v8, %v1773_v25  ;;  %v1941_v44 = vshll.u32 %v16287_v59, %v1932_v47  ;;  %v1942_v37 = vshrl.u32 %v16288_v39, %v1933_v51  ;;  %v1931_v0 = vshrl.u32 %v1930_v33, 5 }
 0x1f1   : > { %v1937_v19 = vor.u32 %v1936_v9, %v1935_v41  ;;  %v1944_v24 = vshll.u32 %v16288_v39, %v1932_v47  ;;  %v10223_v15 = vshll.u32 %v1926_v54, 8  ;;  %v1940_v32 = vor.u32 %v1939_v1, %v1938_v13 }
 0x1f2   : > { %v1776_v63 = vsub.s32 0, %v10217_v55  ;;  %v1943_v52 = vor.u32 %v1942_v37, %v1941_v44  ;;  %v1945_v11 = vshrl.u32 %v16303_v12, %v1933_v51  ;;  %v1947_v8 = vshll.u32 %v16303_v12, %v1932_v47 }
 0x1f3   : > { %v1948_v35 = vshrl.u32 %v16294_v58, %v1933_v51  ;;  %v1822_v45 = vor.u32 8388608, %v1821_v61  ;;  %v1824_v25 = vadd.s32 1, %v8166_v46  ;;  %v1683_v26 = vadd.s32 127, %v1682_v3 }
 0x1f4   : > { %v8163_v33 = vmin.u32 %v1776_v63, %v10217_v55  ;;  %v1934_v41 = vshrl.u32 %v16300_v28, %v1933_v51  ;;  %v1946_v9 = vor.u32 %v1945_v11, %v1944_v24  ;;  %vm1950_vm0 = vcmp.lt.s32.totalorder %v1931_v0, 1 }
 0x1f5   : > { %v1949_v54 = vor.u32 %v1948_v35, %v1947_v8  ;;  %vm1952_vm3 = vcmp.lt.s32.totalorder %v1931_v0, 3  ;;  %vm1953_vm2 = vcmp.lt.s32.totalorder %v1931_v0, 4  ;;  %v1958_v44 = vsel %vm1950_vm0, %v1937_v19, %v1940_v32 }
 0x1f6   : > { %v1778_v13 = vclz %v8163_v33  ;;  %v1955_v1 = vsel %vm1953_vm2, %v1943_v52, 2102212464  ;;  %v1959_v37 = vsel %vm1953_vm2, %v1946_v9, 920167782  ;;  %v1678_v47 = vsub.s32 32, %v10195_v56 }
 0x1f7   : > { %vm1951_vm12 = vcmp.lt.s32.totalorder %v1931_v0, 2  ;;  %v1960_v61 = vsel %vm1952_vm3, %v1943_v52, %v1959_v37  ;;  %vm1825_vm14 = vcmp.gt.s32.totalorder %v1824_v25, 0  ;;  %v10233_v46 = vpop.eup %8767  ;;  %v1954_v63 = vsel %vm1950_vm0, %v1934_v41, %v1937_v19 }
 0x1f8   : > { %16332 = vst [vmem:[#allocation38_spill] sm:$0xff] %v10233_v46  ;;  %v8164_v3 = vadd.s32 4294967294, %v1778_v13  ;;  %v1961_v51 = vsel %vm1951_vm12, %v1958_v44, %v1960_v61  ;;  %v1962_v24 = vsel %vm1950_vm0, %v1940_v32, %v1943_v52  ;;  %v1956_v11 = vsel %vm1952_vm3, %v1940_v32, %v1955_v1  ;;  %v10252_v61 = vpop.f32.mrf.mxu1 }
 0x1f9   : > { %v1963_v8 = vsel %vm1953_vm2, %v1949_v54, 1326507024  ;;  %v10238_v35 = vmul.u32.u64.low %v10223_v15, %v1961_v51  ;;  %v10239_v33 = vmul.u32.u64.high %v10223_v15, %v1961_v51, %v10238_v35  ;;  %v1684_v37 = vshll.u32 %v1683_v26, 23 }
 0x1fa   : > { %vm8165_vm15 = vcmp.lt.s32.totalorder %v8164_v3, 0  ;;  %v1964_v38 = vsel %vm1952_vm3, %v1946_v9, %v1963_v8  ;;  %v1826_v52 = vsel %vm1825_vm14, %v1824_v25, 0  ;;  %v10247_v41 = vshll.u32 %v1822_v45, 8 }
 0x1fb   : > { %v1781_v13 = vsel %vm8165_vm15, 0, %v8164_v3  ;;  %v1965_v19 = vsel %vm1951_vm12, %v1962_v24, %v1964_v38  ;;  %v1957_v1 = vsel %vm1951_vm12, %v1954_v63, %v1956_v11  ;;  %v10250_v44 = vshrl.u32 %v1826_v52, 5 }
 0x1fc   : > { %v1782_v32 = vsub.s32 32, %v1781_v13  ;;  %v1786_v54 = vsub.s32 4294967266, %v1781_v13  ;;  %v1680_v26 = vshrl.u32 %v10203_v2, %v1678_v47  ;;  %v1828_v3 = vand.u32 31, %v1826_v52 }
 0x1fd   : > { %v10256_v51 = vmul.u32.u64.low %v10223_v15, %v1965_v19  ;;  %v10257_v9 = vmul.u32.u64.high %v10223_v15, %v1965_v19, %v10256_v51  ;;  %v10259_v38 = vor.u32 4788187, %v1684_v37  ;;  %v1976_v24 = vadd.s32 1, %v10239_v33 }
 0x1fe   : > { %v1784_v45 = vshrl.u32 %v10206_v60, %v1782_v32  ;;  %v1787_v25 = vadd.s32 127, %v1786_v54  ;;  %v1783_v0 = vshll.u32 %v10217_v55, %v1781_v13  ;;  %v1973_v63 = vmul.u32 %v10223_v15, %v1957_v1 }
 0x1ff   : > { %v1829_v11 = vsub.s32 32, %v1828_v3  ;;  %v2025_v8 = vand.u32 2139095040, %v10252_v61  ;;  %v1831_v47 = vshll.u32 %v16300_v28, %v1828_v3  ;;  %v1834_v19 = vshll.u32 %v16293_v16, %v1828_v3 }
 0x200   : > { %v1788_v2 = vshll.u32 %v1787_v25, 23  ;;  %vm1846_vm1 = vcmp.lt.s32.totalorder %v10250_v44, 1  ;;  %v1785_v37 = vor.u32 %v1784_v45, %v1783_v0  ;;  %vm1975_vm0 = vc.u32 %v10257_v9, %v10238_v35 }
 0x201   : > { %v1832_v60 = vshrl.u32 %v16293_v16, %v1829_v11  ;;  %v1837_v55 = vshll.u32 %v16287_v59, %v1828_v3  ;;  %v1977_v15 = vsel %vm1975_vm0, %v1976_v24, %v10239_v33  ;;  %v1835_v52 = vshrl.u32 %v16287_v59, %v1829_v11 }
 0x202   : > { %v1789_v13 = vor.u32 4788187, %v1788_v2  ;;  %v1840_v32 = vshll.u32 %v16288_v39, %v1828_v3  ;;  %v1978_v54 = vadd.s32 %v1977_v15, %v1973_v63  ;;  %v1838_v51 = vshrl.u32 %v16288_v39, %v1829_v11 }
 0x203   : > { %v1833_v1 = vor.u32 %v1832_v60, %v1831_v47  ;;  %v1841_v45 = vshrl.u32 %v16303_v12, %v1829_v11  ;;  %v1830_v25 = vshrl.u32 %v16300_v28, %v1829_v11  ;;  %v1836_v0 = vor.u32 %v1835_v52, %v1834_v19 }
 0x204   : > { %v1843_v62 = vshll.u32 %v16303_v12, %v1828_v3  ;;  %v1844_v21 = vshrl.u32 %v16294_v58, %v1829_v11  ;;  %v1790_v2 = vand.u32 2147483647, %v1789_v13  ;;  %v1979_v46 = vadd.s32 536870912, %v1978_v54 }
 0x205   : > { %v1839_v33 = vor.u32 %v1838_v51, %v1837_v55  ;;  %v1842_v24 = vor.u32 %v1841_v45, %v1840_v32  ;;  %vm16038_vm3 = vcmp.lt.s32.totalorder %v9788_v53, 0  ;;  %v1792_v20 = vcvt.s32.f32 %v1785_v37 }
 0x206   : > { %v1845_v63 = vor.u32 %v1844_v21, %v1843_v62  ;;  %vm1849_vm2 = vcmp.lt.s32.totalorder %v10250_v44, 4  ;;  %v1854_v47 = vsel %vm1846_vm1, %v1833_v1, %v1836_v0  ;;  %v10285_v60 = vshrl.u32 %v1979_v46, 30 }
 0x207   : > { %vm1848_vm12 = vcmp.lt.s32.totalorder %v10250_v44, 3  ;;  %v1851_v3 = vsel %vm1849_vm2, %v1839_v33, 2102212464  ;;  %v1855_v19 = vsel %vm1849_vm2, %v1842_v24, 920167782  ;;  %vm1847_vm14 = vcmp.lt.s32.totalorder %v10250_v44, 2 }
 0x208   : > { %v1856_v11 = vsel %vm1848_vm12, %v1839_v33, %v1855_v19  ;;  %v1858_v55 = vsel %vm1846_vm1, %v1836_v0, %v1839_v33  ;;  %v1859_v13 = vsel %vm1849_vm2, %v1845_v63, 1326507024  ;;  %v16333_v62 = vand.u32 2147483647, %v9788_v53 }
 0x209   : > { %v1793_v37 = vmul.f32 %v1792_v20, %v1790_v2  ;;  %v1981_v46 = vshll.u32 %v10285_v60, 30  ;;  %v1850_v15 = vsel %vm1846_vm1, %v1830_v25, %v1833_v1  ;;  %v1857_v52 = vsel %vm1847_vm14, %v1854_v47, %v1856_v11 }
 0x20a   : > { %vm10293_vm15 = vcmp.le.f32.partialorder %v16333_v62, 0.7853982  ;;  %v1852_v32 = vsel %vm1848_vm12, %v1836_v0, %v1851_v3  ;;  %v1860_v51 = vsel %vm1848_vm12, %v1842_v24, %v1859_v13  ;;  %v1582_v63 = vand.u32 2147483647, %v10192_v18 }
 0x20b   : > { %v10303_v45 = vmul.u32.u64.low %v10247_v41, %v1857_v52  ;;  %v10304_v33 = vmul.u32.u64.high %v10247_v41, %v1857_v52, %v10303_v45  ;;  %v1482_v19 = vxor.u32 2147483648, %v10199_v43  ;;  %v10309_v20 = vsub.s32 %v1978_v54, %v1981_v46 }
 0x20c   : > { %v1861_v2 = vsel %vm1847_vm14, %v1858_v55, %v1860_v51  ;;  %v1584_v1 = vcvt.s32.f32 %v10190_v4  ;;  %v16336_v25 = vshll.u32 %v10131_v14, %v10195_v56  ;;  %v1794_v3 = vxor.u32 2147483648, %v1793_v37 }
 0x20d   : > { %v10318_v24 = vmul.u32.u64.low %v10247_v41, %v1861_v2  ;;  %v10319_v47 = vmul.u32.u64.high %v10247_v41, %v1861_v2, %v10318_v24  ;;  %v1984_v18 = vsub.s32 0, %v10309_v20  ;;  %v1853_v54 = vsel %vm1847_vm14, %v1850_v15, %v1852_v32 }
 0x20e   : > { %v1681_v0 = vor.u32 %v1680_v26, %v16336_v25  ;;  %v2026_v11 = vshrl.u32 %v2025_v8, 23  ;;  %8769 = vcosq.f32 %v10188_v31  ;;  %v1686_v55 = vand.u32 2147483647, %v10259_v38 }
 0x20f   : > { %vm16039_vm1 = vcmp.lt.s32.totalorder %v9969_v17, 0  ;;  %v1872_v14 = vadd.s32 1, %v10304_v33  ;;  %v10328_v4 = vmul.f32 %v1584_v1, %v1582_v63  ;;  %v1483_v56 = vsel %vm16038_vm3, %v1482_v19, %v10199_v43 }
 0x210   : > { %v8171_v26 = vmin.u32 %v1984_v18, %v10309_v20  ;;  %v8174_v13 = vadd.s32 4294967169, %v2026_v11  ;;  %v1688_v44 = vcvt.s32.f32 %v1681_v0  ;;  %v1869_v8 = vmul.u32 %v10247_v41, %v1853_v54 }
 0x211   : > { %vm1871_vm0 = vc.u32 %v10319_v47, %v10303_v45  ;;  %v16035_v38 = vand.u32 2147483647, %v10252_v61  ;;  %v1795_v62 = vsel %vm16039_vm1, %v1794_v3, %v1793_v37  ;;  %v10344_v43 = vsel %vm10293_vm15, %v9788_v53, %v1483_v56 }
 0x212   : > { %v1986_v46 = vclz %v8171_v26  ;;  %v1873_v15 = vsel %vm1871_vm0, %v1872_v14, %v10304_v33  ;;  %v2032_v52 = vadd.s32 1, %v8174_v13  ;;  %v10346_v32 = vmul.f32 %v1688_v44, %v1686_v55 }
 0x213   : > { %v16337_v41 = vand.u32 2147483647, %v9969_v17  ;;  %v1874_v63 = vadd.s32 %v1873_v15, %v1869_v8  ;;  %v2029_v25 = vand.u32 8388607, %v16035_v38  ;;  %8771 = vcosq.f32 %v10344_v43 }
 0x214   : > { %v8172_v33 = vadd.s32 4294967294, %v1986_v46  ;;  %vm2033_vm12 = vcmp.gt.s32.totalorder %v2032_v52, 0  ;;  %v1974_v54 = vadd.s32 %v10238_v35, %v10257_v9  ;;  %vm1504_vm10 = vcmp.lt.s32.totalorder %v9702_v29, 0 }
 0x215   : > { %vm10350_vm2 = vcmp.le.f32.partialorder %v16337_v41, 0.7853982  ;;  %v1875_v1 = vadd.s32 536870912, %v1874_v63  ;;  %v2034_v0 = vsel %vm2033_vm12, %v2032_v52, 0  ;;  %v2030_v44 = vor.u32 8388608, %v2029_v25 }
 0x216   : > { %v1798_v2 = vsel %vm10350_vm2, %v9969_v17, %v1795_v62  ;;  %vm8173_vm14 = vcmp.lt.s32.totalorder %v8172_v33, 0  ;;  %v2036_v3 = vand.u32 31, %v2034_v0  ;;  %v10369_v8 = vshrl.u32 %v2034_v0, 5 }
 0x217   : > { %v1989_v11 = vsel %vm8173_vm14, 0, %v8172_v33  ;;  %v10366_v55 = vshrl.u32 %v1875_v1, 30  ;;  %8773 = vcosq.f32 %v1798_v2  ;;  %v16353_v51 = vand.u32 2147483647, %v10139_v50 }
 0x218   : > { %v1990_v14 = vsub.s32 32, %v1989_v11  ;;  %v1994_v56 = vsub.s32 4294967266, %v1989_v11  ;;  %v2037_v26 = vsub.s32 32, %v2036_v3  ;;  %8775 = vsinq.f32 %v1798_v2 }
 0x219   : > { %v1877_v13 = vshll.u32 %v10366_v55, 30  ;;  %v1991_v62 = vshll.u32 %v10309_v20, %v1989_v11  ;;  %v2039_v9 = vshll.u32 %v16300_v28, %v2036_v3  ;;  %v2042_v41 = vshll.u32 %v16293_v16, %v2036_v3 }
 0x21a   : > { %v1992_v46 = vshrl.u32 %v1974_v54, %v1990_v14  ;;  %v1995_v15 = vadd.s32 127, %v1994_v56  ;;  %v2040_v52 = vshrl.u32 %v16293_v16, %v2037_v26  ;;  %v2043_v33 = vshrl.u32 %v16287_v59, %v2037_v26 }
 0x21b   : > { %v10373_v35 = vsub.s32 %v1874_v63, %v1877_v13  ;;  %v10378_v2 = vpop.eup %8769  ;;  %v2045_v0 = vshll.u32 %v16287_v59, %v2036_v3  ;;  %v2046_v20 = vshrl.u32 %v16288_v39, %v2037_v26  ;;  %v2048_v11 = vshll.u32 %v16288_v39, %v2036_v3 }
 0x21c   : > { %v1993_v1 = vor.u32 %v1992_v46, %v1991_v62  ;;  %v1996_v25 = vshll.u32 %v1995_v15, 23  ;;  %v2049_v63 = vshrl.u32 %v16303_v12, %v2037_v26  ;;  %v10385_v14 = vshll.u32 %v2030_v44, 8 }
 0x21d   : > { %v1880_v54 = vsub.s32 0, %v10373_v35  ;;  %v2041_v13 = vor.u32 %v2040_v52, %v2039_v9  ;;  %v2044_v38 = vor.u32 %v2043_v33, %v2042_v41  ;;  %v2047_v37 = vor.u32 %v2046_v20, %v2045_v0 }
 0x21e   : > { %v1997_v56 = vor.u32 4788187, %v1996_v25  ;;  %v2050_v46 = vor.u32 %v2049_v63, %v2048_v11  ;;  %v2051_v15 = vshll.u32 %v16303_v12, %v2036_v3  ;;  %v2052_v19 = vshrl.u32 %v16294_v58, %v2037_v26 }
 0x21f   : > { %v8167_v62 = vmin.u32 %v1880_v54, %v10373_v35  ;;  %v2000_v24 = vcvt.s32.f32 %v1993_v1  ;;  %v2038_v39 = vshrl.u32 %v16300_v28, %v2037_v26  ;;  %vm2057_vm12 = vcmp.lt.s32.totalorder %v10369_v8, 4 }
 0x220   : > { %v1998_v18 = vand.u32 2147483647, %v1997_v56  ;;  %v2053_v59 = vor.u32 %v2052_v19, %v2051_v15  ;;  %vm2054_vm14 = vcmp.lt.s32.totalorder %v10369_v8, 1  ;;  %v2059_v52 = vsel %vm2057_vm12, %v2047_v37, 2102212464  ;;  %v10406_v19 = vpop.eup %8771 }
 0x221   : > { %v1882_v44 = vclz %v8167_v62  ;;  %v16340_v9 = vand.u32 2147483647, %v9892_v23  ;;  %vm2055_vm0 = vcmp.lt.s32.totalorder %v10369_v8, 2  ;;  %vm2056_vm1 = vcmp.lt.s32.totalorder %v10369_v8, 3 }
 0x222   : > { %v2062_v3 = vsel %vm2054_vm14, %v2041_v13, %v2044_v38  ;;  %v2063_v26 = vsel %vm2057_vm12, %v2050_v46, 920167782  ;;  %v2058_v1 = vsel %vm2054_vm14, %v2038_v39, %v2041_v13  ;;  %v2066_v0 = vsel %vm2054_vm14, %v2044_v38, %v2047_v37 }
 0x223   : > { %vm10398_vm3 = vcmp.le.f32.partialorder %v16340_v9, 0.7853982  ;;  %v8168_v33 = vadd.s32 4294967294, %v1882_v44  ;;  %v2064_v25 = vsel %vm2056_vm1, %v2047_v37, %v2063_v26  ;;  %v2001_v20 = vmul.f32 %v2000_v24, %v1998_v18 }
 0x224   : > { %v2060_v54 = vsel %vm2056_vm1, %v2044_v38, %v2059_v52  ;;  %v2065_v11 = vsel %vm2055_vm0, %v2062_v3, %v2064_v25  ;;  %v2067_v63 = vsel %vm2057_vm12, %v2053_v59, 1326507024  ;;  %v10413_v56 = vpop.eup %8773  ;;  %8777 = vsinq.f32 %v10344_v43  ;;  %v16373_v3 = vld [vmem:[#allocation31_spill] sm:$0xff] }
 0x225   : > { %vm8169_vm8 = vcmp.lt.s32.totalorder %v8168_v33, 0  ;;  %v2068_v62 = vsel %vm2056_vm1, %v2050_v46, %v2067_v63  ;;  %v10416_v15 = vmul.u32.u64.low %v10385_v14, %v2065_v11  ;;  %v10417_v44 = vmul.u32.u64.high %v10385_v14, %v2065_v11, %v10416_v15  ;;  %v10420_v39 = vpop.eup %8775 }
 0x226   : > { %v16343_v38 = vsub.s32 4, %v10197_v49  ;;  %vm16344_vm14 = vcmp.lt.s32.totalorder %v9969_v17, 0  ;;  %v1885_v59 = vsel %vm8169_vm8, 0, %v8168_v33  ;;  %v2069_v24 = vsel %vm2055_vm0, %v2066_v0, %v2068_v62 }
 0x227   : > { %v16345_v18 = vxor.u32 2147483648, %v10346_v32  ;;  %vm16346_vm1 = vcmp.lt.s32.totalorder %v9892_v23, 0  ;;  %v1870_v46 = vadd.s32 %v10303_v45, %v10319_v47  ;;  %v1886_v43 = vsub.s32 32, %v1885_v59 }
 0x228   : > { %v1797_v37 = vsel %vm16344_vm14, %v16343_v38, %v10197_v49  ;;  %v1890_v52 = vsub.s32 4294967266, %v1885_v59  ;;  %v16347_v9 = vand.u32 2147483647, %v9702_v29  ;;  %v2002_v49 = vxor.u32 2147483648, %v2001_v20 }
 0x229   : > { %v1691_v13 = vsel %vm16346_vm1, %v16345_v18, %v10346_v32  ;;  %v2061_v26 = vsel %vm2055_vm0, %v2058_v1, %v2060_v54  ;;  %v10446_v33 = vmul.u32.u64.low %v10385_v14, %v2069_v24  ;;  %v10447_v25 = vmul.u32.u64.high %v10385_v14, %v2069_v24, %v10446_v33 }
 0x22a   : > { %vm10439_vm12 = vcmp.le.f32.partialorder %v16347_v9, 0.7853982  ;;  %v1887_v32 = vshll.u32 %v10373_v35, %v1885_v59  ;;  %v1888_v0 = vshrl.u32 %v1870_v46, %v1886_v43  ;;  %v1891_v45 = vadd.s32 127, %v1890_v52 }
 0x22b   : > { %v2080_v47 = vadd.s32 1, %v10417_v44  ;;  %8779 = vsinq.f32 %v10188_v31  ;;  %v1588_v11 = vsub.s32 4, %v9894_v5  ;;  %v16350_v63 = vsub.s32 4, %v10004_v10 }
 0x22c   : > { %vm16351_vm8 = vcmp.lt.s32.totalorder %v9788_v53, 0  ;;  %vm1920_vm0 = vcmp.lt.s32.totalorder %v10139_v50, 0  ;;  %v1694_v35 = vsel %vm10398_vm3, %v9892_v23, %v1691_v13  ;;  %v1799_v1 = vsel %vm10350_vm2, 0, %v1797_v37 }
 0x22d   : > { %v1485_v8 = vsel %vm16351_vm8, %v16350_v63, %v10004_v10  ;;  %v1889_v54 = vor.u32 %v1888_v0, %v1887_v32  ;;  %v1892_v62 = vshll.u32 %v1891_v45, 23  ;;  %v2003_v31 = vsel %vm1920_vm0, %v2002_v49, %v2001_v20 }
 0x22e   : > { %v1900_v38 = vsub.s32 4, %v10366_v55  ;;  %v2077_v59 = vmul.u32 %v10385_v14, %v2061_v26  ;;  %vm2079_vm14 = vc.u32 %v10447_v25, %v10416_v15  ;;  %v16352_v10 = vxor.u32 2147483648, %v10328_v4 }
 0x22f   : > { %vm10477_vm2 = vcmp.le.f32.partialorder %v16353_v51, 0.7853982  ;;  %v1893_v20 = vor.u32 4788187, %v1892_v62  ;;  %v2081_v18 = vsel %vm2079_vm14, %v2080_v47, %v10417_v44  ;;  %v2004_v14 = vsub.s32 4, %v10285_v60 }
 0x230   : > { %v1587_v24 = vsel %vm1504_vm10, %v16352_v10, %v10328_v4  ;;  %vm1816_vm1 = vcmp.lt.s32.totalorder %v10158_v34, 0  ;;  %v2082_v13 = vadd.s32 %v2081_v18, %v2077_v59  ;;  %v1803_v46 = vadd.s32 3, %v1799_v1 }
 0x231   : > { %8781 = vsinq.f32 %v1694_v35  ;;  %v2006_v4 = vsel %vm10477_vm2, %v10139_v50, %v2003_v31  ;;  %v1894_v43 = vand.u32 2147483647, %v1893_v20  ;;  %v1896_v52 = vcvt.s32.f32 %v1889_v54 }
 0x232   : > { %v10490_v9 = vsel %vm1504_vm10, %v1588_v11, %v9894_v5  ;;  %8783 = vcosq.f32 %v1694_v35  ;;  %v1901_v44 = vsel %vm1816_vm1, %v1900_v38, %v10366_v55  ;;  %v2083_v49 = vadd.s32 536870912, %v2082_v13  ;;  %v8778_v11 = vpop.eup %8777 }
 0x233   : > { %v1590_v26 = vsel %vm10439_vm12, %v9702_v29, %v1587_v24  ;;  %v16356_v33 = vand.u32 2147483647, %v10158_v34  ;;  %v1897_v0 = vmul.f32 %v1896_v52, %v1894_v43  ;;  %v1487_v5 = vsel %vm10293_vm15, 0, %v1485_v8 }
 0x234   : > { %v2005_v45 = vsel %vm1920_vm0, %v2004_v14, %v10285_v60  ;;  %8785 = vcosq.f32 %v2006_v4  ;;  %v10509_v55 = vshrl.u32 %v2083_v49, 30  ;;  %v1804_v47 = vand.u32 3, %v1803_v46 }
 0x235   : > { %vm10500_vm8 = vcmp.le.f32.partialorder %v16356_v33, 0.7853982  ;;  %v1692_v63 = vsub.s32 4, %v10117_v36  ;;  %v1898_v35 = vxor.u32 2147483648, %v1897_v0  ;;  %v1807_v54 = vxor.u32 2147483648, %v10420_v39 }
 0x236   : > { %v1903_v1 = vsel %vm10500_vm8, 0, %v1901_v44  ;;  %8787 = vcosq.f32 %v1590_v26  ;;  %v2085_v21 = vshll.u32 %v10509_v55, 30  ;;  %v1810_v8 = vxor.u32 2147483648, %v10413_v56  ;;  %v16377_v44 = vld [vmem:[#allocation19_spill] sm:$0xff] }
 0x237   : > { %v1491_v62 = vadd.s32 3, %v1487_v5  ;;  %v1591_v60 = vsel %vm10439_vm12, 0, %v10490_v9  ;;  %v2007_v31 = vsel %vm10477_vm2, 0, %v2005_v45  ;;  %8789 = vsinq.f32 %v2006_v4 }
 0x238   : > { %v1899_v38 = vsel %vm1816_vm1, %v1898_v35, %v1897_v0  ;;  %v10527_v10 = vsub.s32 %v2082_v13, %v2085_v21  ;;  %v1907_v24 = vadd.s32 3, %v1903_v1  ;;  %vm1806_vm10 = vcmp.eq.s32.totalorder %v1804_v47, 0  ;;  %v10529_v51 = vpop.eup %8779 }
 0x239   : > { %v1902_v59 = vsel %vm10500_vm8, %v10158_v34, %v1899_v38  ;;  %vm16359_vm15 = vcmp.lt.s32.totalorder %v9892_v23, 0  ;;  %v1808_v37 = vsel %vm1806_vm10, %v10413_v56, %v1807_v54  ;;  %vm1809_vm0 = vcmp.eq.s32.totalorder %v1804_v47, 2 }
 0x23a   : > { %v1693_v20 = vsel %vm16359_vm15, %v1692_v63, %v10117_v36  ;;  %8791 = vcosq.f32 %v1902_v59  ;;  %v2088_v18 = vsub.s32 0, %v10527_v10  ;;  %v1811_v14 = vsel %vm1809_vm0, %v1810_v8, %v10420_v39 }
 0x23b   : > { %8793 = vsinq.f32 %v1902_v59  ;;  %v1492_v46 = vand.u32 3, %v1491_v62  ;;  %v2011_v13 = vadd.s32 3, %v2007_v31  ;;  %v1495_v4 = vxor.u32 2147483648, %v8778_v11 }
 0x23c   : > { %8795 = vsinq.f32 %v1590_v26  ;;  %v1498_v43 = vxor.u32 2147483648, %v10406_v19  ;;  %v16360_v52 = vand.u32 2147483647, %v10252_v61  ;;  %v8175_v36 = vmin.u32 %v2088_v18, %v10527_v10 }
 0x23d   : > { %v10545_v56 = vand.u32 3, %v1907_v24  ;;  %vm1805_vm2 = vcmp.lt.s32.totalorder %v1804_v47, 2  ;;  %v1695_v39 = vsel %vm10398_vm3, 0, %v1693_v20  ;;  %vm16042_vm1 = vcmp.lt.s32.totalorder %v10252_v61, 0 }
 0x23e   : > { %vm10540_vm14 = vcmp.le.f32.partialorder %v16360_v52, 0.7853982  ;;  %vm1802_vm8 = vweird.f32 %v9969_v17  ;;  %v1812_v49 = vsel %vm1805_vm2, %v1808_v37, %v1811_v14  ;;  %v16363_v26 = vsel %vm10036_vm11, 0, %v9998_v42  ;;  %v10555_v32 = vpop.eup %8781 }
 0x23f   : > { %v1387_v33 = vadd.s32 3, %v16363_v26  ;;  %v2090_v0 = vclz %v8175_v36  ;;  %v2108_v5 = vsub.s32 4, %v10509_v55  ;;  %vm1494_vm10 = vcmp.eq.s32.totalorder %v1492_v46, 0  ;;  %v10558_v45 = vpop.eup %8783 }
 0x240   : > { %vm1497_vm15 = vcmp.eq.s32.totalorder %v1492_v46, 2  ;;  %v10560_v41 = vand.u32 3, %v2011_v13  ;;  %v1496_v47 = vsel %vm1494_vm10, %v10406_v19, %v1495_v4  ;;  %v1699_v35 = vadd.s32 3, %v1695_v39 }
 0x241   : > { %v1499_v63 = vsel %vm1497_vm15, %v1498_v43, %v8778_v11  ;;  %v2078_v40 = vadd.s32 %v10416_v15, %v10447_v25  ;;  %v8176_v42 = vadd.s32 4294967294, %v2090_v0  ;;  %vm1913_vm11 = vcmp.eq.s32.totalorder %v10545_v56, 2  ;;  %v10570_v54 = vpop.eup %8785 }
 0x242   : > { %v10568_v1 = vsel %vm1802_vm8, nan, %v1812_v49  ;;  %vm1910_vm3 = vcmp.eq.s32.totalorder %v10545_v56, 0  ;;  %vm1493_vm0 = vcmp.lt.s32.totalorder %v1492_v46, 2  ;;  %v1703_v21 = vxor.u32 2147483648, %v10555_v32 }
 0x243   : > { %v1388_v19 = vand.u32 3, %v1387_v33  ;;  %v1071_v11 = vsel %vm9934_vm13, 0, %v9955_v27  ;;  %vm8177_vm2 = vcmp.lt.s32.totalorder %v8176_v42, 0  ;;  %v2109_v15 = vsel %vm16042_vm1, %v2108_v5, %v10509_v55  ;;  %v10583_v8 = vpop.eup %8787 }
 0x244   : > { %vm1909_vm8 = vcmp.lt.s32.totalorder %v10545_v56, 2  ;;  %v1500_v17 = vsel %vm1493_vm0, %v1496_v47, %v1499_v63  ;;  %v1706_v25 = vxor.u32 2147483648, %v10558_v45  ;;  %v2093_v62 = vsel %vm8177_vm2, 0, %v8176_v42  ;;  %v8790_v38 = vpop.eup %8789 }
 0x245   : > { %v10586_v31 = vand.u32 3, %v1699_v35  ;;  %v1391_v7 = vxor.u32 2147483648, %v10529_v51  ;;  %v1075_v27 = vadd.s32 3, %v1071_v11  ;;  %v2094_v59 = vsub.s32 32, %v2093_v62 }
 0x246   : > { %v2098_v55 = vsub.s32 4294967266, %v2093_v62  ;;  %v2018_v24 = vxor.u32 2147483648, %v10570_v54  ;;  %v1394_v20 = vxor.u32 2147483648, %v10378_v2  ;;  %v2111_v37 = vsel %vm10540_vm14, 0, %v2109_v15 }
 0x247   : > { %vm1390_vm0 = vcmp.eq.s32.totalorder %v1388_v19, 0  ;;  %v1076_v18 = vand.u32 3, %v1075_v27  ;;  %v1079_v14 = vxor.u32 2147483648, %v10141_v6  ;;  %v8792_v46 = vpop.eup %8791  ;;  %v2095_v13 = vshll.u32 %v10527_v10, %v2093_v62 }
 0x248   : > { %v2096_v4 = vshrl.u32 %v2078_v40, %v2094_v59  ;;  %v2099_v43 = vadd.s32 127, %v2098_v55  ;;  %v1082_v52 = vxor.u32 2147483648, %v10135_v30  ;;  %v8794_v36 = vpop.eup %8793  ;;  %v1914_v39 = vxor.u32 2147483648, %v8792_v46 }
 0x249   : > { %vm2013_vm1 = vcmp.lt.s32.totalorder %v10560_v41, 2  ;;  %v2015_v49 = vxor.u32 2147483648, %v8790_v38  ;;  %v1392_v26 = vsel %vm1390_vm0, %v10378_v2, %v1391_v7  ;;  %vm1393_vm13 = vcmp.eq.s32.totalorder %v1388_v19, 2  ;;  %v10601_v33 = vpop.eup %8795 }
 0x24a   : > { %v2097_v0 = vor.u32 %v2096_v4, %v2095_v13  ;;  %v2100_v5 = vshll.u32 %v2099_v43, 23  ;;  %v1911_v47 = vxor.u32 2147483648, %v8794_v36  ;;  %v1395_v10 = vsel %vm1393_vm13, %v1394_v20, %v10529_v51  ;;  %v16370_v20 = vld [vmem:[#allocation32_spill] sm:$0xff]  ;;  %v16376_v4 = vld [vmem:[#allocation9_spill] sm:$0xff] }
 0x24b   : > { %v1915_v63 = vsel %vm1913_vm11, %v1914_v39, %v8794_v36  ;;  %vm1389_vm2 = vcmp.lt.s32.totalorder %v1388_v19, 2  ;;  %vm1078_vm15 = vcmp.eq.s32.totalorder %v1076_v18, 0  ;;  %vm1081_vm10 = vcmp.eq.s32.totalorder %v1076_v18, 2 }
 0x24c   : > { %v2101_v35 = vor.u32 4788187, %v2100_v5  ;;  %v1912_v40 = vsel %vm1910_vm3, %v8792_v46, %v1911_v47  ;;  %v1080_v2 = vsel %vm1078_vm15, %v10135_v30, %v1079_v14  ;;  %v1083_v42 = vsel %vm1081_vm10, %v1082_v52, %v10141_v6 }
 0x24d   : > { %v1916_v11 = vsel %vm1909_vm8, %v1912_v40, %v1915_v63  ;;  %v2115_v15 = vadd.s32 3, %v2111_v37  ;;  %vm16364_vm13 = vweird.f32 %v9788_v53  ;;  %v1396_v62 = vsel %vm1389_vm2, %v1392_v26, %v1395_v10  ;;  %v16379_v10 = vld [vmem:[#allocation27_spill] sm:$0xff] }
 0x24e   : > { %v1501_v51 = vsel %vm16364_vm13, nan, %v1500_v17  ;;  %v2102_v7 = vand.u32 2147483647, %v2101_v35  ;;  %v2104_v19 = vcvt.s32.f32 %v2097_v0  ;;  %vm16365_vm11 = vweird.f32 %v10158_v34  ;;  %v16369_v34 = vld [vmem:[#allocation33_spill] sm:$0xff] }
 0x24f   : > { %v1917_v27 = vsel %vm16365_vm11, nan, %v1916_v11  ;;  %vm1077_vm0 = vcmp.lt.s32.totalorder %v1076_v18, 2  ;;  %vm2010_vm3 = vweird.f32 %v10139_v50  ;;  %vm16366_vm10 = vcmp.eq.s32.totalorder %v10560_v41, 0  ;;  %v16380_v35 = vld [vmem:[#allocation25_spill] sm:$0xff] }
 0x250   : > { %2191 = vmatprep.subr.mxu0 %v1917_v27  ;;  %v2016_v30 = vsel %vm16366_vm10, %v10570_v54, %v2015_v49  ;;  %vm16367_vm8 = vcmp.eq.s32.totalorder %v10560_v41, 2  ;;  %v1084_v56 = vsel %vm1077_vm0, %v1080_v2, %v1083_v42  ;;  %v16368_v53 = vsel %vm9810_vm4, 0, %v9770_v22  ;;  %v16372_v22 = vld [vmem:[#allocation11_spill] sm:$0xff] }
 0x251   : > { %v2019_v6 = vsel %vm16367_vm8, %v2018_v24, %v8790_v38  ;;  %v971_v17 = vadd.s32 3, %v16368_v53  ;;  %v2105_v59 = vmul.f32 %v2104_v19, %v2102_v7  ;;  %2192 = vmatpush1.msra.mxu0 %v10568_v1  ;;  %vm1702_vm15 = vcmp.eq.s32.totalorder %v10586_v31, 0  ;;  %v16384_v7 = vld [vmem:[#allocation14_spill] sm:$0xff]  ;;  %v16387_v53 = vld [vmem:[#allocation17_spill] sm:$0xff] }
 0x252   : > { %v975_v55 = vxor.u32 2147483648, %v16369_v34  ;;  %v978_v37 = vxor.u32 2147483648, %v16370_v20  ;;  %2193 = vmatprep.subr.mxu0 %v1501_v51  ;;  %vm16371_vm2 = vweird.f32 %v9578_v48  ;;  %v1595_v57 = vadd.s32 3, %v1591_v60  ;;  %v16403_v51 = vld [vmem:[#allocation29_spill] sm:$0xff] }
 0x253   : > { %v1397_v54 = vsel %vm16371_vm2, nan, %v1396_v62  ;;  %vm1074_vm4 = vweird.f32 %v16372_v22  ;;  %v972_v38 = vand.u32 3, %v971_v17  ;;  %v2106_v24 = vxor.u32 2147483648, %v2105_v59  ;;  %v16393_v22 = vld [vmem:[#allocation38_spill] sm:$0xff] }
 0x254   : > { %v2020_v1 = vsel %vm2013_vm1, %v2016_v30, %v2019_v6  ;;  %vm1705_vm13 = vcmp.eq.s32.totalorder %v10586_v31, 2  ;;  %2194 = vmatpush1.msra.mxu0 %v1397_v54  ;;  %v1085_v18 = vsel %vm1074_vm4, nan, %v1084_v56  ;;  %v1704_v48 = vsel %vm1702_vm15, %v10558_v45, %v1703_v21  ;;  %v16386_v30 = vld [vmem:[#allocation20_spill] sm:$0xff]  ;;  %v16392_v54 = vld [vmem:[#allocation7_spill] sm:$0xff] }
 0x255   : > { %2195 = vmatprep.subr.mxu0 %v1085_v18  ;;  %v1279_v9 = vsel %vm10030_vm6, 0, %v16373_v3  ;;  %vm974_vm12 = vcmp.eq.s32.totalorder %v972_v38, 0  ;;  %vm977_vm11 = vcmp.eq.s32.totalorder %v972_v38, 2  ;;  %vm16375_vm0 = vcmp.lt.s32.totalorder %v10252_v61, 0 }
 0x256   : > { %v2107_v60 = vsel %vm16375_vm0, %v2106_v24, %v2105_v59  ;;  %vm973_vm10 = vcmp.lt.s32.totalorder %v972_v38, 2  ;;  %v976_v41 = vsel %vm974_vm12, %v16370_v20, %v975_v55  ;;  %v979_v46 = vsel %vm977_vm11, %v978_v37, %v16369_v34  ;;  %v16388_v34 = vld [vmem:[#allocation28_spill] sm:$0xff]  ;;  %v16390_v55 = vld [vmem:[#allocation26_spill] sm:$0xff]  ;;  %v16394_v24 = vld [vmem:[#allocation37_spill] sm:$0xff] }
 0x257   : > { %v2110_v13 = vsel %vm10540_vm14, %v10252_v61, %v2107_v60  ;;  %v1596_v21 = vand.u32 3, %v1595_v57  ;;  %vm970_vm1 = vweird.f32 %v16376_v4  ;;  %v980_v43 = vsel %vm973_vm10, %v976_v41, %v979_v46  ;;  %v16397_v60 = vld [vmem:[#allocation15_spill] sm:$0xff] }
 0x258   : > { %8797 = vcosq.f32 %v2110_v13  ;;  %v1707_v52 = vsel %vm1705_vm13, %v1706_v25, %v10555_v32  ;;  %v1599_v36 = vxor.u32 2147483648, %v10601_v33  ;;  %v981_v39 = vsel %vm970_vm1, nan, %v980_v43  ;;  %v10718_v43 = vld [vmem:[%s15975_s2] sm:$0xff] }
 0x259   : > { %8799 = vsinq.f32 %v2110_v13  ;;  %v1602_v49 = vxor.u32 2147483648, %v10583_v8  ;;  %v1283_v26 = vadd.s32 3, %v1279_v9  ;;  %2196 = vmatpush1.msra.mxu0 %v981_v39  ;;  %v655_v5 = vsel %vm9570_vm9, 0, %v16377_v44  ;;  %v16395_v9 = vld [vmem:[#allocation13_spill] sm:$0xff]  ;;  %v16400_v39 = vld [vmem:[#allocation36_spill] sm:$0xff] }
 0x25a   : > { %v10664_v47 = vand.u32 3, %v2115_v15  ;;  %v10668_v45 = vsel %vm2010_vm3, nan, %v2020_v1  ;;  %vm1701_vm6 = vcmp.lt.s32.totalorder %v10586_v31, 2  ;;  %v659_v32 = vadd.s32 3, %v655_v5  ;;  %v16381_v15 = vld [vmem:[#allocation22_spill] sm:$0xff] }
 0x25b   : > { %v10671_v25 = vsel %vm1701_vm6, %v1704_v48, %v1707_v52  ;;  %vm1598_vm14 = vcmp.eq.s32.totalorder %v1596_v21, 0  ;;  %v663_v63 = vxor.u32 2147483648, %v16379_v10  ;;  %v666_v40 = vxor.u32 2147483648, %v16380_v35  ;;  %v2131_v52 = vld [vmem:[%s15976_s3 + $0x8] sm:$0xff] }
 0x25c   : > { %vm1597_vm8 = vcmp.lt.s32.totalorder %v1596_v21, 2  ;;  %v1600_v2 = vsel %vm1598_vm14, %v10583_v8, %v1599_v36  ;;  %vm1601_vm9 = vcmp.eq.s32.totalorder %v1596_v21, 2  ;;  %v660_v42 = vand.u32 3, %v659_v32  ;;  %v16399_v21 = vld [vmem:[#allocation5_spill] sm:$0xff] }
 0x25d   : > { %v1603_v11 = vsel %vm1601_vm9, %v1602_v49, %v10601_v33  ;;  %v10677_v50 = vand.u32 3, %v1283_v26  ;;  %v863_v31 = vsel %vm9720_vm5, 0, %v16381_v15  ;;  %v16385_v19 = vsel %vm9464_vm7, 0, %v16384_v7 }
 0x25e   : > { %v555_v27 = vadd.s32 3, %v16385_v19  ;;  %vm661_vm3 = vcmp.lt.s32.totalorder %v660_v42, 2  ;;  %vm662_vm15 = vcmp.eq.s32.totalorder %v660_v42, 0  ;;  %vm665_vm2 = vcmp.eq.s32.totalorder %v660_v42, 2  ;;  %v2133_v42 = vld [vmem:[%s15976_s3 + $0x18] sm:$0xff] }
 0x25f   : > { %v559_v8 = vxor.u32 2147483648, %v16386_v30  ;;  %vm2121_vm4 = vcmp.eq.s32.totalorder %v10664_v47, 2  ;;  %v664_v33 = vsel %vm662_vm15, %v16380_v35, %v663_v63  ;;  %v667_v6 = vsel %vm665_vm2, %v666_v40, %v16379_v10  ;;  %v16401_v10 = vld [vmem:[#allocation35_spill] sm:$0xff]  ;;  %v16402_v35 = vld [vmem:[#allocation30_spill] sm:$0xff]  ;;  %v16404_v19 = vld [vmem:[#allocation24_spill] sm:$0xff] }
 0x260   : > { %v556_v56 = vand.u32 3, %v555_v27  ;;  %v562_v17 = vxor.u32 2147483648, %v16387_v53  ;;  %vm2118_vm5 = vcmp.eq.s32.totalorder %v10664_v47, 0  ;;  %v10693_v59 = vsel %vm1597_vm8, %v1600_v2, %v1603_v11 }
 0x261   : > { %vm16389_vm7 = vnez %v16388_v34  ;;  %vm658_vm13 = vweird.f32 %v16392_v54  ;;  %v668_v57 = vsel %vm661_vm3, %v664_v33, %v667_v6  ;;  %vm2117_vm12 = vcmp.lt.s32.totalorder %v10664_v47, 2  ;;  %v10746_v6 = vld [vmem:[%s15975_s2 + $0x8] sm:$0xff] }
 0x262   : > { %v16391_v20 = vsel %vm16389_vm7, 0, %v16390_v55  ;;  %v1287_v38 = vxor.u32 2147483648, %v16393_v22  ;;  %v1290_v1 = vxor.u32 2147483648, %v16394_v24  ;;  %v669_v18 = vsel %vm658_vm13, nan, %v668_v57 }
 0x263   : > { %v1179_v37 = vadd.s32 3, %v16391_v20  ;;  %v867_v48 = vadd.s32 3, %v863_v31  ;;  %vm2114_vm11 = vweird.f32 %v10252_v61  ;;  %vm1286_vm0 = vcmp.eq.s32.totalorder %v10677_v50, 0  ;;  %2197 = vmatprep.subr.mxu0 %v669_v18  ;;  %v2128_v61 = vld [vmem:[%s15975_s2 + $0x10] sm:$0xff]  ;;  %v16407_v18 = vld [vmem:[#allocation16_spill] sm:$0xff] }
 0x264   : > { %vm1289_vm10 = vcmp.eq.s32.totalorder %v10677_v50, 2  ;;  %vm558_vm1 = vcmp.eq.s32.totalorder %v556_v56, 0  ;;  %vm561_vm6 = vcmp.eq.s32.totalorder %v556_v56, 2  ;;  %vm1285_vm14 = vcmp.lt.s32.totalorder %v10677_v50, 2 }
 0x265   : > { %vm557_vm8 = vcmp.lt.s32.totalorder %v556_v56, 2  ;;  %v560_v3 = vsel %vm558_vm1, %v16387_v53, %v559_v8  ;;  %v563_v14 = vsel %vm561_vm6, %v562_v17, %v16386_v30  ;;  %vm16396_vm9 = vnez %v16395_v9  ;;  %v8798_v36 = vpop.eup %8797  ;;  %v16405_v30 = vld [vmem:[#allocation21_spill] sm:$0xff]  ;;  %v2129_v9 = vld [vmem:[%s15975_s2 + $0x18] sm:$0xff] }
 0x266   : > { %v16398_v41 = vsel %vm16396_vm9, 0, %v16397_v60  ;;  %vm1698_vm3 = vweird.f32 %v9892_v23  ;;  %v1180_v13 = vand.u32 3, %v1179_v37  ;;  %vm554_vm15 = vweird.f32 %v16399_v21  ;;  %v8800_v0 = vpop.eup %8799  ;;  %v2130_v56 = vld [vmem:[%s15976_s3] sm:$0xff]  ;;  %v2132_v37 = vld [vmem:[%s15976_s3 + $0x10] sm:$0xff]  ;;  %v16408_v23 = vld [vmem:[#allocation10_spill] sm:$0xff] }
 0x267   : > { %v763_v46 = vadd.s32 3, %v16398_v41  ;;  %v564_v4 = vsel %vm557_vm8, %v560_v3, %v563_v14  ;;  %vm16078_vm2 = vcmask 261120   ;;  %v1183_v49 = vxor.u32 2147483648, %v16400_v39  ;;  %v16409_v14 = vld [vmem:[#allocation8_spill] sm:$0xff]  ;;  %v16410_v41 = vld [vmem:[#allocation6_spill] sm:$0xff]  ;;  %v8262_v21 = vld [vmem:[%s15976_s3 + $0x20] sm:$0xff] }
 0x268   : > { %v868_v26 = vand.u32 3, %v867_v48  ;;  %v565_v44 = vsel %vm554_vm15, nan, %v564_v4  ;;  %v2122_v5 = vxor.u32 2147483648, %v8798_v36  ;;  %v1288_v32 = vsel %vm1286_vm0, %v16394_v24, %v1287_v38  ;;  %v8337_v4 = vld [vmem:[%s15976_s3 + $0x58] sm:$0xff] }
 0x269   : > { %v1186_v63 = vxor.u32 2147483648, %v16401_v10  ;;  %v871_v40 = vxor.u32 2147483648, %v16402_v35  ;;  %2198 = vmatpush1.msra.mxu0 %v565_v44  ;;  %v9070_v2 = vmov 0   ;;  %v2119_v11 = vxor.u32 2147483648, %v8800_v0 }
 0x26a   : > { %8736 = vset.pattern.permute.xlu1 %v9070_v2  ;;  %v1291_v15 = vsel %vm1289_vm10, %v1290_v1, %v16393_v22  ;;  %v874_v31 = vxor.u32 2147483648, %v16403_v51  ;;  %v764_v62 = vand.u32 3, %v763_v46  ;;  %8178 = vmatmul.mubr.msk.f32.vlgmr.msra.gmra.mxu0 %vm16078_vm2, %v10718_v43  ;;  %v2123_v7 = vsel %vm2121_vm4, %v2122_v5, %v8800_v0 }
 0x26b   : > { %2141 = vperm.xlu1 %8736, %v2131_v52   ;;  %vm1182_vm7 = vcmp.eq.s32.totalorder %v1180_v13, 0  ;;  %v767_v27 = vxor.u32 2147483648, %v16404_v19  ;;  %v770_v8 = vxor.u32 2147483648, %v16405_v30  ;;  %v16406_v33 = vmov 0.0   ;;  %8735 = vset.pattern.permute.xlu0 %v9070_v2  ;;  %v8336_v52 = vld [vmem:[%s15976_s3 + $0x50] sm:$0xff] }
 0x26c   : > { %2237 = vmatprep.mubr.f32.mxu0 %v16406_v33  ;;  %v2120_v53 = vsel %vm2118_vm5, %v8798_v36, %v2119_v11  ;;  %v1184_v17 = vsel %vm1182_vm7, %v16401_v10, %v1183_v49  ;;  %vm1185_vm4 = vcmp.eq.s32.totalorder %v1180_v13, 2  ;;  %vm870_vm13 = vcmp.eq.s32.totalorder %v868_v26, 0  ;;  %2151 = vperm.xlu0 %8735, %v2133_v42   ;;  %v8334_v36 = vld [vmem:[%s15976_s3 + $0x40] sm:$0xff] }
 0x26d   : > { %v2124_v34 = vsel %vm2117_vm12, %v2120_v53, %v2123_v7  ;;  %v1187_v55 = vsel %vm1185_vm4, %v1186_v63, %v16400_v39  ;;  %v872_v20 = vsel %vm870_vm13, %v16403_v51, %v871_v40  ;;  %vm873_vm0 = vcmp.eq.s32.totalorder %v868_v26, 2  ;;  %v8414_v39 = vld [vmem:[%s15976_s3 + $0x60] sm:$0xff] }
 0x26e   : > { %v2125_v54 = vsel %vm2114_vm11, nan, %v2124_v34  ;;  %v875_v57 = vsel %vm873_vm0, %v874_v31, %v16402_v35  ;;  %vm766_vm5 = vcmp.eq.s32.totalorder %v764_v62, 0  ;;  %vm769_vm10 = vcmp.eq.s32.totalorder %v764_v62, 2  ;;  %8179 = vmatmul.mubr.msk.f32.gmra.mxu0 %vm16078_vm2, %v10746_v6 }
 0x26f   : > { %2136 = vperm.xlu1 %8736, %v2130_v56   ;;  %2280 = vmatprep.subr.mxu1 %v2125_v54  ;;  %v1292_v47 = vsel %vm1285_vm14, %v1288_v32, %v1291_v15  ;;  %vm1181_vm12 = vcmp.lt.s32.totalorder %v1180_v13, 2  ;;  %v768_v22 = vsel %vm766_vm5, %v16405_v30, %v767_v27  ;;  %v771_v38 = vsel %vm769_vm10, %v770_v8, %v16404_v19  ;;  %v8263_v13 = vld [vmem:[%s15976_s3 + $0x28] sm:$0xff] }
 0x270   : > { %2243 = vmatprep.mubr.f32.mxu0 %v16406_v33  ;;  %2281 = vmatpush1.msra.mxu1 %v10668_v45  ;;  %v1709_v24 = vsel %vm1698_vm3, nan, %v10671_v25  ;;  %vm1594_vm11 = vweird.f32 %v9702_v29  ;;  %v1188_v50 = vsel %vm1181_vm12, %v1184_v17, %v1187_v55  ;;  %vm869_vm1 = vcmp.lt.s32.totalorder %v868_v26, 2  ;;  %v8265_v45 = vld [vmem:[%s15976_s3 + $0x38] sm:$0xff]  ;;  %v8264_v29 = vld [vmem:[%s15976_s3 + $0x30] sm:$0xff] }
 0x271   : > { %2146 = vperm.xlu0 %8735, %v2132_v37   ;;  %2282 = vmatprep.subr.mxu1 %v1709_v24  ;;  %v1605_v1 = vsel %vm1594_vm11, nan, %v10693_v59  ;;  %vm1282_vm6 = vweird.f32 %v16407_v18  ;;  %v876_v48 = vsel %vm869_vm1, %v872_v20, %v875_v57  ;;  %vm765_vm14 = vcmp.lt.s32.totalorder %v764_v62, 2 }
 0x272   : > { %2283 = vmatpush1.msra.mxu1 %v1605_v1  ;;  %v1293_v3 = vsel %vm1282_vm6, nan, %v1292_v47  ;;  %vm1178_vm8 = vweird.f32 %v16408_v23  ;;  %v772_v25 = vsel %vm765_vm14, %v768_v22, %v771_v38  ;;  %8180 = vmatmul.mubr.msk.f32.gmra.mxu0 %vm16078_vm2, %v2128_v61  ;;  %vm866_vm9 = vweird.f32 %v16409_v14 }
 0x273   : > { %2284 = vmatprep.subr.mxu1 %v1293_v3  ;;  %v1189_v59 = vsel %vm1178_vm8, nan, %v1188_v50  ;;  %2249 = vmatprep.mubr.f32.mxu0 %v16406_v33  ;;  %v877_v60 = vsel %vm866_vm9, nan, %v876_v48  ;;  %vm762_vm3 = vweird.f32 %v16410_v41 }
 0x274   : > { %2285 = vmatpush1.msra.mxu1 %v1189_v59  ;;  %v773_v46 = vsel %vm762_vm3, nan, %v772_v25  ;;  %4221 = vperm.xlu1 %8736, %v8264_v29   ;;  %v16431_v29 = vmov 2131351028  }
 0x275   : > { %4226 = vperm.xlu0 %8735, %v8265_v45   ;;  %2286 = vmatprep.subr.mxu1 %v877_v60  ;;  %v16432_v60 = vmov 2102212464  }
 0x276   : > { %2287 = vmatpush1.msra.mxu1 %v773_v46  ;;  %8181 = vmatmul.mubr.msk.f32.gmra.mxu0 %vm16078_vm2, %v2129_v9 }
 0x277   : > { %8182 = vmatmul.mubr.msk.f32.vlgmr.msra.gmra.mxu1 %vm16078_vm2, %v10718_v43  ;;  %4090 = vmatprep.mubr.f32.mxu0 %v16406_v33  ;;  %v8335_v43 = vld [vmem:[%s15976_s3 + $0x48] sm:$0xff] }
 0x278   : > { %2326 = vmatprep.mubr.f32.mxu1 %v16406_v33  ;;  %4211 = vperm.xlu1 %8736, %v8262_v21  }
 0x279   : > { %4216 = vperm.xlu0 %8735, %v8263_v13  }
 0x27b   : > { %8183 = vmatmul.mubr.msk.f32.gmra.mxu1 %vm16078_vm2, %v10746_v6 }
 0x27c   : > { %2332 = vmatprep.mubr.f32.mxu1 %v16406_v33  ;;  %5931 = vperm.xlu1 %8736, %v8336_v52  }
 0x27d   : > { %5936 = vperm.xlu0 %8735, %v8337_v4  }
 0x27f   : > { %8184 = vmatmul.mubr.msk.f32.gmra.mxu1 %vm16078_vm2, %v2128_v61 }
 0x280   : > { %2338 = vmatprep.mubr.f32.mxu1 %v16406_v33  ;;  %5921 = vperm.xlu1 %8736, %v8334_v36  }
 0x281   : > { %5926 = vperm.xlu0 %8735, %v8335_v43  }
 0x283   : > { %8185 = vmatmul.mubr.msk.f32.gmra.mxu1 %vm16078_vm2, %v2129_v9 }
 0x284   : > { %4179 = vmatprep.mubr.f32.mxu1 %v16406_v33 }
 0x285   : > { %7805 = vperm.xlu0 %8735, %v8414_v39  }
 0x291   : > { %v10828_v49 = vpop.f32.mrf.mxu0  ;;  %v10836_v5 = vpop.f32.mrf.mxu1 }
 0x292   : > { %16411 = vst [vmem:[#allocation33_spill] sm:$0xff] %v10828_v49  ;;  %16415 = vst [vmem:[#allocation34_spill] sm:$0xff] %v10836_v5 }
 0x293   : > { %v10830_v26 = vpop.f32.mrf.mxu0  ;;  %v10840_v10 = vpop.f32.mrf.mxu1 }
 0x294   : > { %16412 = vst [vmem:[#allocation32_spill] sm:$0xff] %v10830_v26  ;;  %16417 = vst [vmem:[#allocation19_spill] sm:$0xff] %v10840_v10 }
 0x296   : > { %v10832_v44 = vpop.f32.mrf.mxu0  ;;  %v10844_v35 = vpop.f32.mrf.mxu1 }
 0x297   : > { %16413 = vst [vmem:[#allocation11_spill] sm:$0xff] %v10832_v44  ;;  %16419 = vst [vmem:[#allocation27_spill] sm:$0xff] %v10844_v35 }
 0x298   : > { %v10834_v0 = vpop.f32.mrf.mxu0  ;;  %v10850_v42 = vpop.f32.mrf.mxu1 }
 0x299   : > { %16414 = vst [vmem:[#allocation31_spill] sm:$0xff] %v10834_v0  ;;  %16421 = vst [vmem:[#allocation22_spill] sm:$0xff] %v10850_v42 }
 0x29a   : > { %v10838_v32 = vpop.f32.mrf.mxu0  ;;  %v10856_v51 = vpop.f32.mrf.mxu1 }
 0x29b   : > { %16416 = vst [vmem:[#allocation9_spill] sm:$0xff] %v10838_v32  ;;  %16423 = vst [vmem:[#allocation12_spill] sm:$0xff] %v10856_v51 }
 0x29c   : > { %v10842_v63 = vpop.f32.mrf.mxu0  ;;  %v10861_v19 = vpop.f32.mrf.mxu1 }
 0x29d   : > { %16418 = vst [vmem:[#allocation18_spill] sm:$0xff] %v10842_v63  ;;  %16425 = vst [vmem:[#allocation20_spill] sm:$0xff] %v10861_v19 }
 0x2a6   : > { %v10848_v2 = vpop.f32.mrf.mxu0  ;;  %v10869_v53 = vpop.f32.mrf.mxu1 }
 0x2a7   : > { %16420 = vst [vmem:[#allocation25_spill] sm:$0xff] %v10848_v2  ;;  %16427 = vst [vmem:[#allocation28_spill] sm:$0xff] %v10869_v53 }
 0x2a8   : > { %v10852_v11 = vpop.f32.mrf.mxu0  ;;  %v10873_v54 = vpop.f32.mrf.mxu1 }
 0x2a9   : > { %16422 = vst [vmem:[#allocation23_spill] sm:$0xff] %v10852_v11  ;;  %16428 = vst [vmem:[#allocation26_spill] sm:$0xff] %v10873_v54 }
 0x2e6   : > { %v10846_v40 = vpop.permute.xlu1 %2141 }
 0x2ea   : > { %v10854_v15 = vpop.permute.xlu1 %2136 }
 0x32a   : > { %v2233_v31 = vpop.f32.mrf.mxu0 }
 0x32b   : > { %v10859_v62 = vadd.f32 %v2233_v31, %v10854_v15 }
 0x32c   : > { %v2235_v7 = vpop.f32.mrf.mxu0 }
 0x32d   : > { %16424 = vst [vmem:[#allocation14_spill] sm:$0xff] %v10859_v62  ;;  %v16045_v27 = vand.u32 2147483647, %v10859_v62  ;;  %v2348_v30 = vand.u32 2139095040, %v10859_v62  ;;  %v10866_v8 = vadd.f32 %v2235_v7, %v10854_v15 }
 0x32e   : > { %v2239_v38 = vpop.f32.mrf.mxu0 }
 0x32f   : > { %16426 = vst [vmem:[#allocation17_spill] sm:$0xff] %v10866_v8  ;;  %v2349_v6 = vshrl.u32 %v2348_v30, 23  ;;  %v2452_v56 = vand.u32 2139095040, %v10866_v8  ;;  %v2352_v34 = vand.u32 8388607, %v16045_v27  ;;  %v10882_v3 = vadd.f32 %v2239_v38, %v10846_v40 }
 0x330   : > { %v16043_v1 = vand.u32 2147483647, %v10866_v8 }
 0x331   : > { %v8186_v17 = vadd.s32 4294967169, %v2349_v6  ;;  %v2453_v55 = vshrl.u32 %v2452_v56, 23  ;;  %v2353_v57 = vor.u32 8388608, %v2352_v34  ;;  %16430 = vst [vmem:[#allocation38_spill] sm:$0xff] %v10882_v3 }
 0x333   : > { %v2355_v20 = vadd.s32 1, %v8186_v17  ;;  %v8190_v37 = vadd.s32 4294967169, %v2453_v55  ;;  %v10876_v48 = vshll.u32 %v2353_v57, 8 }
 0x335   : > { %vm2356_vm15 = vcmp.gt.s32.totalorder %v2355_v20, 0  ;;  %v2459_v22 = vadd.s32 1, %v8190_v37 }
 0x336   : > { %v2357_v47 = vsel %vm2356_vm15, %v2355_v20, 0 }
 0x337   : > { %v2359_v61 = vand.u32 31, %v2357_v47  ;;  %v2322_v24 = vpop.f32.mrf.mxu1  ;;  %v2358_v50 = vshrl.u32 %v2357_v47, 5  ;;  %vm2460_vm7 = vcmp.gt.s32.totalorder %v2459_v22, 0 }
 0x338   : > { %v10879_v45 = vadd.f32 %v2322_v24, %v10854_v15 }
 0x339   : > { %v2360_v18 = vsub.s32 32, %v2359_v61  ;;  %v2362_v23 = vshll.u32 %v16300_v28, %v2359_v61  ;;  %v2365_v25 = vshll.u32 %v16293_v16, %v2359_v61  ;;  %v2368_v59 = vshll.u32 %v16431_v29, %v2359_v61 }
 0x33a   : > { %16429 = vst [vmem:[#allocation7_spill] sm:$0xff] %v10879_v45  ;;  %v2371_v46 = vshll.u32 %v16432_v60, %v2359_v61  ;;  %v2374_v21 = vshll.u32 %v16303_v12, %v2359_v61  ;;  %vm2377_vm4 = vcmp.lt.s32.totalorder %v2358_v50, 1  ;;  %vm2380_vm13 = vcmp.lt.s32.totalorder %v2358_v50, 4 }
 0x33b   : > { %v2363_v14 = vshrl.u32 %v16293_v16, %v2360_v18  ;;  %v2366_v9 = vshrl.u32 %v16431_v29, %v2360_v18  ;;  %v2369_v41 = vshrl.u32 %v16432_v60, %v2360_v18  ;;  %v2372_v13 = vshrl.u32 %v16303_v12, %v2360_v18 }
 0x33c   : > { %v2375_v4 = vshrl.u32 %v16294_v58, %v2360_v18  ;;  %v16044_v7 = vand.u32 2147483647, %v10879_v45  ;;  %v2556_v30 = vand.u32 2139095040, %v10879_v45  ;;  %v2361_v6 = vshrl.u32 %v16300_v28, %v2360_v18 }
 0x33d   : > { %v2364_v52 = vor.u32 %v2363_v14, %v2362_v23  ;;  %v2367_v43 = vor.u32 %v2366_v9, %v2365_v25  ;;  %v2370_v36 = vor.u32 %v2369_v41, %v2368_v59  ;;  %v2373_v39 = vor.u32 %v2372_v13, %v2371_v46 }
 0x33e   : > { %v2376_v31 = vor.u32 %v2375_v4, %v2374_v21  ;;  %vm2378_vm0 = vcmp.lt.s32.totalorder %v2358_v50, 2  ;;  %vm2379_vm5 = vcmp.lt.s32.totalorder %v2358_v50, 3  ;;  %v2557_v38 = vshrl.u32 %v2556_v30, 23 }
 0x33f   : > { %v2382_v56 = vsel %vm2380_vm13, %v2370_v36, 2102212464  ;;  %v2385_v17 = vsel %vm2377_vm4, %v2364_v52, %v2367_v43  ;;  %v2389_v34 = vsel %vm2377_vm4, %v2367_v43, %v2370_v36  ;;  %v2386_v55 = vsel %vm2380_vm13, %v2373_v39, 920167782 }
 0x340   : > { %v2390_v20 = vsel %vm2380_vm13, %v2376_v31, 1326507024  ;;  %v2381_v37 = vsel %vm2377_vm4, %v2361_v6, %v2364_v52  ;;  %v2387_v57 = vsel %vm2379_vm5, %v2370_v36, %v2386_v55  ;;  %v2383_v61 = vsel %vm2379_vm5, %v2367_v43, %v2382_v56 }
 0x341   : > { %v2391_v47 = vsel %vm2379_vm5, %v2373_v39, %v2390_v20  ;;  %v2388_v24 = vsel %vm2378_vm0, %v2385_v17, %v2387_v57  ;;  %v2560_v18 = vand.u32 8388607, %v16044_v7  ;;  %v8194_v41 = vadd.s32 4294967169, %v2557_v38 }
 0x342   : > { %v2392_v23 = vsel %vm2378_vm0, %v2389_v34, %v2391_v47  ;;  %v10909_v14 = vmul.u32.u64.low %v10876_v48, %v2388_v24  ;;  %v10910_v9 = vmul.u32.u64.high %v10876_v48, %v2388_v24, %v10909_v14  ;;  %v10915_v46 = vand.u32 8388607, %v16043_v1 }
 0x343   : > { %v10905_v25 = vmul.u32.u64.low %v10876_v48, %v2392_v23  ;;  %v10906_v59 = vmul.u32.u64.high %v10876_v48, %v2392_v23, %v10905_v25  ;;  %v2461_v13 = vsel %vm2460_vm7, %v2459_v22, 0  ;;  %v2384_v21 = vsel %vm2378_vm0, %v2381_v37, %v2383_v61 }
 0x344   : > { %v2561_v4 = vor.u32 8388608, %v2560_v18  ;;  %v10919_v52 = vand.u32 31, %v2461_v13  ;;  %v2563_v43 = vadd.s32 1, %v8194_v41  ;;  %v2403_v36 = vadd.s32 1, %v10910_v9 }
 0x345   : > { %vm2402_vm10 = vc.u32 %v10906_v59, %v10909_v14  ;;  %v2400_v30 = vmul.u32 %v10876_v48, %v2384_v21  ;;  %v10930_v50 = vshrl.u32 %v2461_v13, 5 }
 0x346   : > { %v10925_v39 = vsub.s32 32, %v10919_v52  ;;  %vm2564_vm12 = vcmp.gt.s32.totalorder %v2563_v43, 0  ;;  %v2404_v6 = vsel %vm2402_vm10, %v2403_v36, %v10910_v9  ;;  %v10933_v17 = vshll.u32 %v2561_v4, 8 }
 0x347   : > { %v2565_v56 = vsel %vm2564_vm12, %v2563_v43, 0  ;;  %v2466_v34 = vshll.u32 %v16300_v28, %v10919_v52  ;;  %v2405_v55 = vadd.s32 %v2404_v6, %v2400_v30  ;;  %v2469_v57 = vshll.u32 %v16293_v16, %v10919_v52 }
 0x348   : > { %v2566_v20 = vshrl.u32 %v2565_v56, 5  ;;  %v2567_v37 = vand.u32 31, %v2565_v56  ;;  %v2467_v48 = vshrl.u32 %v16293_v16, %v10925_v39  ;;  %v2470_v47 = vshrl.u32 %v16431_v29, %v10925_v39 }
 0x349   : > { %v2472_v38 = vshll.u32 %v16431_v29, %v10919_v52  ;;  %v2473_v61 = vshrl.u32 %v16432_v60, %v10925_v39  ;;  %v2406_v24 = vadd.s32 536870912, %v2405_v55  ;;  %v2476_v25 = vshrl.u32 %v16303_v12, %v10925_v39 }
 0x34a   : > { %v2568_v23 = vsub.s32 32, %v2567_v37  ;;  %v2570_v18 = vshll.u32 %v16300_v28, %v2567_v37  ;;  %v2573_v9 = vshll.u32 %v16293_v16, %v2567_v37  ;;  %v2576_v41 = vshll.u32 %v16431_v29, %v2567_v37 }
 0x34b   : > { %v2579_v13 = vshll.u32 %v16432_v60, %v2567_v37  ;;  %v2582_v21 = vshll.u32 %v16303_v12, %v2567_v37  ;;  %v10954_v4 = vshrl.u32 %v2406_v24, 30  ;;  %vm2585_vm11 = vcmp.lt.s32.totalorder %v2566_v20, 1 }
 0x34c   : > { %v2571_v43 = vshrl.u32 %v16293_v16, %v2568_v23  ;;  %v2574_v36 = vshrl.u32 %v16431_v29, %v2568_v23  ;;  %v2569_v30 = vshrl.u32 %v16300_v28, %v2568_v23  ;;  %v2577_v6 = vshrl.u32 %v16432_v60, %v2568_v23 }
 0x34d   : > { %16433 = vst [vmem:[#allocation37_spill] sm:$0xff] %v10954_v4  ;;  %v2580_v56 = vshrl.u32 %v16303_v12, %v2568_v23  ;;  %v2583_v1 = vshrl.u32 %v16294_v58, %v2568_v23  ;;  %v2408_v7 = vshll.u32 %v10954_v4, 30  ;;  %vm2586_vm1 = vcmp.lt.s32.totalorder %v2566_v20, 2 }
 0x34e   : > { %v2572_v27 = vor.u32 %v2571_v43, %v2570_v18  ;;  %v2575_v31 = vor.u32 %v2574_v36, %v2573_v9  ;;  %v2578_v37 = vor.u32 %v2577_v6, %v2576_v41  ;;  %vm2587_vm6 = vcmp.lt.s32.totalorder %v2566_v20, 3 }
 0x34f   : > { %v2581_v24 = vor.u32 %v2580_v56, %v2579_v13  ;;  %v2584_v22 = vor.u32 %v2583_v1, %v2582_v21  ;;  %v10963_v54 = vsub.s32 %v2405_v55, %v2408_v7  ;;  %vm2588_vm14 = vcmp.lt.s32.totalorder %v2566_v20, 4 }
 0x350   : > { %v2589_v11 = vsel %vm2585_vm11, %v2569_v30, %v2572_v27  ;;  %v2593_v53 = vsel %vm2585_vm11, %v2572_v27, %v2575_v31  ;;  %v2590_v2 = vsel %vm2588_vm14, %v2578_v37, 2102212464  ;;  %v2597_v23 = vsel %vm2585_vm11, %v2575_v31, %v2578_v37 }
 0x351   : > { %v2594_v19 = vsel %vm2588_vm14, %v2581_v24, 920167782  ;;  %v2598_v51 = vsel %vm2588_vm14, %v2584_v22, 1326507024  ;;  %v2411_v18 = vsub.s32 0, %v10963_v54  ;;  %v2591_v9 = vsel %vm2587_vm6, %v2575_v31, %v2590_v2 }
 0x352   : > { %v2595_v43 = vsel %vm2587_vm6, %v2578_v37, %v2594_v19  ;;  %v2599_v41 = vsel %vm2587_vm6, %v2581_v24, %v2598_v51  ;;  %v2468_v55 = vor.u32 %v2467_v48, %v2466_v34  ;;  %v2475_v13 = vshll.u32 %v16432_v60, %v10919_v52 }
 0x353   : > { %v2596_v1 = vsel %vm2586_vm1, %v2593_v53, %v2595_v43  ;;  %v2600_v7 = vsel %vm2586_vm1, %v2597_v23, %v2599_v41  ;;  %v8187_v27 = vmin.u32 %v2411_v18, %v10963_v54  ;;  %v2471_v22 = vor.u32 %v2470_v47, %v2469_v57 }
 0x354   : > { %v10975_v21 = vmul.u32.u64.low %v10933_v17, %v2600_v7  ;;  %v10976_v36 = vmul.u32.u64.high %v10933_v17, %v2600_v7, %v10975_v21  ;;  %v2592_v30 = vsel %vm2586_vm1, %v2589_v11, %v2591_v9  ;;  %v2477_v19 = vor.u32 %v2476_v25, %v2475_v13 }
 0x355   : > { %v10980_v2 = vmul.u32.u64.low %v10933_v17, %v2596_v1  ;;  %v10981_v51 = vmul.u32.u64.high %v10933_v17, %v2596_v1, %v10980_v2  ;;  %v2413_v53 = vclz %v8187_v27  ;;  %v2474_v31 = vor.u32 %v2473_v61, %v2472_v38  ;;  %v2324_v38 = vpop.f32.mrf.mxu1 }
 0x356   : > { %v2478_v34 = vshll.u32 %v16303_v12, %v10919_v52  ;;  %v2479_v48 = vshrl.u32 %v16294_v58, %v10925_v39  ;;  %v2465_v6 = vshrl.u32 %v16300_v28, %v10925_v39  ;;  %vm2481_vm8 = vcmp.lt.s32.totalorder %v10930_v50, 1 }
 0x357   : > { %vm2484_vm9 = vcmp.lt.s32.totalorder %v10930_v50, 4  ;;  %v16434_v11 = vor.u32 8388608, %v10915_v46  ;;  %v8188_v57 = vadd.s32 4294967294, %v2413_v53  ;;  %vm2610_vm3 = vc.u32 %v10976_v36, %v10980_v2 }
 0x358   : > { %v2480_v47 = vor.u32 %v2479_v48, %v2478_v34  ;;  %v2489_v52 = vsel %vm2481_vm8, %v2468_v55, %v2471_v22  ;;  %v2608_v61 = vmul.u32 %v10933_v17, %v2592_v30  ;;  %v2611_v39 = vadd.s32 1, %v10981_v51 }
 0x359   : > { %v2497_v20 = vshll.u32 %v16434_v11, 8  ;;  %vm2483_vm15 = vcmp.lt.s32.totalorder %v10930_v50, 3  ;;  %v2490_v25 = vsel %vm2484_vm9, %v2477_v19, 920167782  ;;  %vm2482_vm7 = vcmp.lt.s32.totalorder %v10930_v50, 2 }
 0x35a   : > { %v2486_v46 = vsel %vm2484_vm9, %v2474_v31, 2102212464  ;;  %v2491_v56 = vsel %vm2483_vm15, %v2474_v31, %v2490_v25  ;;  %v2494_v37 = vsel %vm2484_vm9, %v2480_v47, 1326507024  ;;  %v2612_v24 = vsel %vm2610_vm3, %v2611_v39, %v10981_v51 }
 0x35b   : > { %v2492_v23 = vsel %vm2482_vm7, %v2489_v52, %v2491_v56  ;;  %v2493_v18 = vsel %vm2481_vm8, %v2471_v22, %v2474_v31  ;;  %v11008_v17 = vadd.f32 %v2324_v38, %v10854_v15  ;;  %vm8189_vm4 = vcmp.lt.s32.totalorder %v8188_v57, 0 }
 0x35c   : > { %v2613_v9 = vadd.s32 %v2612_v24, %v2608_v61  ;;  %v2485_v43 = vsel %vm2481_vm8, %v2465_v6, %v2468_v55  ;;  %v2487_v41 = vsel %vm2483_vm15, %v2471_v22, %v2486_v46  ;;  %v2495_v1 = vsel %vm2483_vm15, %v2477_v19, %v2494_v37  ;;  %v2241_v22 = vpop.f32.mrf.mxu0 }
 0x35d   : > { %16435 = vst [vmem:[#allocation13_spill] sm:$0xff] %v11008_v17  ;;  %v11012_v7 = vmul.u32.u64.low %v2497_v20, %v2492_v23  ;;  %v11013_v13 = vmul.u32.u64.high %v2497_v20, %v2492_v23, %v11012_v7  ;;  %v2496_v21 = vsel %vm2482_vm7, %v2493_v18, %v2495_v1  ;;  %v16047_v30 = vand.u32 2147483647, %v10882_v3 }
 0x35e   : > { %v2614_v27 = vadd.s32 536870912, %v2613_v9  ;;  %v16436_v15 = vand.u32 2139095040, %v10882_v3  ;;  %v11021_v53 = vmul.u32.u64.low %v2497_v20, %v2496_v21  ;;  %v11022_v31 = vmul.u32.u64.high %v2497_v20, %v2496_v21, %v11021_v53 }
 0x35f   : > { %v2660_v55 = vand.u32 2139095040, %v11008_v17  ;;  %v2416_v19 = vsel %vm8189_vm4, 0, %v8188_v57  ;;  %v2488_v48 = vsel %vm2482_vm7, %v2485_v43, %v2487_v41  ;;  %v2507_v6 = vadd.s32 1, %v11013_v13  ;;  %v2328_v53 = vpop.f32.mrf.mxu1 }
 0x360   : > { %v2765_v51 = vshrl.u32 %v16436_v15, 23  ;;  %v11025_v34 = vshrl.u32 %v2614_v27, 30  ;;  %v2768_v38 = vand.u32 8388607, %v16047_v30  ;;  %v11034_v61 = vadd.f32 %v2241_v22, %v10846_v40 }
 0x361   : > { %v2661_v11 = vshrl.u32 %v2660_v55, 23  ;;  %v2417_v39 = vsub.s32 32, %v2416_v19  ;;  %v2504_v25 = vmul.u32 %v2497_v20, %v2488_v48  ;;  %vm2506_vm13 = vc.u32 %v11022_v31, %v11012_v7 }
 0x362   : > { %16437 = vst [vmem:[#allocation15_spill] sm:$0xff] %v11025_v34  ;;  %v2616_v47 = vshll.u32 %v11025_v34, 30  ;;  %v8202_v52 = vadd.s32 4294967169, %v2765_v51  ;;  %16438 = vst [vmem:[#allocation5_spill] sm:$0xff] %v11034_v61  ;;  %v2421_v50 = vsub.s32 4294967266, %v2416_v19  ;;  %v2508_v56 = vsel %vm2506_vm13, %v2507_v6, %v11013_v13 }
 0x363   : > { %v8198_v57 = vadd.s32 4294967169, %v2661_v11  ;;  %v16046_v37 = vand.u32 2147483647, %v11008_v17  ;;  %v2401_v24 = vadd.s32 %v10909_v14, %v10906_v59  ;;  %v2509_v23 = vadd.s32 %v2508_v56, %v2504_v25 }
 0x364   : > { %v11038_v46 = vsub.s32 %v2613_v9, %v2616_v47  ;;  %v2771_v41 = vadd.s32 1, %v8202_v52  ;;  %v2868_v20 = vand.u32 2139095040, %v11034_v61  ;;  %v2769_v21 = vor.u32 8388608, %v2768_v38 }
 0x365   : > { %v2667_v18 = vadd.s32 1, %v8198_v57  ;;  %v2419_v1 = vshrl.u32 %v2401_v24, %v2417_v39  ;;  %v2510_v27 = vadd.s32 536870912, %v2509_v23  ;;  %v2422_v9 = vadd.s32 127, %v2421_v50 }
 0x366   : > { %v2619_v43 = vsub.s32 0, %v11038_v46  ;;  %v2664_v13 = vand.u32 8388607, %v16046_v37  ;;  %v2418_v55 = vshll.u32 %v10963_v54, %v2416_v19  ;;  %vm2772_vm5 = vcmp.gt.s32.totalorder %v2771_v41, 0 }
 0x367   : > { %vm2668_vm0 = vcmp.gt.s32.totalorder %v2667_v18, 0  ;;  %v11049_v59 = vshrl.u32 %v2510_v27, 30  ;;  %v11052_v48 = vshrl.u32 %v2868_v20, 23  ;;  %v11055_v47 = vshll.u32 %v2769_v21, 8 }
 0x368   : > { %v8195_v15 = vmin.u32 %v2619_v43, %v11038_v46  ;;  %v2669_v51 = vsel %vm2668_vm0, %v2667_v18, 0  ;;  %v11058_v52 = vadd.f32 %v2328_v53, %v10846_v40  ;;  %v11060_v38 = vor.u32 %v2419_v1, %v2418_v55 }
 0x369   : > { %16439 = vst [vmem:[#allocation36_spill] sm:$0xff] %v11049_v59  ;;  %v2671_v14 = vand.u32 31, %v2669_v51  ;;  %v2512_v6 = vshll.u32 %v11049_v59, 30  ;;  %v2423_v39 = vshll.u32 %v2422_v9, 23  ;;  %v2665_v57 = vor.u32 8388608, %v2664_v13 }
 0x36a   : > { %v2621_v22 = vclz %v8195_v15  ;;  %16440 = vst [vmem:[#allocation35_spill] sm:$0xff] %v11058_v52  ;;  %v2773_v56 = vsel %vm2772_vm5, %v2771_v41, 0  ;;  %v2609_v21 = vadd.s32 %v10980_v2, %v10976_v36  ;;  %v2670_v9 = vshrl.u32 %v2669_v51, 5 }
 0x36b   : > { %v2672_v11 = vsub.s32 32, %v2671_v14  ;;  %v11062_v50 = vsub.s32 %v2509_v23, %v2512_v6  ;;  %v2674_v54 = vshll.u32 %v16300_v28, %v2671_v14  ;;  %v2677_v24 = vshll.u32 %v16293_v16, %v2671_v14 }
 0x36c   : > { %v8196_v25 = vadd.s32 4294967294, %v2621_v22  ;;  %v2683_v27 = vshll.u32 %v16432_v60, %v2671_v14  ;;  %v2680_v15 = vshll.u32 %v16431_v29, %v2671_v14  ;;  %v2775_v22 = vand.u32 31, %v2773_v56 }
 0x36d   : > { %v2675_v19 = vshrl.u32 %v16293_v16, %v2672_v11  ;;  %v2678_v18 = vshrl.u32 %v16431_v29, %v2672_v11  ;;  %v2681_v43 = vshrl.u32 %v16432_v60, %v2672_v11  ;;  %v2515_v1 = vsub.s32 0, %v11062_v50 }
 0x36e   : > { %vm8197_vm10 = vcmp.lt.s32.totalorder %v8196_v25, 0  ;;  %v2684_v23 = vshrl.u32 %v16303_v12, %v2672_v11  ;;  %v2424_v6 = vor.u32 4788187, %v2423_v39  ;;  %v2686_v37 = vshll.u32 %v16303_v12, %v2671_v14 }
 0x36f   : > { %v11069_v20 = vsel %vm8197_vm10, 0, %v8196_v25  ;;  %v2676_v13 = vor.u32 %v2675_v19, %v2674_v54  ;;  %v2679_v53 = vor.u32 %v2678_v18, %v2677_v24  ;;  %v2682_v25 = vor.u32 %v2681_v43, %v2680_v15 }
 0x370   : > { %v2629_v41 = vsub.s32 4294967266, %v11069_v20  ;;  %v2685_v55 = vor.u32 %v2684_v23, %v2683_v27  ;;  %v2687_v30 = vshrl.u32 %v16294_v58, %v2672_v11  ;;  %v2427_v63 = vcvt.s32.f32 %v11060_v38 }
 0x371   : > { %v8191_v42 = vmin.u32 %v2515_v1, %v11062_v50  ;;  %v2705_v36 = vshll.u32 %v2665_v57, 8  ;;  %v11082_v2 = vshrl.u32 %v2773_v56, 5  ;;  %vm2689_vm12 = vcmp.lt.s32.totalorder %v2670_v9, 1 }
 0x372   : > { %v2630_v51 = vadd.s32 127, %v2629_v41  ;;  %v2688_v32 = vor.u32 %v2687_v30, %v2686_v37  ;;  %vm2692_vm11 = vcmp.lt.s32.totalorder %v2670_v9, 4  ;;  %vm2691_vm1 = vcmp.lt.s32.totalorder %v2670_v9, 3 }
 0x373   : > { %v2697_v54 = vsel %vm2689_vm12, %v2676_v13, %v2679_v53  ;;  %v2698_v39 = vsel %vm2692_vm11, %v2685_v55, 920167782  ;;  %v2776_v19 = vsub.s32 32, %v2775_v22  ;;  %v2425_v14 = vand.u32 2147483647, %v2424_v6 }
 0x374   : > { %vm2690_vm6 = vcmp.lt.s32.totalorder %v2670_v9, 2  ;;  %v2699_v24 = vsel %vm2691_vm1, %v2682_v25, %v2698_v39  ;;  %v2778_v38 = vshll.u32 %v16300_v28, %v2775_v22  ;;  %v2673_v57 = vshrl.u32 %v16300_v28, %v2672_v11 }
 0x375   : > { %v2694_v56 = vsel %vm2692_vm11, %v2682_v25, 2102212464  ;;  %v2700_v30 = vsel %vm2690_vm6, %v2697_v54, %v2699_v24  ;;  %v2701_v37 = vsel %vm2689_vm12, %v2679_v53, %v2682_v25  ;;  %v2625_v18 = vsub.s32 32, %v11069_v20 }
 0x376   : > { %v2631_v43 = vshll.u32 %v2630_v51, 23  ;;  %v2517_v1 = vclz %v8191_v42  ;;  %v2702_v27 = vsel %vm2692_vm11, %v2688_v32, 1326507024  ;;  %v2693_v23 = vsel %vm2689_vm12, %v2673_v57, %v2676_v13 }
 0x377   : > { %v2703_v41 = vsel %vm2691_vm1, %v2685_v55, %v2702_v27  ;;  %v2779_v15 = vshrl.u32 %v16293_v16, %v2776_v19  ;;  %v2782_v11 = vshrl.u32 %v16431_v29, %v2776_v19  ;;  %vm2793_vm14 = vcmp.lt.s32.totalorder %v11082_v2, 1 }
 0x378   : > { %v2695_v6 = vsel %vm2691_vm1, %v2679_v53, %v2694_v56  ;;  %v2704_v25 = vsel %vm2690_vm6, %v2701_v37, %v2703_v41  ;;  %v11101_v54 = vmul.u32.u64.low %v2705_v36, %v2700_v30  ;;  %v11102_v39 = vmul.u32.u64.high %v2705_v36, %v2700_v30, %v11101_v54 }
 0x379   : > { %v11105_v42 = vmul.u32.u64.low %v2705_v36, %v2704_v25  ;;  %v11106_v32 = vmul.u32.u64.high %v2705_v36, %v2704_v25, %v11105_v42  ;;  %v2781_v13 = vshll.u32 %v16293_v16, %v2775_v22  ;;  %v2785_v55 = vshrl.u32 %v16432_v60, %v2776_v19 }
 0x37a   : > { %v2627_v51 = vshrl.u32 %v2609_v21, %v2625_v18  ;;  %v2632_v24 = vor.u32 4788187, %v2631_v43  ;;  %v8192_v57 = vadd.s32 4294967294, %v2517_v1  ;;  %v2784_v27 = vshll.u32 %v16431_v29, %v2775_v22 }
 0x37b   : > { %v2696_v53 = vsel %vm2690_vm6, %v2693_v23, %v2695_v6  ;;  %v2780_v56 = vor.u32 %v2779_v15, %v2778_v38  ;;  %v2783_v37 = vor.u32 %v2782_v11, %v2781_v13  ;;  %v2788_v30 = vshrl.u32 %v16303_v12, %v2776_v19 }
 0x37c   : > { %v2715_v41 = vadd.s32 1, %v11102_v39  ;;  %v2787_v25 = vshll.u32 %v16432_v60, %v2775_v22  ;;  %v2790_v42 = vshll.u32 %v16303_v12, %v2775_v22  ;;  %v2791_v35 = vshrl.u32 %v16294_v58, %v2776_v19 }
 0x37d   : > { %v2428_v0 = vmul.f32 %v2427_v63, %v2425_v14  ;;  %v2626_v21 = vshll.u32 %v11038_v46, %v11069_v20  ;;  %v2786_v18 = vor.u32 %v2785_v55, %v2784_v27  ;;  %vm2794_vm8 = vcmp.lt.s32.totalorder %v11082_v2, 2 }
 0x37e   : > { %v2712_v9 = vmul.u32 %v2705_v36, %v2696_v53  ;;  %vm2714_vm9 = vc.u32 %v11106_v32, %v11101_v54  ;;  %v2789_v38 = vor.u32 %v2788_v30, %v2787_v25  ;;  %v2792_v43 = vor.u32 %v2791_v35, %v2790_v42 }
 0x37f   : > { %v2628_v1 = vor.u32 %v2627_v51, %v2626_v21  ;;  %vm8193_vm3 = vcmp.lt.s32.totalorder %v8192_v57, 0  ;;  %v2716_v23 = vsel %vm2714_vm9, %v2715_v41, %v11102_v39  ;;  %v2777_v22 = vshrl.u32 %v16300_v28, %v2776_v19 }
 0x380   : > { %v2633_v15 = vand.u32 2147483647, %v2632_v24  ;;  %v2717_v63 = vadd.s32 %v2716_v23, %v2712_v9  ;;  %vm2796_vm15 = vcmp.lt.s32.totalorder %v11082_v2, 4  ;;  %v2801_v46 = vsel %vm2793_vm14, %v2780_v56, %v2783_v37 }
 0x381   : > { %vm2795_vm7 = vcmp.lt.s32.totalorder %v11082_v2, 3  ;;  %v2798_v20 = vsel %vm2796_vm15, %v2786_v18, 2102212464  ;;  %v2802_v36 = vsel %vm2796_vm15, %v2789_v38, 920167782  ;;  %v2805_v35 = vsel %vm2793_vm14, %v2783_v37, %v2786_v18 }
 0x382   : > { %v11130_v14 = vsel %vm8193_vm3, 0, %v8192_v57  ;;  %v2718_v11 = vadd.s32 536870912, %v2717_v63  ;;  %v2803_v6 = vsel %vm2795_vm7, %v2786_v18, %v2802_v36  ;;  %v2806_v39 = vsel %vm2796_vm15, %v2792_v43, 1326507024 }
 0x383   : > { %v2797_v19 = vsel %vm2793_vm14, %v2777_v22, %v2780_v56  ;;  %v2799_v13 = vsel %vm2795_vm7, %v2783_v37, %v2798_v20  ;;  %v2804_v55 = vsel %vm2794_vm8, %v2801_v46, %v2803_v6  ;;  %v2807_v51 = vsel %vm2795_vm7, %v2789_v38, %v2806_v39 }
 0x384   : > { %v11136_v24 = vshrl.u32 %v2718_v11, 30  ;;  %v2808_v27 = vsel %vm2794_vm8, %v2805_v35, %v2807_v51  ;;  %v11141_v53 = vmul.u32.u64.low %v11055_v47, %v2804_v55  ;;  %v11142_v57 = vmul.u32.u64.high %v11055_v47, %v2804_v55, %v11141_v53 }
 0x385   : > { %v2429_v30 = vxor.u32 2147483648, %v2428_v0  ;;  %v2635_v41 = vcvt.s32.f32 %v2628_v1  ;;  %v11146_v25 = vmul.u32.u64.low %v11055_v47, %v2808_v27  ;;  %v11147_v56 = vmul.u32.u64.high %v11055_v47, %v2808_v27, %v11146_v25 }
 0x386   : > { %16441 = vst [vmem:[#allocation30_spill] sm:$0xff] %v11136_v24  ;;  %v2525_v37 = vsub.s32 4294967266, %v11130_v14  ;;  %v2720_v42 = vshll.u32 %v11136_v24, 30  ;;  %v2800_v21 = vsel %vm2794_vm8, %v2797_v19, %v2799_v13  ;;  %v2972_v18 = vand.u32 2139095040, %v11058_v52 }
 0x387   : > { %vm16080_vm4 = vcmp.lt.s32.totalorder %v10859_v62, 0  ;;  %v2636_v9 = vmul.f32 %v2635_v41, %v2633_v15  ;;  %v8206_v38 = vadd.s32 4294967169, %v11052_v48  ;;  %v2819_v1 = vadd.s32 1, %v11142_v57 }
 0x388   : > { %v11156_v43 = vsub.s32 %v2717_v63, %v2720_v42  ;;  %v2973_v23 = vshrl.u32 %v2972_v18, 23  ;;  %v16048_v22 = vand.u32 2147483647, %v11034_v61  ;;  %v2430_v46 = vsel %vm16080_vm4, %v2429_v30, %v2428_v0  ;;  %v2330_v18 = vpop.f32.mrf.mxu1 }
 0x389   : > { %v2521_v2 = vsub.s32 32, %v11130_v14  ;;  %v2816_v20 = vmul.u32 %v11055_v47, %v2800_v21  ;;  %vm2818_vm13 = vc.u32 %v11147_v56, %v11141_v53  ;;  %v2526_v15 = vadd.s32 127, %v2525_v37 }
 0x38a   : > { %v2820_v48 = vsel %vm2818_vm13, %v2819_v1, %v11142_v57  ;;  %v8210_v63 = vadd.s32 4294967169, %v2973_v23  ;;  %v2875_v36 = vadd.s32 1, %v8206_v38  ;;  %v2637_v35 = vxor.u32 2147483648, %v2636_v9 }
 0x38b   : > { %v2723_v11 = vsub.s32 0, %v11156_v43  ;;  %v2821_v6 = vadd.s32 %v2820_v48, %v2816_v20  ;;  %v16442_v39 = vand.u32 2147483647, %v10859_v62  ;;  %v16443_v0 = vmov 0 }
 0x38c   : > { %v2505_v47 = vadd.s32 %v11012_v7, %v11022_v31  ;;  %v16049_v19 = vand.u32 2147483647, %v11058_v52  ;;  %v2979_v13 = vadd.s32 1, %v8210_v63  ;;  %vm16079_vm5 = vcmp.lt.s32.totalorder %v10879_v45, 0 }
 0x38d   : > { %vm11170_vm0 = vcmp.le.f32.partialorder %v16442_v39, 0.7853982  ;;  %v2822_v51 = vadd.s32 536870912, %v2821_v6  ;;  %v2872_v27 = vand.u32 8388607, %v16048_v22  ;;  %v2527_v30 = vshll.u32 %v2526_v15, 23 }
 0x38e   : > { %v16444_v0 = vsel %vm11170_vm0, 4294967295, %v16443_v0  ;;  %v2433_v55 = vsel %vm11170_vm0, %v10859_v62, %v2430_v46  ;;  %v2523_v57 = vshrl.u32 %v2505_v47, %v2521_v2  ;;  %vm2980_vm10 = vcmp.gt.s32.totalorder %v2979_v13, 0 }
 0x38f   : > { %16445 = vst [vmem:[#allocation29_spill] sm:$0xff] %v16444_v0  ;;  %vm2876_vm12 = vcmp.gt.s32.totalorder %v2875_v36, 0  ;;  %v2638_v7 = vsel %vm16079_vm5, %v2637_v35, %v2636_v9  ;;  %v8199_v31 = vmin.u32 %v2723_v11, %v11156_v43  ;;  %v11186_v41 = vshrl.u32 %v2822_v51, 30 }
 0x390   : > { %v2981_v25 = vsel %vm2980_vm10, %v2979_v13, 0  ;;  %8801 = vcosq.f32 %v2433_v55  ;;  %v2522_v37 = vshll.u32 %v11062_v50, %v11130_v14  ;;  %v2976_v42 = vand.u32 8388607, %v16049_v19 }
 0x391   : > { %16446 = vst [vmem:[#allocation24_spill] sm:$0xff] %v11186_v41  ;;  %v2983_v21 = vand.u32 31, %v2981_v25  ;;  %8803 = vsinq.f32 %v2433_v55  ;;  %v16447_v38 = vand.u32 2147483647, %v10879_v45  ;;  %v16448_v1 = vmov 0 }
 0x392   : > { %v2824_v9 = vshll.u32 %v11186_v41, 30  ;;  %v2877_v23 = vsel %vm2876_vm12, %v2875_v36, 0  ;;  %v11204_v50 = vor.u32 %v2523_v57, %v2522_v37  ;;  %v11206_v14 = vor.u32 4788187, %v2527_v30 }
 0x393   : > { %vm11194_vm11 = vcmp.le.f32.partialorder %v16447_v38, 0.7853982  ;;  %v2984_v2 = vsub.s32 32, %v2983_v21  ;;  %v2725_v20 = vclz %v8199_v31  ;;  %v2873_v48 = vor.u32 8388608, %v2872_v27 }
 0x394   : > { %v16449_v1 = vsel %vm11194_vm11, 4294967295, %v16448_v1  ;;  %v11202_v46 = vsel %vm11194_vm11, %v10879_v45, %v2638_v7  ;;  %v11208_v15 = vsub.s32 %v2821_v6, %v2824_v9  ;;  %v11211_v63 = vadd.f32 %v2330_v18, %v10846_v40 }
 0x395   : > { %16450 = vst [vmem:[#allocation21_spill] sm:$0xff] %v16449_v1  ;;  %v2977_v35 = vor.u32 8388608, %v2976_v42  ;;  %v2986_v36 = vshll.u32 %v16300_v28, %v2983_v21  ;;  %v2989_v11 = vshll.u32 %v16293_v16, %v2983_v21  ;;  %v11215_v39 = vand.u32 31, %v2877_v23  ;;  %v11292_v1 = vpop.permute.xlu0 %2151 }
 0x396   : > { %16451 = vst [vmem:[#allocation16_spill] sm:$0xff] %v11211_v63  ;;  %v2827_v47 = vsub.s32 0, %v11208_v15  ;;  %v2987_v13 = vshrl.u32 %v16293_v16, %v2984_v2  ;;  %v2990_v55 = vshrl.u32 %v16431_v29, %v2984_v2  ;;  %v2993_v6 = vshrl.u32 %v16432_v60, %v2984_v2 }
 0x397   : > { %v2982_v51 = vshrl.u32 %v2981_v25, 5  ;;  %v2992_v27 = vshll.u32 %v16431_v29, %v2983_v21  ;;  %v2995_v40 = vshll.u32 %v16432_v60, %v2983_v21  ;;  %v2996_v57 = vshrl.u32 %v16303_v12, %v2984_v2 }
 0x398   : > { %v8200_v30 = vadd.s32 4294967294, %v2725_v20  ;;  %v8203_v7 = vmin.u32 %v2827_v47, %v11208_v15  ;;  %v2988_v31 = vor.u32 %v2987_v13, %v2986_v36  ;;  %v2991_v37 = vor.u32 %v2990_v55, %v2989_v11 }
 0x399   : > { %v2994_v42 = vor.u32 %v2993_v6, %v2992_v27  ;;  %v2997_v18 = vor.u32 %v2996_v57, %v2995_v40  ;;  %v2998_v38 = vshll.u32 %v16303_v12, %v2983_v21  ;;  %v2999_v9 = vshrl.u32 %v16294_v58, %v2984_v2 }
 0x39a   : > { %v11229_v25 = vadd.s32 %v11101_v54, %v11106_v32  ;;  %v11233_v22 = vadd.s32 %v11141_v53, %v11147_v56  ;;  %v2829_v19 = vclz %v8203_v7  ;;  %v11235_v20 = vshll.u32 %v2873_v48, 8 }
 0x39b   : > { %v3000_v47 = vor.u32 %v2999_v9, %v2998_v38  ;;  %vm3001_vm1 = vcmp.lt.s32.totalorder %v2982_v51, 1  ;;  %v3017_v36 = vshll.u32 %v2977_v35, 8  ;;  %vm3004_vm6 = vcmp.lt.s32.totalorder %v2982_v51, 4 }
 0x39c   : > { %v8204_v13 = vadd.s32 4294967294, %v2829_v19  ;;  %v3009_v21 = vsel %vm3001_vm1, %v2988_v31, %v2991_v37  ;;  %v2880_v55 = vsub.s32 32, %v11215_v39  ;;  %vm8201_vm14 = vcmp.lt.s32.totalorder %v8200_v30, 0 }
 0x39d   : > { %vm3003_vm8 = vcmp.lt.s32.totalorder %v2982_v51, 3  ;;  %v3010_v54 = vsel %vm3004_vm6, %v2997_v18, 920167782  ;;  %v3013_v32 = vsel %vm3001_vm1, %v2991_v37, %v2994_v42  ;;  %v11241_v53 = vpop.eup %8801  ;;  %vm3002_vm9 = vcmp.lt.s32.totalorder %v2982_v51, 2 }
 0x39e   : > { %16452 = vst [vmem:[#allocation10_spill] sm:$0xff] %v11241_v53  ;;  %v3006_v56 = vsel %vm3004_vm6, %v2994_v42, 2102212464  ;;  %v3011_v48 = vsel %vm3003_vm8, %v2994_v42, %v3010_v54  ;;  %v3014_v35 = vsel %vm3004_vm6, %v3000_v47, 1326507024  ;;  %v11244_v6 = vpop.eup %8803  ;;  %vm8205_vm3 = vcmp.lt.s32.totalorder %v8204_v13, 0 }
 0x39f   : > { %16453 = vst [vmem:[#allocation8_spill] sm:$0xff] %v11244_v6  ;;  %v2985_v19 = vshrl.u32 %v16300_v28, %v2984_v2  ;;  %v3012_v27 = vsel %vm3002_vm9, %v3009_v21, %v3011_v48  ;;  %v3015_v40 = vsel %vm3003_vm8, %v2997_v18, %v3014_v35  ;;  %v11249_v57 = vsel %vm8201_vm14, 0, %v8200_v30 }
 0x3a0   : > { %v3016_v7 = vsel %vm3002_vm9, %v3013_v32, %v3015_v40  ;;  %v11252_v38 = vshrl.u32 %v2877_v23, 5  ;;  %v2883_v9 = vshrl.u32 %v16293_v16, %v2880_v55  ;;  %v3007_v47 = vsel %vm3003_vm8, %v2991_v37, %v3006_v56 }
 0x3a1   : > { %v3005_v42 = vsel %vm3001_vm1, %v2985_v19, %v2988_v31  ;;  %v11257_v54 = vmul.u32.u64.low %v3017_v36, %v3016_v7  ;;  %v11258_v11 = vmul.u32.u64.high %v3017_v36, %v3016_v7, %v11257_v54  ;;  %v11260_v2 = vsel %vm8205_vm3, 0, %v8204_v13 }
 0x3a2   : > { %v11262_v21 = vmul.u32.u64.low %v3017_v36, %v3012_v27  ;;  %v11263_v48 = vmul.u32.u64.high %v3017_v36, %v3012_v27, %v11262_v21  ;;  %v2886_v30 = vshrl.u32 %v16431_v29, %v2880_v55  ;;  %v2881_v23 = vshrl.u32 %v16300_v28, %v2880_v55 }
 0x3a3   : > { %v2882_v18 = vshll.u32 %v16300_v28, %v11215_v39  ;;  %v2885_v31 = vshll.u32 %v16293_v16, %v11215_v39  ;;  %v3076_v37 = vand.u32 2139095040, %v11211_v63  ;;  %v2729_v32 = vsub.s32 32, %v11249_v57 }
 0x3a4   : > { %v3008_v13 = vsel %vm3002_vm9, %v3005_v42, %v3007_v47  ;;  %v2888_v56 = vshll.u32 %v16431_v29, %v11215_v39  ;;  %v2889_v35 = vshrl.u32 %v16432_v60, %v2880_v55  ;;  %v2837_v19 = vsub.s32 4294967266, %v11260_v2 }
 0x3a5   : > { %vm3026_vm15 = vc.u32 %v11258_v11, %v11262_v21  ;;  %v2891_v27 = vshll.u32 %v16432_v60, %v11215_v39  ;;  %v2892_v40 = vshrl.u32 %v16303_v12, %v2880_v55  ;;  %v3027_v7 = vadd.s32 1, %v11263_v48 }
 0x3a6   : > { %v2884_v54 = vor.u32 %v2883_v9, %v2882_v18  ;;  %v2887_v51 = vor.u32 %v2886_v30, %v2885_v31  ;;  %v2890_v42 = vor.u32 %v2889_v35, %v2888_v56  ;;  %v3024_v47 = vmul.u32 %v3017_v36, %v3008_v13 }
 0x3a7   : > { %v2893_v10 = vor.u32 %v2892_v40, %v2891_v27  ;;  %v2894_v5 = vshll.u32 %v16303_v12, %v11215_v39  ;;  %v2895_v44 = vshrl.u32 %v16294_v58, %v2880_v55  ;;  %v2733_v26 = vsub.s32 4294967266, %v11249_v57 }
 0x3a8   : > { %v2833_v49 = vsub.s32 32, %v11260_v2  ;;  %v3028_v33 = vsel %vm3026_vm15, %v3027_v7, %v11263_v48  ;;  %vm2900_vm7 = vcmp.lt.s32.totalorder %v11252_v38, 4  ;;  %vm2897_vm13 = vcmp.lt.s32.totalorder %v11252_v38, 1  ;;  %v2245_v7 = vpop.f32.mrf.mxu0 }
 0x3a9   : > { %v3029_v9 = vadd.s32 %v3028_v33, %v3024_v47  ;;  %v2896_v30 = vor.u32 %v2895_v44, %v2894_v5  ;;  %v2902_v36 = vsel %vm2900_vm7, %v2890_v42, 2102212464  ;;  %v2838_v39 = vadd.s32 127, %v2837_v19 }
 0x3aa   : > { %vm2899_vm10 = vcmp.lt.s32.totalorder %v11252_v38, 3  ;;  %v2905_v55 = vsel %vm2897_vm13, %v2884_v54, %v2887_v51  ;;  %v2906_v18 = vsel %vm2900_vm7, %v2893_v10, 920167782  ;;  %vm2898_vm12 = vcmp.lt.s32.totalorder %v11252_v38, 2 }
 0x3ab   : > { %v3030_v31 = vadd.s32 536870912, %v3029_v9  ;;  %v2907_v48 = vsel %vm2899_vm10, %v2890_v42, %v2906_v18  ;;  %v2909_v13 = vsel %vm2897_vm13, %v2887_v51, %v2890_v42  ;;  %v2901_v56 = vsel %vm2897_vm13, %v2881_v23, %v2884_v54 }
 0x3ac   : > { %v2903_v33 = vsel %vm2899_vm10, %v2887_v51, %v2902_v36  ;;  %v2908_v44 = vsel %vm2898_vm12, %v2905_v55, %v2907_v48  ;;  %v2910_v5 = vsel %vm2900_vm7, %v2896_v30, 1326507024  ;;  %v2734_v47 = vadd.s32 127, %v2733_v26 }
 0x3ad   : > { %v11305_v35 = vshrl.u32 %v3030_v31, 30  ;;  %v2911_v19 = vsel %vm2899_vm10, %v2893_v10, %v2910_v5  ;;  %v11308_v27 = vmul.u32.u64.low %v11235_v20, %v2908_v44  ;;  %v11309_v40 = vmul.u32.u64.high %v11235_v20, %v2908_v44, %v11308_v27  ;;  %v11320_v10 = vpop.permute.xlu0 %2146 }
 0x3ae   : > { %v2835_v42 = vshrl.u32 %v11233_v22, %v2833_v49  ;;  %v2912_v23 = vsel %vm2898_vm12, %v2909_v13, %v2911_v19  ;;  %v3077_v54 = vshrl.u32 %v3076_v37, 23  ;;  %v2839_v51 = vshll.u32 %v2838_v39, 23 }
 0x3af   : > { %16454 = vst [vmem:[#allocation6_spill] sm:$0xff] %v11305_v35  ;;  %v3032_v36 = vshll.u32 %v11305_v35, 30  ;;  %v11317_v30 = vmul.u32.u64.low %v11235_v20, %v2912_v23  ;;  %v11318_v55 = vmul.u32.u64.high %v11235_v20, %v2912_v23, %v11317_v30  ;;  %v2834_v18 = vshll.u32 %v11208_v15, %v11260_v2 }
 0x3b0   : > { %v2904_v26 = vsel %vm2898_vm12, %v2901_v56, %v2903_v33  ;;  %v8214_v49 = vadd.s32 4294967169, %v3077_v54  ;;  %v11327_v22 = vadd.f32 %v2245_v7, %v11320_v10  ;;  %v2923_v31 = vadd.s32 1, %v11309_v40 }
 0x3b1   : > { %v11330_v39 = vsub.s32 %v3029_v9, %v3032_v36  ;;  %v16455_v48 = vand.u32 2147483647, %v11211_v63  ;;  %v2731_v44 = vshrl.u32 %v11229_v25, %v2729_v32  ;;  %v2735_v5 = vshll.u32 %v2734_v47, 23 }
 0x3b2   : > { %v2836_v15 = vor.u32 %v2835_v42, %v2834_v18  ;;  %v3083_v2 = vadd.s32 1, %v8214_v49  ;;  %v2840_v38 = vor.u32 4788187, %v2839_v51  ;;  %v2920_v33 = vmul.u32 %v11235_v20, %v2904_v26 }
 0x3b3   : > { %v3080_v13 = vand.u32 8388607, %v16455_v48  ;;  %v3035_v56 = vsub.s32 0, %v11330_v39  ;;  %vm2922_vm1 = vc.u32 %v11318_v55, %v11308_v27  ;;  %v2730_v9 = vshll.u32 %v11156_v43, %v11249_v57 }
 0x3b4   : > { %v2924_v19 = vsel %vm2922_vm1, %v2923_v31, %v11309_v40  ;;  %vm3084_vm6 = vcmp.gt.s32.totalorder %v3083_v2, 0  ;;  %v3180_v7 = vand.u32 2139095040, %v11327_v22  ;;  %8805 = vcosq.f32 %v11202_v46 }
 0x3b5   : > { %v8211_v25 = vmin.u32 %v3035_v56, %v11330_v39  ;;  %v2925_v32 = vadd.s32 %v2924_v19, %v2920_v33  ;;  %v3085_v47 = vsel %vm3084_vm6, %v3083_v2, 0  ;;  %v11347_v20 = vor.u32 %v2731_v44, %v2730_v9 }
 0x3b6   : > { %v11349_v23 = vor.u32 4788187, %v2735_v5  ;;  %v3087_v54 = vand.u32 31, %v3085_v47  ;;  %v2841_v51 = vand.u32 2147483647, %v2840_v38  ;;  %v2843_v43 = vcvt.s32.f32 %v2836_v15 }
 0x3b7   : > { %v3037_v57 = vclz %v8211_v25  ;;  %v2926_v40 = vadd.s32 536870912, %v2925_v32  ;;  %v3081_v36 = vor.u32 8388608, %v3080_v13  ;;  %v3181_v26 = vshrl.u32 %v3180_v7, 23 }
 0x3b8   : > { %v3088_v30 = vsub.s32 32, %v3087_v54  ;;  %v3090_v48 = vshll.u32 %v16300_v28, %v3087_v54  ;;  %v3093_v44 = vshll.u32 %v16293_v16, %v3087_v54  ;;  %v3096_v15 = vshll.u32 %v16431_v29, %v3087_v54 }
 0x3b9   : > { %v8212_v49 = vadd.s32 4294967294, %v3037_v57  ;;  %v11352_v31 = vshrl.u32 %v2926_v40, 30  ;;  %v3086_v19 = vshrl.u32 %v3085_v47, 5  ;;  %v3099_v7 = vshll.u32 %v16432_v60, %v3087_v54 }
 0x3ba   : > { %v3091_v5 = vshrl.u32 %v16293_v16, %v3088_v30  ;;  %v3094_v2 = vshrl.u32 %v16431_v29, %v3088_v30  ;;  %v3097_v38 = vshrl.u32 %v16432_v60, %v3088_v30  ;;  %v3100_v56 = vshrl.u32 %v16303_v12, %v3088_v30 }
 0x3bb   : > { %16456 = vst [vmem:[#allocation39_spill] sm:$0xff] %v11352_v31  ;;  %vm8213_vm14 = vcmp.lt.s32.totalorder %v8212_v49, 0  ;;  %v2928_v13 = vshll.u32 %v11352_v31, 30  ;;  %v3103_v33 = vshrl.u32 %v16294_v58, %v3088_v30  ;;  %v3102_v25 = vshll.u32 %v16303_v12, %v3087_v54 }
 0x3bc   : > { %v11363_v9 = vsel %vm8213_vm14, 0, %v8212_v49  ;;  %v3092_v40 = vor.u32 %v3091_v5, %v3090_v48  ;;  %v3095_v37 = vor.u32 %v3094_v2, %v3093_v44  ;;  %v3098_v42 = vor.u32 %v3097_v38, %v3096_v15 }
 0x3bd   : > { %v11367_v57 = vsub.s32 %v2925_v32, %v2928_v13  ;;  %v2739_v18 = vcvt.s32.f32 %v11347_v20  ;;  %v3101_v45 = vor.u32 %v3100_v56, %v3099_v7  ;;  %v3104_v53 = vor.u32 %v3103_v33, %v3102_v25 }
 0x3be   : > { %v8218_v6 = vadd.s32 4294967169, %v3181_v26  ;;  %v2737_v34 = vand.u32 2147483647, %v11349_v23  ;;  %v2844_v0 = vmul.f32 %v2843_v43, %v2841_v51  ;;  %v3045_v49 = vsub.s32 4294967266, %v11363_v9 }
 0x3bf   : > { %v2931_v47 = vsub.s32 0, %v11367_v57  ;;  %vm3105_vm8 = vcmp.lt.s32.totalorder %v3086_v19, 1  ;;  %vm3108_vm9 = vcmp.lt.s32.totalorder %v3086_v19, 4  ;;  %v3121_v54 = vshll.u32 %v3081_v36, 8 }
 0x3c0   : > { %v16457_v32 = vand.u32 2147483647, %v11327_v22  ;;  %v3089_v20 = vshrl.u32 %v16300_v28, %v3088_v30  ;;  %v3110_v5 = vsel %vm3108_vm9, %v3098_v42, 2102212464  ;;  %v3113_v26 = vsel %vm3105_vm8, %v3092_v40, %v3095_v37 }
 0x3c1   : > { %v8207_v44 = vmin.u32 %v2931_v47, %v11367_v57  ;;  %v11378_v2 = vpop.eup %8805  ;;  %v3114_v23 = vsel %vm3108_vm9, %v3101_v45, 920167782  ;;  %v3117_v51 = vsel %vm3105_vm8, %v3095_v37, %v3098_v42  ;;  %v3118_v43 = vsel %vm3108_vm9, %v3104_v53, 1326507024  ;;  %v2334_v53 = vpop.f32.mrf.mxu1 }
 0x3c2   : > { %v3184_v48 = vand.u32 8388607, %v16457_v32  ;;  %16458 = vst [vmem:[#allocation40_spill] sm:$0xff] %v11378_v2  ;;  %v3187_v15 = vadd.s32 1, %v8218_v6  ;;  %vm16100_vm3 = vcmp.lt.s32.totalorder %v10882_v3, 0  ;;  %v3041_v36 = vsub.s32 32, %v11363_v9 }
 0x3c3   : > { %v3046_v38 = vadd.s32 127, %v3045_v49  ;;  %vm3106_vm15 = vcmp.lt.s32.totalorder %v3086_v19, 2  ;;  %vm3107_vm7 = vcmp.lt.s32.totalorder %v3086_v19, 3  ;;  %v3109_v13 = vsel %vm3105_vm8, %v3089_v20, %v3092_v40 }
 0x3c4   : > { %v3115_v30 = vsel %vm3107_vm7, %v3098_v42, %v3114_v23  ;;  %v3119_v56 = vsel %vm3107_vm7, %v3101_v45, %v3118_v43  ;;  %vm3188_vm13 = vcmp.gt.s32.totalorder %v3187_v15, 0  ;;  %v2933_v33 = vclz %v8207_v44 }
 0x3c5   : > { %v3111_v7 = vsel %vm3107_vm7, %v3095_v37, %v3110_v5  ;;  %v3116_v25 = vsel %vm3106_vm15, %v3113_v26, %v3115_v30  ;;  %v3120_v47 = vsel %vm3106_vm15, %v3117_v51, %v3119_v56  ;;  %v16459_v49 = vand.u32 2147483647, %v11206_v14 }
 0x3c6   : > { %v11386_v6 = vmul.u32.u64.low %v3121_v54, %v3120_v47  ;;  %v11387_v32 = vmul.u32.u64.high %v3121_v54, %v3120_v47, %v11386_v6  ;;  %v11389_v2 = vmul.u32.u64.low %v3121_v54, %v3116_v25  ;;  %v11390_v62 = vmul.u32.u64.high %v3121_v54, %v3116_v25, %v11389_v2 }
 0x3c7   : > { %v16460_v42 = vcvt.s32.f32 %v11204_v50  ;;  %v11399_v40 = vmul.f32 %v2739_v18, %v2737_v34  ;;  %v3025_v37 = vadd.s32 %v11262_v21, %v11258_v11  ;;  %v3189_v44 = vsel %vm3188_vm13, %v3187_v15, 0  ;;  %v2247_v18 = vpop.f32.mrf.mxu0 }
 0x3c8   : > { %v2845_v20 = vxor.u32 2147483648, %v2844_v0  ;;  %v3112_v5 = vsel %vm3106_vm15, %v3109_v13, %v3111_v7  ;;  %v3191_v26 = vand.u32 31, %v3189_v44  ;;  %v11405_v23 = vadd.f32 %v2334_v53, %v11320_v10 }
 0x3c9   : > { %v11397_v45 = vmul.f32 %v16460_v42, %v16459_v49  ;;  %8807 = vsinq.f32 %v11202_v46  ;;  %v3043_v14 = vshrl.u32 %v3025_v37, %v3041_v36  ;;  %v3047_v51 = vshll.u32 %v3046_v38, 23 }
 0x3ca   : > { %v3185_v50 = vor.u32 8388608, %v3184_v48  ;;  %v8208_v43 = vadd.s32 4294967294, %v2933_v33  ;;  %vm3130_vm10 = vc.u32 %v11387_v32, %v11389_v2  ;;  %v3131_v34 = vadd.s32 1, %v11390_v62 }
 0x3cb   : > { %v3192_v11 = vsub.s32 32, %v3191_v26  ;;  %v2533_v21 = vxor.u32 2147483648, %v11397_v45  ;;  %v3042_v19 = vshll.u32 %v11330_v39, %v11363_v9  ;;  %v3128_v15 = vmul.u32 %v3121_v54, %v3112_v5 }
 0x3cc   : > { %v11417_v46 = vsel %vm16100_vm3, %v2845_v20, %v2844_v0  ;;  %v3132_v48 = vsel %vm3130_vm10, %v3131_v34, %v11390_v62  ;;  %v16062_v38 = vand.u32 2147483647, %v11405_v23  ;;  %v3194_v56 = vshll.u32 %v16300_v28, %v3191_v26 }
 0x3cd   : > { %v3195_v36 = vshrl.u32 %v16293_v16, %v3192_v11  ;;  %v3044_v13 = vor.u32 %v3043_v14, %v3042_v19  ;;  %v3133_v30 = vadd.s32 %v3132_v48, %v3128_v15  ;;  %v11423_v33 = vshll.u32 %v3185_v50, 8 }
 0x3ce   : > { %v3048_v7 = vor.u32 4788187, %v3047_v51  ;;  %vm8209_vm12 = vcmp.lt.s32.totalorder %v8208_v43, 0  ;;  %v3197_v39 = vshll.u32 %v16293_v16, %v3191_v26  ;;  %v3198_v9 = vshrl.u32 %v16431_v29, %v3192_v11 }
 0x3cf   : > { %v3134_v0 = vadd.s32 536870912, %v3133_v30  ;;  %v3190_v54 = vshrl.u32 %v3189_v44, 5  ;;  %v3196_v25 = vor.u32 %v3195_v36, %v3194_v56  ;;  %v3200_v62 = vshll.u32 %v16431_v29, %v3191_v26 }
 0x3d0   : > { %v3199_v47 = vor.u32 %v3198_v9, %v3197_v39  ;;  %v3201_v53 = vshrl.u32 %v16432_v60, %v3192_v11  ;;  %v3203_v6 = vshll.u32 %v16432_v60, %v3191_v26  ;;  %v3204_v49 = vshrl.u32 %v16303_v12, %v3192_v11 }
 0x3d1   : > { %vm16082_vm1 = vcmp.lt.s32.totalorder %v10866_v8, 0  ;;  %v3051_v42 = vcvt.s32.f32 %v3044_v13  ;;  %v11432_v37 = vshrl.u32 %v3134_v0, 30  ;;  %v3206_v20 = vshll.u32 %v16303_v12, %v3191_v26 }
 0x3d2   : > { %v3207_v5 = vshrl.u32 %v16294_v58, %v3192_v11  ;;  %v3049_v44 = vand.u32 2147483647, %v3048_v7  ;;  %v3202_v14 = vor.u32 %v3201_v53, %v3200_v62  ;;  %v3205_v51 = vor.u32 %v3204_v49, %v3203_v6 }
 0x3d3   : > { %16461 = vst [vmem:[#allocation41_spill] sm:$0xff] %v11432_v37  ;;  %v3388_v50 = vand.u32 2139095040, %v11405_v23  ;;  %vm16081_vm6 = vcmp.lt.s32.totalorder %v11008_v17, 0  ;;  %v16462_v34 = vand.u32 2147483647, %v10882_v3  ;;  %v16463_v19 = vmov 0 }
 0x3d4   : > { %v11445_v15 = vsel %vm8209_vm12, 0, %v8208_v43  ;;  %v3136_v26 = vshll.u32 %v11432_v37, 30  ;;  %v3208_v48 = vor.u32 %v3207_v5, %v3206_v20  ;;  %vm3209_vm8 = vcmp.lt.s32.totalorder %v3190_v54, 1 }
 0x3d5   : > { %vm11440_vm14 = vcmp.le.f32.partialorder %v16462_v34, 0.7853982  ;;  %v3193_v36 = vshrl.u32 %v16300_v28, %v3192_v11  ;;  %vm3210_vm9 = vcmp.lt.s32.totalorder %v3190_v54, 2  ;;  %vm3212_vm15 = vcmp.lt.s32.totalorder %v3190_v54, 4 }
 0x3d6   : > { %v16464_v19 = vsel %vm11440_vm14, 4294967295, %v16463_v19  ;;  %v3217_v13 = vsel %vm3209_vm8, %v3196_v25, %v3199_v47  ;;  %v11450_v56 = vsub.s32 %v3133_v30, %v3136_v26  ;;  %vm3211_vm7 = vcmp.lt.s32.totalorder %v3190_v54, 3  ;;  %v11452_v9 = vpop.eup %8807 }
 0x3d7   : > { %16465 = vst [vmem:[#allocation42_spill] sm:$0xff] %v16464_v19  ;;  %v3214_v7 = vsel %vm3212_vm15, %v3202_v14, 2102212464  ;;  %v3218_v39 = vsel %vm3212_vm15, %v3205_v51, 920167782  ;;  %16466 = vst [vmem:[#allocation43_spill] sm:$0xff] %v11452_v9  ;;  %v3221_v43 = vsel %vm3209_vm8, %v3199_v47, %v3202_v14  ;;  %v3052_v6 = vmul.f32 %v3051_v42, %v3049_v44 }
 0x3d8   : > { %v3219_v0 = vsel %vm3211_vm7, %v3202_v14, %v3218_v39  ;;  %v3222_v62 = vsel %vm3212_vm15, %v3208_v48, 1326507024  ;;  %v3389_v53 = vshrl.u32 %v3388_v50, 23  ;;  %v3139_v49 = vsub.s32 0, %v11450_v56 }
 0x3d9   : > { %v3213_v11 = vsel %vm3209_vm8, %v3193_v36, %v3196_v25  ;;  %v3220_v20 = vsel %vm3210_vm9, %v3217_v13, %v3219_v0  ;;  %v3215_v5 = vsel %vm3211_vm7, %v3199_v47, %v3214_v7  ;;  %v3223_v30 = vsel %vm3211_vm7, %v3205_v51, %v3222_v62 }
 0x3da   : > { %v11459_v34 = vmul.u32.u64.low %v11423_v33, %v3220_v20  ;;  %v11460_v26 = vmul.u32.u64.high %v11423_v33, %v3220_v20, %v11459_v34  ;;  %v2941_v39 = vsub.s32 4294967266, %v11445_v15  ;;  %v8215_v14 = vmin.u32 %v3139_v49, %v11450_v56 }
 0x3db   : > { %v3224_v42 = vsel %vm3210_vm9, %v3221_v43, %v3223_v30  ;;  %v8226_v44 = vadd.s32 4294967169, %v3389_v53  ;;  %v11471_v25 = vsel %vm16082_vm1, %v2533_v21, %v11397_v45  ;;  %v3392_v50 = vand.u32 8388607, %v16062_v38 }
 0x3dc   : > { %16467 = vst [vmem:[#allocation44_spill] sm:$0xff] %v11471_v25  ;;  %v11474_v47 = vmul.u32.u64.low %v11423_v33, %v3224_v42  ;;  %v11475_v51 = vmul.u32.u64.high %v11423_v33, %v3224_v42, %v11474_v47  ;;  %vm16099_vm13 = vcmp.lt.s32.totalorder %v11058_v52, 0  ;;  %v3216_v48 = vsel %vm3210_vm9, %v3213_v11, %v3215_v5 }
 0x3dd   : > { %v3395_v36 = vadd.s32 1, %v8226_v44  ;;  %v11482_v13 = vadd.f32 %v2247_v18, %v11320_v10  ;;  %v16468_v7 = vxor.u32 2147483648, %v11399_v40  ;;  %v2849_v21 = vsel %vm11440_vm14, %v10882_v3, %v11417_v46 }
 0x3de   : > { %v3053_v0 = vxor.u32 2147483648, %v3052_v6  ;;  %v3235_v54 = vadd.s32 1, %v11460_v26  ;;  %v2937_v43 = vsub.s32 32, %v11445_v15  ;;  %v11497_v62 = vadd.s32 127, %v2941_v39 }
 0x3df   : > { %v11489_v45 = vsel %vm16081_vm6, %v16468_v7, %v11399_v40  ;;  %v3141_v18 = vclz %v8215_v14  ;;  %vm3396_vm10 = vcmp.gt.s32.totalorder %v3395_v36, 0  ;;  %v3232_v53 = vmul.u32 %v11423_v33, %v3216_v48 }
 0x3e0   : > { %16469 = vst [vmem:[#allocation45_spill] sm:$0xff] %v11489_v45  ;;  %vm3234_vm12 = vc.u32 %v11475_v51, %v11459_v34  ;;  %v3393_v40 = vor.u32 8388608, %v3392_v50  ;;  %v3397_v49 = vsel %vm3396_vm10, %v3395_v36, 0  ;;  %8809 = vcosq.f32 %v2849_v21 }
 0x3e1   : > { %v3236_v11 = vsel %vm3234_vm12, %v3235_v54, %v11460_v26  ;;  %v3399_v46 = vand.u32 31, %v3397_v49  ;;  %v3284_v20 = vand.u32 2139095040, %v11482_v13  ;;  %8811 = vsinq.f32 %v2849_v21 }
 0x3e2   : > { %v2921_v5 = vadd.s32 %v11308_v27, %v11318_v55  ;;  %v3237_v39 = vadd.s32 %v3236_v11, %v3232_v53  ;;  %v3054_v33 = vsel %vm16099_vm13, %v3053_v0, %v3052_v6  ;;  %v11512_v14 = vadd.s32 %v11389_v2, %v11387_v32 }
 0x3e3   : > { %v8216_v42 = vadd.s32 4294967294, %v3141_v18  ;;  %v3400_v26 = vsub.s32 32, %v3399_v46  ;;  %v2943_v47 = vshll.u32 %v11497_v62, 23  ;;  %v11515_v48 = vshll.u32 %v3393_v40, 8 }
 0x3e4   : > { %v2939_v44 = vshrl.u32 %v2921_v5, %v2937_v43  ;;  %v3238_v50 = vadd.s32 536870912, %v3237_v39  ;;  %v3402_v27 = vshll.u32 %v16300_v28, %v3399_v46  ;;  %v3405_v36 = vshll.u32 %v16293_v16, %v3399_v46 }
 0x3e5   : > { %v3403_v55 = vshrl.u32 %v16293_v16, %v3400_v26  ;;  %v3285_v7 = vshrl.u32 %v3284_v20, 23  ;;  %v3406_v2 = vshrl.u32 %v16431_v29, %v3400_v26  ;;  %v3408_v32 = vshll.u32 %v16431_v29, %v3399_v46 }
 0x3e6   : > { %v11520_v6 = vshrl.u32 %v3238_v50, 30  ;;  %v3409_v21 = vshrl.u32 %v16432_v60, %v3400_v26  ;;  %vm8217_vm8 = vcmp.lt.s32.totalorder %v8216_v42, 0  ;;  %v3398_v0 = vshrl.u32 %v3397_v49, 5 }
 0x3e7   : > { %v3411_v54 = vshll.u32 %v16432_v60, %v3399_v46  ;;  %v3412_v43 = vshrl.u32 %v16303_v12, %v3400_v26  ;;  %v16470_v62 = vand.u32 2147483647, %v11058_v52  ;;  %v16471_v18 = vmov 0 }
 0x3e8   : > { %v3240_v53 = vshll.u32 %v11520_v6, 30  ;;  %v3404_v40 = vor.u32 %v3403_v55, %v3402_v27  ;;  %v3407_v11 = vor.u32 %v3406_v2, %v3405_v36  ;;  %v3410_v20 = vor.u32 %v3409_v21, %v3408_v32 }
 0x3e9   : > { %vm11529_vm9 = vcmp.le.f32.partialorder %v16470_v62, 0.7853982  ;;  %v3413_v5 = vor.u32 %v3412_v43, %v3411_v54  ;;  %v3414_v50 = vshll.u32 %v16303_v12, %v3399_v46  ;;  %v3415_v49 = vshrl.u32 %v16294_v58, %v3400_v26 }
 0x3ea   : > { %v16472_v18 = vsel %vm11529_vm9, 4294967295, %v16471_v18  ;;  %v11537_v30 = vsel %vm8217_vm8, 0, %v8216_v42  ;;  %v11539_v9 = vsub.s32 %v3237_v39, %v3240_v53  ;;  %v3401_v62 = vshrl.u32 %v16300_v28, %v3400_v26  ;;  %v2336_v39 = vpop.f32.mrf.mxu1 }
 0x3eb   : > { %16473 = vst [vmem:[#allocation46_spill] sm:$0xff] %v16472_v18  ;;  %v8222_v4 = vadd.s32 4294967169, %v3285_v7  ;;  %v3416_v45 = vor.u32 %v3415_v49, %v3414_v50  ;;  %vm3417_vm15 = vcmp.lt.s32.totalorder %v3398_v0, 1  ;;  %vm3419_vm7 = vcmp.lt.s32.totalorder %v3398_v0, 3 }
 0x3ec   : > { %vm3420_vm10 = vcmp.lt.s32.totalorder %v3398_v0, 4  ;;  %v3243_v27 = vsub.s32 0, %v11539_v9  ;;  %v3425_v36 = vsel %vm3417_vm15, %v3404_v40, %v3407_v11  ;;  %v3149_v2 = vsub.s32 4294967266, %v11537_v30 }
 0x3ed   : > { %v3422_v55 = vsel %vm3420_vm10, %v3410_v20, 2102212464  ;;  %v3426_v46 = vsel %vm3420_vm10, %v3413_v5, 920167782  ;;  %vm3418_vm12 = vcmp.lt.s32.totalorder %v3398_v0, 2  ;;  %v3429_v32 = vsel %vm3417_vm15, %v3407_v11, %v3410_v20  ;;  %v11545_v21 = vpop.eup %8809 }
 0x3ee   : > { %v3427_v42 = vsel %vm3419_vm7, %v3410_v20, %v3426_v46  ;;  %16474 = vst [vmem:[#allocation47_spill] sm:$0xff] %v11545_v21  ;;  %v8219_v26 = vmin.u32 %v3243_v27, %v11539_v9  ;;  %v3421_v7 = vsel %vm3417_vm15, %v3401_v62, %v3404_v40  ;;  %v3430_v43 = vsel %vm3420_vm10, %v3416_v45, 1326507024  ;;  %v11549_v53 = vpop.eup %8811 }
 0x3ef   : > { %v3428_v54 = vsel %vm3418_vm12, %v3425_v36, %v3427_v42  ;;  %16475 = vst [vmem:[#allocation48_spill] sm:$0xff] %v11549_v53  ;;  %v3423_v50 = vsel %vm3419_vm7, %v3407_v11, %v3422_v55  ;;  %v3431_v49 = vsel %vm3419_vm7, %v3413_v5, %v3430_v43  ;;  %v16476_v27 = vand.u32 2147483647, %v11482_v13  ;;  %v2251_v43 = vpop.f32.mrf.mxu0 }
 0x3f0   : > { %v11554_v38 = vmul.u32.u64.low %v11515_v48, %v3428_v54  ;;  %v11555_v24 = vmul.u32.u64.high %v11515_v48, %v3428_v54, %v11554_v38  ;;  %v3245_v20 = vclz %v8219_v26  ;;  %v3432_v46 = vsel %vm3418_vm12, %v3429_v32, %v3431_v49 }
 0x3f1   : > { %v3288_v40 = vand.u32 8388607, %v16476_v27  ;;  %v11562_v62 = vadd.f32 %v2336_v39, %v11320_v10  ;;  %v11567_v45 = vsel %vm11529_vm9, %v11058_v52, %v3054_v33  ;;  %v3291_v55 = vadd.s32 1, %v8222_v4 }
 0x3f2   : > { %v11570_v11 = vmul.u32.u64.low %v11515_v48, %v3432_v46  ;;  %v11571_v5 = vmul.u32.u64.high %v11515_v48, %v3432_v46, %v11570_v11  ;;  %v16477_v36 = vshll.u32 %v11367_v57, %v11445_v15  ;;  %v11578_v32 = vor.u32 4788187, %v2943_v47 }
 0x3f3   : > { %v8220_v26 = vadd.s32 4294967294, %v3245_v20  ;;  %v3424_v10 = vsel %vm3418_vm12, %v3421_v7, %v3423_v50  ;;  %v3145_v39 = vsub.s32 32, %v11537_v30  ;;  %v11582_v54 = vadd.s32 127, %v3149_v2 }
 0x3f4   : > { %v11576_v42 = vor.u32 %v2939_v44, %v16477_v36  ;;  %v3443_v33 = vadd.s32 1, %v11555_v24  ;;  %vm3292_vm8 = vcmp.gt.s32.totalorder %v3291_v55, 0  ;;  %v3289_v4 = vor.u32 8388608, %v3288_v40 }
 0x3f5   : > { %vm8221_vm15 = vcmp.lt.s32.totalorder %v8220_v26, 0  ;;  %v3293_v49 = vsel %vm3292_vm8, %v3291_v55, 0  ;;  %v3492_v57 = vand.u32 2139095040, %v11562_v62  ;;  %v3440_v44 = vmul.u32 %v11515_v48, %v3424_v10 }
 0x3f6   : > { %v11586_v15 = vsel %vm8221_vm15, 0, %v8220_v26  ;;  %vm3442_vm7 = vc.u32 %v11571_v5, %v11554_v38  ;;  %v11591_v47 = vshrl.u32 %v3293_v49, 5  ;;  %v11597_v50 = vadd.f32 %v2251_v43, %v11292_v1 }
 0x3f7   : > { %v3253_v2 = vsub.s32 4294967266, %v11586_v15  ;;  %v3444_v7 = vsel %vm3442_vm7, %v3443_v33, %v11555_v24  ;;  %v3233_v20 = vadd.s32 %v11459_v34, %v11475_v51  ;;  %v3295_v27 = vand.u32 31, %v3293_v49 }
 0x3f8   : > { %v3445_v46 = vadd.s32 %v3444_v7, %v3440_v44  ;;  %v11603_v40 = vshrl.u32 %v11512_v14, %v3145_v39  ;;  %v3151_v11 = vshll.u32 %v11582_v54, 23  ;;  %v11606_v55 = vshll.u32 %v3289_v4, 8 }
 0x3f9   : > { %v3493_v36 = vshrl.u32 %v3492_v57, 23  ;;  %v3249_v24 = vsub.s32 32, %v11586_v15  ;;  %v3296_v10 = vsub.s32 32, %v3295_v27  ;;  %vm3313_vm10 = vcmp.lt.s32.totalorder %v11591_v47, 1 }
 0x3fa   : > { %v3446_v26 = vadd.s32 536870912, %v3445_v46  ;;  %v3254_v33 = vadd.s32 127, %v3253_v2  ;;  %v3298_v34 = vshll.u32 %v16300_v28, %v3295_v27  ;;  %vm3314_vm12 = vcmp.lt.s32.totalorder %v11591_v47, 2 }
 0x3fb   : > { %vm3315_vm8 = vcmp.lt.s32.totalorder %v11591_v47, 3  ;;  %v3299_v14 = vshrl.u32 %v16293_v16, %v3296_v10  ;;  %v3301_v39 = vshll.u32 %v16293_v16, %v3295_v27  ;;  %v3302_v54 = vshrl.u32 %v16431_v29, %v3296_v10 }
 0x3fc   : > { %v11613_v51 = vshrl.u32 %v3446_v26, 30  ;;  %v3304_v43 = vshll.u32 %v16431_v29, %v3295_v27  ;;  %v3305_v4 = vshrl.u32 %v16432_v60, %v3296_v10  ;;  %v3307_v49 = vshll.u32 %v16432_v60, %v3295_v27 }
 0x3fd   : > { %v3308_v57 = vshrl.u32 %v16303_v12, %v3296_v10  ;;  %v3300_v2 = vor.u32 %v3299_v14, %v3298_v34  ;;  %v3303_v7 = vor.u32 %v3302_v54, %v3301_v39  ;;  %vm3316_vm15 = vcmp.lt.s32.totalorder %v11591_v47, 4 }
 0x3fe   : > { %v3448_v44 = vshll.u32 %v11613_v51, 30  ;;  %v3306_v26 = vor.u32 %v3305_v4, %v3304_v43  ;;  %v3310_v48 = vshll.u32 %v16303_v12, %v3295_v27  ;;  %v3311_v17 = vshrl.u32 %v16294_v58, %v3296_v10 }
 0x3ff   : > { %v3309_v0 = vor.u32 %v3308_v57, %v3307_v49  ;;  %v3255_v25 = vshll.u32 %v3254_v33, 23  ;;  %v3297_v18 = vshrl.u32 %v16300_v28, %v3296_v10  ;;  %v3321_v8 = vsel %vm3313_vm10, %v3300_v2, %v3303_v7 }
 0x400   : > { %v11626_v59 = vsub.s32 %v3445_v46, %v3448_v44  ;;  %v3312_v52 = vor.u32 %v3311_v17, %v3310_v48  ;;  %v3318_v34 = vsel %vm3316_vm15, %v3306_v26, 2102212464  ;;  %v8230_v39 = vadd.s32 4294967169, %v3493_v36 }
 0x401   : > { %v3322_v14 = vsel %vm3316_vm15, %v3309_v0, 920167782  ;;  %v3251_v54 = vshrl.u32 %v3233_v20, %v3249_v24  ;;  %v3325_v10 = vsel %vm3313_vm10, %v3303_v7, %v3306_v26  ;;  %v3317_v33 = vsel %vm3313_vm10, %v3297_v18, %v3300_v2 }
 0x402   : > { %v3451_v27 = vsub.s32 0, %v11626_v59  ;;  %v3323_v46 = vsel %vm3315_vm8, %v3306_v26, %v3322_v14  ;;  %v3319_v17 = vsel %vm3315_vm8, %v3303_v7, %v3318_v34  ;;  %v3326_v20 = vsel %vm3316_vm15, %v3312_v52, 1326507024 }
 0x403   : > { %v3324_v48 = vsel %vm3314_vm12, %v3321_v8, %v3323_v46  ;;  %v3327_v24 = vsel %vm3315_vm8, %v3309_v0, %v3326_v20  ;;  %v3250_v18 = vshll.u32 %v11539_v9, %v11586_v15  ;;  %v3256_v49 = vor.u32 4788187, %v3255_v25 }
 0x404   : > { %v8227_v36 = vmin.u32 %v3451_v27, %v11626_v59  ;;  %v11652_v43 = vmul.u32.u64.low %v11606_v55, %v3324_v48  ;;  %v11653_v4 = vmul.u32.u64.high %v11606_v55, %v3324_v48, %v11652_v43  ;;  %v3328_v8 = vsel %vm3314_vm12, %v3325_v10, %v3327_v24 }
 0x405   : > { %v3499_v57 = vadd.s32 1, %v8230_v39  ;;  %v11660_v44 = vor.u32 4788187, %v3151_v11  ;;  %v11663_v2 = vmul.u32.u64.low %v11606_v55, %v3328_v8  ;;  %v11664_v7 = vmul.u32.u64.high %v11606_v55, %v3328_v8, %v11663_v2 }
 0x406   : > { %v3453_v52 = vclz %v8227_v36  ;;  %v3146_v0 = vshll.u32 %v11450_v56, %v11537_v30  ;;  %v3252_v26 = vor.u32 %v3251_v54, %v3250_v18  ;;  %v3320_v34 = vsel %vm3314_vm12, %v3317_v33, %v3319_v17 }
 0x407   : > { %vm3500_vm7 = vcmp.gt.s32.totalorder %v3499_v57, 0  ;;  %v3339_v25 = vadd.s32 1, %v11653_v4  ;;  %v16478_v15 = vand.u32 2147483647, %v11562_v62  ;;  %v2945_v39 = vand.u32 2147483647, %v11578_v32 }
 0x408   : > { %v8228_v9 = vadd.s32 4294967294, %v3453_v52  ;;  %v3501_v14 = vsel %vm3500_vm7, %v3499_v57, 0  ;;  %v11675_v27 = vor.u32 %v11603_v40, %v3146_v0  ;;  %v3257_v46 = vand.u32 2147483647, %v3256_v49 }
 0x409   : > { %v3496_v11 = vand.u32 8388607, %v16478_v15  ;;  %v3503_v10 = vand.u32 31, %v3501_v14  ;;  %v3336_v30 = vmul.u32 %v11606_v55, %v3320_v34  ;;  %vm3338_vm12 = vc.u32 %v11664_v7, %v11652_v43 }
 0x40a   : > { %vm8229_vm10 = vcmp.lt.s32.totalorder %v8228_v9, 0  ;;  %v3259_v47 = vcvt.s32.f32 %v3252_v26  ;;  %v3340_v33 = vsel %vm3338_vm12, %v3339_v25, %v11653_v4  ;;  %v3441_v55 = vadd.s32 %v11554_v38, %v11571_v5 }
 0x40b   : > { %v11681_v54 = vsel %vm8229_vm10, 0, %v8228_v9  ;;  %v3504_v17 = vsub.s32 32, %v3503_v10  ;;  %v3341_v40 = vadd.s32 %v3340_v33, %v3336_v30  ;;  %v3497_v20 = vor.u32 8388608, %v3496_v11 }
 0x40c   : > { %v3461_v48 = vsub.s32 4294967266, %v11681_v54  ;;  %v11686_v24 = vmul.f32 %v3259_v47, %v3257_v46  ;;  %v3457_v8 = vsub.s32 32, %v11681_v54  ;;  %v3502_v4 = vshrl.u32 %v3501_v14, 5 }
 0x40d   : > { %v3507_v18 = vshrl.u32 %v16293_v16, %v3504_v17  ;;  %v3510_v49 = vshrl.u32 %v16431_v29, %v3504_v17  ;;  %v3342_v57 = vadd.s32 536870912, %v3341_v40  ;;  %v3506_v52 = vshll.u32 %v16300_v28, %v3503_v10 }
 0x40e   : > { %v3462_v2 = vadd.s32 127, %v3461_v48  ;;  %v3509_v0 = vshll.u32 %v16293_v16, %v3503_v10  ;;  %v3512_v26 = vshll.u32 %v16431_v29, %v3503_v10  ;;  %v3513_v34 = vshrl.u32 %v16432_v60, %v3504_v17 }
 0x40f   : > { %v11697_v9 = vshrl.u32 %v3342_v57, 30  ;;  %v3508_v38 = vor.u32 %v3507_v18, %v3506_v52  ;;  %v3515_v5 = vshll.u32 %v16432_v60, %v3503_v10  ;;  %v3516_v25 = vshrl.u32 %v16303_v12, %v3504_v17 }
 0x410   : > { %v3511_v15 = vor.u32 %v3510_v49, %v3509_v0  ;;  %v3514_v11 = vor.u32 %v3513_v34, %v3512_v26  ;;  %v3518_v14 = vshll.u32 %v16303_v12, %v3503_v10  ;;  %v3519_v46 = vshrl.u32 %v16294_v58, %v3504_v17 }
 0x411   : > { %v3344_v30 = vshll.u32 %v11697_v9, 30  ;;  %v3517_v47 = vor.u32 %v3516_v25, %v3515_v5  ;;  %v3537_v33 = vshll.u32 %v3497_v20, 8  ;;  %v3596_v48 = vand.u32 2139095040, %v11597_v50 }
 0x412   : > { %v3458_v57 = vshll.u32 %v11626_v59, %v11681_v54  ;;  %v3463_v18 = vshll.u32 %v3462_v2, 23  ;;  %v3505_v52 = vshrl.u32 %v16300_v28, %v3504_v17  ;;  %v3520_v36 = vor.u32 %v3519_v46, %v3518_v14 }
 0x413   : > { %v3459_v56 = vshrl.u32 %v3441_v55, %v3457_v8  ;;  %v11708_v49 = vsub.s32 %v3341_v40, %v3344_v30  ;;  %vm3521_vm8 = vcmp.lt.s32.totalorder %v3502_v4, 1  ;;  %vm3524_vm15 = vcmp.lt.s32.totalorder %v3502_v4, 4 }
 0x414   : > { %vm3523_vm7 = vcmp.lt.s32.totalorder %v3502_v4, 3  ;;  %v3526_v10 = vsel %vm3524_vm15, %v3514_v11, 2102212464  ;;  %v3529_v0 = vsel %vm3521_vm8, %v3508_v38, %v3511_v15  ;;  %v3530_v26 = vsel %vm3524_vm15, %v3517_v47, 920167782 }
 0x415   : > { %v3347_v20 = vsub.s32 0, %v11708_v49  ;;  %vm3522_vm10 = vcmp.lt.s32.totalorder %v3502_v4, 2  ;;  %v3531_v34 = vsel %vm3523_vm7, %v3514_v11, %v3530_v26  ;;  %v3533_v59 = vsel %vm3521_vm8, %v3511_v15, %v3514_v11 }
 0x416   : > { %vm3179_vm12 = vcmp.lt.s32.totalorder %v11327_v22, 0  ;;  %v3464_v54 = vor.u32 4788187, %v3463_v18  ;;  %v3532_v17 = vsel %vm3522_vm10, %v3529_v0, %v3531_v34  ;;  %v3534_v40 = vsel %vm3524_vm15, %v3520_v36, 1326507024 }
 0x417   : > { %v3597_v55 = vshrl.u32 %v3596_v48, 23  ;;  %v8223_v8 = vmin.u32 %v3347_v20, %v11708_v49  ;;  %v3525_v2 = vsel %vm3521_vm8, %v3505_v52, %v3508_v38  ;;  %v3527_v5 = vsel %vm3523_vm7, %v3511_v15, %v3526_v10 }
 0x418   : > { %v3535_v25 = vsel %vm3523_vm7, %v3517_v47, %v3534_v40  ;;  %v11721_v46 = vmul.u32.u64.low %v3537_v33, %v3532_v17  ;;  %v11722_v30 = vmul.u32.u64.high %v3537_v33, %v3532_v17, %v11721_v46  ;;  %v3155_v18 = vcvt.s32.f32 %v11675_v27 }
 0x419   : > { %v3536_v14 = vsel %vm3522_vm10, %v3533_v59, %v3535_v25  ;;  %v8234_v11 = vadd.s32 4294967169, %v3597_v55  ;;  %v3349_v0 = vclz %v8223_v8  ;;  %8813 = vcosq.f32 %v11567_v45 }
 0x41a   : > { %v11726_v36 = vmul.u32.u64.low %v3537_v33, %v3536_v14  ;;  %v11727_v48 = vmul.u32.u64.high %v3537_v33, %v3536_v14, %v11726_v36  ;;  %v3460_v38 = vor.u32 %v3459_v56, %v3458_v57  ;;  %v3528_v15 = vsel %vm3522_vm10, %v3525_v2, %v3527_v5  ;;  %v2340_v57 = vpop.f32.mrf.mxu1 }
 0x41b   : > { %v3603_v52 = vadd.s32 1, %v8234_v11  ;;  %v16479_v47 = vcvt.s32.f32 %v11576_v42  ;;  %v16480_v26 = vand.u32 2147483647, %v11660_v44  ;;  %v3261_v27 = vxor.u32 2147483648, %v11686_v24 }
 0x41c   : > { %v8224_v34 = vadd.s32 4294967294, %v3349_v0  ;;  %v3465_v59 = vand.u32 2147483647, %v3464_v54  ;;  %v3547_v17 = vadd.s32 1, %v11722_v30  ;;  %v16481_v56 = vand.u32 2147483647, %v11597_v50 }
 0x41d   : > { %v11735_v10 = vmul.f32 %v16479_v47, %v2945_v39  ;;  %v11739_v20 = vmul.f32 %v3155_v18, %v16480_v26  ;;  %vm3604_vm8 = vcmp.gt.s32.totalorder %v3603_v52, 0  ;;  %v3544_v32 = vmul.u32 %v3537_v33, %v3528_v15 }
 0x41e   : > { %v3600_v4 = vand.u32 8388607, %v16481_v56  ;;  %vm8225_vm15 = vcmp.lt.s32.totalorder %v8224_v34, 0  ;;  %vm3546_vm7 = vc.u32 %v11727_v48, %v11721_v46  ;;  %v3605_v42 = vsel %vm3604_vm8, %v3603_v52, 0 }
 0x41f   : > { %v3467_v44 = vcvt.s32.f32 %v3460_v38  ;;  %v11747_v39 = vsel %vm8225_vm15, 0, %v8224_v34  ;;  %v3548_v40 = vsel %vm3546_vm7, %v3547_v17, %v11722_v30  ;;  %v3607_v55 = vand.u32 31, %v3605_v42 }
 0x420   : > { %v11753_v54 = vsel %vm3179_vm12, %v3261_v27, %v11686_v24  ;;  %v3337_v8 = vadd.s32 %v11652_v43, %v11664_v7  ;;  %v3549_v2 = vadd.s32 %v3548_v40, %v3544_v32  ;;  %v11758_v33 = vadd.f32 %v2340_v57, %v11292_v1 }
 0x421   : > { %v11760_v5 = vmul.f32 %v3467_v44, %v3465_v59  ;;  %v3353_v25 = vsub.s32 32, %v11747_v39  ;;  %v3601_v14 = vor.u32 8388608, %v3600_v4  ;;  %v3608_v11 = vsub.s32 32, %v3607_v55 }
 0x422   : > { %v3357_v30 = vsub.s32 4294967266, %v11747_v39  ;;  %v3550_v18 = vadd.s32 536870912, %v3549_v2  ;;  %v3610_v0 = vshll.u32 %v16300_v28, %v3607_v55  ;;  %v3613_v24 = vshll.u32 %v16293_v16, %v3607_v55 }
 0x423   : > { %v3611_v36 = vshrl.u32 %v16293_v16, %v3608_v11  ;;  %v3614_v43 = vshrl.u32 %v16431_v29, %v3608_v11  ;;  %v3616_v7 = vshll.u32 %v16431_v29, %v3607_v55  ;;  %v3617_v38 = vshrl.u32 %v16432_v60, %v3608_v11 }
 0x424   : > { %v11770_v15 = vshrl.u32 %v3550_v18, 30  ;;  %v3606_v52 = vshrl.u32 %v3605_v42, 5  ;;  %v3619_v47 = vshll.u32 %v16432_v60, %v3607_v55  ;;  %v3620_v26 = vshrl.u32 %v16303_v12, %v3608_v11 }
 0x425   : > { %v3612_v27 = vor.u32 %v3611_v36, %v3610_v0  ;;  %v3615_v34 = vor.u32 %v3614_v43, %v3613_v24  ;;  %v3618_v59 = vor.u32 %v3617_v38, %v3616_v7  ;;  %v11774_v17 = vshll.u32 %v3601_v14, 8 }
 0x426   : > { %v3552_v56 = vshll.u32 %v11770_v15, 30  ;;  %v3621_v4 = vor.u32 %v3620_v26, %v3619_v47  ;;  %v16083_v57 = vand.u32 2147483647, %v11758_v33  ;;  %v3804_v32 = vand.u32 2139095040, %v11758_v33  ;;  %v11781_v21 = vpop.eup %8813 }
 0x427   : > { %v3355_v44 = vshrl.u32 %v3337_v8, %v3353_v25  ;;  %v3358_v40 = vadd.s32 127, %v3357_v30  ;;  %v3622_v42 = vshll.u32 %v16303_v12, %v3607_v55  ;;  %v3623_v18 = vshrl.u32 %v16294_v58, %v3608_v11  ;;  %16482 = vst [vmem:[#allocation49_spill] sm:$0xff] %v11781_v21 }
 0x428   : > { %v11783_v0 = vsub.s32 %v3549_v2, %v3552_v56  ;;  %vm3625_vm10 = vcmp.lt.s32.totalorder %v3606_v52, 1  ;;  %vm3627_vm8 = vcmp.lt.s32.totalorder %v3606_v52, 3  ;;  %vm3628_vm15 = vcmp.lt.s32.totalorder %v3606_v52, 4 }
 0x429   : > { %v16483_v14 = vand.u32 2147483647, %v11327_v22  ;;  %vm16107_vm2 = vcmp.lt.s32.totalorder %v11405_v23, 0  ;;  %v3624_v8 = vor.u32 %v3623_v18, %v3622_v42  ;;  %v3630_v25 = vsel %vm3628_vm15, %v3618_v59, 2102212464 }
 0x42a   : > { %v3633_v55 = vsel %vm3625_vm10, %v3612_v27, %v3615_v34  ;;  %v3634_v30 = vsel %vm3628_vm15, %v3621_v4, 920167782  ;;  %v3555_v36 = vsub.s32 0, %v11783_v0  ;;  %v3609_v2 = vshrl.u32 %v16300_v28, %v3608_v11 }
 0x42b   : > { %vm11787_vm7 = vcmp.le.f32.partialorder %v16483_v14, 0.7853982  ;;  %vm3626_vm5 = vcmp.lt.s32.totalorder %v3606_v52, 2  ;;  %v3635_v43 = vsel %vm3627_vm8, %v3618_v59, %v3634_v30  ;;  %vm16106_vm4 = vcmp.lt.s32.totalorder %v11034_v61, 0 }
 0x42c   : > { %v3359_v7 = vshll.u32 %v3358_v40, 23  ;;  %v3636_v38 = vsel %vm3626_vm5, %v3633_v55, %v3635_v43  ;;  %v3637_v47 = vsel %vm3625_vm10, %v3615_v34, %v3618_v59  ;;  %v3638_v26 = vsel %vm3628_vm15, %v3624_v8, 1326507024 }
 0x42d   : > { %vm16105_vm6 = vcmp.lt.s32.totalorder %v11211_v63, 0  ;;  %v8231_v56 = vmin.u32 %v3555_v36, %v11783_v0  ;;  %v3629_v42 = vsel %vm3625_vm10, %v3609_v2, %v3612_v27  ;;  %v3631_v18 = vsel %vm3627_vm8, %v3615_v34, %v3630_v25 }
 0x42e   : > { %v3639_v11 = vsel %vm3627_vm8, %v3621_v4, %v3638_v26  ;;  %v16486_v14 = vand.u32 2147483647, %v11405_v23  ;;  %v11812_v59 = vmul.u32.u64.low %v11774_v17, %v3636_v38  ;;  %v11813_v8 = vmul.u32.u64.high %v11774_v17, %v3636_v38, %v11812_v59 }
 0x42f   : > { %v3640_v40 = vsel %vm3626_vm5, %v3637_v47, %v3639_v11  ;;  %v3805_v55 = vshrl.u32 %v3804_v32, 23  ;;  %v3469_v36 = vxor.u32 2147483648, %v11760_v5  ;;  %v3557_v27 = vclz %v8231_v56 }
 0x430   : > { %vm11806_vm1 = vcmp.le.f32.partialorder %v16486_v14, 0.7853982  ;;  %v11817_v34 = vmul.u32.u64.low %v11774_v17, %v3640_v40  ;;  %v11818_v25 = vmul.u32.u64.high %v11774_v17, %v3640_v40, %v11817_v34  ;;  %v3354_v4 = vshll.u32 %v11708_v49, %v11747_v39 }
 0x431   : > { %v3360_v2 = vor.u32 4788187, %v3359_v7  ;;  %v3632_v43 = vsel %vm3626_vm5, %v3629_v42, %v3631_v18  ;;  %v8242_v26 = vadd.s32 4294967169, %v3805_v55  ;;  %8815 = vsinq.f32 %v11567_v45  ;;  %v2253_v34 = vpop.f32.mrf.mxu0 }
 0x432   : > { %v2949_v38 = vxor.u32 2147483648, %v11735_v10  ;;  %v8232_v47 = vadd.s32 4294967294, %v3557_v27  ;;  %v3808_v32 = vand.u32 8388607, %v16083_v57  ;;  %v3157_v56 = vxor.u32 2147483648, %v11739_v20 }
 0x433   : > { %v3356_v11 = vor.u32 %v3355_v44, %v3354_v4  ;;  %v3651_v14 = vadd.s32 1, %v11813_v8  ;;  %v3811_v40 = vadd.s32 1, %v8242_v26  ;;  %v3265_v49 = vsel %vm11787_vm7, %v11327_v22, %v11753_v54 }
 0x434   : > { %v3470_v45 = vsel %vm16107_vm2, %v3469_v36, %v11760_v5  ;;  %v3648_v39 = vmul.u32 %v11774_v17, %v3632_v43  ;;  %vm3650_vm5 = vc.u32 %v11818_v25, %v11812_v59  ;;  %v3361_v52 = vand.u32 2147483647, %v3360_v2  ;;  %v2342_v5 = vpop.f32.mrf.mxu1 }
 0x435   : > { %vm8233_vm10 = vcmp.lt.s32.totalorder %v8232_v47, 0  ;;  %v3652_v44 = vsel %vm3650_vm5, %v3651_v14, %v11813_v8  ;;  %vm3812_vm8 = vcmp.gt.s32.totalorder %v3811_v40, 0  ;;  %v11842_v7 = vsel %vm16106_vm4, %v2949_v38, %v11735_v10 }
 0x436   : > { %16489 = vst [vmem:[#allocation50_spill] sm:$0xff] %v11842_v7  ;;  %v3653_v42 = vadd.s32 %v3652_v44, %v3648_v39  ;;  %v3809_v54 = vor.u32 8388608, %v3808_v32  ;;  %v11845_v18 = vadd.f32 %v2253_v34, %v11292_v1  ;;  %v11850_v17 = vsel %vm16105_vm6, %v3157_v56, %v11739_v20 }
 0x437   : > { %16490 = vst [vmem:[#allocation51_spill] sm:$0xff] %v11850_v17  ;;  %8817 = vcosq.f32 %v3265_v49  ;;  %v3363_v55 = vcvt.s32.f32 %v3356_v11  ;;  %v3813_v8 = vsel %vm3812_vm8, %v3811_v40, 0  ;;  %v11855_v10 = vsel %vm11806_vm1, %v11405_v23, %v3470_v45 }
 0x438   : > { %8819 = vsinq.f32 %v3265_v49  ;;  %v11857_v36 = vsel %vm8233_vm10, 0, %v8232_v47  ;;  %v3654_v27 = vadd.s32 536870912, %v3653_v42  ;;  %v3545_v2 = vadd.s32 %v11721_v46, %v11727_v48 }
 0x439   : > { %v11859_v4 = vmul.f32 %v3363_v55, %v3361_v52  ;;  %v3815_v43 = vand.u32 31, %v3813_v8  ;;  %v11864_v20 = vadd.f32 %v2342_v5, %v11292_v1  ;;  %v11867_v26 = vadd.s32 %v11812_v59, %v11818_v25 }
 0x43a   : > { %v11869_v38 = vshrl.u32 %v3654_v27, 30  ;;  %v11871_v32 = vshll.u32 %v3809_v54, 8  ;;  %v3561_v56 = vsub.s32 32, %v11857_v36  ;;  %v3700_v46 = vand.u32 2139095040, %v11845_v18 }
 0x43b   : > { %v3816_v14 = vsub.s32 32, %v3815_v43  ;;  %v3814_v48 = vshrl.u32 %v3813_v8, 5  ;;  %v3818_v59 = vshll.u32 %v16300_v28, %v3815_v43  ;;  %v3821_v25 = vshll.u32 %v16293_v16, %v3815_v43 }
 0x43c   : > { %v3656_v1 = vshll.u32 %v11869_v38, 30  ;;  %v3824_v49 = vshll.u32 %v16431_v29, %v3815_v43  ;;  %v3827_v52 = vshll.u32 %v16432_v60, %v3815_v43  ;;  %v3830_v54 = vshll.u32 %v16303_v12, %v3815_v43 }
 0x43d   : > { %v3819_v40 = vshrl.u32 %v16293_v16, %v3816_v14  ;;  %v3822_v34 = vshrl.u32 %v16431_v29, %v3816_v14  ;;  %v3825_v45 = vshrl.u32 %v16432_v60, %v3816_v14  ;;  %v3828_v44 = vshrl.u32 %v16303_v12, %v3816_v14 }
 0x43e   : > { %v11885_v39 = vsub.s32 %v3653_v42, %v3656_v1  ;;  %v11890_v5 = vpop.eup %8815  ;;  %v3831_v57 = vshrl.u32 %v16294_v58, %v3816_v14  ;;  %v3565_v11 = vsub.s32 4294967266, %v11857_v36  ;;  %v3701_v42 = vshrl.u32 %v3700_v46, 23 }
 0x43f   : > { %16491 = vst [vmem:[#allocation52_spill] sm:$0xff] %v11890_v5  ;;  %v3820_v55 = vor.u32 %v3819_v40, %v3818_v59  ;;  %v3823_v8 = vor.u32 %v3822_v34, %v3821_v25  ;;  %v3826_v27 = vor.u32 %v3825_v45, %v3824_v49  ;;  %v3829_v21 = vor.u32 %v3828_v44, %v3827_v52 }
 0x440   : > { %v3659_v47 = vsub.s32 0, %v11885_v39  ;;  %v3817_v1 = vshrl.u32 %v16300_v28, %v3816_v14  ;;  %v3832_v53 = vor.u32 %v3831_v57, %v3830_v54  ;;  %vm3833_vm15 = vcmp.lt.s32.totalorder %v3814_v48, 1 }
 0x441   : > { %vm3836_vm5 = vcmp.lt.s32.totalorder %v3814_v48, 4  ;;  %vm3834_vm10 = vcmp.lt.s32.totalorder %v3814_v48, 2  ;;  %v3841_v59 = vsel %vm3833_vm15, %v3820_v55, %v3823_v8  ;;  %vm3835_vm8 = vcmp.lt.s32.totalorder %v3814_v48, 3 }
 0x442   : > { %v8235_v43 = vmin.u32 %v3659_v47, %v11885_v39  ;;  %v3838_v5 = vsel %vm3836_vm5, %v3826_v27, 2102212464  ;;  %v3842_v25 = vsel %vm3836_vm5, %v3829_v21, 920167782  ;;  %v3845_v40 = vsel %vm3833_vm15, %v3823_v8, %v3826_v27 }
 0x443   : > { %v3846_v34 = vsel %vm3836_vm5, %v3832_v53, 1326507024  ;;  %v3837_v35 = vsel %vm3833_vm15, %v3817_v1, %v3820_v55  ;;  %v3839_v52 = vsel %vm3835_vm8, %v3823_v8, %v3838_v5  ;;  %v3843_v46 = vsel %vm3835_vm8, %v3826_v27, %v3842_v25 }
 0x444   : > { %v11897_v49 = vpop.eup %8817  ;;  %v3661_v45 = vclz %v8235_v43  ;;  %v3844_v57 = vsel %vm3834_vm10, %v3841_v59, %v3843_v46  ;;  %v3847_v14 = vsel %vm3835_vm8, %v3829_v21, %v3846_v34  ;;  %v8238_v54 = vadd.s32 4294967169, %v3701_v42 }
 0x445   : > { %v11899_v44 = vpop.eup %8819  ;;  %v16492_v47 = vand.u32 2147483647, %v11845_v18  ;;  %v3848_v41 = vsel %vm3834_vm10, %v3845_v40, %v3847_v14  ;;  %v11906_v53 = vmul.u32.u64.low %v11871_v32, %v3844_v57  ;;  %v11907_v17 = vmul.u32.u64.high %v11871_v32, %v3844_v57, %v11906_v53 }
 0x446   : > { %v8236_v3 = vadd.s32 4294967294, %v3661_v45  ;;  %v3840_v5 = vsel %vm3834_vm10, %v3837_v35, %v3839_v52  ;;  %v11912_v55 = vmul.u32.u64.low %v11871_v32, %v3848_v41  ;;  %v11913_v8 = vmul.u32.u64.high %v11871_v32, %v3848_v41, %v11912_v55 }
 0x447   : > { %v3704_v19 = vand.u32 8388607, %v16492_v47  ;;  %v3707_v27 = vadd.s32 1, %v8238_v54  ;;  %v11915_v21 = vshrl.u32 %v3545_v2, %v3561_v56  ;;  %v16094_v42 = vand.u32 2147483647, %v11864_v20 }
 0x448   : > { %vm8237_vm15 = vcmp.lt.s32.totalorder %v8236_v3, 0  ;;  %v3908_v1 = vand.u32 2139095040, %v11864_v20  ;;  %v11919_v43 = vadd.s32 127, %v3565_v11  ;;  %v3856_v35 = vmul.u32 %v11871_v32, %v3840_v5 }
 0x449   : > { %v3664_v59 = vsel %vm8237_vm15, 0, %v8236_v3  ;;  %v3705_v25 = vor.u32 8388608, %v3704_v19  ;;  %vm3708_vm5 = vcmp.gt.s32.totalorder %v3707_v27, 0  ;;  %v3859_v41 = vadd.s32 1, %v11907_v17 }
 0x44a   : > { %v3665_v40 = vsub.s32 32, %v3664_v59  ;;  %v3669_v48 = vsub.s32 4294967266, %v3664_v59  ;;  %v3666_v34 = vshll.u32 %v11885_v39, %v3664_v59  ;;  %vm3858_vm10 = vc.u32 %v11913_v8, %v11906_v53 }
 0x44b   : > { %v3709_v2 = vsel %vm3708_vm5, %v3707_v27, 0  ;;  %v3909_v56 = vshrl.u32 %v3908_v1, 23  ;;  %v3860_v3 = vsel %vm3858_vm10, %v3859_v41, %v11907_v17  ;;  %v11928_v57 = vshll.u32 %v3705_v25, 8 }
 0x44c   : > { %v3667_v45 = vshrl.u32 %v11867_v26, %v3665_v40  ;;  %v3670_v11 = vadd.s32 127, %v3669_v48  ;;  %v3710_v19 = vshrl.u32 %v3709_v2, 5  ;;  %v3861_v52 = vadd.s32 %v3860_v3, %v3856_v35 }
 0x44d   : > { %v3711_v46 = vand.u32 31, %v3709_v2  ;;  %v11932_v32 = vand.u32 8388607, %v16094_v42  ;;  %v8246_v54 = vadd.s32 4294967169, %v3909_v56  ;;  %vm3595_vm15 = vcmp.lt.s32.totalorder %v11597_v50, 0 }
 0x44e   : > { %v3668_v39 = vor.u32 %v3667_v45, %v3666_v34  ;;  %v3671_v14 = vshll.u32 %v3670_v11, 23  ;;  %vm3729_vm8 = vcmp.lt.s32.totalorder %v3710_v19, 1  ;;  %v3862_v47 = vadd.s32 536870912, %v3861_v52 }
 0x44f   : > { %v3712_v26 = vsub.s32 32, %v3711_v46  ;;  %v3714_v5 = vshll.u32 %v16300_v28, %v3711_v46  ;;  %vm3730_vm5 = vcmp.lt.s32.totalorder %v3710_v19, 2  ;;  %v3717_v27 = vshll.u32 %v16293_v16, %v3711_v46 }
 0x450   : > { %v3672_v17 = vor.u32 4788187, %v3671_v14  ;;  %v3675_v55 = vcvt.s32.f32 %v3668_v39  ;;  %v3720_v1 = vshll.u32 %v16431_v29, %v3711_v46  ;;  %v16493_v59 = vand.u32 2147483647, %v11597_v50 }
 0x451   : > { %v11944_v40 = vshrl.u32 %v3862_v47, 30  ;;  %v3715_v48 = vshrl.u32 %v16293_v16, %v3712_v26  ;;  %v3718_v35 = vshrl.u32 %v16431_v29, %v3712_v26  ;;  %v3723_v41 = vshll.u32 %v16432_v60, %v3711_v46 }
 0x452   : > { %vm11940_vm10 = vcmp.le.f32.partialorder %v16493_v59, 0.7853982  ;;  %v3673_v34 = vand.u32 2147483647, %v3672_v17  ;;  %v3721_v2 = vshrl.u32 %v16432_v60, %v3712_v26  ;;  %v3724_v56 = vshrl.u32 %v16303_v12, %v3712_v26 }
 0x453   : > { %v3726_v45 = vshll.u32 %v16303_v12, %v3711_v46  ;;  %v3864_v11 = vshll.u32 %v11944_v40, 30  ;;  %v3716_v3 = vor.u32 %v3715_v48, %v3714_v5  ;;  %v3719_v39 = vor.u32 %v3718_v35, %v3717_v27 }
 0x454   : > { %v3727_v14 = vshrl.u32 %v16294_v58, %v3712_v26  ;;  %v3676_v47 = vmul.f32 %v3675_v55, %v3673_v34  ;;  %v3713_v59 = vshrl.u32 %v16300_v28, %v3712_v26  ;;  %v3722_v42 = vor.u32 %v3721_v2, %v3720_v1 }
 0x455   : > { %v3725_v37 = vor.u32 %v3724_v56, %v3723_v41  ;;  %v11955_v63 = vsub.s32 %v3861_v52, %v3864_v11  ;;  %vm3731_vm13 = vcmp.lt.s32.totalorder %v3710_v19, 3  ;;  %vm3732_vm3 = vcmp.lt.s32.totalorder %v3710_v19, 4 }
 0x456   : > { %v3728_v17 = vor.u32 %v3727_v14, %v3726_v45  ;;  %v3677_v7 = vxor.u32 2147483648, %v3676_v47  ;;  %v3734_v31 = vsel %vm3732_vm3, %v3722_v42, 2102212464  ;;  %v3737_v46 = vsel %vm3729_vm8, %v3716_v3, %v3719_v39 }
 0x457   : > { %v3738_v61 = vsel %vm3732_vm3, %v3725_v37, 920167782  ;;  %v3867_v5 = vsub.s32 0, %v11955_v63  ;;  %v3733_v27 = vsel %vm3729_vm8, %v3713_v59, %v3716_v3  ;;  %v3741_v26 = vsel %vm3729_vm8, %v3719_v39, %v3722_v42 }
 0x458   : > { %v3739_v55 = vsel %vm3731_vm13, %v3722_v42, %v3738_v61  ;;  %v3678_v52 = vsel %vm3595_vm15, %v3677_v7, %v3676_v47  ;;  %v3735_v1 = vsel %vm3731_vm13, %v3719_v39, %v3734_v31  ;;  %v3742_v35 = vsel %vm3732_vm3, %v3728_v17, 1326507024 }
 0x459   : > { %v3740_v48 = vsel %vm3730_vm5, %v3737_v46, %v3739_v55  ;;  %v3567_v41 = vshll.u32 %v11919_v43, 23  ;;  %v8243_v34 = vmin.u32 %v3867_v5, %v11955_v63  ;;  %v3743_v2 = vsel %vm3731_vm13, %v3725_v37, %v3742_v35 }
 0x45a   : > { %v3913_v56 = vor.u32 8388608, %v11932_v32  ;;  %v3681_v61 = vsel %vm11940_vm10, %v11597_v50, %v3678_v52  ;;  %v3744_v42 = vsel %vm3730_vm5, %v3741_v26, %v3743_v2  ;;  %v3736_v43 = vsel %vm3730_vm5, %v3733_v27, %v3735_v1 }
 0x45b   : > { %v11975_v7 = vmul.u32.u64.low %v11928_v57, %v3740_v48  ;;  %v11976_v31 = vmul.u32.u64.high %v11928_v57, %v3740_v48, %v11975_v7  ;;  %v3869_v45 = vclz %v8243_v34  ;;  %8821 = vcosq.f32 %v11855_v10 }
 0x45c   : > { %v11981_v11 = vmul.u32.u64.low %v11928_v57, %v3744_v42  ;;  %v11982_v3 = vmul.u32.u64.high %v11928_v57, %v3744_v42, %v11981_v11  ;;  %v3365_v37 = vxor.u32 2147483648, %v11859_v4  ;;  %v16496_v32 = vshll.u32 %v11783_v0, %v11857_v36 }
 0x45d   : > { %v3915_v14 = vadd.s32 1, %v8246_v54  ;;  %v11992_v47 = vor.u32 4788187, %v3567_v41  ;;  %8823 = vcosq.f32 %v3681_v61  ;;  %v3857_v19 = vadd.s32 %v11906_v53, %v11913_v8 }
 0x45e   : > { %v11990_v39 = vor.u32 %v11915_v21, %v16496_v32  ;;  %v8244_v59 = vadd.s32 4294967294, %v3869_v45  ;;  %8825 = vsinq.f32 %v3681_v61  ;;  %v3752_v17 = vmul.u32 %v11928_v57, %v3736_v43 }
 0x45f   : > { %v3755_v46 = vadd.s32 1, %v11976_v31  ;;  %vm3916_vm3 = vcmp.gt.s32.totalorder %v3915_v14, 0  ;;  %vm3754_vm8 = vc.u32 %v11982_v3, %v11975_v7  ;;  %v12000_v36 = vshll.u32 %v3913_v56, 8 }
 0x460   : > { %vm8245_vm13 = vcmp.lt.s32.totalorder %v8244_v59, 0  ;;  %v3917_v0 = vsel %vm3916_vm3, %v3915_v14, 0  ;;  %v3679_v53 = vsub.s32 4, %v11869_v38  ;;  %vm3283_vm5 = vcmp.lt.s32.totalorder %v11482_v13, 0 }
 0x461   : > { %v3872_v21 = vsel %vm8245_vm13, 0, %v8244_v59  ;;  %v3756_v54 = vsel %vm3754_vm8, %v3755_v46, %v11976_v31  ;;  %v3919_v5 = vand.u32 31, %v3917_v0  ;;  %v12004_v57 = vshrl.u32 %v3917_v0, 5 }
 0x462   : > { %v3873_v8 = vsub.s32 32, %v3872_v21  ;;  %v3877_v27 = vsub.s32 4294967266, %v3872_v21  ;;  %v3757_v55 = vadd.s32 %v3756_v54, %v3752_v17  ;;  %v3874_v26 = vshll.u32 %v11955_v63, %v3872_v21 }
 0x463   : > { %v3920_v52 = vsub.s32 32, %v3919_v5  ;;  %v3922_v1 = vshll.u32 %v16300_v28, %v3919_v5  ;;  %v3925_v48 = vshll.u32 %v16293_v16, %v3919_v5  ;;  %v3928_v2 = vshll.u32 %v16431_v29, %v3919_v5 }
 0x464   : > { %v3875_v35 = vshrl.u32 %v3857_v19, %v3873_v8  ;;  %v3878_v41 = vadd.s32 127, %v3877_v27  ;;  %v3758_v34 = vadd.s32 536870912, %v3757_v55  ;;  %v3931_v31 = vshll.u32 %v16432_v60, %v3919_v5 }
 0x465   : > { %v3923_v56 = vshrl.u32 %v16293_v16, %v3920_v52  ;;  %v3926_v61 = vshrl.u32 %v16431_v29, %v3920_v52  ;;  %v3929_v42 = vshrl.u32 %v16432_v60, %v3920_v52  ;;  %v3932_v11 = vshrl.u32 %v16303_v12, %v3920_v52 }
 0x466   : > { %v3876_v63 = vor.u32 %v3875_v35, %v3874_v26  ;;  %v3879_v45 = vshll.u32 %v3878_v41, 23  ;;  %v12015_v43 = vshrl.u32 %v3758_v34, 30  ;;  %vm3803_vm3 = vcmp.lt.s32.totalorder %v11758_v33, 0 }
 0x467   : > { %v3924_v32 = vor.u32 %v3923_v56, %v3922_v1  ;;  %v3927_v14 = vor.u32 %v3926_v61, %v3925_v48  ;;  %v3930_v19 = vor.u32 %v3929_v42, %v3928_v2  ;;  %v3680_v59 = vsel %vm3595_vm15, %v3679_v53, %v11869_v38 }
 0x468   : > { %v16497_v17 = vand.u32 2147483647, %v11758_v33  ;;  %v3880_v0 = vor.u32 4788187, %v3879_v45  ;;  %v3760_v21 = vshll.u32 %v12015_v43, 30  ;;  %v3921_v54 = vshrl.u32 %v16300_v28, %v3920_v52  ;;  %v12033_v38 = vpop.eup %8821 }
 0x469   : > { %v3933_v8 = vor.u32 %v3932_v11, %v3931_v31  ;;  %v3883_v27 = vcvt.s32.f32 %v3876_v63  ;;  %v3934_v26 = vshll.u32 %v16303_v12, %v3919_v5  ;;  %v3935_v1 = vshrl.u32 %v16294_v58, %v3920_v52 }
 0x46a   : > { %vm12024_vm13 = vcmp.le.f32.partialorder %v16497_v17, 0.7853982  ;;  %vm3937_vm8 = vcmp.lt.s32.totalorder %v12004_v57, 1  ;;  %v3881_v53 = vand.u32 2147483647, %v3880_v0  ;;  %v12035_v48 = vsub.s32 %v3757_v55, %v3760_v21  ;;  %v12039_v35 = vpop.eup %8823 }
 0x46b   : > { %vm3939_vm15 = vcmp.lt.s32.totalorder %v12004_v57, 3  ;;  %vm3940_vm6 = vcmp.lt.s32.totalorder %v12004_v57, 4  ;;  %v3936_v41 = vor.u32 %v3935_v1, %v3934_v26  ;;  %v3945_v5 = vsel %vm3937_vm8, %v3924_v32, %v3927_v14  ;;  %v12043_v52 = vpop.eup %8825 }
 0x46c   : > { %v3942_v34 = vsel %vm3940_vm6, %v3930_v19, 2102212464  ;;  %v3946_v2 = vsel %vm3940_vm6, %v3933_v8, 920167782  ;;  %v3884_v56 = vmul.f32 %v3883_v27, %v3881_v53  ;;  %v3763_v61 = vsub.s32 0, %v12035_v48 }
 0x46d   : > { %vm3938_vm4 = vcmp.lt.s32.totalorder %v12004_v57, 2  ;;  %v3947_v55 = vsel %vm3939_vm15, %v3930_v19, %v3946_v2  ;;  %v3941_v42 = vsel %vm3937_vm8, %v3921_v54, %v3924_v32  ;;  %v3949_v63 = vsel %vm3937_vm8, %v3927_v14, %v3930_v19 }
 0x46e   : > { %v3948_v31 = vsel %vm3938_vm4, %v3945_v5, %v3947_v55  ;;  %v3950_v45 = vsel %vm3940_vm6, %v3936_v41, 1326507024  ;;  %v3885_v11 = vxor.u32 2147483648, %v3884_v56  ;;  %v8239_v17 = vmin.u32 %v3763_v61, %v12035_v48 }
 0x46f   : > { %v3943_v0 = vsel %vm3939_vm15, %v3927_v14, %v3942_v34  ;;  %v3951_v21 = vsel %vm3939_vm15, %v3933_v8, %v3950_v45  ;;  %v3366_v32 = vsel %vm3283_vm5, %v3365_v37, %v11859_v4  ;;  %v3569_v53 = vand.u32 2147483647, %v11992_v47 }
 0x470   : > { %v3952_v54 = vsel %vm3938_vm4, %v3949_v63, %v3951_v21  ;;  %v12068_v19 = vmul.u32.u64.low %v12000_v36, %v3948_v31  ;;  %v12069_v27 = vmul.u32.u64.high %v12000_v36, %v3948_v31, %v12068_v19  ;;  %v3886_v14 = vsel %vm3803_vm3, %v3885_v11, %v3884_v56 }
 0x471   : > { %v3765_v26 = vclz %v8239_v17  ;;  %v12075_v8 = vmul.u32.u64.low %v12000_v36, %v3952_v54  ;;  %v12076_v1 = vmul.u32.u64.high %v12000_v36, %v3952_v54, %v12075_v8  ;;  %v3889_v4 = vsel %vm12024_vm13, %v11758_v33, %v3886_v14 }
 0x472   : > { %v3944_v37 = vsel %vm3938_vm4, %v3941_v42, %v3943_v0  ;;  %v3682_v41 = vsel %vm11940_vm10, 0, %v3680_v59  ;;  %v3571_v34 = vcvt.s32.f32 %v11990_v39  ;;  %vm3699_vm6 = vcmp.lt.s32.totalorder %v11845_v18, 0 }
 0x473   : > { %v8240_v5 = vadd.s32 4294967294, %v3765_v26  ;;  %v16500_v2 = vand.u32 2147483647, %v11482_v13  ;;  %v3963_v47 = vadd.s32 1, %v12069_v27  ;;  %v3783_v61 = vsub.s32 4, %v12015_v43 }
 0x474   : > { %v3686_v57 = vadd.s32 3, %v3682_v41  ;;  %v3887_v55 = vsub.s32 4, %v11944_v40  ;;  %8827 = vcosq.f32 %v3889_v4  ;;  %v3960_v25 = vmul.u32 %v12000_v36, %v3944_v37 }
 0x475   : > { %vm12090_vm8 = vcmp.le.f32.partialorder %v16500_v2, 0.7853982  ;;  %vm8241_vm4 = vcmp.lt.s32.totalorder %v8240_v5, 0  ;;  %vm3962_vm10 = vc.u32 %v12076_v1, %v12068_v19  ;;  %v3572_v39 = vmul.f32 %v3571_v34, %v3569_v53 }
 0x476   : > { %8829 = vsinq.f32 %v3889_v4  ;;  %v3768_v59 = vsel %vm8241_vm4, 0, %v8240_v5  ;;  %v3964_v42 = vsel %vm3962_vm10, %v3963_v47, %v12069_v27  ;;  %v3753_v31 = vadd.s32 %v11975_v7, %v11982_v3 }
 0x477   : > { %v3769_v63 = vsub.s32 32, %v3768_v59  ;;  %v3773_v45 = vsub.s32 4294967266, %v3768_v59  ;;  %v3965_v11 = vadd.s32 %v3964_v42, %v3960_v25  ;;  %v3784_v17 = vsel %vm3699_vm6, %v3783_v61, %v12015_v43 }
 0x478   : > { %v3687_v0 = vand.u32 3, %v3686_v57  ;;  %v3888_v36 = vsel %vm3803_vm3, %v3887_v55, %v11944_v40  ;;  %v3369_v21 = vsel %vm12090_vm8, %v11482_v13, %v3366_v32  ;;  %vm3491_vm15 = vcmp.lt.s32.totalorder %v11562_v62, 0 }
 0x479   : > { %v3770_v7 = vshll.u32 %v12035_v48, %v3768_v59  ;;  %v3771_v3 = vshrl.u32 %v3753_v31, %v3769_v63  ;;  %v3774_v54 = vadd.s32 127, %v3773_v45  ;;  %v3966_v27 = vadd.s32 536870912, %v3965_v11 }
 0x47a   : > { %v16503_v14 = vand.u32 2147483647, %v11845_v18  ;;  %v3690_v26 = vxor.u32 2147483648, %v12043_v52  ;;  %v3693_v40 = vxor.u32 2147483648, %v12039_v35  ;;  %v3367_v8 = vsub.s32 4, %v11697_v9 }
 0x47b   : > { %v3772_v32 = vor.u32 %v3771_v3, %v3770_v7  ;;  %v3775_v53 = vshll.u32 %v3774_v54, 23  ;;  %v3967_v4 = vshrl.u32 %v3966_v27, 30  ;;  %8831 = vcosq.f32 %v3369_v21 }
 0x47c   : > { %vm12116_vm4 = vcmp.le.f32.partialorder %v16503_v14, 0.7853982  ;;  %v3573_v48 = vxor.u32 2147483648, %v3572_v39  ;;  %v3890_v41 = vsel %vm12024_vm13, 0, %v3888_v36  ;;  %8833 = vsinq.f32 %v3369_v21 }
 0x47d   : > { %v3786_v37 = vsel %vm12116_vm4, 0, %v3784_v17  ;;  %v3776_v34 = vor.u32 4788187, %v3775_v53  ;;  %v3968_v5 = vshll.u32 %v3967_v4, 30  ;;  %vm3689_vm3 = vcmp.eq.s32.totalorder %v3687_v0, 0 }
 0x47e   : > { %vm3692_vm10 = vcmp.eq.s32.totalorder %v3687_v0, 2  ;;  %v3991_v2 = vsub.s32 4, %v3967_v4  ;;  %v3691_v47 = vsel %vm3689_vm3, %v12039_v35, %v3690_v26  ;;  %v3368_v57 = vsel %vm3283_vm5, %v3367_v8, %v11697_v9 }
 0x47f   : > { %v3694_v61 = vsel %vm3692_vm10, %v3693_v40, %v12043_v52  ;;  %v3777_v55 = vand.u32 2147483647, %v3776_v34  ;;  %v3779_v25 = vcvt.s32.f32 %v3772_v32  ;;  %v12132_v59 = vsub.s32 %v3965_v11, %v3968_v5 }
 0x480   : > { %v3894_v46 = vadd.s32 3, %v3890_v41  ;;  %8835 = vsinq.f32 %v11855_v10  ;;  %vm16108_vm13 = vcmp.lt.s32.totalorder %v11864_v20, 0  ;;  %v3790_v42 = vadd.s32 3, %v3786_v37 }
 0x481   : > { %vm3688_vm2 = vcmp.lt.s32.totalorder %v3687_v0, 2  ;;  %v3780_v31 = vmul.f32 %v3779_v25, %v3777_v55  ;;  %v3971_v35 = vsub.s32 0, %v12132_v59  ;;  %v3370_v52 = vsel %vm12090_vm8, 0, %v3368_v57  ;;  %v8828_v45 = vpop.eup %8827 }
 0x482   : > { %v3695_v63 = vsel %vm3688_vm2, %v3691_v47, %v3694_v61  ;;  %v3574_v9 = vsel %vm3491_vm15, %v3573_v48, %v3572_v39  ;;  %v3992_v11 = vsel %vm16108_vm13, %v3991_v2, %v3967_v4  ;;  %vm3685_vm5 = vweird.f32 %v11597_v50 }
 0x483   : > { %v3575_v10 = vsub.s32 4, %v11770_v15  ;;  %v8830_v17 = vpop.eup %8829  ;;  %v3781_v0 = vxor.u32 2147483648, %v3780_v31  ;;  %v8247_v36 = vmin.u32 %v3971_v35, %v12132_v59  ;;  %v16506_v21 = vand.u32 2147483647, %v11864_v20 }
 0x484   : > { %v3895_v7 = vand.u32 3, %v3894_v46  ;;  %v3961_v39 = vadd.s32 %v12068_v19, %v12076_v1  ;;  %v12154_v3 = vand.u32 3, %v3790_v42  ;;  %v12156_v54 = vsel %vm3685_vm5, nan, %v3695_v63 }
 0x485   : > { %vm12148_vm2 = vcmp.le.f32.partialorder %v16506_v21, 0.7853982  ;;  %v3374_v50 = vadd.s32 3, %v3370_v52  ;;  %v3782_v27 = vsel %vm3699_vm6, %v3781_v0, %v3780_v31  ;;  %v3973_v14 = vclz %v8247_v36 }
 0x486   : > { %v3994_v26 = vsel %vm12148_vm2, 0, %v3992_v11  ;;  %v3901_v40 = vxor.u32 2147483648, %v8828_v45  ;;  %v3785_v8 = vsel %vm12116_vm4, %v11845_v18, %v3782_v27  ;;  %v3898_v32 = vxor.u32 2147483648, %v8830_v17 }
 0x487   : > { %v16509_v19 = vand.u32 2147483647, %v11562_v62  ;;  %v3576_v53 = vsel %vm3491_vm15, %v3575_v10, %v11770_v15  ;;  %v8248_v4 = vadd.s32 4294967294, %v3973_v14  ;;  %8837 = vcosq.f32 %v3785_v8 }
 0x488   : > { %vm3893_vm6 = vweird.f32 %v11758_v33  ;;  %vm3897_vm3 = vcmp.eq.s32.totalorder %v3895_v7, 0  ;;  %v8832_v48 = vpop.eup %8831  ;;  %8839 = vsinq.f32 %v3785_v8  ;;  %v3998_v37 = vadd.s32 3, %v3994_v26 }
 0x489   : > { %vm12167_vm8 = vcmp.le.f32.partialorder %v16509_v19, 0.7853982  ;;  %vm3900_vm4 = vcmp.eq.s32.totalorder %v3895_v7, 2  ;;  %v3263_v41 = vsub.s32 4, %v11520_v6  ;;  %v8834_v34 = vpop.eup %8833  ;;  %vm8249_vm10 = vcmp.lt.s32.totalorder %v8248_v4, 0  ;;  %v16517_v19 = vld [vmem:[#allocation39_spill] sm:$0xff] }
 0x48a   : > { %v3577_v43 = vsel %vm12167_vm8, %v11562_v62, %v3574_v9  ;;  %v3375_v5 = vand.u32 3, %v3374_v50  ;;  %v3578_v15 = vsel %vm12167_vm8, 0, %v3576_v53  ;;  %v3976_v2 = vsel %vm8249_vm10, 0, %v8248_v4 }
 0x48b   : > { %8841 = vcosq.f32 %v3577_v43  ;;  %v3899_v47 = vsel %vm3897_vm3, %v8828_v45, %v3898_v32  ;;  %v3902_v61 = vsel %vm3900_vm4, %v3901_v40, %v8830_v17  ;;  %v3977_v57 = vsub.s32 32, %v3976_v2  ;;  %v16513_v40 = vld [vmem:[#allocation5_spill] sm:$0xff] }
 0x48c   : > { %8843 = vsinq.f32 %v3577_v43  ;;  %v3981_v55 = vsub.s32 4294967266, %v3976_v2  ;;  %vm3896_vm15 = vcmp.lt.s32.totalorder %v3895_v7, 2  ;;  %v3381_v25 = vxor.u32 2147483648, %v8832_v48 }
 0x48d   : > { %v12181_v46 = vand.u32 3, %v3998_v37  ;;  %v3378_v42 = vxor.u32 2147483648, %v8834_v34  ;;  %v3582_v31 = vadd.s32 3, %v3578_v15  ;;  %v3264_v35 = vsel %vm3179_vm12, %v3263_v41, %v11520_v6  ;;  %v12186_v63 = vpop.eup %8835 }
 0x48e   : > { %v3978_v52 = vshll.u32 %v12132_v59, %v3976_v2  ;;  %v3979_v9 = vshrl.u32 %v3961_v39, %v3977_v57  ;;  %v3982_v45 = vadd.s32 127, %v3981_v55  ;;  %v3903_v11 = vsel %vm3896_vm15, %v3899_v47, %v3902_v61 }
 0x48f   : > { %vm3796_vm5 = vcmp.eq.s32.totalorder %v12154_v3, 2  ;;  %vm3376_vm8 = vcmp.lt.s32.totalorder %v3375_v5, 2  ;;  %vm3377_vm3 = vcmp.eq.s32.totalorder %v3375_v5, 0  ;;  %vm3380_vm4 = vcmp.eq.s32.totalorder %v3375_v5, 2 }
 0x490   : > { %v3266_v10 = vsel %vm11787_vm7, 0, %v3264_v35  ;;  %v3980_v17 = vor.u32 %v3979_v9, %v3978_v52  ;;  %v3983_v0 = vshll.u32 %v3982_v45, 23  ;;  %vm3793_vm10 = vcmp.eq.s32.totalorder %v12154_v3, 0 }
 0x491   : > { %v3270_v6 = vadd.s32 3, %v3266_v10  ;;  %v3471_v36 = vsub.s32 4, %v11613_v51  ;;  %v12197_v59 = vsel %vm3893_vm6, nan, %v3903_v11  ;;  %v3379_v21 = vsel %vm3377_vm3, %v8832_v48, %v3378_v42 }
 0x492   : > { %v3382_v7 = vsel %vm3380_vm4, %v3381_v25, %v8834_v34  ;;  %v3583_v39 = vand.u32 3, %v3582_v31  ;;  %v3984_v50 = vor.u32 4788187, %v3983_v0  ;;  %v3274_v27 = vxor.u32 2147483648, %v11899_v44 }
 0x493   : > { %v3271_v24 = vand.u32 3, %v3270_v6  ;;  %vm16512_vm7 = vcmp.lt.s32.totalorder %v11405_v23, 0  ;;  %v3277_v26 = vxor.u32 2147483648, %v11897_v49  ;;  %v16514_v8 = vand.u32 2147483647, %v16513_v40 }
 0x494   : > { %v3472_v14 = vsel %vm16512_vm7, %v3471_v36, %v11613_v51  ;;  %v2951_v1 = vsub.s32 4, %v16517_v19  ;;  %v3985_v53 = vand.u32 2147483647, %v3984_v50  ;;  %v3987_v4 = vcvt.s32.f32 %v3980_v17  ;;  %v16518_v51 = vld [vmem:[#allocation50_spill] sm:$0xff]  ;;  %v8838_v48 = vpop.eup %8837 }
 0x495   : > { %v3474_v33 = vsel %vm11806_vm1, 0, %v3472_v14  ;;  %vm12209_vm6 = vcmp.le.f32.partialorder %v16514_v8, 0.7853982  ;;  %vm3373_vm3 = vweird.f32 %v11482_v13  ;;  %v3383_v43 = vsel %vm3376_vm8, %v3379_v21, %v3382_v7  ;;  %v8840_v37 = vpop.eup %8839  ;;  %v16523_v7 = vld [vmem:[#allocation16_spill] sm:$0xff]  ;;  %v16528_v14 = vld [vmem:[#allocation41_spill] sm:$0xff] }
 0x496   : > { %vm3269_vm4 = vweird.f32 %v11327_v22  ;;  %v2953_v30 = vsel %vm12209_vm6, %v16513_v40, %v16518_v51  ;;  %vm3585_vm7 = vcmp.eq.s32.totalorder %v3583_v39, 0  ;;  %vm3588_vm15 = vcmp.eq.s32.totalorder %v3583_v39, 2  ;;  %v16535_v51 = vld [vmem:[#allocation6_spill] sm:$0xff] }
 0x497   : > { %vm3273_vm12 = vcmp.eq.s32.totalorder %v3271_v24, 0  ;;  %vm3276_vm13 = vcmp.eq.s32.totalorder %v3271_v24, 2  ;;  %v3988_v41 = vmul.f32 %v3987_v4, %v3985_v53  ;;  %v3797_v34 = vxor.u32 2147483648, %v8838_v48  ;;  %v16532_v4 = vld [vmem:[#allocation38_spill] sm:$0xff] }
 0x498   : > { %v3478_v15 = vadd.s32 3, %v3474_v33  ;;  %vm16519_vm8 = vcmp.lt.s32.totalorder %v16513_v40, 0  ;;  %v8842_v2 = vpop.eup %8841  ;;  %v3794_v47 = vxor.u32 2147483648, %v8840_v37  ;;  %v3275_v61 = vsel %vm3273_vm12, %v11897_v49, %v3274_v27  ;;  %v16530_v33 = vld [vmem:[#allocation24_spill] sm:$0xff] }
 0x499   : > { %v2952_v5 = vsel %vm16519_vm8, %v2951_v1, %v16517_v19  ;;  %v3278_v57 = vsel %vm3276_vm13, %v3277_v26, %v11899_v44  ;;  %8845 = vcosq.f32 %v2953_v30  ;;  %v8844_v55 = vpop.eup %8843  ;;  %v3989_v25 = vxor.u32 2147483648, %v3988_v41 }
 0x49a   : > { %v3798_v42 = vsel %vm3796_vm5, %v3797_v34, %v8840_v37  ;;  %v3589_v31 = vxor.u32 2147483648, %v8842_v2  ;;  %8847 = vsinq.f32 %v2953_v30  ;;  %v3795_v35 = vsel %vm3793_vm10, %v8838_v48, %v3794_v47 }
 0x49b   : > { %v3586_v52 = vxor.u32 2147483648, %v8844_v55  ;;  %vm3272_vm1 = vcmp.lt.s32.totalorder %v3271_v24, 2  ;;  %v2954_v9 = vsel %vm12209_vm6, 0, %v2952_v5  ;;  %vm16520_vm12 = vcmp.lt.s32.totalorder %v11864_v20, 0 }
 0x49c   : > { %v3990_v49 = vsel %vm16520_vm12, %v3989_v25, %v3988_v41  ;;  %vm16521_vm13 = vcmp.lt.s32.totalorder %v12154_v3, 2  ;;  %v3279_v45 = vsel %vm3272_vm1, %v3275_v61, %v3278_v57  ;;  %v12236_v11 = vand.u32 3, %v3478_v15  ;;  %v16536_v41 = vld [vmem:[#allocation48_spill] sm:$0xff]  ;;  %v16537_v15 = vld [vmem:[#allocation47_spill] sm:$0xff]  ;;  %v16540_v61 = vld [vmem:[#allocation17_spill] sm:$0xff] }
 0x49d   : > { %v3799_v44 = vsel %vm16521_vm13, %v3795_v35, %v3798_v42  ;;  %vm16522_vm5 = vweird.f32 %v11845_v18  ;;  %v3993_v17 = vsel %vm12148_vm2, %v11864_v20, %v3990_v49  ;;  %v3587_v0 = vsel %vm3585_vm7, %v8842_v2, %v3586_v52  ;;  %v16538_v2 = vld [vmem:[#allocation35_spill] sm:$0xff] }
 0x49e   : > { %v3800_v10 = vsel %vm16522_vm5, nan, %v3799_v44  ;;  %v3590_v6 = vsel %vm3588_vm15, %v3589_v31, %v8844_v55  ;;  %8849 = vcosq.f32 %v3993_v17  ;;  %v3482_v36 = vxor.u32 2147483648, %v12186_v63 }
 0x49f   : > { %4050 = vmatprep.subr.mxu0 %v3800_v10  ;;  %v3485_v3 = vxor.u32 2147483648, %v12033_v38  ;;  %v2958_v21 = vadd.s32 3, %v2954_v9  ;;  %8851 = vsinq.f32 %v3993_v17  ;;  %v3384_v18 = vsel %vm3373_vm3, nan, %v3383_v43  ;;  %v16545_v9 = vld [vmem:[#allocation36_spill] sm:$0xff] }
 0x4a0   : > { %4051 = vmatpush1.msra.mxu0 %v12156_v54  ;;  %v3280_v56 = vsel %vm3269_vm4, nan, %v3279_v45  ;;  %v16524_v50 = vand.u32 2147483647, %v16523_v7  ;;  %vm16527_vm10 = vcmp.lt.s32.totalorder %v3583_v39, 2  ;;  %vm3481_vm15 = vcmp.eq.s32.totalorder %v12236_v11, 0  ;;  %v16529_v54 = vld [vmem:[#allocation51_spill] sm:$0xff] }
 0x4a1   : > { %4052 = vmatprep.subr.mxu0 %v3384_v18  ;;  %v3591_v27 = vsel %vm16527_vm10, %v3587_v0, %v3590_v6  ;;  %v3159_v26 = vsub.s32 4, %v16528_v14  ;;  %vm3484_vm6 = vcmp.eq.s32.totalorder %v12236_v11, 2  ;;  %v2959_v22 = vand.u32 3, %v2958_v21  ;;  %v16546_v10 = vld [vmem:[#allocation52_spill] sm:$0xff] }
 0x4a2   : > { %vm12254_vm2 = vcmp.le.f32.partialorder %v16524_v50, 0.7853982  ;;  %4053 = vmatpush1.msra.mxu0 %v3280_v56  ;;  %v2847_v8 = vsub.s32 4, %v16530_v33  ;;  %vm3581_vm3 = vweird.f32 %v11562_v62  ;;  %v3483_v39 = vsel %vm3481_vm15, %v12033_v38, %v3482_v36  ;;  %v16547_v0 = vld [vmem:[#allocation44_spill] sm:$0xff] }
 0x4a3   : > { %v3161_v13 = vsel %vm12254_vm2, %v16523_v7, %v16529_v54  ;;  %v3486_v32 = vsel %vm3484_vm6, %v3485_v3, %v12186_v63  ;;  %vm16531_vm4 = vcmp.lt.s32.totalorder %v16523_v7, 0  ;;  %v12273_v1 = vsel %vm3581_vm3, nan, %v3591_v27 }
 0x4a4   : > { %8853 = vcosq.f32 %v3161_v13  ;;  %v3160_v19 = vsel %vm16531_vm4, %v3159_v26, %v16528_v14  ;;  %vm2957_vm1 = vweird.f32 %v16513_v40  ;;  %vm16533_vm7 = vcmp.lt.s32.totalorder %v16532_v4, 0 }
 0x4a5   : > { %v3162_v53 = vsel %vm12254_vm2, 0, %v3160_v19  ;;  %8855 = vsinq.f32 %v3161_v13  ;;  %v2848_v62 = vsel %vm16533_vm7, %v2847_v8, %v16530_v33  ;;  %vm3480_vm8 = vcmp.lt.s32.totalorder %v12236_v11, 2  ;;  %v16549_v8 = vld [vmem:[#allocation49_spill] sm:$0xff] }
 0x4a6   : > { %v3166_v38 = vadd.s32 3, %v3162_v53  ;;  %v2850_v43 = vsel %vm11440_vm14, 0, %v2848_v62  ;;  %vm2853_vm12 = vweird.f32 %v16532_v4  ;;  %v3055_v30 = vsub.s32 4, %v16535_v51  ;;  %v8846_v37 = vpop.eup %8845 }
 0x4a7   : > { %vm4004_vm13 = vcmp.eq.s32.totalorder %v12181_v46, 2  ;;  %vm2960_vm5 = vcmp.lt.s32.totalorder %v2959_v22, 2  ;;  %vm2961_vm10 = vcmp.eq.s32.totalorder %v2959_v22, 0  ;;  %vm2964_vm2 = vcmp.eq.s32.totalorder %v2959_v22, 2  ;;  %v8848_v25 = vpop.eup %8847 }
 0x4a8   : > { %v2854_v48 = vadd.s32 3, %v2850_v43  ;;  %vm4001_vm15 = vcmp.eq.s32.totalorder %v12181_v46, 0  ;;  %v2858_v34 = vxor.u32 2147483648, %v16536_v41  ;;  %v2861_v5 = vxor.u32 2147483648, %v16537_v15 }
 0x4a9   : > { %vm16539_vm14 = vcmp.lt.s32.totalorder %v16538_v2, 0  ;;  %v16541_v57 = vand.u32 2147483647, %v16540_v61  ;;  %v2965_v42 = vxor.u32 2147483648, %v8846_v37  ;;  %v2535_v49 = vsub.s32 4, %v16545_v9 }
 0x4aa   : > { %v3056_v47 = vsel %vm16539_vm14, %v3055_v30, %v16535_v51  ;;  %v2855_v31 = vand.u32 3, %v2854_v48  ;;  %v2962_v44 = vxor.u32 2147483648, %v8848_v25  ;;  %v3167_v45 = vand.u32 3, %v3166_v38 }
 0x4ab   : > { %vm12295_vm6 = vcmp.le.f32.partialorder %v16541_v57, 0.7853982  ;;  %v3058_v52 = vsel %vm11529_vm9, 0, %v3056_v47  ;;  %v3066_v17 = vxor.u32 2147483648, %v16546_v10  ;;  %v2966_v36 = vsel %vm2964_vm2, %v2965_v42, %v8848_v25  ;;  %v8850_v50 = vpop.eup %8849  ;;  %v16557_v57 = vld [vmem:[#allocation45_spill] sm:$0xff] }
 0x4ac   : > { %v2537_v6 = vsel %vm12295_vm6, %v16540_v61, %v16547_v0  ;;  %vm2856_vm7 = vcmp.lt.s32.totalorder %v2855_v31, 2  ;;  %vm2857_vm14 = vcmp.eq.s32.totalorder %v2855_v31, 0  ;;  %vm2860_vm3 = vcmp.eq.s32.totalorder %v2855_v31, 2  ;;  %v8852_v26 = vpop.eup %8851  ;;  %v16558_v42 = vld [vmem:[#allocation37_spill] sm:$0xff] }
 0x4ad   : > { %v2963_v3 = vsel %vm2961_vm10, %v8846_v37, %v2962_v44  ;;  %v2859_v21 = vsel %vm2857_vm14, %v16537_v15, %v2858_v34  ;;  %v2862_v18 = vsel %vm2860_vm3, %v2861_v5, %v16536_v41  ;;  %v3062_v56 = vadd.s32 3, %v3058_v52  ;;  %v16552_v41 = vld [vmem:[#allocation13_spill] sm:$0xff]  ;;  %v16556_v5 = vld [vmem:[#allocation30_spill] sm:$0xff] }
 0x4ae   : > { %vm3477_vm9 = vweird.f32 %v11405_v23  ;;  %v2967_v24 = vsel %vm2960_vm5, %v2963_v3, %v2966_v36  ;;  %v2863_v27 = vsel %vm2856_vm7, %v2859_v21, %v2862_v18  ;;  %vm16548_vm4 = vcmp.lt.s32.totalorder %v16540_v61, 0  ;;  %v16564_v36 = vld [vmem:[#allocation8_spill] sm:$0xff] }
 0x4af   : > { %v2536_v14 = vsel %vm16548_vm4, %v2535_v49, %v16545_v9  ;;  %8857 = vcosq.f32 %v2537_v6  ;;  %v4005_v54 = vxor.u32 2147483648, %v8850_v50  ;;  %v2968_v13 = vsel %vm2957_vm1, nan, %v2967_v24  ;;  %v16560_v49 = vld [vmem:[#allocation14_spill] sm:$0xff]  ;;  %v16566_v24 = vld [vmem:[#allocation7_spill] sm:$0xff] }
 0x4b0   : > { %v3063_v33 = vand.u32 3, %v3062_v56  ;;  %v3069_v19 = vxor.u32 2147483648, %v16549_v8  ;;  %v4002_v53 = vxor.u32 2147483648, %v8852_v26  ;;  %v3487_v62 = vsel %vm3480_vm8, %v3483_v39, %v3486_v32  ;;  %4054 = vmatprep.subr.mxu0 %v2968_v13  ;;  %v16565_v56 = vld [vmem:[#allocation10_spill] sm:$0xff] }
 0x4b1   : > { %v2864_v22 = vsel %vm2853_vm12, nan, %v2863_v27  ;;  %8859 = vsinq.f32 %v2537_v6  ;;  %v8854_v38 = vpop.eup %8853  ;;  %v4006_v63 = vsel %vm4004_vm13, %v4005_v54, %v8852_v26  ;;  %vm3168_vm5 = vcmp.lt.s32.totalorder %v3167_v45, 2  ;;  %v16586_v54 = vld [vmem:[#allocation19_spill] sm:$0xff] }
 0x4b2   : > { %vm3169_vm10 = vcmp.eq.s32.totalorder %v3167_v45, 0  ;;  %4055 = vmatpush1.msra.mxu0 %v2864_v22  ;;  %v2538_v40 = vsel %vm12295_vm6, 0, %v2536_v14  ;;  %v4003_v43 = vsel %vm4001_vm15, %v8850_v50, %v4002_v53  ;;  %v3173_v11 = vxor.u32 2147483648, %v8854_v38  ;;  %v8856_v39 = vpop.eup %8855 }
 0x4b3   : > { %vm3065_vm1 = vcmp.eq.s32.totalorder %v3063_v33, 0  ;;  %vm3068_vm8 = vcmp.eq.s32.totalorder %v3063_v33, 2  ;;  %vm16550_vm12 = vcmp.lt.s32.totalorder %v12181_v46, 2  ;;  %vm3172_vm2 = vcmp.eq.s32.totalorder %v3167_v45, 2 }
 0x4b4   : > { %v4007_v32 = vsel %vm16550_vm12, %v4003_v43, %v4006_v63  ;;  %v3067_v4 = vsel %vm3065_vm1, %v16549_v8, %v3066_v17  ;;  %v3070_v51 = vsel %vm3068_vm8, %v3069_v19, %v16546_v10  ;;  %vm16551_vm13 = vweird.f32 %v11864_v20  ;;  %v16563_v17 = vld [vmem:[#allocation15_spill] sm:$0xff]  ;;  %v16581_v10 = vld [vmem:[#allocation32_spill] sm:$0xff] }
 0x4b5   : > { %v4008_v30 = vsel %vm16551_vm13, nan, %v4007_v32  ;;  %v3170_v48 = vxor.u32 2147483648, %v8856_v39  ;;  %v3174_v37 = vsel %vm3172_vm2, %v3173_v11, %v8856_v39  ;;  %v16553_v34 = vand.u32 2147483647, %v16552_v41  ;;  %v16569_v19 = vld [vmem:[#allocation43_spill] sm:$0xff]  ;;  %v16570_v39 = vld [vmem:[#allocation40_spill] sm:$0xff] }
 0x4b6   : > { %4139 = vmatprep.subr.mxu1 %v4008_v30  ;;  %vm3064_vm6 = vcmp.lt.s32.totalorder %v3063_v33, 2  ;;  %v2542_v46 = vadd.s32 3, %v2538_v40  ;;  %v2743_v47 = vsub.s32 4, %v16556_v5  ;;  %v2431_v31 = vsub.s32 4, %v16558_v42  ;;  %v8250_v30 = vld [vmem:[%s15975_s2 + $0x20] sm:$0xff] }
 0x4b7   : > { %vm12339_vm15 = vcmp.le.f32.partialorder %v16553_v34, 0.7853982  ;;  %4140 = vmatpush1.msra.mxu1 %v12197_v59  ;;  %v3171_v20 = vsel %vm3169_vm10, %v8854_v38, %v3170_v48  ;;  %v3071_v25 = vsel %vm3064_vm6, %v3067_v4, %v3070_v51  ;;  %v3488_v35 = vsel %vm3477_vm9, nan, %v3487_v62 }
 0x4b8   : > { %v2745_v55 = vsel %vm12339_vm15, %v16552_v41, %v16557_v57  ;;  %4141 = vmatprep.subr.mxu1 %v12273_v1  ;;  %vm3165_vm3 = vweird.f32 %v16523_v7  ;;  %v3175_v52 = vsel %vm3168_vm5, %v3171_v20, %v3174_v37  ;;  %vm3061_vm4 = vweird.f32 %v16538_v2 }
 0x4b9   : > { %8861 = vcosq.f32 %v2745_v55  ;;  %4142 = vmatpush1.msra.mxu1 %v3488_v35  ;;  %v3176_v9 = vsel %vm3165_vm3, nan, %v3175_v52  ;;  %vm16559_vm7 = vcmp.lt.s32.totalorder %v16552_v41, 0  ;;  %vm16561_vm14 = vcmp.lt.s32.totalorder %v16560_v49, 0  ;;  %v8252_v35 = vld [vmem:[%s15975_s2 + $0x30] sm:$0xff] }
 0x4ba   : > { %v2744_v59 = vsel %vm16559_vm7, %v2743_v47, %v16556_v5  ;;  %8863 = vsinq.f32 %v2745_v55  ;;  %v2432_v1 = vsel %vm16561_vm14, %v2431_v31, %v16558_v42  ;;  %4143 = vmatprep.subr.mxu1 %v3176_v9  ;;  %v3072_v23 = vsel %vm3061_vm4, nan, %v3071_v25  ;;  %v8251_v55 = vld [vmem:[%s15975_s2 + $0x28] sm:$0xff]  ;;  %v12415_v9 = vpop.permute.xlu1 %4221 }
 0x4bb   : > { %v2543_v44 = vand.u32 3, %v2542_v46  ;;  %v2434_v7 = vsel %vm11170_vm0, 0, %v2432_v1  ;;  %4144 = vmatpush1.msra.mxu1 %v3072_v23  ;;  %v2746_v2 = vsel %vm12339_vm15, 0, %v2744_v59  ;;  %v2639_v0 = vsub.s32 4, %v16563_v17 }
 0x4bc   : > { %v2438_v45 = vadd.s32 3, %v2434_v7  ;;  %v8858_v6 = vpop.eup %8857  ;;  %v2442_v3 = vxor.u32 2147483648, %v16564_v36  ;;  %v2445_v50 = vxor.u32 2147483648, %v16565_v56  ;;  %vm16567_vm9 = vcmp.lt.s32.totalorder %v16566_v24, 0 }
 0x4bd   : > { %v2549_v21 = vxor.u32 2147483648, %v8858_v6  ;;  %v2640_v27 = vsel %vm16567_vm9, %v2639_v0, %v16563_v17  ;;  %vm2541_vm0 = vweird.f32 %v16540_v61  ;;  %vm2548_vm5 = vcmp.eq.s32.totalorder %v2543_v44, 2  ;;  %v12423_v17 = vpop.permute.xlu0 %4226 }
 0x4be   : > { %v2439_v18 = vand.u32 3, %v2438_v45  ;;  %v8860_v14 = vpop.eup %8859  ;;  %v2750_v26 = vadd.s32 3, %v2746_v2  ;;  %v2642_v13 = vsel %vm11194_vm11, 0, %v2640_v27  ;;  %vm2544_vm10 = vcmp.lt.s32.totalorder %v2543_v44, 2  ;;  %v16585_v27 = vld [vmem:[#allocation34_spill] sm:$0xff] }
 0x4bf   : > { %vm2545_vm1 = vcmp.eq.s32.totalorder %v2543_v44, 0  ;;  %v2546_v33 = vxor.u32 2147483648, %v8860_v14  ;;  %v2550_v8 = vsel %vm2548_vm5, %v2549_v21, %v8860_v14  ;;  %v2650_v53 = vxor.u32 2147483648, %v16569_v19  ;;  %v4212_v44 = vpop.permute.xlu1 %4211  ;;  %v16584_v21 = vld [vmem:[#allocation11_spill] sm:$0xff] }
 0x4c0   : > { %vm2440_vm8 = vcmp.lt.s32.totalorder %v2439_v18, 2  ;;  %vm2441_vm12 = vcmp.eq.s32.totalorder %v2439_v18, 0  ;;  %vm2444_vm2 = vcmp.eq.s32.totalorder %v2439_v18, 2  ;;  %v2646_v63 = vadd.s32 3, %v2642_v13 }
 0x4c1   : > { %v2547_v62 = vsel %vm2545_vm1, %v8858_v6, %v2546_v33  ;;  %v2443_v22 = vsel %vm2441_vm12, %v16565_v56, %v2442_v3  ;;  %v2446_v38 = vsel %vm2444_vm2, %v2445_v50, %v16564_v36  ;;  %v2751_v43 = vand.u32 3, %v2750_v26  ;;  %v4217_v50 = vpop.permute.xlu0 %4216 }
 0x4c2   : > { %v2551_v40 = vsel %vm2544_vm10, %v2547_v62, %v2550_v8  ;;  %v2447_v11 = vsel %vm2440_vm8, %v2443_v22, %v2446_v38  ;;  %v2653_v32 = vxor.u32 2147483648, %v16570_v39  ;;  %vm2437_vm11 = vweird.f32 %v16560_v49  ;;  %v16580_v49 = vld [vmem:[#allocation33_spill] sm:$0xff] }
 0x4c3   : > { %v2552_v4 = vsel %vm2541_vm0, nan, %v2551_v40  ;;  %v2647_v51 = vand.u32 3, %v2646_v63  ;;  %v2448_v37 = vsel %vm2437_vm11, nan, %v2447_v11  ;;  %vm2756_vm6 = vcmp.eq.s32.totalorder %v2751_v43, 2 }
 0x4c4   : > { %4056 = vmatprep.subr.mxu0 %v2552_v4  ;;  %vm16571_vm3 = vcmask 261120   ;;  %v16572_v57 = vmov 0.0   ;;  %vm2753_vm4 = vcmp.eq.s32.totalorder %v2751_v43, 0  ;;  %vm2752_vm14 = vcmp.lt.s32.totalorder %v2751_v43, 2  ;;  %v16590_v4 = vld [vmem:[#allocation31_spill] sm:$0xff] }
 0x4c5   : > { %4057 = vmatpush1.msra.mxu0 %v2448_v37  ;;  %vm2649_vm13 = vcmp.eq.s32.totalorder %v2647_v51, 0  ;;  %vm2652_vm15 = vcmp.eq.s32.totalorder %v2647_v51, 2  ;;  %vm2648_vm7 = vcmp.lt.s32.totalorder %v2647_v51, 2  ;;  %vm2749_vm9 = vweird.f32 %v16552_v41  ;;  %vm16573_vm0 = vmmov %vm16571_vm3  ;;  %v8253_v41 = vld [vmem:[%s15975_s2 + $0x38] sm:$0xff] }
 0x4c6   : > { %v8862_v48 = vpop.eup %8861  ;;  %v2651_v46 = vsel %vm2649_vm13, %v16570_v39, %v2650_v53  ;;  %v2654_v61 = vsel %vm2652_vm15, %v2653_v32, %v16569_v19  ;;  %8254 = vmatmul.mubr.msk.f32.vlgmr.msra.gmra.mxu0 %vm16571_vm3, %v8250_v30  ;;  %vm2645_vm5 = vweird.f32 %v16566_v24  ;;  %vm16574_vm10 = vmmov %vm16573_vm0 }
 0x4c7   : > { %v2757_v34 = vxor.u32 2147483648, %v8862_v48  ;;  %v8864_v15 = vpop.eup %8863  ;;  %4096 = vmatprep.mubr.f32.mxu0 %v16572_v57  ;;  %v2655_v25 = vsel %vm2648_vm7, %v2651_v46, %v2654_v61  ;;  %vm16575_vm1 = vmmov %vm16573_vm0 }
 0x4c8   : > { %v2754_v5 = vxor.u32 2147483648, %v8864_v15  ;;  %v2656_v52 = vsel %vm2645_vm5, nan, %v2655_v25  ;;  %vm16576_vm8 = vmmov %vm16573_vm0  ;;  %v16594_v25 = vld [vmem:[#allocation9_spill] sm:$0xff] }
 0x4c9   : > { %v2758_v47 = vsel %vm2756_vm6, %v2757_v34, %v8864_v15  ;;  %vm16577_vm12 = vmmov %vm16573_vm0 }
 0x4ca   : > { %v2755_v20 = vsel %vm2753_vm4, %v8862_v48, %v2754_v5  ;;  %8255 = vmatmul.mubr.msk.f32.gmra.mxu0 %vm16573_vm0, %v8251_v55  ;;  %vm16578_vm2 = vmmov %vm16573_vm0 }
 0x4cb   : > { %v2759_v42 = vsel %vm2752_vm14, %v2755_v20, %v2758_v47  ;;  %4102 = vmatprep.mubr.f32.mxu0 %v16572_v57  ;;  %vm16579_vm11 = vmmov %vm16573_vm0 }
 0x4cc   : > { %v2760_v31 = vsel %vm2749_vm9, nan, %v2759_v42 }
 0x4cd   : > { %4145 = vmatprep.subr.mxu1 %v2760_v31 }
 0x4ce   : > { %4146 = vmatpush1.msra.mxu1 %v2656_v52  ;;  %8256 = vmatmul.mubr.msk.f32.gmra.mxu0 %vm16575_vm1, %v8252_v35 }
 0x4cf   : > { %8258 = vmatmul.mubr.msk.f32.vlgmr.msra.gmra.mxu1 %vm16574_vm10, %v8250_v30  ;;  %4108 = vmatprep.mubr.f32.mxu0 %v16572_v57  ;;  %v16591_v30 = vld [vmem:[#allocation27_spill] sm:$0xff] }
 0x4d0   : > { %4185 = vmatprep.mubr.f32.mxu1 %v16572_v57 }
 0x4d2   : > { %8257 = vmatmul.mubr.msk.f32.gmra.mxu0 %vm16577_vm12, %v8253_v41 }
 0x4d3   : > { %8259 = vmatmul.mubr.msk.f32.gmra.mxu1 %vm16576_vm8, %v8251_v55  ;;  %6015 = vmatprep.mubr.f32.mxu0 %v16572_v57 }
 0x4d4   : > { %4191 = vmatprep.mubr.f32.mxu1 %v16572_v57 }
 0x4d7   : > { %8260 = vmatmul.mubr.msk.f32.gmra.mxu1 %vm16578_vm2, %v8252_v35 }
 0x4d8   : > { %4197 = vmatprep.mubr.f32.mxu1 %v16572_v57 }
 0x4db   : > { %8261 = vmatmul.mubr.msk.f32.gmra.mxu1 %vm16579_vm11, %v8253_v41 }
 0x4dc   : > { %6104 = vmatprep.mubr.f32.mxu1 %v16572_v57 }
 0x586   : > { %v4092_v59 = vpop.f32.mrf.mxu0 }
 0x587   : > { %v4093_v1 = vadd.f32 %v4092_v59, %v16580_v49 }
 0x588   : > { %v4094_v23 = vpop.f32.mrf.mxu0 }
 0x589   : > { %v4095_v7 = vadd.f32 %v4094_v23, %v16581_v10  ;;  %v12419_v2 = vadd.f32 %v4212_v44, %v4093_v1 }
 0x58a   : > { %v4098_v0 = vpop.f32.mrf.mxu0 }
 0x58b   : > { %16582 = vst [vmem:[#allocation5_spill] sm:$0xff] %v12419_v2  ;;  %v12421_v45 = vadd.f32 %v4212_v44, %v4095_v7  ;;  %v4248_v6 = vand.u32 2139095040, %v12419_v2  ;;  %v4099_v18 = vadd.f32 %v4098_v0, %v16584_v21  ;;  %v16638_v2 = vld [vmem:[#allocation28_spill] sm:$0xff] }
 0x58c   : > { %v4100_v38 = vpop.f32.mrf.mxu0 }
 0x58d   : > { %16583 = vst [vmem:[#allocation39_spill] sm:$0xff] %v12421_v45  ;;  %v4352_v3 = vand.u32 2139095040, %v12421_v45  ;;  %v4249_v24 = vshrl.u32 %v4248_v6, 23  ;;  %v12430_v33 = vadd.f32 %v4217_v50, %v4099_v18  ;;  %v4101_v51 = vadd.f32 %v4100_v38, %v16590_v4  ;;  %v16598_v6 = vld [vmem:[#allocation22_spill] sm:$0xff] }
 0x58e   : > { %v4104_v61 = vpop.f32.mrf.mxu0 }
 0x58f   : > { %v4181_v36 = vpop.f32.mrf.mxu1  ;;  %v4353_v26 = vshrl.u32 %v4352_v3, 23  ;;  %16587 = vst [vmem:[#allocation50_spill] sm:$0xff] %v12430_v33  ;;  %v8266_v8 = vadd.s32 4294967169, %v4249_v24  ;;  %v4664_v22 = vand.u32 2139095040, %v12430_v33  ;;  %v12441_v46 = vadd.f32 %v4217_v50, %v4101_v51  ;;  %v16601_v24 = vld [vmem:[#allocation18_spill] sm:$0xff] }
 0x590   : > { %v4182_v14 = vadd.f32 %v4181_v36, %v16585_v27  ;;  %v4105_v42 = vadd.f32 %v4104_v61, %v16594_v25  ;;  %v4106_v10 = vpop.f32.mrf.mxu0 }
 0x591   : > { %v4183_v56 = vpop.f32.mrf.mxu1  ;;  %v8270_v53 = vadd.s32 4294967169, %v4353_v26  ;;  %v4255_v63 = vadd.s32 1, %v8266_v8  ;;  %v4665_v32 = vshrl.u32 %v4664_v22, 23  ;;  %16592 = vst [vmem:[#allocation51_spill] sm:$0xff] %v12441_v46  ;;  %v4768_v52 = vand.u32 2139095040, %v12441_v46 }
 0x592   : > { %v4184_v13 = vadd.f32 %v4183_v56, %v16586_v54  ;;  %v12432_v19 = vadd.f32 %v4212_v44, %v4182_v14  ;;  %v4107_v27 = vadd.f32 %v4106_v10, %v16601_v24 }
 0x593   : > { %v4187_v43 = vpop.f32.mrf.mxu1  ;;  %v4359_v11 = vadd.s32 1, %v8270_v53  ;;  %vm4256_vm13 = vcmp.gt.s32.totalorder %v4255_v63, 0  ;;  %v8282_v15 = vadd.s32 4294967169, %v4665_v32  ;;  %v4769_v0 = vshrl.u32 %v4768_v52, 23  ;;  %v16604_v53 = vld [vmem:[#allocation12_spill] sm:$0xff] }
 0x594   : > { %16588 = vst [vmem:[#allocation16_spill] sm:$0xff] %v12432_v19  ;;  %v12434_v62 = vadd.f32 %v4212_v44, %v4184_v13  ;;  %v4456_v40 = vand.u32 2139095040, %v12432_v19  ;;  %v4188_v48 = vadd.f32 %v4187_v43, %v16591_v30  ;;  %v4257_v5 = vsel %vm4256_vm13, %v4255_v63, 0 }
 0x595   : > { %vm4360_vm15 = vcmp.gt.s32.totalorder %v4359_v11, 0  ;;  %v4671_v35 = vadd.s32 1, %v8282_v15  ;;  %v12447_v41 = vand.u32 31, %v4257_v5  ;;  %v4189_v59 = vpop.f32.mrf.mxu1  ;;  %v12453_v44 = vadd.f32 %v12415_v9, %v4105_v42 }
 0x596   : > { %16589 = vst [vmem:[#allocation41_spill] sm:$0xff] %v12434_v62  ;;  %v4560_v39 = vand.u32 2139095040, %v12434_v62  ;;  %v4457_v37 = vshrl.u32 %v4456_v40, 23  ;;  %v12443_v47 = vadd.f32 %v4217_v50, %v4188_v48  ;;  %v4361_v20 = vsel %vm4360_vm15, %v4359_v11, 0 }
 0x597   : > { %16595 = vst [vmem:[#allocation38_spill] sm:$0xff] %v12447_v41  ;;  %v12449_v49 = vand.u32 31, %v4361_v20  ;;  %16597 = vst [vmem:[#allocation6_spill] sm:$0xff] %v12453_v44  ;;  %vm4672_vm6 = vcmp.gt.s32.totalorder %v4671_v35, 0  ;;  %v4190_v36 = vadd.f32 %v4189_v59, %v16598_v6  ;;  %v12457_v3 = vsub.s32 32, %v12447_v41  ;;  %v4193_v21 = vpop.f32.mrf.mxu1 }
 0x598   : > { %v4561_v34 = vshrl.u32 %v4560_v39, 23  ;;  %16593 = vst [vmem:[#allocation24_spill] sm:$0xff] %v12443_v47  ;;  %v8274_v55 = vadd.s32 4294967169, %v4457_v37  ;;  %v4872_v1 = vand.u32 2139095040, %v12443_v47  ;;  %v4673_v14 = vsel %vm4672_vm6, %v4671_v35, 0 }
 0x599   : > { %16596 = vst [vmem:[#allocation42_spill] sm:$0xff] %v12449_v49  ;;  %16599 = vst [vmem:[#allocation48_spill] sm:$0xff] %v12457_v3  ;;  %v12460_v18 = vsub.s32 32, %v12449_v49  ;;  %v12463_v26 = vadd.f32 %v4217_v50, %v4190_v36  ;;  %v5080_v54 = vand.u32 2139095040, %v12453_v44  ;;  %v12466_v13 = vshrl.u32 %v4257_v5, 5 }
 0x59a   : > { %v8278_v31 = vadd.s32 4294967169, %v4561_v34  ;;  %v4463_v23 = vadd.s32 1, %v8274_v55  ;;  %v4873_v56 = vshrl.u32 %v4872_v1, 23  ;;  %v8286_v8 = vadd.s32 4294967169, %v4769_v0  ;;  %v16623_v1 = vld [vmem:[#allocation25_spill] sm:$0xff] }
 0x59b   : > { %16600 = vst [vmem:[#allocation47_spill] sm:$0xff] %v12460_v18  ;;  %16602 = vst [vmem:[#allocation35_spill] sm:$0xff] %v12463_v26  ;;  %v4194_v22 = vadd.f32 %v4193_v21, %v16604_v53  ;;  %v4271_v38 = vshll.u32 %v16432_v60, %v12447_v41  ;;  %v4272_v63 = vshrl.u32 %v16303_v12, %v12457_v3  ;;  %v12485_v39 = vand.u32 31, %v4673_v14 }
 0x59c   : > { %v4567_v7 = vadd.s32 1, %v8278_v31  ;;  %vm4464_vm3 = vcmp.gt.s32.totalorder %v4463_v23, 0  ;;  %16603 = vst [vmem:[#allocation17_spill] sm:$0xff] %v12466_v13  ;;  %v12475_v40 = vshll.u32 %v16303_v12, %v12447_v41  ;;  %v12479_v50 = vshrl.u32 %v16294_v58, %v12457_v3 }
 0x59d   : > { %v12481_v43 = vsel %vm4464_vm3, %v4463_v23, 0  ;;  %v4376_v11 = vshrl.u32 %v16303_v12, %v12460_v18  ;;  %16608 = vst [vmem:[#allocation44_spill] sm:$0xff] %v12485_v39  ;;  %v8290_v32 = vadd.s32 4294967169, %v4873_v56  ;;  %v4375_v4 = vshll.u32 %v16432_v60, %v12449_v49 }
 0x59e   : > { %vm4568_vm4 = vcmp.gt.s32.totalorder %v4567_v7, 0  ;;  %16605 = vst [vmem:[#allocation46_spill] sm:$0xff] %v12475_v40  ;;  %16606 = vst [vmem:[#allocation36_spill] sm:$0xff] %v12479_v50  ;;  %v4976_v30 = vand.u32 2139095040, %v12463_v26  ;;  %v5081_v48 = vshrl.u32 %v5080_v54, 23  ;;  %v4379_v37 = vshrl.u32 %v16294_v58, %v12460_v18  ;;  %v4195_v54 = vpop.f32.mrf.mxu1 }
 0x59f   : > { %16607 = vst [vmem:[#allocation52_spill] sm:$0xff] %v12481_v43  ;;  %v4569_v51 = vsel %vm4568_vm4, %v4567_v7, 0  ;;  %v4775_v34 = vadd.s32 1, %v8286_v8  ;;  %v12493_v15 = vadd.f32 %v12415_v9, %v4194_v22  ;;  %v12496_v61 = vadd.f32 %v12415_v9, %v4107_v27  ;;  %v4110_v8 = vpop.f32.mrf.mxu0 }
 0x5a0   : > { %v12498_v5 = vor.u32 %v4272_v63, %v4271_v38  ;;  %v12501_v55 = vand.u32 31, %v12481_v43  ;;  %v12503_v25 = vshrl.u32 %v4361_v20, 5  ;;  %v4378_v42 = vshll.u32 %v16303_v12, %v12449_v49 }
 0x5a1   : > { %16609 = vst [vmem:[#allocation49_spill] sm:$0xff] %v12493_v15  ;;  %v12507_v31 = vor.u32 %v4376_v11, %v4375_v4  ;;  %v12509_v35 = vand.u32 31, %v4569_v51  ;;  %v12512_v52 = vsub.s32 32, %v12485_v39  ;;  %v4879_v59 = vadd.s32 1, %v8290_v32 }
 0x5a2   : > { %16610 = vst [vmem:[#allocation13_spill] sm:$0xff] %v12498_v5  ;;  %16611 = vst [vmem:[#allocation30_spill] sm:$0xff] %v12501_v55  ;;  %vm4280_vm7 = vcmp.lt.s32.totalorder %v12466_v13, 4  ;;  %v4977_v23 = vshrl.u32 %v4976_v30, 23  ;;  %v8298_v10 = vadd.s32 4294967169, %v5081_v48  ;;  %v4380_v20 = vor.u32 %v4379_v37, %v4378_v42  ;;  %v16622_v37 = vld [vmem:[#allocation20_spill] sm:$0xff] }
 0x5a3   : > { %16612 = vst [vmem:[#allocation45_spill] sm:$0xff] %v12503_v25  ;;  %16613 = vst [vmem:[#allocation37_spill] sm:$0xff] %v12507_v31  ;;  %vm4776_vm14 = vcmp.gt.s32.totalorder %v4775_v34, 0  ;;  %v5288_v7 = vand.u32 2139095040, %v12493_v15  ;;  %v5184_v0 = vand.u32 2139095040, %v12496_v61  ;;  %v12525_v36 = vsub.s32 32, %v12501_v55 }
 0x5a4   : > { %16614 = vst [vmem:[#allocation14_spill] sm:$0xff] %v12509_v35  ;;  %16615 = vst [vmem:[#allocation29_spill] sm:$0xff] %v12512_v52  ;;  %v12522_v6 = vsel %vm4280_vm7, %v12498_v5, 920167782  ;;  %vm4384_vm9 = vcmp.lt.s32.totalorder %v12503_v25, 4  ;;  %v12528_v21 = vshrl.u32 %v4673_v14, 5  ;;  %v4688_v27 = vshrl.u32 %v16303_v12, %v12512_v52 }
 0x5a5   : > { %16616 = vst [vmem:[#allocation15_spill] sm:$0xff] %v12522_v6  ;;  %16617 = vst [vmem:[#allocation8_spill] sm:$0xff] %v12525_v36  ;;  %v12533_v56 = vsel %vm4384_vm9, %v12507_v31, 920167782  ;;  %v12536_v24 = vsub.s32 32, %v12509_v35  ;;  %vm4880_vm0 = vcmp.gt.s32.totalorder %v4879_v59, 0  ;;  %v4691_v53 = vshrl.u32 %v16294_v58, %v12512_v52 }
 0x5a6   : > { %16618 = vst [vmem:[#allocation10_spill] sm:$0xff] %v12528_v21  ;;  %16619 = vst [vmem:[#allocation7_spill] sm:$0xff] %v12533_v56  ;;  %v4777_v22 = vsel %vm4776_vm14, %v4775_v34, 0  ;;  %v8294_v14 = vadd.s32 4294967169, %v4977_v23  ;;  %v5087_v38 = vadd.s32 1, %v8298_v10  ;;  %v4687_v11 = vshll.u32 %v16432_v60, %v12485_v39 }
 0x5a7   : > { %16620 = vst [vmem:[#allocation21_spill] sm:$0xff] %v12536_v24  ;;  %v12544_v63 = vsel %vm4384_vm9, %v4380_v20, 1326507024  ;;  %v5289_v32 = vshrl.u32 %v5288_v7, 23  ;;  %v5185_v4 = vshrl.u32 %v5184_v0, 23  ;;  %v4690_v30 = vshll.u32 %v16303_v12, %v12485_v39 }
 0x5a8   : > { %16621 = vst [vmem:[#allocation43_spill] sm:$0xff] %v12544_v63  ;;  %v4881_v48 = vsel %vm4880_vm0, %v4879_v59, 0  ;;  %v4196_v42 = vadd.f32 %v4195_v54, %v16622_v37  ;;  %v4111_v57 = vadd.f32 %v4110_v8, %v16623_v1  ;;  %v12552_v34 = vshrl.u32 %v4569_v51, 5 }
 0x5a9   : > { %v4583_v23 = vshll.u32 %v16432_v60, %v12509_v35  ;;  %v4584_v10 = vshrl.u32 %v16303_v12, %v12536_v24  ;;  %v12558_v20 = vand.u32 31, %v4777_v22  ;;  %v12560_v7 = vor.u32 %v4688_v27, %v4687_v11 }
 0x5aa   : > { %16624 = vst [vmem:[#allocation40_spill] sm:$0xff] %v12552_v34  ;;  %v4692_v0 = vor.u32 %v4691_v53, %v4690_v30  ;;  %v4983_v19 = vadd.s32 1, %v8294_v14  ;;  %vm5088_vm5 = vcmp.gt.s32.totalorder %v5087_v38, 0  ;;  %v12564_v59 = vshll.u32 %v16303_v12, %v12509_v35 }
 0x5ab   : > { %16625 = vst [vmem:[#allocation33_spill] sm:$0xff] %v12558_v20  ;;  %16626 = vst [vmem:[#allocation32_spill] sm:$0xff] %v12560_v7  ;;  %v12566_v1 = vand.u32 31, %v4881_v48  ;;  %v8306_v51 = vadd.s32 4294967169, %v5289_v32  ;;  %v8302_v54 = vadd.s32 4294967169, %v5185_v4  ;;  %v12570_v8 = vshrl.u32 %v16294_v58, %v12536_v24 }
 0x5ac   : > { %16627 = vst [vmem:[#allocation11_spill] sm:$0xff] %v12564_v59  ;;  %vm4696_vm10 = vcmp.lt.s32.totalorder %v12528_v21, 4  ;;  %v12574_v27 = vadd.f32 %v12415_v9, %v4196_v42  ;;  %v12577_v53 = vadd.f32 %v12423_v17, %v4111_v57  ;;  %v12579_v14 = vor.u32 %v4584_v10, %v4583_v23  ;;  %v16656_v59 = vld [vmem:[#allocation26_spill] sm:$0xff] }
 0x5ad   : > { %16628 = vst [vmem:[#allocation34_spill] sm:$0xff] %v12566_v1  ;;  %16629 = vst [vmem:[#allocation19_spill] sm:$0xff] %v12570_v8  ;;  %v12582_v11 = vsub.s32 32, %v12558_v20  ;;  %v5089_v30 = vsel %vm5088_vm5, %v5087_v38, 0  ;;  %v5191_v32 = vadd.s32 1, %v8302_v54  ;;  %vm4984_vm1 = vcmp.gt.s32.totalorder %v4983_v19, 0  ;;  %v4199_v38 = vpop.f32.mrf.mxu1 }
 0x5ae   : > { %16630 = vst [vmem:[#allocation31_spill] sm:$0xff] %v12579_v14  ;;  %v12587_v4 = vsel %vm4696_vm10, %v12560_v7, 920167782  ;;  %v12591_v37 = vsel %vm4696_vm10, %v4692_v0, 1326507024  ;;  %v5392_v57 = vand.u32 2139095040, %v12574_v27  ;;  %v4791_v0 = vshll.u32 %v16432_v60, %v12558_v20 }
 0x5af   : > { %16631 = vst [vmem:[#allocation27_spill] sm:$0xff] %v12582_v11  ;;  %16632 = vst [vmem:[#allocation9_spill] sm:$0xff] %v12587_v4  ;;  %v12594_v9 = vshrl.u32 %v4881_v48, 5  ;;  %v12597_v42 = vsub.s32 32, %v12566_v1  ;;  %v5295_v23 = vadd.s32 1, %v8306_v51  ;;  %vm5192_vm8 = vcmp.gt.s32.totalorder %v5191_v32, 0  ;;  %v4112_v51 = vpop.f32.mrf.mxu0 }
 0x5b0   : > { %16633 = vst [vmem:[#allocation22_spill] sm:$0xff] %v12591_v37  ;;  %v12599_v10 = vshrl.u32 %v4777_v22, 5  ;;  %v12601_v54 = vand.u32 31, %v5089_v30  ;;  %v5393_v6 = vshrl.u32 %v5392_v57, 23  ;;  %v5496_v5 = vand.u32 2139095040, %v12577_v53 }
 0x5b1   : > { %16634 = vst [vmem:[#allocation18_spill] sm:$0xff] %v12594_v9  ;;  %16635 = vst [vmem:[#allocation12_spill] sm:$0xff] %v12597_v42  ;;  %v4792_v48 = vshrl.u32 %v16303_v12, %v12582_v11  ;;  %v4795_v41 = vshrl.u32 %v16294_v58, %v12582_v11  ;;  %v4985_v3 = vsel %vm4984_vm1, %v4983_v19, 0  ;;  %v4794_v22 = vshll.u32 %v16303_v12, %v12558_v20 }
 0x5b2   : > { %16636 = vst [vmem:[#allocation20_spill] sm:$0xff] %v12599_v10  ;;  %16637 = vst [vmem:[#allocation25_spill] sm:$0xff] %v12601_v54  ;;  %v5193_v55 = vsel %vm5192_vm8, %v5191_v32, 0  ;;  %v8310_v43 = vadd.s32 4294967169, %v5393_v6  ;;  %v4200_v57 = vadd.f32 %v4199_v38, %v16638_v2  ;;  %v4896_v13 = vshrl.u32 %v16303_v12, %v12597_v42  ;;  %v16642_v6 = vld [vmem:[#allocation23_spill] sm:$0xff] }
 0x5b3   : > { %v12617_v40 = vshrl.u32 %v16294_v58, %v12597_v42  ;;  %vm5296_vm12 = vcmp.gt.s32.totalorder %v5295_v23, 0  ;;  %v5497_v50 = vshrl.u32 %v5496_v5, 23  ;;  %v4895_v19 = vshll.u32 %v16432_v60, %v12566_v1 }
 0x5b4   : > { %v12621_v36 = vand.u32 31, %v4985_v3  ;;  %v12624_v24 = vsub.s32 32, %v12601_v54  ;;  %v4113_v32 = vadd.f32 %v4112_v51, %v16642_v6  ;;  %v12629_v2 = vshll.u32 %v16303_v12, %v12566_v1 }
 0x5b5   : > { %16639 = vst [vmem:[#allocation28_spill] sm:$0xff] %v12617_v40  ;;  %v12631_v38 = vor.u32 %v4792_v48, %v4791_v0  ;;  %v4796_v35 = vor.u32 %v4795_v41, %v4794_v22  ;;  %v12633_v62 = vand.u32 31, %v5193_v55  ;;  %vm4800_vm2 = vcmp.lt.s32.totalorder %v12599_v10, 4  ;;  %v4201_v48 = vpop.f32.mrf.mxu1 }
 0x5b6   : > { %16640 = vst [vmem:[#allocation53_spill] sm:$0xff] %v12621_v36  ;;  %16641 = vst [vmem:[#allocation54_spill] sm:$0xff] %v12624_v24  ;;  %v5297_v5 = vsel %vm5296_vm12, %v5295_v23, 0  ;;  %v5399_v56 = vadd.s32 1, %v8310_v43  ;;  %v12637_v31 = vadd.f32 %v12423_v17, %v4200_v57  ;;  %v12639_v63 = vor.u32 %v4896_v13, %v4895_v19 }
 0x5b7   : > { %16643 = vst [vmem:[#allocation23_spill] sm:$0xff] %v12629_v2  ;;  %16644 = vst [vmem:[#allocation55_spill] sm:$0xff] %v12631_v38  ;;  %v12643_v6 = vshrl.u32 %v5089_v30, 5  ;;  %v8314_v25 = vadd.s32 4294967169, %v5497_v50  ;;  %v12645_v0 = vshrl.u32 %v4985_v3, 5  ;;  %v12648_v41 = vsub.s32 32, %v12621_v36 }
 0x5b8   : > { %16645 = vst [vmem:[#allocation56_spill] sm:$0xff] %v12639_v63  ;;  %v5104_v23 = vshrl.u32 %v16303_v12, %v12624_v24  ;;  %v12653_v43 = vadd.f32 %v12423_v17, %v4113_v32  ;;  %v12658_v13 = vsel %vm4800_vm2, %v12631_v38, 920167782  ;;  %v12662_v30 = vsel %vm4800_vm2, %v4796_v35, 1326507024 }
 0x5b9   : > { %16646 = vst [vmem:[#allocation57_spill] sm:$0xff] %v12643_v6  ;;  %16647 = vst [vmem:[#allocation58_spill] sm:$0xff] %v12645_v0  ;;  %v12664_v3 = vand.u32 31, %v5297_v5  ;;  %v12667_v50 = vsub.s32 32, %v12633_v62  ;;  %v4999_v22 = vshll.u32 %v16432_v60, %v12621_v36  ;;  %v5103_v57 = vshll.u32 %v16432_v60, %v12601_v54 }
 0x5ba   : > { %16648 = vst [vmem:[#allocation59_spill] sm:$0xff] %v12648_v41  ;;  %16649 = vst [vmem:[#allocation60_spill] sm:$0xff] %v12658_v13  ;;  %vm5400_vm11 = vcmp.gt.s32.totalorder %v5399_v56, 0  ;;  %v5704_v19 = vand.u32 2139095040, %v12637_v31  ;;  %v12676_v32 = vshll.u32 %v16303_v12, %v12621_v36  ;;  %v12680_v35 = vshll.u32 %v16303_v12, %v12601_v54 }
 0x5bb   : > { %16650 = vst [vmem:[#allocation61_spill] sm:$0xff] %v12662_v30  ;;  %16651 = vst [vmem:[#allocation62_spill] sm:$0xff] %v12664_v3  ;;  %v12684_v51 = vshrl.u32 %v16294_v58, %v12624_v24  ;;  %v5503_v49 = vadd.s32 1, %v8314_v25  ;;  %v5000_v18 = vshrl.u32 %v16303_v12, %v12648_v41  ;;  %v12688_v14 = vor.u32 %v5104_v23, %v5103_v57 }
 0x5bc   : > { %16652 = vst [vmem:[#allocation63_spill] sm:$0xff] %v12676_v32  ;;  %16653 = vst [vmem:[#allocation64_spill] sm:$0xff] %v12680_v35  ;;  %v5600_v8 = vand.u32 2139095040, %v12653_v43  ;;  %v4202_v45 = vadd.f32 %v4201_v48, %v16656_v59  ;;  %vm5112_vm13 = vcmp.lt.s32.totalorder %v12643_v6, 4  ;;  %v12694_v34 = vsub.s32 32, %v12664_v3 }
 0x5bd   : > { %16654 = vst [vmem:[#allocation65_spill] sm:$0xff] %v12684_v51  ;;  %16655 = vst [vmem:[#allocation66_spill] sm:$0xff] %v12688_v14  ;;  %v5208_v1 = vshrl.u32 %v16303_v12, %v12667_v50  ;;  %v5401_v42 = vsel %vm5400_vm11, %v5399_v56, 0  ;;  %v12700_v25 = vshrl.u32 %v16294_v58, %v12648_v41  ;;  %v5705_v2 = vshrl.u32 %v5704_v19, 23 }
 0x5be   : > { %16657 = vst [vmem:[#allocation26_spill] sm:$0xff] %v12694_v34  ;;  %v5601_v23 = vshrl.u32 %v5600_v8, 23  ;;  %v12703_v57 = vadd.f32 %v12423_v17, %v4202_v45  ;;  %v5207_v48 = vshll.u32 %v16432_v60, %v12633_v62  ;;  %v5211_v40 = vshrl.u32 %v16294_v58, %v12667_v50 }
 0x5bf   : > { %16658 = vst [vmem:[#allocation67_spill] sm:$0xff] %v12700_v25  ;;  %vm5504_vm15 = vcmp.gt.s32.totalorder %v5503_v49, 0  ;;  %v12711_v56 = vor.u32 %v5000_v18, %v4999_v22  ;;  %v12716_v19 = vsel %vm5112_vm13, %v12688_v14, 920167782  ;;  %v12718_v8 = vand.u32 31, %v5401_v42 }
 0x5c0   : > { %16660 = vst [vmem:[#allocation69_spill] sm:$0xff] %v12716_v19  ;;  %v8318_v45 = vadd.s32 4294967169, %v5601_v23  ;;  %v5312_v17 = vshrl.u32 %v16303_v12, %v12694_v34  ;;  %v12722_v59 = vshrl.u32 %v5193_v55, 5  ;;  %v12724_v47 = vor.u32 %v5208_v1, %v5207_v48 }
 0x5c1   : > { %16659 = vst [vmem:[#allocation68_spill] sm:$0xff] %v12711_v56  ;;  %v5210_v4 = vshll.u32 %v16303_v12, %v12633_v62  ;;  %v5505_v18 = vsel %vm5504_vm15, %v5503_v49, 0  ;;  %v8322_v22 = vadd.s32 4294967169, %v5705_v2  ;;  %v5808_v37 = vand.u32 2139095040, %v12703_v57 }
 0x5c2   : > { %v5607_v7 = vadd.s32 1, %v8318_v45  ;;  %v12729_v21 = vshrl.u32 %v5297_v5, 5  ;;  %v5311_v23 = vshll.u32 %v16432_v60, %v12664_v3  ;;  %v12735_v52 = vshll.u32 %v16303_v12, %v12664_v3 }
 0x5c3   : > { %v5212_v55 = vor.u32 %v5211_v40, %v5210_v4  ;;  %v12738_v1 = vsub.s32 32, %v12718_v8  ;;  %v5809_v48 = vshrl.u32 %v5808_v37, 23  ;;  %v12743_v2 = vshrl.u32 %v16294_v58, %v12694_v34 }
 0x5c4   : > { %vm5608_vm6 = vcmp.gt.s32.totalorder %v5607_v7, 0  ;;  %vm5216_vm3 = vcmp.lt.s32.totalorder %v12722_v59, 4  ;;  %v12746_v5 = vand.u32 31, %v5505_v18  ;;  %v12748_v39 = vor.u32 %v5312_v17, %v5311_v23 }
 0x5c5   : > { %v5609_v45 = vsel %vm5608_vm6, %v5607_v7, 0  ;;  %v12753_v40 = vsel %vm5216_vm3, %v12724_v47, 920167782  ;;  %v12755_v4 = vshrl.u32 %v5401_v42, 5  ;;  %v5711_v37 = vadd.s32 1, %v8322_v22 }
 0x5c6   : > { %16661 = vst [vmem:[#allocation70_spill] sm:$0xff] %v12748_v39  ;;  %v12759_v49 = vsel %vm5216_vm3, %v5212_v55, 1326507024  ;;  %v12761_v33 = vshrl.u32 %v5609_v45, 5  ;;  %v5611_v63 = vand.u32 31, %v5609_v45  ;;  %v8326_v9 = vadd.s32 4294967169, %v5809_v48 }
 0x5c7   : > { %v12765_v7 = vshll.u32 %v16432_v60, %v12718_v8  ;;  %v12769_v17 = vshrl.u32 %v16303_v12, %v12738_v1  ;;  %v12771_v23 = vshrl.u32 %v5505_v18, 5  ;;  %v16662_v42 = vand.u32 2147483647, %v12653_v43 }
 0x5c8   : > { %v12776_v55 = vsub.s32 32, %v12746_v5  ;;  %v12780_v45 = vshll.u32 %v16432_v60, %v12746_v5  ;;  %v12784_v48 = vshll.u32 %v16303_v12, %v12746_v5  ;;  %v5612_v36 = vsub.s32 32, %v5611_v63 }
 0x5c9   : > { %v5604_v22 = vand.u32 8388607, %v16662_v42  ;;  %vm5712_vm4 = vcmp.gt.s32.totalorder %v5711_v37, 0  ;;  %v5623_v41 = vshll.u32 %v16432_v60, %v5611_v63  ;;  %v5815_v18 = vadd.s32 1, %v8326_v9 }
 0x5ca   : > { %v5624_v42 = vshrl.u32 %v16303_v12, %v5612_v36  ;;  %v5626_v13 = vshll.u32 %v16303_v12, %v5611_v63  ;;  %v5627_v38 = vshrl.u32 %v16294_v58, %v5612_v36  ;;  %vm5632_vm14 = vcmp.lt.s32.totalorder %v12761_v33, 4 }
 0x5cb   : > { %vm5816_vm0 = vcmp.gt.s32.totalorder %v5815_v18, 0  ;;  %v5605_v30 = vor.u32 8388608, %v5604_v22  ;;  %v5614_v10 = vshll.u32 %v16300_v28, %v5611_v63  ;;  %v5615_v20 = vshrl.u32 %v16293_v16, %v5612_v36 }
 0x5cc   : > { %v5625_v11 = vor.u32 %v5624_v42, %v5623_v41  ;;  %v5628_v46 = vor.u32 %v5627_v38, %v5626_v13  ;;  %v5817_v56 = vsel %vm5816_vm0, %v5815_v18, 0  ;;  %v5613_v9 = vshrl.u32 %v16300_v28, %v5612_v36 }
 0x5cd   : > { %v5819_v26 = vand.u32 31, %v5817_v56  ;;  %v5616_v25 = vor.u32 %v5615_v20, %v5614_v10  ;;  %v5617_v32 = vshll.u32 %v16293_v16, %v5611_v63  ;;  %v5618_v0 = vshrl.u32 %v16431_v29, %v5612_v36 }
 0x5ce   : > { %v5638_v3 = vsel %vm5632_vm14, %v5625_v11, 920167782  ;;  %v12799_v34 = vshrl.u32 %v5817_v56, 5  ;;  %v5620_v22 = vshll.u32 %v16431_v29, %v5611_v63  ;;  %v5621_v15 = vshrl.u32 %v16432_v60, %v5612_v36 }
 0x5cf   : > { %v5642_v38 = vsel %vm5632_vm14, %v5628_v46, 1326507024  ;;  %v5820_v41 = vsub.s32 32, %v5819_v26  ;;  %v5831_v13 = vshll.u32 %v16432_v60, %v5819_v26  ;;  %v5834_v20 = vshll.u32 %v16303_v12, %v5819_v26 }
 0x5d0   : > { %v5619_v10 = vor.u32 %v5618_v0, %v5617_v32  ;;  %v5622_v18 = vor.u32 %v5621_v15, %v5620_v22  ;;  %vm5629_vm5 = vcmp.lt.s32.totalorder %v12761_v33, 1  ;;  %vm5630_vm1 = vcmp.lt.s32.totalorder %v12761_v33, 2 }
 0x5d1   : > { %v5832_v56 = vshrl.u32 %v16303_v12, %v5820_v41  ;;  %v5835_v63 = vshrl.u32 %v16294_v58, %v5820_v41  ;;  %vm5631_vm8 = vcmp.lt.s32.totalorder %v12761_v33, 3  ;;  %v5633_v36 = vsel %vm5629_vm5, %v5613_v9, %v5616_v25 }
 0x5d2   : > { %v5634_v46 = vsel %vm5632_vm14, %v5622_v18, 2102212464  ;;  %v5637_v42 = vsel %vm5629_vm5, %v5616_v25, %v5619_v10  ;;  %v5639_v19 = vsel %vm5631_vm8, %v5622_v18, %v5638_v3  ;;  %v5641_v14 = vsel %vm5629_vm5, %v5619_v10, %v5622_v18 }
 0x5d3   : > { %v5833_v24 = vor.u32 %v5832_v56, %v5831_v13  ;;  %v5836_v0 = vor.u32 %v5835_v63, %v5834_v20  ;;  %v5635_v15 = vsel %vm5631_vm8, %v5619_v10, %v5634_v46  ;;  %v5640_v32 = vsel %vm5630_vm1, %v5637_v42, %v5639_v19 }
 0x5d4   : > { %v5520_v22 = vshrl.u32 %v16303_v12, %v12776_v55  ;;  %v12819_v54 = vsel %vm5712_vm4, %v5711_v37, 0  ;;  %v5643_v44 = vsel %vm5631_vm8, %v5625_v11, %v5642_v38  ;;  %v5645_v9 = vshll.u32 %v5605_v30, 8 }
 0x5d5   : > { %vm5840_vm12 = vcmp.lt.s32.totalorder %v12799_v34, 4  ;;  %v5636_v3 = vsel %vm5630_vm1, %v5633_v36, %v5635_v15  ;;  %v5644_v25 = vsel %vm5630_vm1, %v5641_v14, %v5643_v44  ;;  %v16663_v13 = vand.u32 2147483647, %v12703_v57 }
 0x5d6   : > { %v12828_v19 = vmul.u32.u64.low %v5645_v9, %v5644_v25  ;;  %v12829_v10 = vmul.u32.u64.high %v5645_v9, %v5644_v25, %v12828_v19  ;;  %v12831_v18 = vmul.u32.u64.low %v5645_v9, %v5640_v32  ;;  %v12832_v56 = vmul.u32.u64.high %v5645_v9, %v5640_v32, %v12831_v18 }
 0x5d7   : > { %v5812_v20 = vand.u32 8388607, %v16663_v13  ;;  %v12837_v11 = vshrl.u32 %v16294_v58, %v12776_v55  ;;  %v12840_v30 = vand.u32 31, %v12819_v54  ;;  %v5846_v33 = vsel %vm5840_vm12, %v5833_v24, 920167782 }
 0x5d8   : > { %v5850_v44 = vsel %vm5840_vm12, %v5836_v0, 1326507024  ;;  %v5822_v37 = vshll.u32 %v16300_v28, %v5819_v26  ;;  %v5823_v38 = vshrl.u32 %v16293_v16, %v5820_v41  ;;  %v5826_v63 = vshrl.u32 %v16431_v29, %v5820_v41 }
 0x5d9   : > { %v5813_v14 = vor.u32 8388608, %v5812_v20  ;;  %v5652_v36 = vmul.u32 %v5645_v9, %v5636_v3  ;;  %v5825_v46 = vshll.u32 %v16293_v16, %v5819_v26  ;;  %v5828_v42 = vshll.u32 %v16431_v29, %v5819_v26 }
 0x5da   : > { %v5829_v15 = vshrl.u32 %v16432_v60, %v5820_v41  ;;  %vm5654_vm11 = vc.u32 %v12829_v10, %v12831_v18  ;;  %v5655_v32 = vadd.s32 1, %v12832_v56  ;;  %v5821_v0 = vshrl.u32 %v16300_v28, %v5820_v41 }
 0x5db   : > { %v5824_v25 = vor.u32 %v5823_v38, %v5822_v37  ;;  %v5827_v13 = vor.u32 %v5826_v63, %v5825_v46  ;;  %vm5837_vm15 = vcmp.lt.s32.totalorder %v12799_v34, 1  ;;  %vm5839_vm6 = vcmp.lt.s32.totalorder %v12799_v34, 3 }
 0x5dc   : > { %v5830_v20 = vor.u32 %v5829_v15, %v5828_v42  ;;  %v5656_v9 = vsel %vm5654_vm11, %v5655_v32, %v12832_v56  ;;  %vm5838_vm4 = vcmp.lt.s32.totalorder %v12799_v34, 2  ;;  %v5851_v26 = vsel %vm5839_vm6, %v5833_v24, %v5850_v44 }
 0x5dd   : > { %v5853_v3 = vshll.u32 %v5813_v14, 8  ;;  %v5657_v19 = vadd.s32 %v5656_v9, %v5652_v36  ;;  %v5845_v6 = vsel %vm5837_vm15, %v5824_v25, %v5827_v13  ;;  %v5841_v41 = vsel %vm5837_vm15, %v5821_v0, %v5824_v25 }
 0x5de   : > { %v5842_v39 = vsel %vm5840_vm12, %v5830_v20, 2102212464  ;;  %v5847_v35 = vsel %vm5839_vm6, %v5830_v20, %v5846_v33  ;;  %v5849_v63 = vsel %vm5837_vm15, %v5827_v13, %v5830_v20  ;;  %vm5528_vm14 = vcmp.lt.s32.totalorder %v12771_v23, 4 }
 0x5df   : > { %v5843_v37 = vsel %vm5839_vm6, %v5827_v13, %v5842_v39  ;;  %v5848_v38 = vsel %vm5838_vm4, %v5845_v6, %v5847_v35  ;;  %v5658_v46 = vadd.s32 536870912, %v5657_v19  ;;  %v5852_v56 = vsel %vm5838_vm4, %v5849_v63, %v5851_v26 }
 0x5e0   : > { %v16202_v24 = vand.u32 2147483647, %v12577_v53  ;;  %v12868_v44 = vmul.u32.u64.low %v5853_v3, %v5852_v56  ;;  %v12869_v14 = vmul.u32.u64.high %v5853_v3, %v5852_v56, %v12868_v44  ;;  %v5521_v39 = vor.u32 %v5520_v22, %v12780_v45 }
 0x5e1   : > { %v12871_v36 = vmul.u32.u64.low %v5853_v3, %v5848_v38  ;;  %v12872_v42 = vmul.u32.u64.high %v5853_v3, %v5848_v38, %v12871_v36  ;;  %v5524_v6 = vor.u32 %v12837_v11, %v12784_v48  ;;  %v12878_v35 = vshrl.u32 %v5658_v46, 30 }
 0x5e2   : > { %v5844_v33 = vsel %vm5838_vm4, %v5841_v41, %v5843_v37  ;;  %v12883_v15 = vsub.s32 32, %v12840_v30  ;;  %v5510_v32 = vshll.u32 %v16300_v28, %v12746_v5  ;;  %v5511_v0 = vshrl.u32 %v16293_v16, %v12776_v55 }
 0x5e3   : > { %v5514_v45 = vshrl.u32 %v16431_v29, %v12776_v55  ;;  %v5660_v22 = vshll.u32 %v12878_v35, 30  ;;  %v5513_v48 = vshll.u32 %v16293_v16, %v12746_v5  ;;  %v5516_v34 = vshll.u32 %v16431_v29, %v12746_v5 }
 0x5e4   : > { %v5517_v11 = vshrl.u32 %v16432_v60, %v12776_v55  ;;  %v5860_v25 = vmul.u32 %v5853_v3, %v5844_v33  ;;  %vm5862_vm0 = vc.u32 %v12869_v14, %v12871_v36  ;;  %v5863_v13 = vadd.s32 1, %v12872_v42 }
 0x5e5   : > { %v5500_v20 = vand.u32 8388607, %v16202_v24  ;;  %v12903_v9 = vsub.s32 %v5657_v19, %v5660_v22  ;;  %v5512_v26 = vor.u32 %v5511_v0, %v5510_v32  ;;  %v5515_v41 = vor.u32 %v5514_v45, %v5513_v48 }
 0x5e6   : > { %v5518_v37 = vor.u32 %v5517_v11, %v5516_v34  ;;  %v5534_v5 = vsel %vm5528_vm14, %v5521_v39, 920167782  ;;  %v12908_v38 = vshrl.u32 %v12819_v54, 5  ;;  %v5728_v3 = vshrl.u32 %v16303_v12, %v12883_v15 }
 0x5e7   : > { %v5864_v63 = vsel %vm5862_vm0, %v5863_v13, %v12872_v42  ;;  %v5538_v46 = vsel %vm5528_vm14, %v5524_v6, 1326507024  ;;  %v5727_v19 = vshll.u32 %v16432_v60, %v12840_v30  ;;  %v5663_v56 = vsub.s32 0, %v12903_v9 }
 0x5e8   : > { %v5865_v44 = vadd.s32 %v5864_v63, %v5860_v25  ;;  %v5730_v33 = vshll.u32 %v16303_v12, %v12840_v30  ;;  %vm5599_vm5 = vcmp.lt.s32.totalorder %v12653_v43, 0  ;;  %v5501_v54 = vor.u32 8388608, %v5500_v20 }
 0x5e9   : > { %vm5525_vm1 = vcmp.lt.s32.totalorder %v12771_v23, 1  ;;  %vm5527_vm8 = vcmp.lt.s32.totalorder %v12771_v23, 3  ;;  %v8319_v42 = vmin.u32 %v5663_v56, %v12903_v9  ;;  %v12928_v45 = vor.u32 %v5728_v3, %v5727_v19 }
 0x5ea   : > { %v5866_v32 = vadd.s32 536870912, %v5865_v44  ;;  %v5533_v6 = vsel %vm5525_vm1, %v5512_v26, %v5515_v41  ;;  %v5535_v0 = vsel %vm5527_vm8, %v5518_v37, %v5534_v5  ;;  %v5731_v22 = vshrl.u32 %v16294_v58, %v12883_v15 }
 0x5eb   : > { %v5537_v48 = vsel %vm5525_vm1, %v5515_v41, %v5518_v37  ;;  %v5539_v34 = vsel %vm5527_vm8, %v5521_v39, %v5538_v46  ;;  %v5665_v11 = vclz %v8319_v42  ;;  %v5509_v25 = vshrl.u32 %v16300_v28, %v12776_v55 }
 0x5ec   : > { %vm5526_vm12 = vcmp.lt.s32.totalorder %v12771_v23, 2  ;;  %v5530_v13 = vsel %vm5528_vm14, %v5518_v37, 2102212464  ;;  %v5867_v20 = vshrl.u32 %v5866_v32, 30  ;;  %v5541_v63 = vshll.u32 %v5501_v54, 8 }
 0x5ed   : > { %v5536_v5 = vsel %vm5526_vm12, %v5533_v6, %v5535_v0  ;;  %v5540_v3 = vsel %vm5526_vm12, %v5537_v48, %v5539_v34  ;;  %vm5736_vm11 = vcmp.lt.s32.totalorder %v12908_v38, 4  ;;  %v16664_v39 = vand.u32 2147483647, %v12653_v43 }
 0x5ee   : > { %v8320_v55 = vadd.s32 4294967294, %v5665_v11  ;;  %v5683_v19 = vsub.s32 4, %v12878_v35  ;;  %v5529_v37 = vsel %vm5525_vm1, %v5509_v25, %v5512_v26  ;;  %vm5807_vm6 = vcmp.lt.s32.totalorder %v12703_v57, 0 }
 0x5ef   : > { %vm12948_vm15 = vcmp.le.f32.partialorder %v16664_v39, 0.7853982  ;;  %v5868_v56 = vshll.u32 %v5867_v20, 30  ;;  %v5531_v54 = vsel %vm5527_vm8, %v5515_v41, %v5530_v13  ;;  %v5732_v6 = vor.u32 %v5731_v22, %v5730_v33 }
 0x5f0   : > { %v12958_v42 = vmul.u32.u64.low %v5541_v63, %v5540_v3  ;;  %v12959_v32 = vmul.u32.u64.high %v5541_v63, %v5540_v3, %v12958_v42  ;;  %vm8321_vm4 = vcmp.lt.s32.totalorder %v8320_v55, 0  ;;  %v12968_v34 = vsel %vm5736_vm11, %v12928_v45, 920167782 }
 0x5f1   : > { %v12961_v0 = vmul.u32.u64.low %v5541_v63, %v5536_v5  ;;  %v12962_v48 = vmul.u32.u64.high %v5541_v63, %v5536_v5, %v12961_v0  ;;  %v5653_v26 = vadd.s32 %v12831_v18, %v12829_v10  ;;  %v5668_v11 = vsel %vm8321_vm4, 0, %v8320_v55 }
 0x5f2   : > { %v12972_v25 = vsub.s32 %v5865_v44, %v5868_v56  ;;  %v5669_v41 = vsub.s32 32, %v5668_v11  ;;  %v5673_v13 = vsub.s32 4294967266, %v5668_v11  ;;  %v5684_v33 = vsel %vm5599_vm5, %v5683_v19, %v12878_v35 }
 0x5f3   : > { %v5532_v22 = vsel %vm5526_vm12, %v5529_v37, %v5531_v54  ;;  %v5891_v3 = vsub.s32 4, %v5867_v20  ;;  %vm5550_vm14 = vc.u32 %v12959_v32, %v12961_v0  ;;  %v16201_v10 = vand.u32 2147483647, %v12637_v31 }
 0x5f4   : > { %v5871_v5 = vsub.s32 0, %v12972_v25  ;;  %v5670_v18 = vshll.u32 %v12903_v9, %v5668_v11  ;;  %v5671_v44 = vshrl.u32 %v5653_v26, %v5669_v41  ;;  %v5674_v39 = vadd.s32 127, %v5673_v13 }
 0x5f5   : > { %v5551_v55 = vadd.s32 1, %v12962_v48  ;;  %v12987_v35 = vsel %vm5736_vm11, %v5732_v6, 1326507024  ;;  %v16667_v23 = vand.u32 2147483647, %v12703_v57  ;;  %v5861_v37 = vadd.s32 %v12871_v36, %v12869_v14 }
 0x5f6   : > { %v8327_v56 = vmin.u32 %v5871_v5, %v12972_v25  ;;  %v5672_v9 = vor.u32 %v5671_v44, %v5670_v18  ;;  %v5675_v54 = vshll.u32 %v5674_v39, 23  ;;  %v5548_v42 = vmul.u32 %v5541_v63, %v5532_v22 }
 0x5f7   : > { %vm12991_vm0 = vcmp.le.f32.partialorder %v16667_v23, 0.7853982  ;;  %v5552_v26 = vsel %vm5550_vm14, %v5551_v55, %v12962_v48  ;;  %v5686_v6 = vsel %vm12948_vm15, 0, %v5684_v33  ;;  %v5718_v41 = vshll.u32 %v16300_v28, %v12840_v30 }
 0x5f8   : > { %v5873_v11 = vclz %v8327_v56  ;;  %v5719_v13 = vshrl.u32 %v16293_v16, %v12883_v15  ;;  %v5676_v23 = vor.u32 4788187, %v5675_v54  ;;  %v5892_v14 = vsel %vm5807_vm6, %v5891_v3, %v5867_v20 }
 0x5f9   : > { %v5553_v36 = vadd.s32 %v5552_v26, %v5548_v42  ;;  %v5708_v63 = vand.u32 8388607, %v16201_v10  ;;  %v5721_v48 = vshll.u32 %v16293_v16, %v12840_v30  ;;  %v5722_v33 = vshrl.u32 %v16431_v29, %v12883_v15 }
 0x5fa   : > { %v8328_v22 = vadd.s32 4294967294, %v5873_v11  ;;  %v5725_v5 = vshrl.u32 %v16432_v60, %v12883_v15  ;;  %v5677_v18 = vand.u32 2147483647, %v5676_v23  ;;  %v5679_v44 = vcvt.s32.f32 %v5672_v9 }
 0x5fb   : > { %v5554_v39 = vadd.s32 536870912, %v5553_v36  ;;  %v5724_v20 = vshll.u32 %v16431_v29, %v12840_v30  ;;  %v5690_v3 = vadd.s32 3, %v5686_v6  ;;  %v5720_v55 = vor.u32 %v5719_v13, %v5718_v41 }
 0x5fc   : > { %vm8329_vm1 = vcmp.lt.s32.totalorder %v8328_v22, 0  ;;  %v5723_v56 = vor.u32 %v5722_v33, %v5721_v48  ;;  %v5680_v54 = vmul.f32 %v5679_v44, %v5677_v18  ;;  %v5894_v51 = vsel %vm12991_vm0, 0, %v5892_v14 }
 0x5fd   : > { %v5876_v42 = vsel %vm8329_vm1, 0, %v8328_v22  ;;  %v13017_v26 = vshrl.u32 %v5554_v39, 30  ;;  %v5726_v11 = vor.u32 %v5725_v5, %v5724_v20  ;;  %v5717_v9 = vshrl.u32 %v16300_v28, %v12883_v15 }
 0x5fe   : > { %v5877_v10 = vsub.s32 32, %v5876_v42  ;;  %v5881_v24 = vsub.s32 4294967266, %v5876_v42  ;;  %v5681_v23 = vxor.u32 2147483648, %v5680_v54  ;;  %v5709_v6 = vor.u32 8388608, %v5708_v63 }
 0x5ff   : > { %v5556_v30 = vshll.u32 %v13017_v26, 30  ;;  %vm5733_vm8 = vcmp.lt.s32.totalorder %v12908_v38, 1  ;;  %v5878_v41 = vshll.u32 %v12972_v25, %v5876_v42  ;;  %vm5735_vm12 = vcmp.lt.s32.totalorder %v12908_v38, 3 }
 0x600   : > { %v5879_v13 = vshrl.u32 %v5861_v37, %v5877_v10  ;;  %v5882_v22 = vadd.s32 127, %v5881_v24  ;;  %v5682_v48 = vsel %vm5599_vm5, %v5681_v23, %v5680_v54  ;;  %v5738_v15 = vsel %vm5736_vm11, %v5726_v11, 2102212464 }
 0x601   : > { %v13029_v33 = vsub.s32 %v5553_v36, %v5556_v30  ;;  %v5741_v14 = vsel %vm5733_vm8, %v5720_v55, %v5723_v56  ;;  %v5685_v63 = vsel %vm12948_vm15, %v12653_v43, %v5682_v48  ;;  %v5743_v24 = vsel %vm5735_vm12, %v5726_v11, %v12968_v34 }
 0x602   : > { %v5880_v25 = vor.u32 %v5879_v13, %v5878_v41  ;;  %v5883_v10 = vshll.u32 %v5882_v22, 23  ;;  %8865 = vcosq.f32 %v5685_v63  ;;  %vm5734_vm5 = vcmp.lt.s32.totalorder %v12908_v38, 2 }
 0x603   : > { %v5559_v37 = vsub.s32 0, %v13029_v33  ;;  %v5737_v36 = vsel %vm5733_vm8, %v5717_v9, %v5720_v55  ;;  %8867 = vsinq.f32 %v5685_v63  ;;  %v5739_v46 = vsel %vm5735_vm12, %v5723_v56, %v5738_v15 }
 0x604   : > { %v5884_v5 = vor.u32 4788187, %v5883_v10  ;;  %v5745_v18 = vsel %vm5733_vm8, %v5723_v56, %v5726_v11  ;;  %v13049_v44 = vand.u32 3, %v5690_v3  ;;  %v5744_v39 = vsel %vm5734_vm5, %v5741_v14, %v5743_v24 }
 0x605   : > { %v8315_v34 = vmin.u32 %v5559_v37, %v13029_v33  ;;  %v5747_v20 = vsel %vm5735_vm12, %v12928_v45, %v12987_v35  ;;  %v5887_v54 = vcvt.s32.f32 %v5880_v25  ;;  %v5749_v9 = vshll.u32 %v5709_v6, 8 }
 0x606   : > { %v5885_v55 = vand.u32 2147483647, %v5884_v5  ;;  %v5748_v42 = vsel %vm5734_vm5, %v5745_v18, %v5747_v20  ;;  %v13062_v3 = vshll.u32 %v16303_v12, %v12718_v8  ;;  %v5898_v56 = vadd.s32 3, %v5894_v51 }
 0x607   : > { %v5561_v11 = vclz %v8315_v34  ;;  %v5740_v23 = vsel %vm5734_vm5, %v5737_v36, %v5739_v46  ;;  %v13066_v41 = vmul.u32.u64.low %v5749_v9, %v5748_v42  ;;  %v13067_v13 = vmul.u32.u64.high %v5749_v9, %v5748_v42, %v13066_v41 }
 0x608   : > { %v5888_v30 = vmul.f32 %v5887_v54, %v5885_v55  ;;  %v5181_v45 = vand.u32 2147483647, %v12496_v61  ;;  %v13072_v35 = vshrl.u32 %v16294_v58, %v12738_v1  ;;  %v13080_v51 = vor.u32 %v12769_v17, %v12765_v7 }
 0x609   : > { %v8316_v6 = vadd.s32 4294967294, %v5561_v11  ;;  %v13074_v22 = vmul.u32.u64.low %v5749_v9, %v5744_v39  ;;  %v13075_v48 = vmul.u32.u64.high %v5749_v9, %v5744_v39, %v13074_v22  ;;  %vm5495_vm11 = vcmp.lt.s32.totalorder %v12577_v53, 0 }
 0x60a   : > { %vm5696_vm15 = vcmp.eq.s32.totalorder %v13049_v44, 2  ;;  %v5889_v38 = vxor.u32 2147483648, %v5888_v30  ;;  %v5549_v15 = vadd.s32 %v12961_v0, %v12959_v32  ;;  %vm5693_vm4 = vcmp.eq.s32.totalorder %v13049_v44, 0 }
 0x60b   : > { %v13087_v14 = vand.u32 3, %v5898_v56  ;;  %vm8317_vm14 = vcmp.lt.s32.totalorder %v8316_v6, 0  ;;  %v5579_v63 = vsub.s32 4, %v13017_v26  ;;  %v5756_v25 = vmul.u32 %v5749_v9, %v5740_v23 }
 0x60c   : > { %vm5692_vm1 = vcmp.lt.s32.totalorder %v13049_v44, 2  ;;  %v5890_v7 = vsel %vm5807_vm6, %v5889_v38, %v5888_v30  ;;  %v5564_v17 = vsel %vm8317_vm14, 0, %v8316_v6  ;;  %v5188_v10 = vand.u32 8388607, %v5181_v45 }
 0x60d   : > { %v5198_v32 = vshll.u32 %v16300_v28, %v12633_v62  ;;  %vm5689_vm8 = vweird.f32 %v12653_v43  ;;  %v5893_v0 = vsel %vm12991_vm0, %v12703_v57, %v5890_v7  ;;  %v16670_v24 = vand.u32 2147483647, %v12577_v53 }
 0x60e   : > { %v5565_v36 = vsub.s32 32, %v5564_v17  ;;  %v5569_v5 = vsub.s32 4294967266, %v5564_v17  ;;  %vm5758_vm6 = vc.u32 %v13067_v13, %v13074_v22  ;;  %8869 = vcosq.f32 %v5893_v0 }
 0x60f   : > { %vm13103_vm12 = vcmp.le.f32.partialorder %v16670_v24, 0.7853982  ;;  %v5566_v46 = vshll.u32 %v13029_v33, %v5564_v17  ;;  %v5759_v18 = vadd.s32 1, %v13075_v48  ;;  %v5199_v19 = vshrl.u32 %v16293_v16, %v12667_v50  ;;  %v8866_v55 = vpop.eup %8865 }
 0x610   : > { %8871 = vsinq.f32 %v5893_v0  ;;  %v5567_v34 = vshrl.u32 %v5549_v15, %v5565_v36  ;;  %v5570_v39 = vadd.s32 127, %v5569_v5  ;;  %v5202_v20 = vshrl.u32 %v16431_v29, %v12667_v50  ;;  %v8868_v56 = vpop.eup %8867 }
 0x611   : > { %v5760_v54 = vsel %vm5758_vm6, %v5759_v18, %v13075_v48  ;;  %v5201_v42 = vshll.u32 %v16293_v16, %v12633_v62  ;;  %v5204_v33 = vshll.u32 %v16431_v29, %v12633_v62  ;;  %v5205_v9 = vshrl.u32 %v16432_v60, %v12667_v50 }
 0x612   : > { %v5697_v11 = vxor.u32 2147483648, %v8866_v55  ;;  %v5568_v23 = vor.u32 %v5567_v34, %v5566_v46  ;;  %v5571_v30 = vshll.u32 %v5570_v39, 23  ;;  %v5761_v41 = vadd.s32 %v5760_v54, %v5756_v25 }
 0x613   : > { %v5694_v6 = vxor.u32 2147483648, %v8868_v56  ;;  %v5200_v38 = vor.u32 %v5199_v19, %v5198_v32  ;;  %v5203_v15 = vor.u32 %v5202_v20, %v5201_v42  ;;  %v5206_v7 = vor.u32 %v5205_v9, %v5204_v33 }
 0x614   : > { %v5698_v48 = vsel %vm5696_vm15, %v5697_v11, %v8868_v56  ;;  %v5572_v17 = vor.u32 4788187, %v5571_v30  ;;  %v5580_v62 = vsel %vm5495_vm11, %v5579_v63, %v13017_v26  ;;  %v5762_v0 = vadd.s32 536870912, %v5761_v41 }
 0x615   : > { %v5695_v24 = vsel %vm5693_vm4, %v8866_v55, %v5694_v6  ;;  %v5575_v36 = vcvt.s32.f32 %v5568_v23  ;;  %v5189_v5 = vor.u32 8388608, %v5188_v10  ;;  %vm5213_vm0 = vcmp.lt.s32.totalorder %v12722_v59, 1 }
 0x616   : > { %v5699_v25 = vsel %vm5692_vm1, %v5695_v24, %v5698_v48  ;;  %v5573_v32 = vand.u32 2147483647, %v5572_v17  ;;  %v13132_v46 = vshrl.u32 %v5762_v0, 30  ;;  %vm5215_vm5 = vcmp.lt.s32.totalorder %v12722_v59, 3 }
 0x617   : > { %v5700_v18 = vsel %vm5689_vm8, nan, %v5699_v25  ;;  %v5582_v26 = vsel %vm13103_vm12, 0, %v5580_v62  ;;  %v5221_v63 = vsel %vm5213_vm0, %v5200_v38, %v5203_v15  ;;  %v5223_v10 = vsel %vm5215_vm5, %v5206_v7, %v12753_v40 }
 0x618   : > { %5975 = vmatprep.subr.mxu0 %v5700_v18  ;;  %v5576_v44 = vmul.f32 %v5575_v36, %v5573_v32  ;;  %v5764_v19 = vshll.u32 %v13132_v46, 30  ;;  %v5197_v34 = vshrl.u32 %v16300_v28, %v12667_v50  ;;  %vm5214_vm15 = vcmp.lt.s32.totalorder %v12722_v59, 2 }
 0x619   : > { %v5218_v43 = vsel %vm5216_vm3, %v5206_v7, 2102212464  ;;  %v5225_v39 = vsel %vm5213_vm0, %v5203_v15, %v5206_v7  ;;  %v5227_v40 = vsel %vm5215_vm5, %v12724_v47, %v12759_v49  ;;  %v5229_v20 = vshll.u32 %v5189_v5, 8 }
 0x61a   : > { %vm5424_vm4 = vcmp.lt.s32.totalorder %v12755_v4, 4  ;;  %v5577_v55 = vxor.u32 2147483648, %v5576_v44  ;;  %v13157_v54 = vsub.s32 %v5761_v41, %v5764_v19  ;;  %v5224_v50 = vsel %vm5214_vm15, %v5221_v63, %v5223_v10 }
 0x61b   : > { %v5228_v42 = vsel %vm5214_vm15, %v5225_v39, %v5227_v40  ;;  %v5420_v33 = vor.u32 %v13072_v35, %v13062_v3  ;;  %v5586_v9 = vadd.s32 3, %v5582_v26  ;;  %v8870_v47 = vpop.eup %8869  ;;  %v5217_v30 = vsel %vm5213_vm0, %v5197_v34, %v5200_v38 }
 0x61c   : > { %v13165_v56 = vmul.u32.u64.low %v5229_v20, %v5228_v42  ;;  %v13166_v11 = vmul.u32.u64.high %v5229_v20, %v5228_v42, %v13165_v56  ;;  %v5578_v49 = vsel %vm5495_vm11, %v5577_v55, %v5576_v44  ;;  %v5767_v23 = vsub.s32 0, %v13157_v54 }
 0x61d   : > { %v5219_v41 = vsel %vm5215_vm5, %v5203_v15, %v5218_v43  ;;  %v8872_v6 = vpop.eup %8871  ;;  %v5905_v7 = vxor.u32 2147483648, %v8870_v47  ;;  %v5581_v3 = vsel %vm13103_vm12, %v12577_v53, %v5578_v49  ;;  %vm5904_vm3 = vcmp.eq.s32.totalorder %v13087_v14, 2 }
 0x61e   : > { %v13178_v35 = vmul.u32.u64.low %v5229_v20, %v5224_v50  ;;  %v13179_v48 = vmul.u32.u64.high %v5229_v20, %v5224_v50, %v13178_v35  ;;  %v5902_v17 = vxor.u32 2147483648, %v8872_v6  ;;  %8873 = vcosq.f32 %v5581_v3 }
 0x61f   : > { %v8323_v62 = vmin.u32 %v5767_v23, %v13157_v54  ;;  %vm5901_vm11 = vcmp.eq.s32.totalorder %v13087_v14, 0  ;;  %v5906_v38 = vsel %vm5904_vm3, %v5905_v7, %v8872_v6  ;;  %8875 = vsinq.f32 %v5581_v3 }
 0x620   : > { %v5220_v15 = vsel %vm5214_vm15, %v5217_v30, %v5219_v41  ;;  %vm5900_vm14 = vcmp.lt.s32.totalorder %v13087_v14, 2  ;;  %v5903_v37 = vsel %vm5901_vm11, %v8870_v47, %v5902_v17  ;;  %vm5238_vm1 = vc.u32 %v13166_v11, %v13178_v35 }
 0x621   : > { %v5769_v0 = vclz %v8323_v62  ;;  %vm5897_vm8 = vweird.f32 %v12703_v57  ;;  %v5907_v24 = vsel %vm5900_vm14, %v5903_v37, %v5906_v38  ;;  %v13191_v36 = vand.u32 3, %v5586_v9 }
 0x622   : > { %v5239_v5 = vadd.s32 1, %v13179_v48  ;;  %v5908_v25 = vsel %vm5897_vm8, nan, %v5907_v24  ;;  %v5236_v18 = vmul.u32 %v5229_v20, %v5220_v15  ;;  %v5389_v59 = vand.u32 2147483647, %v12574_v27 }
 0x623   : > { %v8324_v32 = vadd.s32 4294967294, %v5769_v0  ;;  %v5316_v14 = vor.u32 %v12743_v2, %v12735_v52  ;;  %v5430_v26 = vsel %vm5424_vm4, %v13080_v51, 920167782  ;;  %6064 = vmatprep.subr.mxu1 %v5908_v25  ;;  %v5407_v63 = vshrl.u32 %v16293_v16, %v12738_v1 }
 0x624   : > { %v5240_v57 = vsel %vm5238_vm1, %v5239_v5, %v13179_v48  ;;  %v5434_v10 = vsel %vm5424_vm4, %v5420_v33, 1326507024  ;;  %v5757_v44 = vadd.s32 %v13074_v22, %v13067_v13  ;;  %vm5592_vm6 = vcmp.eq.s32.totalorder %v13191_v36, 2 }
 0x625   : > { %vm8325_vm12 = vcmp.lt.s32.totalorder %v8324_v32, 0  ;;  %v5241_v19 = vadd.s32 %v5240_v57, %v5236_v18  ;;  %v5406_v43 = vshll.u32 %v16300_v28, %v12718_v8  ;;  %v5409_v39 = vshll.u32 %v16293_v16, %v12718_v8 }
 0x626   : > { %v5772_v34 = vsel %vm8325_vm12, 0, %v8324_v32  ;;  %v5410_v40 = vshrl.u32 %v16431_v29, %v12738_v1  ;;  %vm5589_vm0 = vcmp.eq.s32.totalorder %v13191_v36, 0  ;;  %v5396_v13 = vand.u32 8388607, %v5389_v59 }
 0x627   : > { %v5773_v20 = vsub.s32 32, %v5772_v34  ;;  %v5777_v55 = vsub.s32 4294967266, %v5772_v34  ;;  %v5242_v50 = vadd.s32 536870912, %v5241_v19  ;;  %vm5588_vm5 = vcmp.lt.s32.totalorder %v13191_v36, 2 }
 0x628   : > { %v5408_v22 = vor.u32 %v5407_v63, %v5406_v43  ;;  %v5411_v42 = vor.u32 %v5410_v40, %v5409_v39  ;;  %v5412_v33 = vshll.u32 %v16431_v29, %v12718_v8  ;;  %v5413_v9 = vshrl.u32 %v16432_v60, %v12738_v1 }
 0x629   : > { %vm5703_vm15 = vcmp.lt.s32.totalorder %v12637_v31, 0  ;;  %vm5585_vm3 = vweird.f32 %v12577_v53  ;;  %v5774_v56 = vshll.u32 %v13157_v54, %v5772_v34  ;;  %v5775_v47 = vshrl.u32 %v5757_v44, %v5773_v20 }
 0x62a   : > { %v5778_v49 = vadd.s32 127, %v5777_v55  ;;  %v13225_v23 = vshrl.u32 %v5242_v50, 30  ;;  %v5787_v30 = vsub.s32 4, %v13132_v46  ;;  %v5405_v41 = vshrl.u32 %v16300_v28, %v12738_v1 }
 0x62b   : > { %v5414_v6 = vor.u32 %v5413_v9, %v5412_v33  ;;  %vm5421_vm11 = vcmp.lt.s32.totalorder %v12755_v4, 1  ;;  %vm5320_vm14 = vcmp.lt.s32.totalorder %v12729_v21, 4  ;;  %v5776_v8 = vor.u32 %v5775_v47, %v5774_v56  ;;  %v8874_v54 = vpop.eup %8873  ;;  %v16673_v56 = vld [vmem:[#allocation65_spill] sm:$0xff]  ;;  %v16674_v47 = vld [vmem:[#allocation64_spill] sm:$0xff] }
 0x62c   : > { %v5779_v7 = vshll.u32 %v5778_v49, 23  ;;  %v5244_v3 = vshll.u32 %v13225_v23, 30  ;;  %vm5423_vm1 = vcmp.lt.s32.totalorder %v12755_v4, 3  ;;  %v5397_v48 = vor.u32 8388608, %v5396_v13  ;;  %v8876_v38 = vpop.eup %8875  ;;  %v16676_v49 = vld [vmem:[#allocation57_spill] sm:$0xff] }
 0x62d   : > { %v5429_v17 = vsel %vm5421_vm11, %v5408_v22, %v5411_v42  ;;  %v5431_v62 = vsel %vm5423_vm1, %v5414_v6, %v5430_v26  ;;  %v5435_v1 = vsel %vm5423_vm1, %v13080_v51, %v5434_v10  ;;  %v5593_v15 = vxor.u32 2147483648, %v8874_v54 }
 0x62e   : > { %v5780_v37 = vor.u32 4788187, %v5779_v7  ;;  %v13241_v0 = vsub.s32 %v5241_v19, %v5244_v3  ;;  %v5433_v24 = vsel %vm5421_vm11, %v5411_v42, %v5414_v6  ;;  %v5590_v5 = vxor.u32 2147483648, %v8876_v38  ;;  %v16687_v7 = vld [vmem:[#allocation69_spill] sm:$0xff] }
 0x62f   : > { %vm5422_vm8 = vcmp.lt.s32.totalorder %v12755_v4, 2  ;;  %v5425_v25 = vsel %vm5421_vm11, %v5405_v41, %v5408_v22  ;;  %v5426_v32 = vsel %vm5424_vm4, %v5414_v6, 2102212464  ;;  %v5594_v51 = vsel %vm5592_vm6, %v5593_v15, %v8876_v38  ;;  %v16677_v41 = vld [vmem:[#allocation70_spill] sm:$0xff]  ;;  %v16682_v38 = vld [vmem:[#allocation25_spill] sm:$0xff] }
 0x630   : > { %v5781_v18 = vand.u32 2147483647, %v5780_v37  ;;  %v5783_v26 = vcvt.s32.f32 %v5776_v8  ;;  %v5247_v57 = vsub.s32 0, %v13241_v0  ;;  %v5591_v63 = vsel %vm5589_vm0, %v8874_v54, %v5590_v5  ;;  %v16683_v37 = vld [vmem:[#allocation54_spill] sm:$0xff] }
 0x631   : > { %v5432_v10 = vsel %vm5422_vm8, %v5429_v17, %v5431_v62  ;;  %v5436_v44 = vsel %vm5422_vm8, %v5433_v24, %v5435_v1  ;;  %v5437_v19 = vshll.u32 %v5397_v48, 8  ;;  %v5595_v34 = vsel %vm5588_vm5, %v5591_v63, %v5594_v51  ;;  %v16681_v48 = vld [vmem:[#allocation6_spill] sm:$0xff] }
 0x632   : > { %v5784_v43 = vmul.f32 %v5783_v26, %v5781_v18  ;;  %v8303_v39 = vmin.u32 %v5247_v57, %v13241_v0  ;;  %v5427_v40 = vsel %vm5423_vm1, %v5411_v42, %v5426_v32  ;;  %v5596_v20 = vsel %vm5585_vm3, nan, %v5595_v34 }
 0x633   : > { %v5788_v55 = vsel %vm5703_vm15, %v5787_v30, %v13132_v46  ;;  %v13269_v50 = vmul.u32.u64.low %v5437_v19, %v5436_v44  ;;  %v13270_v13 = vmul.u32.u64.high %v5437_v19, %v5436_v44, %v13269_v50  ;;  %5976 = vmatpush1.msra.mxu0 %v5596_v20  ;;  %v16675_v42 = vor.u32 %v16673_v56, %v16674_v47  ;;  %v16686_v47 = vld [vmem:[#allocation66_spill] sm:$0xff] }
 0x634   : > { %v5785_v22 = vxor.u32 2147483648, %v5784_v43  ;;  %v5249_v36 = vclz %v8303_v39  ;;  %v13272_v33 = vmul.u32.u64.low %v5437_v19, %v5432_v10  ;;  %v13273_v9 = vmul.u32.u64.high %v5437_v19, %v5432_v10, %v13272_v33 }
 0x635   : > { %v5122_v53 = vsel %vm5112_vm13, %v16675_v42, 1326507024  ;;  %v13284_v46 = vsel %vm5320_vm14, %v16677_v41, 920167782  ;;  %v13291_v30 = vsel %vm5320_vm14, %v5316_v14, 1326507024  ;;  %v5428_v6 = vsel %vm5422_vm8, %v5425_v25, %v5427_v40 }
 0x636   : > { %v16678_v8 = vand.u32 2147483647, %v12637_v31  ;;  %v5786_v3 = vsel %vm5703_vm15, %v5785_v22, %v5784_v43  ;;  %v8304_v54 = vadd.s32 4294967294, %v5249_v36  ;;  %v5077_v17 = vand.u32 2147483647, %v16681_v48 }
 0x637   : > { %vm5183_vm12 = vcmp.lt.s32.totalorder %v12496_v61, 0  ;;  %v5237_v4 = vadd.s32 %v13178_v35, %v13166_v11  ;;  %vm5446_vm6 = vc.u32 %v13270_v13, %v13272_v33  ;;  %v5444_v14 = vmul.u32 %v5437_v19, %v5428_v6 }
 0x638   : > { %vm13297_vm4 = vcmp.le.f32.partialorder %v16678_v8, 0.7853982  ;;  %vm8305_vm0 = vcmp.lt.s32.totalorder %v8304_v54, 0  ;;  %v5447_v62 = vadd.s32 1, %v13273_v9  ;;  %v5094_v15 = vshll.u32 %v16300_v28, %v16682_v38 }
 0x639   : > { %v5789_v52 = vsel %vm13297_vm4, %v12637_v31, %v5786_v3  ;;  %v5790_v2 = vsel %vm13297_vm4, 0, %v5788_v55  ;;  %v5252_v1 = vsel %vm8305_vm0, 0, %v8304_v54  ;;  %v5095_v24 = vshrl.u32 %v16293_v16, %v16683_v37 }
 0x63a   : > { %8877 = vcosq.f32 %v5789_v52  ;;  %v5253_v5 = vsub.s32 32, %v5252_v1  ;;  %v5257_v25 = vsub.s32 4294967266, %v5252_v1  ;;  %v5448_v11 = vsel %vm5446_vm6, %v5447_v62, %v13273_v9 }
 0x63b   : > { %8879 = vsinq.f32 %v5789_v52  ;;  %v5084_v35 = vand.u32 8388607, %v5077_v17  ;;  %v5254_v32 = vshll.u32 %v13241_v0, %v5252_v1  ;;  %v5267_v51 = vsub.s32 4, %v13225_v23 }
 0x63c   : > { %v5449_v18 = vadd.s32 %v5448_v11, %v5444_v14  ;;  %v5096_v26 = vor.u32 %v5095_v24, %v5094_v15  ;;  %vm13326_vm5 = vcmp.le.f32.partialorder %v5181_v45, 0.7853982  ;;  %v5255_v63 = vshrl.u32 %v5237_v4, %v5253_v5 }
 0x63d   : > { %v5258_v10 = vadd.s32 127, %v5257_v25  ;;  %v5097_v44 = vshll.u32 %v16293_v16, %v16682_v38  ;;  %v5098_v19 = vshrl.u32 %v16431_v29, %v16683_v37  ;;  %v5794_v34 = vadd.s32 3, %v5790_v2 }
 0x63e   : > { %v5450_v0 = vadd.s32 536870912, %v5449_v18  ;;  %v5100_v43 = vshll.u32 %v16431_v29, %v16682_v38  ;;  %v5101_v39 = vshrl.u32 %v16432_v60, %v16683_v37  ;;  %v5256_v45 = vor.u32 %v5255_v63, %v5254_v32 }
 0x63f   : > { %v5259_v40 = vshll.u32 %v5258_v10, 23  ;;  %v5085_v20 = vor.u32 8388608, %v5084_v35  ;;  %v5099_v55 = vor.u32 %v5098_v19, %v5097_v44  ;;  %vm5109_vm15 = vcmp.lt.s32.totalorder %v16676_v49, 1 }
 0x640   : > { %v13338_v50 = vshrl.u32 %v5450_v0, 30  ;;  %v5102_v22 = vor.u32 %v5101_v39, %v5100_v43  ;;  %vm5111_vm3 = vcmp.lt.s32.totalorder %v16676_v49, 3  ;;  %v5268_v9 = vsel %vm5183_vm12, %v5267_v51, %v13225_v23 }
 0x641   : > { %v5260_v36 = vor.u32 4788187, %v5259_v40  ;;  %v5117_v56 = vsel %vm5109_vm15, %v5096_v26, %v5099_v55  ;;  %v5123_v42 = vsel %vm5111_vm3, %v16686_v47, %v5122_v53  ;;  %v5263_v6 = vcvt.s32.f32 %v5256_v45 }
 0x642   : > { %v5452_v8 = vshll.u32 %v13338_v50, 30  ;;  %vm5110_vm11 = vcmp.lt.s32.totalorder %v16676_v49, 2  ;;  %v5119_v3 = vsel %vm5111_vm3, %v5102_v22, %v16687_v7  ;;  %vm5793_vm1 = vweird.f32 %v12637_v31 }
 0x643   : > { %v5261_v54 = vand.u32 2147483647, %v5260_v36  ;;  %v5120_v23 = vsel %vm5110_vm11, %v5117_v56, %v5119_v3  ;;  %v5121_v52 = vsel %vm5109_vm15, %v5099_v55, %v5102_v22  ;;  %v5125_v2 = vshll.u32 %v5085_v20, 8 }
 0x644   : > { %v5795_v53 = vand.u32 3, %v5794_v34  ;;  %v13360_v4 = vsub.s32 %v5449_v18, %v5452_v8  ;;  %v5114_v14 = vsel %vm5112_vm13, %v5102_v22, 2102212464  ;;  %v5124_v62 = vsel %vm5110_vm11, %v5121_v52, %v5123_v42  ;;  %v16691_v8 = vld [vmem:[#allocation26_spill] sm:$0xff] }
 0x645   : > { %v5264_v1 = vmul.f32 %v5263_v6, %v5261_v54  ;;  %v5093_v38 = vshrl.u32 %v16300_v28, %v16683_v37  ;;  %v13368_v15 = vmul.u32.u64.low %v5125_v2, %v5124_v62  ;;  %v13369_v24 = vmul.u32.u64.high %v5125_v2, %v5124_v62, %v13368_v15 }
 0x646   : > { %v5270_v25 = vsel %vm13326_vm5, 0, %v5268_v9  ;;  %v5455_v11 = vsub.s32 0, %v13360_v4  ;;  %v13374_v35 = vmul.u32.u64.low %v5125_v2, %v5120_v23  ;;  %v13375_v32 = vmul.u32.u64.high %v5125_v2, %v5120_v23, %v13374_v35 }
 0x647   : > { %v8878_v5 = vpop.eup %8877  ;;  %v5265_v63 = vxor.u32 2147483648, %v5264_v1  ;;  %v5113_v10 = vsel %vm5109_vm15, %v5093_v38, %v5096_v26  ;;  %v5115_v37 = vsel %vm5111_vm3, %v5099_v55, %v5114_v14  ;;  %vm5796_vm13 = vcmp.lt.s32.totalorder %v5795_v53, 2  ;;  %v16688_v55 = vld [vmem:[#allocation49_spill] sm:$0xff] }
 0x648   : > { %v8880_v51 = vpop.eup %8879  ;;  %v5801_v18 = vxor.u32 2147483648, %v8878_v5  ;;  %vm5800_vm8 = vcmp.eq.s32.totalorder %v5795_v53, 2  ;;  %v8311_v19 = vmin.u32 %v5455_v11, %v13360_v4  ;;  %vm5797_vm4 = vcmp.eq.s32.totalorder %v5795_v53, 0 }
 0x649   : > { %v5798_v44 = vxor.u32 2147483648, %v8880_v51  ;;  %v5266_v0 = vsel %vm5183_vm12, %v5265_v63, %v5264_v1  ;;  %v5274_v43 = vadd.s32 3, %v5270_v25  ;;  %v5116_v40 = vsel %vm5110_vm11, %v5113_v10, %v5115_v37 }
 0x64a   : > { %v5802_v34 = vsel %vm5800_vm8, %v5801_v18, %v8880_v51  ;;  %v5269_v45 = vsel %vm13326_vm5, %v12496_v61, %v5266_v0  ;;  %v5457_v26 = vclz %v8311_v19  ;;  %vm5134_vm6 = vc.u32 %v13369_v24, %v13374_v35 }
 0x64b   : > { %v5799_v39 = vsel %vm5797_vm4, %v8878_v5, %v5798_v44  ;;  %8881 = vcosq.f32 %v5269_v45  ;;  %v5285_v22 = vand.u32 2147483647, %v16688_v55  ;;  %v5135_v56 = vadd.s32 1, %v13375_v32 }
 0x64c   : > { %v5803_v20 = vsel %vm5796_vm13, %v5799_v39, %v5802_v34  ;;  %8883 = vsinq.f32 %v5269_v45  ;;  %v8312_v9 = vadd.s32 4294967294, %v5457_v26  ;;  %v13396_v57 = vand.u32 3, %v5274_v43 }
 0x64d   : > { %v5804_v36 = vsel %vm5793_vm1, nan, %v5803_v20  ;;  %vm13400_vm12 = vcmp.le.f32.partialorder %v5389_v59, 0.7853982  ;;  %vm5391_vm0 = vcmp.lt.s32.totalorder %v12574_v27, 0  ;;  %v5445_v47 = vadd.s32 %v13272_v33, %v13270_v13  ;;  %v16692_v13 = vld [vmem:[#allocation62_spill] sm:$0xff] }
 0x64e   : > { %6065 = vmatpush1.msra.mxu1 %v5804_v36  ;;  %v5132_v31 = vmul.u32 %v5125_v2, %v5116_v40  ;;  %vm8313_vm5 = vcmp.lt.s32.totalorder %v8312_v9, 0  ;;  %v5475_v42 = vsub.s32 4, %v13338_v50  ;;  %v5136_v6 = vsel %vm5134_vm6, %v5135_v56, %v13375_v32 }
 0x64f   : > { %v5303_v7 = vshrl.u32 %v16293_v16, %v16691_v8  ;;  %v5460_v3 = vsel %vm8313_vm5, 0, %v8312_v9  ;;  %v5292_v59 = vand.u32 8388607, %v5285_v22  ;;  %v5306_v23 = vshrl.u32 %v16431_v29, %v16691_v8 }
 0x650   : > { %v5137_v54 = vadd.s32 %v5136_v6, %v5132_v31  ;;  %v5461_v52 = vsub.s32 32, %v5460_v3  ;;  %v5465_v53 = vsub.s32 4294967266, %v5460_v3  ;;  %v5302_v33 = vshll.u32 %v16300_v28, %v16692_v13 }
 0x651   : > { %v5305_v2 = vshll.u32 %v16293_v16, %v16692_v13  ;;  %v5462_v14 = vshll.u32 %v13360_v4, %v5460_v3  ;;  %v5308_v1 = vshll.u32 %v16431_v29, %v16692_v13  ;;  %v5309_v38 = vshrl.u32 %v16432_v60, %v16691_v8 }
 0x652   : > { %v5138_v62 = vadd.s32 536870912, %v5137_v54  ;;  %v5463_v15 = vshrl.u32 %v5445_v47, %v5461_v52  ;;  %v5466_v5 = vadd.s32 127, %v5465_v53  ;;  %v5304_v25 = vor.u32 %v5303_v7, %v5302_v33 }
 0x653   : > { %v5307_v11 = vor.u32 %v5306_v23, %v5305_v2  ;;  %vm5277_vm15 = vcmp.eq.s32.totalorder %v13396_v57, 0  ;;  %v5476_v32 = vsel %vm5391_vm0, %v5475_v42, %v13338_v50  ;;  %v5310_v4 = vor.u32 %v5309_v38, %v5308_v1 }
 0x654   : > { %v13428_v51 = vshrl.u32 %v5138_v62, 30  ;;  %vm5276_vm3 = vcmp.lt.s32.totalorder %v13396_v57, 2  ;;  %v5464_v18 = vor.u32 %v5463_v15, %v5462_v14  ;;  %v5467_v63 = vshll.u32 %v5466_v5, 23  ;;  %v16693_v62 = vld [vmem:[#allocation58_spill] sm:$0xff]  ;;  %v16694_v5 = vld [vmem:[#allocation63_spill] sm:$0xff] }
 0x655   : > { %v5293_v10 = vor.u32 8388608, %v5292_v59  ;;  %vm5319_vm11 = vcmp.lt.s32.totalorder %v12729_v21, 3  ;;  %vm5280_vm1 = vcmp.eq.s32.totalorder %v13396_v57, 2  ;;  %vm5317_vm13 = vcmp.lt.s32.totalorder %v12729_v21, 1 }
 0x656   : > { %v5140_v37 = vshll.u32 %v13428_v51, 30  ;;  %v5331_v50 = vsel %vm5319_vm11, %v16677_v41, %v13291_v30  ;;  %v5468_v44 = vor.u32 4788187, %v5467_v63  ;;  %v5478_v19 = vsel %vm13400_vm12, 0, %v5476_v32  ;;  %v16696_v32 = vld [vmem:[#allocation68_spill] sm:$0xff] }
 0x657   : > { %v5325_v34 = vsel %vm5317_vm13, %v5304_v25, %v5307_v11  ;;  %v5327_v0 = vsel %vm5319_vm11, %v5310_v4, %v13284_v46  ;;  %vm5318_vm8 = vcmp.lt.s32.totalorder %v12729_v21, 2  ;;  %v5322_v39 = vsel %vm5320_vm14, %v5310_v4, 2102212464 }
 0x658   : > { %v13446_v43 = vsub.s32 %v5137_v54, %v5140_v37  ;;  %v5329_v41 = vsel %vm5317_vm13, %v5307_v11, %v5310_v4  ;;  %v8882_v30 = vpop.eup %8881  ;;  %v5469_v45 = vand.u32 2147483647, %v5468_v44  ;;  %v5471_v26 = vcvt.s32.f32 %v5464_v18  ;;  %v16697_v18 = vld [vmem:[#allocation51_spill] sm:$0xff] }
 0x659   : > { %v5332_v40 = vsel %vm5318_vm8, %v5329_v41, %v5331_v50  ;;  %v5333_v20 = vshll.u32 %v5293_v10, 8  ;;  %v8884_v36 = vpop.eup %8883  ;;  %v5281_v9 = vxor.u32 2147483648, %v8882_v30  ;;  %v5301_v56 = vshrl.u32 %v16300_v28, %v16691_v8 }
 0x65a   : > { %v5143_v46 = vsub.s32 0, %v13446_v43  ;;  %v5328_v47 = vsel %vm5318_vm8, %v5325_v34, %v5327_v0  ;;  %v5278_v31 = vxor.u32 2147483648, %v8884_v36  ;;  %v5472_v42 = vmul.f32 %v5471_v26, %v5469_v45  ;;  %v16699_v26 = vld [vmem:[#allocation33_spill] sm:$0xff] }
 0x65b   : > { %v13460_v6 = vmul.u32.u64.low %v5333_v20, %v5332_v40  ;;  %v13461_v7 = vmul.u32.u64.high %v5333_v20, %v5332_v40, %v13460_v6  ;;  %v5282_v3 = vsel %vm5280_vm1, %v5281_v9, %v8884_v36  ;;  %v5321_v59 = vsel %vm5317_vm13, %v5301_v56, %v5304_v25  ;;  %v16695_v25 = vld [vmem:[#allocation67_spill] sm:$0xff] }
 0x65c   : > { %v8299_v54 = vmin.u32 %v5143_v46, %v13446_v43  ;;  %v5323_v23 = vsel %vm5319_vm11, %v5307_v11, %v5322_v39  ;;  %v5279_v8 = vsel %vm5277_vm15, %v8882_v30, %v5278_v31  ;;  %v5473_v52 = vxor.u32 2147483648, %v5472_v42 }
 0x65d   : > { %v13472_v53 = vmul.u32.u64.low %v5333_v20, %v5328_v47  ;;  %v13473_v13 = vmul.u32.u64.high %v5333_v20, %v5328_v47, %v13472_v53  ;;  %vm5273_vm14 = vweird.f32 %v12496_v61  ;;  %v5283_v33 = vsel %vm5276_vm3, %v5279_v8, %v5282_v3  ;;  %v16702_v8 = vld [vmem:[#allocation20_spill] sm:$0xff] }
 0x65e   : > { %v5482_v2 = vadd.s32 3, %v5478_v19  ;;  %v5145_v14 = vclz %v8299_v54  ;;  %vm5008_vm4 = vcmp.lt.s32.totalorder %v16693_v62, 4  ;;  %v5284_v1 = vsel %vm5273_vm14, nan, %v5283_v33  ;;  %v16698_v19 = vld [vmem:[#allocation27_spill] sm:$0xff] }
 0x65f   : > { %v5474_v38 = vsel %vm5391_vm0, %v5473_v52, %v5472_v42  ;;  %v5324_v15 = vsel %vm5318_vm8, %v5321_v59, %v5323_v23  ;;  %v5004_v11 = vor.u32 %v16695_v25, %v16694_v5  ;;  %5977 = vmatprep.subr.mxu0 %v5284_v1  ;;  %vm5342_vm6 = vc.u32 %v13461_v7, %v13472_v53  ;;  %v16704_v33 = vld [vmem:[#allocation55_spill] sm:$0xff] }
 0x660   : > { %v5477_v61 = vsel %vm13400_vm12, %v12574_v27, %v5474_v38  ;;  %v8300_v57 = vadd.s32 4294967294, %v5145_v14  ;;  %v13494_v4 = vsel %vm5008_vm4, %v16696_v32, 920167782  ;;  %v5343_v21 = vadd.s32 1, %v13473_v13  ;;  %v16705_v38 = vld [vmem:[#allocation60_spill] sm:$0xff] }
 0x661   : > { %8885 = vcosq.f32 %v5477_v61  ;;  %v4765_v63 = vand.u32 2147483647, %v16697_v18  ;;  %vm5079_vm0 = vcmp.lt.s32.totalorder %v16681_v48, 0  ;;  %v13499_v10 = vand.u32 3, %v5482_v2 }
 0x662   : > { %8887 = vsinq.f32 %v5477_v61  ;;  %vm8301_vm12 = vcmp.lt.s32.totalorder %v8300_v57, 0  ;;  %v5340_v49 = vmul.u32 %v5333_v20, %v5324_v15  ;;  %v5133_v37 = vadd.s32 %v13374_v35, %v13369_v24 }
 0x663   : > { %v5148_v50 = vsel %vm8301_vm12, 0, %v8300_v57  ;;  %v5344_v44 = vsel %vm5342_vm6, %v5343_v21, %v13473_v13  ;;  %v4783_v34 = vshrl.u32 %v16293_v16, %v16698_v19  ;;  %v5163_v41 = vsub.s32 4, %v13428_v51 }
 0x664   : > { %v5149_v0 = vsub.s32 32, %v5148_v50  ;;  %v5153_v39 = vsub.s32 4294967266, %v5148_v50  ;;  %v5345_v30 = vadd.s32 %v5344_v44, %v5340_v49  ;;  %v4772_v45 = vand.u32 8388607, %v4765_v63 }
 0x665   : > { %v4782_v40 = vshll.u32 %v16300_v28, %v16699_v26  ;;  %v4785_v24 = vshll.u32 %v16293_v16, %v16699_v26  ;;  %v4786_v35 = vshrl.u32 %v16431_v29, %v16698_v19  ;;  %v5150_v20 = vshll.u32 %v13446_v43, %v5148_v50 }
 0x666   : > { %v5151_v36 = vshrl.u32 %v5133_v37, %v5149_v0  ;;  %v5154_v9 = vadd.s32 127, %v5153_v39  ;;  %v5346_v46 = vadd.s32 536870912, %v5345_v30  ;;  %v4788_v31 = vshll.u32 %v16431_v29, %v16699_v26 }
 0x667   : > { %v4784_v56 = vor.u32 %v4783_v34, %v4782_v40  ;;  %v4787_v47 = vor.u32 %v4786_v35, %v4785_v24  ;;  %v4789_v42 = vshrl.u32 %v16432_v60, %v16698_v19  ;;  %vm13522_vm5 = vcmp.le.f32.partialorder %v5077_v17, 0.7853982  ;;  %v16703_v17 = vld [vmem:[#allocation61_spill] sm:$0xff] }
 0x668   : > { %v5152_v3 = vor.u32 %v5151_v36, %v5150_v20  ;;  %v5155_v54 = vshll.u32 %v5154_v9, 23  ;;  %v13526_v43 = vshrl.u32 %v5346_v46, 30  ;;  %vm5488_vm15 = vcmp.eq.s32.totalorder %v13499_v10, 2 }
 0x669   : > { %v4773_v59 = vor.u32 8388608, %v4772_v45  ;;  %v4790_v23 = vor.u32 %v4789_v42, %v4788_v31  ;;  %vm4799_vm3 = vcmp.lt.s32.totalorder %v16702_v8, 3  ;;  %vm5484_vm11 = vcmp.lt.s32.totalorder %v13499_v10, 2 }
 0x66a   : > { %v5156_v52 = vor.u32 4788187, %v5155_v54  ;;  %v5348_v13 = vshll.u32 %v13526_v43, 30  ;;  %vm4797_vm1 = vcmp.lt.s32.totalorder %v16702_v8, 1  ;;  %v4811_v2 = vsel %vm4799_vm3, %v16704_v33, %v16703_v17 }
 0x66b   : > { %v5164_v14 = vsel %vm5079_vm0, %v5163_v41, %v13428_v51  ;;  %v4805_v1 = vsel %vm4797_vm1, %v4784_v56, %v4787_v47  ;;  %v4807_v15 = vsel %vm4799_vm3, %v4790_v23, %v16705_v38  ;;  %v4809_v61 = vsel %vm4797_vm1, %v4787_v47, %v4790_v23 }
 0x66c   : > { %v5157_v57 = vand.u32 2147483647, %v5156_v52  ;;  %v5159_v21 = vcvt.s32.f32 %v5152_v3  ;;  %v13547_v49 = vsub.s32 %v5345_v30, %v5348_v13  ;;  %vm4798_vm13 = vcmp.lt.s32.totalorder %v16702_v8, 2 }
 0x66d   : > { %v4781_v37 = vshrl.u32 %v16300_v28, %v16698_v19  ;;  %v4802_v51 = vsel %vm4800_vm2, %v4790_v23, 2102212464  ;;  %v4812_v50 = vsel %vm4798_vm13, %v4809_v61, %v4811_v2  ;;  %v4813_v44 = vshll.u32 %v4773_v59, 8 }
 0x66e   : > { %v8886_v34 = vpop.eup %8885  ;;  %v5160_v0 = vmul.f32 %v5159_v21, %v5157_v57  ;;  %v5166_v39 = vsel %vm13522_vm5, 0, %v5164_v14  ;;  %v5351_v41 = vsub.s32 0, %v13547_v49  ;;  %v4808_v30 = vsel %vm4798_vm13, %v4805_v1, %v4807_v15  ;;  %v16709_v1 = vld [vmem:[#allocation59_spill] sm:$0xff] }
 0x66f   : > { %v8888_v45 = vpop.eup %8887  ;;  %v5489_v26 = vxor.u32 2147483648, %v8886_v34  ;;  %v4801_v19 = vsel %vm4797_vm1, %v4781_v37, %v4784_v56  ;;  %v13563_v40 = vmul.u32.u64.low %v4813_v44, %v4812_v50  ;;  %v13564_v24 = vmul.u32.u64.high %v4813_v44, %v4812_v50, %v13563_v40  ;;  %v16710_v37 = vld [vmem:[#allocation53_spill] sm:$0xff] }
 0x670   : > { %v5486_v35 = vxor.u32 2147483648, %v8888_v45  ;;  %v5161_v20 = vxor.u32 2147483648, %v5160_v0  ;;  %v8307_v36 = vmin.u32 %v5351_v41, %v13547_v49  ;;  %v4803_v9 = vsel %vm4799_vm3, %v4787_v47, %v4802_v51 }
 0x671   : > { %vm5485_vm2 = vcmp.eq.s32.totalorder %v13499_v10, 0  ;;  %v5490_v46 = vsel %vm5488_vm15, %v5489_v26, %v8888_v45  ;;  %v13572_v31 = vmul.u32.u64.low %v4813_v44, %v4808_v30  ;;  %v13573_v42 = vmul.u32.u64.high %v4813_v44, %v4808_v30, %v13572_v31  ;;  %v16706_v10 = vld [vmem:[#allocation35_spill] sm:$0xff] }
 0x672   : > { %v5487_v56 = vsel %vm5485_vm2, %v8886_v34, %v5486_v35  ;;  %v5162_v3 = vsel %vm5079_vm0, %v5161_v20, %v5160_v0  ;;  %v5170_v54 = vadd.s32 3, %v5166_v39  ;;  %v5353_v59 = vclz %v8307_v36  ;;  %v16711_v36 = vld [vmem:[#allocation18_spill] sm:$0xff] }
 0x673   : > { %vm5287_vm8 = vcmp.lt.s32.totalorder %v16688_v55, 0  ;;  %vm5481_vm14 = vweird.f32 %v12574_v27  ;;  %v5491_v47 = vsel %vm5484_vm11, %v5487_v56, %v5490_v46  ;;  %v5165_v23 = vsel %vm13522_vm5, %v16681_v48, %v5162_v3 }
 0x674   : > { %v4804_v52 = vsel %vm4798_vm13, %v4801_v19, %v4803_v9  ;;  %v5018_v13 = vsel %vm5008_vm4, %v5004_v11, 1326507024  ;;  %v5492_v17 = vsel %vm5481_vm14, nan, %v5491_v47  ;;  %8889 = vcosq.f32 %v5165_v23 }
 0x675   : > { %v8308_v33 = vadd.s32 4294967294, %v5353_v59  ;;  %6066 = vmatprep.subr.mxu1 %v5492_v17  ;;  %8891 = vsinq.f32 %v5165_v23  ;;  %vm4822_vm6 = vc.u32 %v13564_v24, %v13572_v31  ;;  %v4823_v27 = vadd.s32 1, %v13573_v42 }
 0x676   : > { %v4973_v6 = vand.u32 2147483647, %v16706_v10  ;;  %v13596_v8 = vand.u32 3, %v5170_v54  ;;  %vm13600_vm0 = vcmp.le.f32.partialorder %v5285_v22, 0.7853982  ;;  %v4820_v25 = vmul.u32 %v4813_v44, %v4804_v52 }
 0x677   : > { %vm8309_vm12 = vcmp.lt.s32.totalorder %v8308_v33, 0  ;;  %v5341_v11 = vadd.s32 %v13472_v53, %v13461_v7  ;;  %v4824_v14 = vsel %vm4822_vm6, %v4823_v27, %v13573_v42  ;;  %v4991_v38 = vshrl.u32 %v16293_v16, %v16709_v1 }
 0x678   : > { %v5356_v2 = vsel %vm8309_vm12, 0, %v8308_v33  ;;  %v5371_v57 = vsub.s32 4, %v13526_v43  ;;  %v4825_v21 = vadd.s32 %v4824_v14, %v4820_v25  ;;  %v4980_v22 = vand.u32 8388607, %v4973_v6 }
 0x679   : > { %v5357_v15 = vsub.s32 32, %v5356_v2  ;;  %v5361_v61 = vsub.s32 4294967266, %v5356_v2  ;;  %v4990_v51 = vshll.u32 %v16300_v28, %v16710_v37  ;;  %v4993_v7 = vshll.u32 %v16293_v16, %v16710_v37 }
 0x67a   : > { %v4994_v53 = vshrl.u32 %v16431_v29, %v16709_v1  ;;  %v5358_v50 = vshll.u32 %v13547_v49, %v5356_v2  ;;  %v4826_v0 = vadd.s32 536870912, %v4825_v21  ;;  %v4996_v30 = vshll.u32 %v16431_v29, %v16710_v37 }
 0x67b   : > { %v5359_v44 = vshrl.u32 %v5341_v11, %v5357_v15  ;;  %v5362_v34 = vadd.s32 127, %v5361_v61  ;;  %v4992_v39 = vor.u32 %v4991_v38, %v4990_v51  ;;  %v4997_v45 = vshrl.u32 %v16432_v60, %v16709_v1 }
 0x67c   : > { %v4995_v41 = vor.u32 %v4994_v53, %v4993_v7  ;;  %vm5173_vm5 = vcmp.eq.s32.totalorder %v13596_v8, 0  ;;  %v5372_v40 = vsel %vm5287_vm8, %v5371_v57, %v13526_v43  ;;  %v13627_v49 = vshrl.u32 %v4826_v0, 30  ;;  %v16712_v0 = vld [vmem:[#allocation56_spill] sm:$0xff] }
 0x67d   : > { %v5360_v26 = vor.u32 %v5359_v44, %v5358_v50  ;;  %v5363_v19 = vshll.u32 %v5362_v34, 23  ;;  %vm5172_vm15 = vcmp.lt.s32.totalorder %v13596_v8, 2  ;;  %vm5176_vm3 = vcmp.eq.s32.totalorder %v13596_v8, 2 }
 0x67e   : > { %v4981_v35 = vor.u32 8388608, %v4980_v22  ;;  %v4998_v20 = vor.u32 %v4997_v45, %v4996_v30  ;;  %vm5007_vm11 = vcmp.lt.s32.totalorder %v16693_v62, 3  ;;  %vm4904_vm1 = vcmp.lt.s32.totalorder %v16711_v36, 4 }
 0x67f   : > { %v5364_v9 = vor.u32 4788187, %v5363_v19  ;;  %v4828_v46 = vshll.u32 %v13627_v49, 30  ;;  %vm5005_vm13 = vcmp.lt.s32.totalorder %v16693_v62, 1  ;;  %v5019_v43 = vsel %vm5007_vm11, %v16696_v32, %v5018_v13  ;;  %v16713_v19 = vld [vmem:[#allocation50_spill] sm:$0xff] }
 0x680   : > { %v5374_v42 = vsel %vm13600_vm0, 0, %v5372_v40  ;;  %v5013_v56 = vsel %vm5005_vm13, %v4992_v39, %v4995_v41  ;;  %v5015_v3 = vsel %vm5007_vm11, %v4998_v20, %v13494_v4  ;;  %v5017_v54 = vsel %vm5005_vm13, %v4995_v41, %v4998_v20 }
 0x681   : > { %v5365_v59 = vand.u32 2147483647, %v5364_v9  ;;  %v5367_v47 = vcvt.s32.f32 %v5360_v26  ;;  %v13647_v23 = vsub.s32 %v4825_v21, %v4828_v46  ;;  %vm5006_vm2 = vcmp.lt.s32.totalorder %v16693_v62, 2  ;;  %v8890_v32 = vpop.eup %8889  ;;  %v16714_v46 = vld [vmem:[#allocation44_spill] sm:$0xff] }
 0x682   : > { %v4989_v52 = vshrl.u32 %v16300_v28, %v16709_v1  ;;  %v5010_v13 = vsel %vm5008_vm4, %v4998_v20, 2102212464  ;;  %v5020_v17 = vsel %vm5006_vm2, %v5017_v54, %v5019_v43  ;;  %v5021_v4 = vshll.u32 %v4981_v35, 8  ;;  %v8892_v33 = vpop.eup %8891 }
 0x683   : > { %v5177_v27 = vxor.u32 2147483648, %v8890_v32  ;;  %v5368_v25 = vmul.f32 %v5367_v47, %v5365_v59  ;;  %v4831_v11 = vsub.s32 0, %v13647_v23  ;;  %v5016_v2 = vsel %vm5006_vm2, %v5013_v56, %v5015_v3 }
 0x684   : > { %v5174_v14 = vxor.u32 2147483648, %v8892_v33  ;;  %v5009_v38 = vsel %vm5005_vm13, %v4989_v52, %v4992_v39  ;;  %v13661_v1 = vmul.u32.u64.low %v5021_v4, %v5020_v17  ;;  %v13662_v15 = vmul.u32.u64.high %v5021_v4, %v5020_v17, %v13661_v1 }
 0x685   : > { %v5178_v61 = vsel %vm5176_vm3, %v5177_v27, %v8892_v33  ;;  %v5369_v57 = vxor.u32 2147483648, %v5368_v25  ;;  %v8287_v21 = vmin.u32 %v4831_v11, %v13647_v23  ;;  %v5011_v22 = vsel %vm5007_vm11, %v4995_v41, %v5010_v13 }
 0x686   : > { %v5175_v37 = vsel %vm5173_vm5, %v8890_v32, %v5174_v14  ;;  %v5378_v51 = vadd.s32 3, %v5374_v42  ;;  %v13671_v7 = vmul.u32.u64.low %v5021_v4, %v5016_v2  ;;  %v13672_v53 = vmul.u32.u64.high %v5021_v4, %v5016_v2, %v13671_v7  ;;  %v16715_v42 = vld [vmem:[#allocation29_spill] sm:$0xff] }
 0x687   : > { %vm5169_vm4 = vweird.f32 %v16681_v48  ;;  %v5179_v50 = vsel %vm5172_vm15, %v5175_v37, %v5178_v61  ;;  %v5370_v44 = vsel %vm5287_vm8, %v5369_v57, %v5368_v25  ;;  %v4833_v34 = vclz %v8287_v21  ;;  %v16718_v61 = vld [vmem:[#allocation10_spill] sm:$0xff] }
 0x688   : > { %v13683_v39 = vsel %vm4904_vm1, %v16712_v0, 920167782  ;;  %v5180_v41 = vsel %vm5169_vm4, nan, %v5179_v50  ;;  %v5373_v30 = vsel %vm13600_vm0, %v16688_v55, %v5370_v44  ;;  %v5012_v48 = vsel %vm5006_vm2, %v5009_v38, %v5011_v22  ;;  %v16720_v22 = vld [vmem:[#allocation32_spill] sm:$0xff]  ;;  %v16721_v50 = vld [vmem:[#allocation9_spill] sm:$0xff] }
 0x689   : > { %5978 = vmatpush1.msra.mxu0 %v5180_v41  ;;  %8893 = vcosq.f32 %v5373_v30  ;;  %vm4767_vm14 = vcmp.lt.s32.totalorder %v16697_v18, 0  ;;  %v8288_v8 = vadd.s32 4294967294, %v4833_v34  ;;  %vm5030_vm8 = vc.u32 %v13662_v15, %v13671_v7 }
 0x68a   : > { %8895 = vsinq.f32 %v5373_v30  ;;  %v13693_v45 = vand.u32 3, %v5378_v51  ;;  %v5031_v26 = vadd.s32 1, %v13672_v53  ;;  %v4661_v40 = vand.u32 2147483647, %v16713_v19 }
 0x68b   : > { %v4821_v5 = vadd.s32 %v13572_v31, %v13564_v24  ;;  %vm8289_vm6 = vcmp.lt.s32.totalorder %v8288_v8, 0  ;;  %v4851_v62 = vsub.s32 4, %v13627_v49  ;;  %v5028_v35 = vmul.u32 %v5021_v4, %v5012_v48 }
 0x68c   : > { %v4836_v20 = vsel %vm8289_vm6, 0, %v8288_v8  ;;  %v5032_v9 = vsel %vm5030_vm8, %v5031_v26, %v13672_v53  ;;  %v4678_v43 = vshll.u32 %v16300_v28, %v16714_v46  ;;  %v4679_v56 = vshrl.u32 %v16293_v16, %v16715_v42 }
 0x68d   : > { %v4837_v3 = vsub.s32 32, %v4836_v20  ;;  %v4841_v54 = vsub.s32 4294967266, %v4836_v20  ;;  %v5033_v59 = vadd.s32 %v5032_v9, %v5028_v35  ;;  %v4681_v47 = vshll.u32 %v16293_v16, %v16714_v46 }
 0x68e   : > { %v4838_v24 = vshll.u32 %v13647_v23, %v4836_v20  ;;  %v4668_v31 = vand.u32 8388607, %v4661_v40  ;;  %v4682_v32 = vshrl.u32 %v16431_v29, %v16715_v42  ;;  %v4684_v52 = vshll.u32 %v16431_v29, %v16714_v46 }
 0x68f   : > { %v4839_v13 = vshrl.u32 %v4821_v5, %v4837_v3  ;;  %v4842_v17 = vadd.s32 127, %v4841_v54  ;;  %v5034_v4 = vadd.s32 536870912, %v5033_v59  ;;  %v4685_v33 = vshrl.u32 %v16432_v60, %v16715_v42 }
 0x690   : > { %vm13718_vm0 = vcmp.le.f32.partialorder %v4765_v63, 0.7853982  ;;  %v4852_v23 = vsel %vm4767_vm14, %v4851_v62, %v13627_v49  ;;  %v4680_v25 = vor.u32 %v4679_v56, %v4678_v43  ;;  %v4683_v11 = vor.u32 %v4682_v32, %v4681_v47  ;;  %v16719_v49 = vld [vmem:[#allocation22_spill] sm:$0xff] }
 0x691   : > { %v4840_v2 = vor.u32 %v4839_v13, %v4838_v24  ;;  %v4843_v14 = vshll.u32 %v4842_v17, 23  ;;  %v13725_v38 = vshrl.u32 %v5034_v4, 30  ;;  %v4686_v1 = vor.u32 %v4685_v33, %v4684_v52 }
 0x692   : > { %vm5380_vm12 = vcmp.lt.s32.totalorder %v13693_v45, 2  ;;  %vm5381_vm5 = vcmp.eq.s32.totalorder %v13693_v45, 0  ;;  %vm5384_vm15 = vcmp.eq.s32.totalorder %v13693_v45, 2  ;;  %v4669_v63 = vor.u32 8388608, %v4668_v31 }
 0x693   : > { %vm4695_vm3 = vcmp.lt.s32.totalorder %v16718_v61, 3  ;;  %v4844_v57 = vor.u32 4788187, %v4843_v14  ;;  %v5036_v21 = vshll.u32 %v13725_v38, 30  ;;  %vm4693_vm11 = vcmp.lt.s32.totalorder %v16718_v61, 1 }
 0x694   : > { %v4707_v37 = vsel %vm4695_vm3, %v16720_v22, %v16719_v49  ;;  %v4854_v51 = vsel %vm13718_vm0, 0, %v4852_v23  ;;  %v4701_v53 = vsel %vm4693_vm11, %v4680_v25, %v4683_v11  ;;  %v4703_v44 = vsel %vm4695_vm3, %v4686_v1, %v16721_v50 }
 0x695   : > { %v4705_v34 = vsel %vm4693_vm11, %v4683_v11, %v4686_v1  ;;  %v4845_v41 = vand.u32 2147483647, %v4844_v57  ;;  %v4847_v30 = vcvt.s32.f32 %v4840_v2  ;;  %v13746_v48 = vsub.s32 %v5033_v59, %v5036_v21  ;;  %v16723_v57 = vld [vmem:[#allocation28_spill] sm:$0xff]  ;;  %v16724_v21 = vld [vmem:[#allocation23_spill] sm:$0xff] }
 0x696   : > { %vm4694_vm13 = vcmp.lt.s32.totalorder %v16718_v61, 2  ;;  %v8894_v8 = vpop.eup %8893  ;;  %v4677_v26 = vshrl.u32 %v16300_v28, %v16715_v42  ;;  %v4698_v5 = vsel %vm4696_vm10, %v4686_v1, 2102212464  ;;  %v4709_v35 = vshll.u32 %v4669_v63, 8  ;;  %v16722_v1 = vld [vmem:[#allocation24_spill] sm:$0xff] }
 0x697   : > { %v4708_v62 = vsel %vm4694_vm13, %v4705_v34, %v4707_v37  ;;  %v8896_v20 = vpop.eup %8895  ;;  %v5385_v9 = vxor.u32 2147483648, %v8894_v8  ;;  %v4848_v46 = vmul.f32 %v4847_v30, %v4845_v41  ;;  %v5039_v43 = vsub.s32 0, %v13746_v48  ;;  %v16727_v30 = vld [vmem:[#allocation34_spill] sm:$0xff] }
 0x698   : > { %v4704_v56 = vsel %vm4694_vm13, %v4701_v53, %v4703_v44  ;;  %v5382_v3 = vxor.u32 2147483648, %v8896_v20  ;;  %v4697_v54 = vsel %vm4693_vm11, %v4677_v26, %v4680_v25  ;;  %v4699_v32 = vsel %vm4695_vm3, %v4683_v11, %v4698_v5  ;;  %v16726_v53 = vld [vmem:[#allocation12_spill] sm:$0xff] }
 0x699   : > { %v13760_v42 = vmul.u32.u64.low %v4709_v35, %v4708_v62  ;;  %v13761_v59 = vmul.u32.u64.high %v4709_v35, %v4708_v62, %v13760_v42  ;;  %v5386_v47 = vsel %vm5384_vm15, %v5385_v9, %v8896_v20  ;;  %v4849_v24 = vxor.u32 2147483648, %v4848_v46 }
 0x69a   : > { %v8295_v31 = vmin.u32 %v5039_v43, %v13746_v48  ;;  %v5383_v52 = vsel %vm5381_vm5, %v8894_v8, %v5382_v3  ;;  %v4858_v13 = vadd.s32 3, %v4854_v51  ;;  %vm5377_vm10 = vweird.f32 %v16688_v55 }
 0x69b   : > { %v13770_v17 = vmul.u32.u64.low %v4709_v35, %v4704_v56  ;;  %v13771_v4 = vmul.u32.u64.high %v4709_v35, %v4704_v56, %v13770_v17  ;;  %v5387_v33 = vsel %vm5380_vm12, %v5383_v52, %v5386_v47  ;;  %v4850_v23 = vsel %vm4767_vm14, %v4849_v24, %v4848_v46 }
 0x69c   : > { %v5041_v25 = vclz %v8295_v31  ;;  %v5388_v2 = vsel %vm5377_vm10, nan, %v5387_v33  ;;  %v4853_v11 = vsel %vm13718_vm0, %v16697_v18, %v4850_v23  ;;  %v4700_v14 = vsel %vm4694_vm13, %v4697_v54, %v4699_v32 }
 0x69d   : > { %v4869_v63 = vand.u32 2147483647, %v16722_v1  ;;  %v16725_v55 = vor.u32 %v16723_v57, %v16724_v21  ;;  %6067 = vmatpush1.msra.mxu1 %v5388_v2  ;;  %8897 = vcosq.f32 %v4853_v11  ;;  %vm4718_vm2 = vc.u32 %v13761_v59, %v13770_v17 }
 0x69e   : > { %v8296_v49 = vadd.s32 4294967294, %v5041_v25  ;;  %8899 = vsinq.f32 %v4853_v11  ;;  %v13792_v27 = vand.u32 3, %v4858_v13  ;;  %v5029_v61 = vadd.s32 %v13671_v7, %v13662_v15 }
 0x69f   : > { %v4914_v45 = vsel %vm4904_vm1, %v16725_v55, 1326507024  ;;  %v4719_v22 = vadd.s32 1, %v13771_v4  ;;  %v5059_v37 = vsub.s32 4, %v13725_v38  ;;  %v4716_v51 = vmul.u32 %v4709_v35, %v4700_v14 }
 0x6a0   : > { %vm8297_vm4 = vcmp.lt.s32.totalorder %v8296_v49, 0  ;;  %v4887_v50 = vshrl.u32 %v16293_v16, %v16726_v53  ;;  %vm4975_vm14 = vcmp.lt.s32.totalorder %v16706_v10, 0  ;;  %v4876_v41 = vand.u32 8388607, %v4869_v63 }
 0x6a1   : > { %v5044_v44 = vsel %vm8297_vm4, 0, %v8296_v49  ;;  %v4720_v34 = vsel %vm4718_vm2, %v4719_v22, %v13771_v4  ;;  %v4886_v15 = vshll.u32 %v16300_v28, %v16727_v30  ;;  %v4889_v5 = vshll.u32 %v16293_v16, %v16727_v30 }
 0x6a2   : > { %v5045_v7 = vsub.s32 32, %v5044_v44  ;;  %v5049_v8 = vsub.s32 4294967266, %v5044_v44  ;;  %v4721_v26 = vadd.s32 %v4720_v34, %v4716_v51  ;;  %v4890_v35 = vshrl.u32 %v16431_v29, %v16726_v53 }
 0x6a3   : > { %v4888_v62 = vor.u32 %v4887_v50, %v4886_v15  ;;  %v4892_v20 = vshll.u32 %v16431_v29, %v16727_v30  ;;  %v4893_v9 = vshrl.u32 %v16432_v60, %v16726_v53  ;;  %vm13816_vm8 = vcmp.le.f32.partialorder %v4973_v6, 0.7853982 }
 0x6a4   : > { %v5046_v43 = vshll.u32 %v13746_v48, %v5044_v44  ;;  %v5047_v56 = vshrl.u32 %v5029_v61, %v5045_v7  ;;  %v5050_v3 = vadd.s32 127, %v5049_v8  ;;  %v4722_v54 = vadd.s32 536870912, %v4721_v26 }
 0x6a5   : > { %v4877_v42 = vor.u32 8388608, %v4876_v41  ;;  %v4891_v47 = vor.u32 %v4890_v35, %v4889_v5  ;;  %v4894_v24 = vor.u32 %v4893_v9, %v4892_v20  ;;  %vm4901_vm6 = vcmp.lt.s32.totalorder %v16711_v36, 1 }
 0x6a6   : > { %v5048_v31 = vor.u32 %v5047_v56, %v5046_v43  ;;  %v5051_v32 = vshll.u32 %v5050_v3, 23  ;;  %v13822_v52 = vshrl.u32 %v4722_v54, 30  ;;  %vm4903_vm0 = vcmp.lt.s32.totalorder %v16711_v36, 3  ;;  %v16730_v56 = vld [vmem:[#allocation40_spill] sm:$0xff] }
 0x6a7   : > { %vm4864_vm12 = vcmp.eq.s32.totalorder %v13792_v27, 2  ;;  %v4885_v6 = vshrl.u32 %v16300_v28, %v16726_v53  ;;  %v4909_v48 = vsel %vm4901_vm6, %v4888_v62, %v4891_v47  ;;  %v4911_v13 = vsel %vm4903_vm0, %v4894_v24, %v13683_v39 }
 0x6a8   : > { %vm4857_vm5 = vweird.f32 %v16697_v18  ;;  %v5052_v4 = vor.u32 4788187, %v5051_v32  ;;  %v4724_v33 = vshll.u32 %v13822_v52, 30  ;;  %vm4902_vm15 = vcmp.lt.s32.totalorder %v16711_v36, 2 }
 0x6a9   : > { %v4913_v23 = vsel %vm4901_vm6, %v4891_v47, %v4894_v24  ;;  %v4906_v25 = vsel %vm4904_vm1, %v4894_v24, 2102212464  ;;  %v4912_v2 = vsel %vm4902_vm15, %v4909_v48, %v4911_v13  ;;  %v4915_v39 = vsel %vm4903_vm0, %v16712_v0, %v4914_v45  ;;  %v16732_v24 = vld [vmem:[#allocation11_spill] sm:$0xff] }
 0x6aa   : > { %v4917_v11 = vshll.u32 %v4877_v42, 8  ;;  %v5053_v14 = vand.u32 2147483647, %v5052_v4  ;;  %v5055_v57 = vcvt.s32.f32 %v5048_v31  ;;  %v5060_v21 = vsel %vm4975_vm14, %v5059_v37, %v13725_v38  ;;  %v8898_v49 = vpop.eup %8897  ;;  %v16733_v31 = vld [vmem:[#allocation19_spill] sm:$0xff] }
 0x6ab   : > { %v13848_v55 = vsub.s32 %v4721_v26, %v4724_v33  ;;  %v4905_v61 = vsel %vm4901_vm6, %v4885_v6, %v4888_v62  ;;  %v4916_v22 = vsel %vm4902_vm15, %v4913_v23, %v4915_v39  ;;  %v8900_v0 = vpop.eup %8899  ;;  %v4865_v45 = vxor.u32 2147483648, %v8898_v49  ;;  %v16734_v6 = vld [vmem:[#allocation31_spill] sm:$0xff] }
 0x6ac   : > { %v13854_v51 = vmul.u32.u64.low %v4917_v11, %v4912_v2  ;;  %v13855_v53 = vmul.u32.u64.high %v4917_v11, %v4912_v2, %v13854_v51  ;;  %v5056_v50 = vmul.f32 %v5055_v57, %v5053_v14  ;;  %v4907_v38 = vsel %vm4903_vm0, %v4891_v47, %v4906_v25  ;;  %v16737_v57 = vld [vmem:[#allocation47_spill] sm:$0xff] }
 0x6ad   : > { %v4727_v44 = vsub.s32 0, %v13848_v55  ;;  %v4862_v37 = vxor.u32 2147483648, %v8900_v0  ;;  %v5062_v34 = vsel %vm13816_vm8, 0, %v5060_v21  ;;  %vm4861_vm1 = vcmp.eq.s32.totalorder %v13792_v27, 0 }
 0x6ae   : > { %v13863_v41 = vmul.u32.u64.low %v4917_v11, %v4916_v22  ;;  %v13864_v30 = vmul.u32.u64.high %v4917_v11, %v4916_v22, %v13863_v41  ;;  %v4866_v15 = vsel %vm4864_vm12, %v4865_v45, %v8900_v0  ;;  %v5057_v7 = vxor.u32 2147483648, %v5056_v50 }
 0x6af   : > { %v8283_v8 = vmin.u32 %v4727_v44, %v13848_v55  ;;  %vm4860_vm3 = vcmp.lt.s32.totalorder %v13792_v27, 2  ;;  %v4863_v26 = vsel %vm4861_vm1, %v8898_v49, %v4862_v37  ;;  %v4908_v5 = vsel %vm4902_vm15, %v4905_v61, %v4907_v38  ;;  %v16731_v27 = vld [vmem:[#allocation39_spill] sm:$0xff]  ;;  %v16738_v49 = vld [vmem:[#allocation42_spill] sm:$0xff] }
 0x6b0   : > { %v4927_v62 = vadd.s32 1, %v13855_v53  ;;  %vm4663_vm11 = vcmp.lt.s32.totalorder %v16713_v19, 0  ;;  %v4867_v35 = vsel %vm4860_vm3, %v4863_v26, %v4866_v15  ;;  %v5058_v20 = vsel %vm4975_vm14, %v5057_v7, %v5056_v50  ;;  %v16739_v26 = vld [vmem:[#allocation45_spill] sm:$0xff] }
 0x6b1   : > { %v5066_v9 = vadd.s32 3, %v5062_v34  ;;  %v4729_v43 = vclz %v8283_v8  ;;  %vm4592_vm13 = vcmp.lt.s32.totalorder %v16730_v56, 4  ;;  %v4868_v3 = vsel %vm4857_vm5, nan, %v4867_v35  ;;  %v16741_v35 = vld [vmem:[#allocation37_spill] sm:$0xff] }
 0x6b2   : > { %v5061_v36 = vsel %vm13816_vm8, %v16706_v10, %v5058_v20  ;;  %v4349_v54 = vand.u32 2147483647, %v16731_v27  ;;  %5979 = vmatprep.subr.mxu0 %v4868_v3  ;;  %v4924_v47 = vmul.u32 %v4917_v11, %v4908_v5  ;;  %vm4926_vm10 = vc.u32 %v13864_v30, %v13854_v51 }
 0x6b3   : > { %8901 = vcosq.f32 %v5061_v36  ;;  %v8284_v42 = vadd.s32 4294967294, %v4729_v43  ;;  %v4588_v32 = vor.u32 %v16733_v31, %v16732_v24  ;;  %v13891_v18 = vsel %vm4592_vm13, %v16734_v6, 920167782  ;;  %v16750_v24 = vld [vmem:[#allocation46_spill] sm:$0xff] }
 0x6b4   : > { %8903 = vsinq.f32 %v5061_v36  ;;  %v4928_v46 = vsel %vm4926_vm10, %v4927_v62, %v13855_v53  ;;  %v13894_v48 = vand.u32 3, %v5066_v9  ;;  %vm13898_vm2 = vcmp.le.f32.partialorder %v4661_v40, 0.7853982  ;;  %v16740_v62 = vld [vmem:[#allocation43_spill] sm:$0xff] }
 0x6b5   : > { %vm8285_vm4 = vcmp.lt.s32.totalorder %v8284_v42, 0  ;;  %v4929_v4 = vadd.s32 %v4928_v46, %v4924_v47  ;;  %v4717_v33 = vadd.s32 %v13770_v17, %v13761_v59  ;;  %v4747_v25 = vsub.s32 4, %v13822_v52 }
 0x6b6   : > { %v4732_v23 = vsel %vm8285_vm4, 0, %v8284_v42  ;;  %v4356_v2 = vand.u32 8388607, %v4349_v54  ;;  %v4367_v40 = vshrl.u32 %v16293_v16, %v16737_v57  ;;  %v4366_v61 = vshll.u32 %v16300_v28, %v16738_v49 }
 0x6b7   : > { %v4733_v39 = vsub.s32 32, %v4732_v23  ;;  %v4737_v11 = vsub.s32 4294967266, %v4732_v23  ;;  %v4930_v14 = vadd.s32 536870912, %v4929_v4  ;;  %v4734_v21 = vshll.u32 %v13848_v55, %v4732_v23  ;;  %v16742_v23 = vld [vmem:[#allocation7_spill] sm:$0xff] }
 0x6b8   : > { %v4369_v59 = vshll.u32 %v16293_v16, %v16738_v49  ;;  %v4370_v17 = vshrl.u32 %v16431_v29, %v16737_v57  ;;  %v4373_v45 = vshrl.u32 %v16432_v60, %v16737_v57  ;;  %vm5072_vm14 = vcmp.eq.s32.totalorder %v13894_v48, 2 }
 0x6b9   : > { %v4735_v22 = vshrl.u32 %v4717_v33, %v4733_v39  ;;  %v4738_v53 = vadd.s32 127, %v4737_v11  ;;  %v13916_v0 = vshrl.u32 %v4930_v14, 30  ;;  %v4748_v55 = vsel %vm4663_vm11, %v4747_v25, %v13822_v52 }
 0x6ba   : > { %v4371_v50 = vor.u32 %v4370_v17, %v4369_v59  ;;  %v4372_v44 = vshll.u32 %v16431_v29, %v16738_v49  ;;  %vm5069_vm8 = vcmp.eq.s32.totalorder %v13894_v48, 0  ;;  %v4368_v41 = vor.u32 %v4367_v40, %v4366_v61 }
 0x6bb   : > { %v4736_v38 = vor.u32 %v4735_v22, %v4734_v21  ;;  %v4739_v37 = vshll.u32 %v4738_v53, 23  ;;  %v4932_v34 = vshll.u32 %v13916_v0, 30  ;;  %v4357_v15 = vor.u32 8388608, %v4356_v2 }
 0x6bc   : > { %v4365_v7 = vshrl.u32 %v16300_v28, %v16737_v57  ;;  %v4374_v8 = vor.u32 %v4373_v45, %v4372_v44  ;;  %vm4383_vm6 = vcmp.lt.s32.totalorder %v16739_v26, 3  ;;  %vm4381_vm0 = vcmp.lt.s32.totalorder %v16739_v26, 1 }
 0x6bd   : > { %v4740_v5 = vor.u32 4788187, %v4739_v37  ;;  %v13931_v52 = vsub.s32 %v4929_v4, %v4932_v34  ;;  %v4395_v20 = vsel %vm4383_vm6, %v16741_v35, %v16740_v62  ;;  %v4750_v9 = vsel %vm13898_vm2, 0, %v4748_v55 }
 0x6be   : > { %vm4382_vm12 = vcmp.lt.s32.totalorder %v16739_v26, 2  ;;  %v4386_v43 = vsel %vm4384_vm9, %v4374_v8, 2102212464  ;;  %v4393_v3 = vsel %vm4381_vm0, %v4371_v50, %v4374_v8  ;;  %v4743_v42 = vcvt.s32.f32 %v4736_v38 }
 0x6bf   : > { %v4741_v36 = vand.u32 2147483647, %v4740_v5  ;;  %v4935_v47 = vsub.s32 0, %v13931_v52  ;;  %v4385_v46 = vsel %vm4381_vm0, %v4365_v7, %v4368_v41  ;;  %v4389_v33 = vsel %vm4381_vm0, %v4368_v41, %v4371_v50  ;;  %v16743_v41 = vld [vmem:[#allocation41_spill] sm:$0xff] }
 0x6c0   : > { %v8902_v4 = vpop.eup %8901  ;;  %v4391_v25 = vsel %vm4383_vm6, %v4374_v8, %v16742_v23  ;;  %v4396_v2 = vsel %vm4382_vm12, %v4393_v3, %v4395_v20  ;;  %v4397_v39 = vshll.u32 %v4357_v15, 8  ;;  %v4387_v21 = vsel %vm4383_vm6, %v4371_v50, %v4386_v43  ;;  %v16747_v3 = vld [vmem:[#allocation21_spill] sm:$0xff] }
 0x6c1   : > { %v8904_v11 = vpop.eup %8903  ;;  %v5073_v14 = vxor.u32 2147483648, %v8902_v4  ;;  %v4744_v57 = vmul.f32 %v4743_v42, %v4741_v36  ;;  %v8291_v40 = vmin.u32 %v4935_v47, %v13931_v52  ;;  %v4754_v61 = vadd.s32 3, %v4750_v9 }
 0x6c2   : > { %v5070_v49 = vxor.u32 2147483648, %v8904_v11  ;;  %v13952_v59 = vmul.u32.u64.low %v4397_v39, %v4396_v2  ;;  %v13953_v17 = vmul.u32.u64.high %v4397_v39, %v4396_v2, %v13952_v59  ;;  %v4392_v55 = vsel %vm4382_vm12, %v4389_v33, %v4391_v25 }
 0x6c3   : > { %v5074_v22 = vsel %vm5072_vm14, %v5073_v14, %v8904_v11  ;;  %v4745_v53 = vxor.u32 2147483648, %v4744_v57  ;;  %v4937_v45 = vclz %v8291_v40  ;;  %vm5065_vm9 = vweird.f32 %v16706_v10 }
 0x6c4   : > { %vm5068_vm5 = vcmp.lt.s32.totalorder %v13894_v48, 2  ;;  %v5071_v50 = vsel %vm5069_vm8, %v8902_v4, %v5070_v49  ;;  %v4388_v44 = vsel %vm4382_vm12, %v4385_v46, %v4387_v21  ;;  %vm4871_vm15 = vcmp.lt.s32.totalorder %v16722_v1, 0 }
 0x6c5   : > { %v5075_v38 = vsel %vm5068_vm5, %v5071_v50, %v5074_v22  ;;  %v4746_v37 = vsel %vm4663_vm11, %v4745_v53, %v4744_v57  ;;  %v8292_v34 = vadd.s32 4294967294, %v4937_v45  ;;  %v4557_v15 = vand.u32 2147483647, %v16743_v41 }
 0x6c6   : > { %v5076_v7 = vsel %vm5065_vm9, nan, %v5075_v38  ;;  %v4749_v10 = vsel %vm13898_vm2, %v16713_v19, %v4746_v37  ;;  %v13972_v8 = vmul.u32.u64.low %v4397_v39, %v4392_v55  ;;  %v13973_v48 = vmul.u32.u64.high %v4397_v39, %v4392_v55, %v13972_v8 }
 0x6c7   : > { %v4602_v26 = vsel %vm4592_vm13, %v4588_v32, 1326507024  ;;  %6068 = vmatprep.subr.mxu1 %v5076_v7  ;;  %8905 = vcosq.f32 %v4749_v10  ;;  %v13981_v5 = vand.u32 3, %v4754_v61  ;;  %vm8293_vm1 = vcmp.lt.s32.totalorder %v8292_v34, 0 }
 0x6c8   : > { %8907 = vsinq.f32 %v4749_v10  ;;  %v4925_v13 = vadd.s32 %v13854_v51, %v13864_v30  ;;  %v4940_v62 = vsel %vm8293_vm1, 0, %v8292_v34  ;;  %v4955_v35 = vsub.s32 4, %v13916_v0  ;;  %v16746_v30 = vld [vmem:[#allocation14_spill] sm:$0xff] }
 0x6c9   : > { %v4941_v20 = vsub.s32 32, %v4940_v62  ;;  %v4945_v9 = vsub.s32 4294967266, %v4940_v62  ;;  %v4404_v43 = vmul.u32 %v4397_v39, %v4388_v44  ;;  %vm4406_vm3 = vc.u32 %v13953_v17, %v13972_v8 }
 0x6ca   : > { %vm13990_vm11 = vcmp.le.f32.partialorder %v4869_v63, 0.7853982  ;;  %v4407_v31 = vadd.s32 1, %v13973_v48  ;;  %v4564_v51 = vand.u32 8388607, %v4557_v15  ;;  %v4574_v32 = vshll.u32 %v16300_v28, %v16746_v30 }
 0x6cb   : > { %v4575_v36 = vshrl.u32 %v16293_v16, %v16747_v3  ;;  %v4942_v42 = vshll.u32 %v13931_v52, %v4940_v62  ;;  %v4943_v47 = vshrl.u32 %v4925_v13, %v4941_v20  ;;  %v4946_v46 = vadd.s32 127, %v4945_v9 }
 0x6cc   : > { %v4577_v63 = vshll.u32 %v16293_v16, %v16746_v30  ;;  %v4408_v4 = vsel %vm4406_vm3, %v4407_v31, %v13973_v48  ;;  %v4578_v23 = vshrl.u32 %v16431_v29, %v16747_v3  ;;  %v4580_v25 = vshll.u32 %v16431_v29, %v16746_v30 }
 0x6cd   : > { %v4576_v33 = vor.u32 %v4575_v36, %v4574_v32  ;;  %v4944_v2 = vor.u32 %v4943_v47, %v4942_v42  ;;  %v4947_v39 = vshll.u32 %v4946_v46, 23  ;;  %v4409_v11 = vadd.s32 %v4408_v4, %v4404_v43 }
 0x6ce   : > { %v4581_v52 = vshrl.u32 %v16432_v60, %v16747_v3  ;;  %v4956_v14 = vsel %vm4871_vm15, %v4955_v35, %v13916_v0  ;;  %v4565_v57 = vor.u32 8388608, %v4564_v51  ;;  %v4573_v40 = vshrl.u32 %v16300_v28, %v16747_v3 }
 0x6cf   : > { %v4579_v21 = vor.u32 %v4578_v23, %v4577_v63  ;;  %v4948_v49 = vor.u32 4788187, %v4947_v39  ;;  %v4410_v61 = vadd.s32 536870912, %v4409_v11  ;;  %vm4589_vm10 = vcmp.lt.s32.totalorder %v16730_v56, 1 }
 0x6d0   : > { %v4582_v59 = vor.u32 %v4581_v52, %v4580_v25  ;;  %vm4756_vm2 = vcmp.lt.s32.totalorder %v13981_v5, 2  ;;  %v4951_v22 = vcvt.s32.f32 %v4944_v2  ;;  %vm4590_vm4 = vcmp.lt.s32.totalorder %v16730_v56, 2  ;;  %v16748_v2 = vld [vmem:[#allocation8_spill] sm:$0xff] }
 0x6d1   : > { %vm4591_vm14 = vcmp.lt.s32.totalorder %v16730_v56, 3  ;;  %v4597_v0 = vsel %vm4589_vm10, %v4576_v33, %v4579_v21  ;;  %v4949_v53 = vand.u32 2147483647, %v4948_v49  ;;  %v14022_v45 = vshrl.u32 %v4410_v61, 30  ;;  %v16749_v56 = vld [vmem:[#allocation36_spill] sm:$0xff] }
 0x6d2   : > { %v4599_v55 = vsel %vm4591_vm14, %v4582_v59, %v13891_v18  ;;  %v4603_v50 = vsel %vm4591_vm14, %v16734_v6, %v4602_v26  ;;  %v4594_v44 = vsel %vm4592_vm13, %v4582_v59, 2102212464  ;;  %v4601_v37 = vsel %vm4589_vm10, %v4579_v21, %v4582_v59  ;;  %v16754_v49 = vld [vmem:[#allocation52_spill] sm:$0xff]  ;;  %v16755_v59 = vld [vmem:[#allocation30_spill] sm:$0xff] }
 0x6d3   : > { %v4600_v38 = vsel %vm4590_vm4, %v4597_v0, %v4599_v55  ;;  %v4605_v34 = vshll.u32 %v4565_v57, 8  ;;  %vm4757_vm8 = vcmp.eq.s32.totalorder %v13981_v5, 0  ;;  %v4952_v7 = vmul.f32 %v4951_v22, %v4949_v53 }
 0x6d4   : > { %v4958_v18 = vsel %vm13990_vm11, 0, %v4956_v14  ;;  %v4412_v10 = vshll.u32 %v14022_v45, 30  ;;  %v8906_v48 = vpop.eup %8905  ;;  %v4593_v6 = vsel %vm4589_vm10, %v4573_v40, %v4576_v33  ;;  %v4604_v26 = vsel %vm4590_vm4, %v4601_v37, %v4603_v50  ;;  %v16752_v14 = vld [vmem:[#allocation17_spill] sm:$0xff] }
 0x6d5   : > { %v14044_v13 = vmul.u32.u64.low %v4605_v34, %v4600_v38  ;;  %v14045_v62 = vmul.u32.u64.high %v4605_v34, %v4600_v38, %v14044_v13  ;;  %v8908_v35 = vpop.eup %8907  ;;  %v4761_v20 = vxor.u32 2147483648, %v8906_v48  ;;  %v4953_v9 = vxor.u32 2147483648, %v4952_v7  ;;  %v16753_v40 = vld [vmem:[#allocation5_spill] sm:$0xff] }
 0x6d6   : > { %v14048_v43 = vsub.s32 %v4409_v11, %v4412_v10  ;;  %v4595_v31 = vsel %vm4591_vm14, %v4579_v21, %v4594_v44  ;;  %v4758_v51 = vxor.u32 2147483648, %v8908_v35  ;;  %vm4760_vm13 = vcmp.eq.s32.totalorder %v13981_v5, 2 }
 0x6d7   : > { %v14053_v30 = vmul.u32.u64.low %v4605_v34, %v4604_v26  ;;  %v14054_v32 = vmul.u32.u64.high %v4605_v34, %v4604_v26, %v14053_v30  ;;  %v4762_v3 = vsel %vm4760_vm13, %v4761_v20, %v8908_v35  ;;  %v4954_v36 = vsel %vm4871_vm15, %v4953_v9, %v4952_v7 }
 0x6d8   : > { %v4962_v42 = vadd.s32 3, %v4958_v18  ;;  %v4415_v47 = vsub.s32 0, %v14048_v43  ;;  %v4759_v46 = vsel %vm4757_vm8, %v8906_v48, %v4758_v51  ;;  %v4957_v63 = vsel %vm13990_vm11, %v16722_v1, %v4954_v36  ;;  %v16757_v18 = vld [vmem:[#allocation38_spill] sm:$0xff] }
 0x6d9   : > { %v4596_v4 = vsel %vm4590_vm4, %v4593_v6, %v4595_v31  ;;  %v4615_v33 = vadd.s32 1, %v14045_v62  ;;  %vm4753_vm6 = vweird.f32 %v16713_v19  ;;  %v4763_v23 = vsel %vm4756_vm2, %v4759_v46, %v4762_v3 }
 0x6da   : > { %8909 = vcosq.f32 %v4957_v63  ;;  %v8271_v25 = vmin.u32 %v4415_v47, %v14048_v43  ;;  %v4480_v39 = vshrl.u32 %v16303_v12, %v16748_v2  ;;  %v4764_v11 = vsel %vm4753_vm6, nan, %v4763_v23 }
 0x6db   : > { %8911 = vsinq.f32 %v4957_v63  ;;  %vm4614_vm0 = vc.u32 %v14054_v32, %v14044_v13  ;;  %v16751_v52 = vor.u32 %v16749_v56, %v16750_v24  ;;  %5980 = vmatpush1.msra.mxu0 %v4764_v11  ;;  %v4612_v57 = vmul.u32 %v4605_v34, %v4596_v4  ;;  %v16756_v34 = vld [vmem:[#allocation48_spill] sm:$0xff] }
 0x6dc   : > { %v4417_v5 = vclz %v8271_v25  ;;  %v4245_v21 = vand.u32 2147483647, %v16753_v40  ;;  %v14082_v61 = vshrl.u32 %v16754_v49, 5  ;;  %v4479_v22 = vshll.u32 %v16432_v60, %v16755_v59  ;;  %v16758_v25 = vld [vmem:[#allocation13_spill] sm:$0xff]  ;;  %v16759_v49 = vld [vmem:[#allocation15_spill] sm:$0xff] }
 0x6dd   : > { %v4290_v19 = vsel %vm4280_vm7, %v16751_v52, 1326507024  ;;  %v14086_v0 = vand.u32 3, %v4962_v42  ;;  %v4616_v53 = vsel %vm4614_vm0, %v4615_v33, %v14045_v62  ;;  %v14091_v55 = vshll.u32 %v16303_v12, %v16755_v59 }
 0x6de   : > { %v14095_v50 = vshrl.u32 %v16294_v58, %v16748_v2  ;;  %v8272_v44 = vadd.s32 4294967294, %v4417_v5  ;;  %v4617_v38 = vadd.s32 %v4616_v53, %v4612_v57  ;;  %v14097_v37 = vor.u32 %v4480_v39, %v4479_v22 }
 0x6df   : > { %v4263_v7 = vshrl.u32 %v16293_v16, %v16756_v34  ;;  %v4265_v10 = vshll.u32 %v16293_v16, %v16757_v18  ;;  %v4266_v48 = vshrl.u32 %v16431_v29, %v16756_v34  ;;  %v4252_v26 = vand.u32 8388607, %v4245_v21 }
 0x6e0   : > { %vm8273_vm12 = vcmp.lt.s32.totalorder %v8272_v44, 0  ;;  %v4618_v6 = vadd.s32 536870912, %v4617_v38  ;;  %v4269_v62 = vshrl.u32 %v16432_v60, %v16756_v34  ;;  %vm4968_vm9 = vcmp.eq.s32.totalorder %v14086_v0, 2 }
 0x6e1   : > { %v4420_v35 = vsel %vm8273_vm12, 0, %v8272_v44  ;;  %v4262_v20 = vshll.u32 %v16300_v28, %v16757_v18  ;;  %v4267_v9 = vor.u32 %v4266_v48, %v4265_v10  ;;  %v4268_v31 = vshll.u32 %v16431_v29, %v16757_v18 }
 0x6e2   : > { %vm4965_vm5 = vcmp.eq.s32.totalorder %v14086_v0, 0  ;;  %v4405_v51 = vadd.s32 %v13972_v8, %v13953_v17  ;;  %v4421_v30 = vsub.s32 32, %v4420_v35  ;;  %v4425_v3 = vsub.s32 4294967266, %v4420_v35 }
 0x6e3   : > { %v14117_v36 = vshrl.u32 %v4618_v6, 30  ;;  %vm4964_vm15 = vcmp.lt.s32.totalorder %v14086_v0, 2  ;;  %vm4351_vm1 = vcmp.lt.s32.totalorder %v16731_v27, 0  ;;  %v4422_v42 = vshll.u32 %v14048_v43, %v4420_v35 }
 0x6e4   : > { %v4264_v47 = vor.u32 %v4263_v7, %v4262_v20  ;;  %v4270_v46 = vor.u32 %v4269_v62, %v4268_v31  ;;  %vm4277_vm3 = vcmp.lt.s32.totalorder %v16752_v14, 1  ;;  %vm4961_vm11 = vweird.f32 %v16722_v1 }
 0x6e5   : > { %v4423_v63 = vshrl.u32 %v4405_v51, %v4421_v30  ;;  %v4426_v4 = vadd.s32 127, %v4425_v3  ;;  %v4620_v17 = vshll.u32 %v14117_v36, 30  ;;  %vm4279_vm10 = vcmp.lt.s32.totalorder %v16752_v14, 3 }
 0x6e6   : > { %v4435_v8 = vsub.s32 4, %v14022_v45  ;;  %v4253_v33 = vor.u32 8388608, %v4252_v26  ;;  %v4289_v23 = vsel %vm4277_vm3, %v4267_v9, %v4270_v46  ;;  %v4291_v43 = vsel %vm4279_vm10, %v16758_v25, %v4290_v19 }
 0x6e7   : > { %vm4488_vm2 = vcmp.lt.s32.totalorder %v14082_v61, 4  ;;  %v4424_v39 = vor.u32 %v4423_v63, %v4422_v42  ;;  %v4427_v11 = vshll.u32 %v4426_v4, 23  ;;  %v14133_v56 = vsub.s32 %v4617_v38, %v4620_v17  ;;  %v8910_v52 = vpop.eup %8909 }
 0x6e8   : > { %v4282_v24 = vsel %vm4280_vm7, %v4270_v46, 2102212464  ;;  %v4261_v5 = vshrl.u32 %v16300_v28, %v16756_v34  ;;  %vm4278_vm4 = vcmp.lt.s32.totalorder %v16752_v14, 2  ;;  %v4285_v57 = vsel %vm4277_vm3, %v4264_v47, %v4267_v9  ;;  %v8912_v22 = vpop.eup %8911 }
 0x6e9   : > { %v4287_v19 = vsel %vm4279_vm10, %v4270_v46, %v16759_v49  ;;  %v4969_v53 = vxor.u32 2147483648, %v8910_v52  ;;  %v4428_v44 = vor.u32 4788187, %v4427_v11  ;;  %v4623_v38 = vsub.s32 0, %v14133_v56 }
 0x6ea   : > { %v4292_v7 = vsel %vm4278_vm4, %v4289_v23, %v4291_v43  ;;  %v4966_v18 = vxor.u32 2147483648, %v8912_v22  ;;  %v4281_v34 = vsel %vm4277_vm3, %v4261_v5, %v4264_v47  ;;  %v4283_v10 = vsel %vm4279_vm10, %v4267_v9, %v4282_v24 }
 0x6eb   : > { %v4293_v48 = vshll.u32 %v4253_v33, 8  ;;  %v4970_v6 = vsel %vm4968_vm9, %v4969_v53, %v8912_v22  ;;  %v4429_v26 = vand.u32 2147483647, %v4428_v44  ;;  %v4431_v62 = vcvt.s32.f32 %v4424_v39 }
 0x6ec   : > { %v8279_v35 = vmin.u32 %v4623_v38, %v14133_v56  ;;  %v4967_v20 = vsel %vm4965_vm5, %v8910_v52, %v4966_v18  ;;  %v4288_v31 = vsel %vm4278_vm4, %v4285_v57, %v4287_v19  ;;  %v4436_v42 = vsel %vm4351_vm1, %v4435_v8, %v14022_v45 }
 0x6ed   : > { %v14159_v51 = vmul.u32.u64.low %v4293_v48, %v4292_v7  ;;  %v14160_v30 = vmul.u32.u64.high %v4293_v48, %v4292_v7, %v14159_v51  ;;  %v4971_v9 = vsel %vm4964_vm15, %v4967_v20, %v4970_v6  ;;  %v4432_v3 = vmul.f32 %v4431_v62, %v4429_v26 }
 0x6ee   : > { %v4625_v47 = vclz %v8279_v35  ;;  %v4484_v46 = vor.u32 %v14095_v50, %v14091_v55  ;;  %v4972_v63 = vsel %vm4961_vm11, nan, %v4971_v9  ;;  %vm14173_vm7 = vcmp.le.f32.partialorder %v4349_v54, 0.7853982  ;;  %v16762_v55 = vld [vmem:[#allocation16_spill] sm:$0xff] }
 0x6ef   : > { %v4284_v0 = vsel %vm4278_vm4, %v4281_v34, %v4283_v10  ;;  %6069 = vmatpush1.msra.mxu1 %v4972_v63  ;;  %v4433_v17 = vxor.u32 2147483648, %v4432_v3  ;;  %v14179_v45 = vmul.u32.u64.low %v4293_v48, %v4288_v31  ;;  %v14180_v8 = vmul.u32.u64.high %v4293_v48, %v4288_v31, %v14179_v45 }
 0x6f0   : > { %v8280_v33 = vadd.s32 4294967294, %v4625_v47  ;;  %v4494_v1 = vsel %vm4488_vm2, %v14097_v37, 920167782  ;;  %v4438_v54 = vsel %vm14173_vm7, 0, %v4436_v42  ;;  %v4453_v50 = vand.u32 2147483647, %v16762_v55 }
 0x6f1   : > { %v4471_v14 = vshrl.u32 %v16293_v16, %v16748_v2  ;;  %v4434_v23 = vsel %vm4351_vm1, %v4433_v17, %v4432_v3  ;;  %v4613_v25 = vadd.s32 %v14044_v13, %v14054_v32  ;;  %v4300_v43 = vmul.u32 %v4293_v48, %v4284_v0 }
 0x6f2   : > { %vm8281_vm14 = vcmp.lt.s32.totalorder %v8280_v33, 0  ;;  %v4437_v39 = vsel %vm14173_vm7, %v16731_v27, %v4434_v23  ;;  %vm4302_vm8 = vc.u32 %v14160_v30, %v14179_v45  ;;  %v4470_v24 = vshll.u32 %v16300_v28, %v16755_v59 }
 0x6f3   : > { %v4628_v11 = vsel %vm8281_vm14, 0, %v8280_v33  ;;  %8913 = vcosq.f32 %v4437_v39  ;;  %v4460_v57 = vand.u32 8388607, %v4453_v50  ;;  %v4303_v32 = vadd.s32 1, %v14180_v8 }
 0x6f4   : > { %v4629_v52 = vsub.s32 32, %v4628_v11  ;;  %v4633_v5 = vsub.s32 4294967266, %v4628_v11  ;;  %8915 = vsinq.f32 %v4437_v39  ;;  %v4630_v13 = vshll.u32 %v14133_v56, %v4628_v11 }
 0x6f5   : > { %v4472_v49 = vor.u32 %v4471_v14, %v4470_v24  ;;  %v4473_v53 = vshll.u32 %v16293_v16, %v16755_v59  ;;  %v4474_v44 = vshrl.u32 %v16431_v29, %v16748_v2  ;;  %v4498_v38 = vsel %vm4488_vm2, %v4484_v46, 1326507024 }
 0x6f6   : > { %v4631_v19 = vshrl.u32 %v4613_v25, %v4629_v52  ;;  %v4634_v22 = vadd.s32 127, %v4633_v5  ;;  %v4304_v7 = vsel %vm4302_vm8, %v4303_v32, %v14180_v8  ;;  %v4476_v18 = vshll.u32 %v16431_v29, %v16755_v59 }
 0x6f7   : > { %v4477_v56 = vshrl.u32 %v16432_v60, %v16748_v2  ;;  %v4305_v48 = vadd.s32 %v4304_v7, %v4300_v43  ;;  %v4475_v6 = vor.u32 %v4474_v44, %v4473_v53  ;;  %v4442_v26 = vadd.s32 3, %v4438_v54 }
 0x6f8   : > { %v4632_v34 = vor.u32 %v4631_v19, %v4630_v13  ;;  %v4635_v10 = vshll.u32 %v4634_v22, 23  ;;  %v4461_v62 = vor.u32 8388608, %v4460_v57  ;;  %vm4485_vm13 = vcmp.lt.s32.totalorder %v14082_v61, 1 }
 0x6f9   : > { %v4478_v35 = vor.u32 %v4477_v56, %v4476_v18  ;;  %v4306_v31 = vadd.s32 536870912, %v4305_v48  ;;  %vm4487_vm6 = vcmp.lt.s32.totalorder %v14082_v61, 3  ;;  %v4493_v51 = vsel %vm4485_vm13, %v4472_v49, %v4475_v6 }
 0x6fa   : > { %v4636_v20 = vor.u32 4788187, %v4635_v10  ;;  %vm4486_vm0 = vcmp.lt.s32.totalorder %v14082_v61, 2  ;;  %v4499_v3 = vsel %vm4487_vm6, %v14097_v37, %v4498_v38  ;;  %v4639_v47 = vcvt.s32.f32 %v4632_v34 }
 0x6fb   : > { %v4495_v59 = vsel %vm4487_vm6, %v4478_v35, %v4494_v1  ;;  %v4497_v9 = vsel %vm4485_vm13, %v4475_v6, %v4478_v35  ;;  %v14229_v46 = vshrl.u32 %v4306_v31, 30  ;;  %v4443_v4 = vand.u32 3, %v4442_v26 }
 0x6fc   : > { %v4637_v42 = vand.u32 2147483647, %v4636_v20  ;;  %v4496_v63 = vsel %vm4486_vm0, %v4493_v51, %v4495_v59  ;;  %v4490_v0 = vsel %vm4488_vm2, %v4478_v35, 2102212464  ;;  %v4500_v17 = vsel %vm4486_vm0, %v4497_v9, %v4499_v3 }
 0x6fd   : > { %v4501_v33 = vshll.u32 %v4461_v62, 8  ;;  %v4308_v1 = vshll.u32 %v14229_v46, 30  ;;  %v4469_v37 = vshrl.u32 %v16300_v28, %v16748_v2  ;;  %v4491_v24 = vsel %vm4487_vm6, %v4475_v6, %v4490_v0 }
 0x6fe   : > { %v4640_v8 = vmul.f32 %v4639_v47, %v4637_v42  ;;  %vm4444_vm12 = vcmp.lt.s32.totalorder %v4443_v4, 2  ;;  %vm14253_vm9 = vcmp.le.f32.partialorder %v4557_v15, 0.7853982  ;;  %vm4559_vm5 = vcmp.lt.s32.totalorder %v16743_v41, 0 }
 0x6ff   : > { %v14240_v54 = vmul.u32.u64.low %v4501_v33, %v4500_v17  ;;  %v14241_v14 = vmul.u32.u64.high %v4501_v33, %v4500_v17, %v14240_v54  ;;  %v14243_v23 = vmul.u32.u64.low %v4501_v33, %v4496_v63  ;;  %v14244_v25 = vmul.u32.u64.high %v4501_v33, %v4496_v63, %v14243_v23 }
 0x700   : > { %v4641_v43 = vxor.u32 2147483648, %v4640_v8  ;;  %v4309_v39 = vsub.s32 %v4305_v48, %v4308_v1  ;;  %v4489_v11 = vsel %vm4485_vm13, %v4469_v37, %v4472_v49  ;;  %v8914_v52 = vpop.eup %8913  ;;  %v4643_v5 = vsub.s32 4, %v14117_v36 }
 0x701   : > { %v8916_v57 = vpop.eup %8915  ;;  %vm4445_vm15 = vcmp.eq.s32.totalorder %v4443_v4, 0  ;;  %v4449_v13 = vxor.u32 2147483648, %v8914_v52  ;;  %vm4448_vm1 = vcmp.eq.s32.totalorder %v4443_v4, 2  ;;  %v4492_v22 = vsel %vm4486_vm0, %v4489_v11, %v4491_v24 }
 0x702   : > { %v4642_v32 = vsel %vm4559_vm5, %v4641_v43, %v4640_v8  ;;  %v4311_v49 = vsub.s32 0, %v4309_v39  ;;  %v4446_v19 = vxor.u32 2147483648, %v8916_v57  ;;  %vm4510_vm3 = vc.u32 %v14241_v14, %v14243_v23 }
 0x703   : > { %v4645_v15 = vsel %vm14253_vm9, %v16743_v41, %v4642_v32  ;;  %v4450_v53 = vsel %vm4448_vm1, %v4449_v13, %v8916_v57  ;;  %v4644_v7 = vsel %vm4559_vm5, %v4643_v5, %v14117_v36  ;;  %v4511_v18 = vadd.s32 1, %v14244_v25 }
 0x704   : > { %8917 = vcosq.f32 %v4645_v15  ;;  %v8267_v44 = vmin.u32 %v4311_v49, %v4309_v39  ;;  %v4447_v38 = vsel %vm4445_vm15, %v8914_v52, %v4446_v19  ;;  %vm4441_vm11 = vweird.f32 %v16731_v27 }
 0x705   : > { %8919 = vsinq.f32 %v4645_v15  ;;  %v4451_v56 = vsel %vm4444_vm12, %v4447_v38, %v4450_v53  ;;  %v4508_v34 = vmul.u32 %v4501_v33, %v4492_v22  ;;  %v4512_v48 = vsel %vm4510_vm3, %v4511_v18, %v14244_v25 }
 0x706   : > { %v4313_v61 = vclz %v8267_v44  ;;  %v4452_v10 = vsel %vm4441_vm11, nan, %v4451_v56  ;;  %v4646_v6 = vsel %vm14253_vm9, 0, %v4644_v7  ;;  %v4301_v27 = vadd.s32 %v14179_v45, %v14160_v30 }
 0x707   : > { %5981 = vmatprep.subr.mxu0 %v4452_v10  ;;  %v4513_v62 = vadd.s32 %v4512_v48, %v4508_v34  ;;  %v4650_v35 = vadd.s32 3, %v4646_v6  ;;  %vm4649_vm14 = vweird.f32 %v16743_v41  ;;  %vm4247_vm8 = vcmp.lt.s32.totalorder %v16753_v40, 0 }
 0x708   : > { %v8268_v26 = vadd.s32 4294967294, %v4313_v61  ;;  %v4331_v32 = vsub.s32 4, %v14229_v46  ;;  %vm14287_vm13 = vcmp.le.f32.partialorder %v4245_v21, 0.7853982  ;;  %v4509_v22 = vadd.s32 %v14243_v23, %v14241_v14 }
 0x709   : > { %v4514_v36 = vadd.s32 536870912, %v4513_v62  ;;  %v4651_v63 = vand.u32 3, %v4650_v35  ;;  %vm4455_vm0 = vcmp.lt.s32.totalorder %v16762_v55, 0  ;;  %vm14303_vm12 = vcmp.le.f32.partialorder %v4453_v50, 0.7853982 }
 0x70a   : > { %vm8269_vm10 = vcmp.lt.s32.totalorder %v8268_v26, 0  ;;  %v4332_v38 = vsel %vm4247_vm8, %v4331_v32, %v14229_v46  ;;  %vm4337_vm1 = vweird.f32 %v16753_v40  ;;  %vm16769_vm3 = vcmask 261120  }
 0x70b   : > { %v4316_v20 = vsel %vm8269_vm10, 0, %v8268_v26  ;;  %v14279_v59 = vshrl.u32 %v4514_v36, 30  ;;  %vm4653_vm2 = vcmp.eq.s32.totalorder %v4651_v63, 0  ;;  %vm4656_vm4 = vcmp.eq.s32.totalorder %v4651_v63, 2  ;;  %vm16771_vm11 = vmmov %vm16769_vm3 }
 0x70c   : > { %v4317_v31 = vsub.s32 32, %v4316_v20  ;;  %v4321_v51 = vsub.s32 4294967266, %v4316_v20  ;;  %v4318_v9 = vshll.u32 %v4309_v39, %v4316_v20  ;;  %vm4652_vm7 = vcmp.lt.s32.totalorder %v4651_v63, 2  ;;  %v8330_v63 = vld [vmem:[%s15975_s2 + $0x40] sm:$0xff]  ;;  %vm16772_vm10 = vmmov %vm16769_vm3 }
 0x70d   : > { %v4516_v47 = vshll.u32 %v14279_v59, 30  ;;  %v4334_v56 = vsel %vm14287_vm13, 0, %v4332_v38  ;;  %v4539_v46 = vsub.s32 4, %v14279_v59 }
 0x70e   : > { %v4319_v3 = vshrl.u32 %v4301_v27, %v4317_v31  ;;  %v4322_v42 = vadd.s32 127, %v4321_v51  ;;  %v4338_v48 = vadd.s32 3, %v4334_v56 }
 0x70f   : > { %v4517_v17 = vsub.s32 %v4513_v62, %v4516_v47  ;;  %v4540_v47 = vsel %vm4455_vm0, %v4539_v46, %v14279_v59  ;;  %v8331_v59 = vld [vmem:[%s15975_s2 + $0x48] sm:$0xff] }
 0x710   : > { %v4320_v4 = vor.u32 %v4319_v3, %v4318_v9  ;;  %v4323_v0 = vshll.u32 %v4322_v42, 23  ;;  %v4339_v36 = vand.u32 3, %v4338_v48 }
 0x711   : > { %v8918_v33 = vpop.eup %8917  ;;  %v4519_v54 = vsub.s32 0, %v4517_v17 }
 0x712   : > { %v8920_v8 = vpop.eup %8919  ;;  %v4657_v1 = vxor.u32 2147483648, %v8918_v33  ;;  %v4324_v37 = vor.u32 4788187, %v4323_v0  ;;  %v4327_v43 = vcvt.s32.f32 %v4320_v4  ;;  %vm4344_vm9 = vcmp.eq.s32.totalorder %v4339_v36, 2 }
 0x713   : > { %v4654_v30 = vxor.u32 2147483648, %v8920_v8  ;;  %v8275_v39 = vmin.u32 %v4519_v54, %v4517_v17  ;;  %vm4341_vm5 = vcmp.eq.s32.totalorder %v4339_v36, 0  ;;  %vm4340_vm15 = vcmp.lt.s32.totalorder %v4339_v36, 2 }
 0x714   : > { %v4658_v45 = vsel %vm4656_vm4, %v4657_v1, %v8920_v8  ;;  %v4325_v25 = vand.u32 2147483647, %v4324_v37  ;;  %v4542_v0 = vsel %vm14303_vm12, 0, %v4540_v47 }
 0x715   : > { %v4655_v11 = vsel %vm4653_vm2, %v8918_v33, %v4654_v30  ;;  %v4521_v2 = vclz %v8275_v39  ;;  %v4546_v33 = vadd.s32 3, %v4542_v0  ;;  %v8333_v30 = vld [vmem:[%s15975_s2 + $0x58] sm:$0xff] }
 0x716   : > { %v4659_v24 = vsel %vm4652_vm7, %v4655_v11, %v4658_v45  ;;  %v4328_v52 = vmul.f32 %v4327_v43, %v4325_v25 }
 0x717   : > { %v4660_v5 = vsel %vm4649_vm14, nan, %v4659_v24  ;;  %v8276_v13 = vadd.s32 4294967294, %v4521_v2  ;;  %v4547_v8 = vand.u32 3, %v4546_v33  ;;  %vm16773_vm14 = vmmov %vm16769_vm3 }
 0x718   : > { %6070 = vmatprep.subr.mxu1 %v4660_v5  ;;  %v4329_v57 = vxor.u32 2147483648, %v4328_v52 }
 0x719   : > { %vm8277_vm6 = vcmp.lt.s32.totalorder %v8276_v13, 0  ;;  %vm4552_vm2 = vcmp.eq.s32.totalorder %v4547_v8, 2  ;;  %vm4549_vm4 = vcmp.eq.s32.totalorder %v4547_v8, 0  ;;  %vm4548_vm7 = vcmp.lt.s32.totalorder %v4547_v8, 2 }
 0x71a   : > { %v4330_v19 = vsel %vm4247_vm8, %v4329_v57, %v4328_v52  ;;  %v4524_v15 = vsel %vm8277_vm6, 0, %v8276_v13  ;;  %vm4545_vm8 = vweird.f32 %v16762_v55  ;;  %vm16775_vm6 = vmmov %vm16769_vm3 }
 0x71b   : > { %v4333_v41 = vsel %vm14287_vm13, %v16753_v40, %v4330_v19  ;;  %v4525_v53 = vsub.s32 32, %v4524_v15  ;;  %v4529_v44 = vsub.s32 4294967266, %v4524_v15  ;;  %v4526_v21 = vshll.u32 %v4517_v17, %v4524_v15  ;;  %v8332_v40 = vld [vmem:[%s15975_s2 + $0x50] sm:$0xff]  ;;  %vm16774_vm13 = vmmov %vm16769_vm3 }
 0x71c   : > { %8921 = vcosq.f32 %v4333_v41  ;;  %v16770_v17 = vmov 0.0  }
 0x71d   : > { %8923 = vsinq.f32 %v4333_v41  ;;  %v4527_v7 = vshrl.u32 %v4509_v22, %v4525_v53  ;;  %v4530_v18 = vadd.s32 127, %v4529_v44  ;;  %v14358_v22 = vpop.permute.xlu0 %5936 }
 0x71f   : > { %v4528_v61 = vor.u32 %v4527_v7, %v4526_v21  ;;  %v4531_v34 = vshll.u32 %v4530_v18, 23 }
 0x721   : > { %v4532_v10 = vor.u32 4788187, %v4531_v34  ;;  %v4535_v26 = vcvt.s32.f32 %v4528_v61  ;;  %v14360_v34 = vpop.permute.xlu0 %5926 }
 0x723   : > { %v4533_v6 = vand.u32 2147483647, %v4532_v10 }
 0x725   : > { %v4536_v62 = vmul.f32 %v4535_v26, %v4533_v6 }
 0x727   : > { %v4537_v14 = vxor.u32 2147483648, %v4536_v62 }
 0x729   : > { %v8922_v23 = vpop.eup %8921  ;;  %v4538_v31 = vsel %vm4455_vm0, %v4537_v14, %v4536_v62  ;;  %vm16776_vm0 = vmmov %vm16769_vm3 }
 0x72a   : > { %v8924_v35 = vpop.eup %8923  ;;  %v4345_v20 = vxor.u32 2147483648, %v8922_v23  ;;  %v4541_v9 = vsel %vm14303_vm12, %v16762_v55, %v4538_v31  ;;  %vm16777_vm12 = vmmov %vm16776_vm0  ;;  %v14343_v55 = vpop.permute.xlu1 %5931 }
 0x72b   : > { %v4342_v51 = vxor.u32 2147483648, %v8924_v35  ;;  %8925 = vcosq.f32 %v4541_v9 }
 0x72c   : > { %v4346_v3 = vsel %vm4344_vm9, %v4345_v20, %v8924_v35  ;;  %8927 = vsinq.f32 %v4541_v9 }
 0x72d   : > { %v4343_v42 = vsel %vm4341_vm5, %v8922_v23, %v4342_v51 }
 0x72e   : > { %v4347_v50 = vsel %vm4340_vm15, %v4343_v42, %v4346_v3  ;;  %v14345_v24 = vpop.permute.xlu1 %5921 }
 0x72f   : > { %v4348_v4 = vsel %vm4337_vm1, nan, %v4347_v50 }
 0x730   : > { %5982 = vmatpush1.msra.mxu0 %v4348_v4 }
 0x731   : > { %8338 = vmatmul.mubr.msk.f32.vlgmr.msra.gmra.mxu0 %vm16769_vm3, %v8330_v63 }
 0x732   : > { %6021 = vmatprep.mubr.f32.mxu0 %v16770_v17 }
 0x735   : > { %8339 = vmatmul.mubr.msk.f32.gmra.mxu0 %vm16771_vm11, %v8331_v59 }
 0x736   : > { %6027 = vmatprep.mubr.f32.mxu0 %v16770_v17 }
 0x738   : > { %v8926_v1 = vpop.eup %8925 }
 0x739   : > { %8340 = vmatmul.mubr.msk.f32.gmra.mxu0 %vm16772_vm10, %v8332_v40  ;;  %v8928_v37 = vpop.eup %8927  ;;  %v4553_v54 = vxor.u32 2147483648, %v8926_v1 }
 0x73a   : > { %6033 = vmatprep.mubr.f32.mxu0 %v16770_v17  ;;  %v4550_v45 = vxor.u32 2147483648, %v8928_v37 }
 0x73b   : > { %v4554_v25 = vsel %vm4552_vm2, %v4553_v54, %v8928_v37 }
 0x73c   : > { %v4551_v43 = vsel %vm4549_vm4, %v8926_v1, %v4550_v45 }
 0x73d   : > { %8341 = vmatmul.mubr.msk.f32.gmra.mxu0 %vm16773_vm14, %v8333_v30  ;;  %v4555_v39 = vsel %vm4548_vm7, %v4551_v43, %v4554_v25 }
 0x73e   : > { %7896 = vmatprep.mubr.f32.mxu0 %v16770_v17  ;;  %v4556_v11 = vsel %vm4545_vm8, nan, %v4555_v39 }
 0x73f   : > { %6071 = vmatpush1.msra.mxu1 %v4556_v11 }
 0x740   : > { %8342 = vmatmul.mubr.msk.f32.vlgmr.msra.gmra.mxu1 %vm16774_vm13, %v8330_v63 }
 0x741   : > { %6110 = vmatprep.mubr.f32.mxu1 %v16770_v17 }
 0x744   : > { %8343 = vmatmul.mubr.msk.f32.gmra.mxu1 %vm16775_vm6, %v8331_v59 }
 0x745   : > { %6116 = vmatprep.mubr.f32.mxu1 %v16770_v17 }
 0x748   : > { %8344 = vmatmul.mubr.msk.f32.gmra.mxu1 %vm16776_vm0, %v8332_v40 }
 0x749   : > { %6122 = vmatprep.mubr.f32.mxu1 %v16770_v17 }
 0x74c   : > { %8345 = vmatmul.mubr.msk.f32.gmra.mxu1 %vm16777_vm12, %v8333_v30 }
 0x74d   : > { %7979 = vmatprep.mubr.f32.mxu1 %v16770_v17 }
 0x7f1   : > { %v6017_v52 = vpop.f32.mrf.mxu0 }
 0x7f2   : > { %v14348_v2 = vadd.f32 %v6017_v52, %v14345_v24 }
 0x7f3   : > { %v6019_v5 = vpop.f32.mrf.mxu0 }
 0x7f4   : > { %16778 = vst [vmem:[#allocation65_spill] sm:$0xff] %v14348_v2  ;;  %v6129_v57 = vand.u32 2147483647, %v14348_v2  ;;  %v6132_v13 = vand.u32 2139095040, %v14348_v2  ;;  %v14353_v32 = vadd.f32 %v6019_v5, %v14345_v24 }
 0x7f5   : > { %v6023_v56 = vpop.f32.mrf.mxu0 }
 0x7f6   : > { %16779 = vst [vmem:[#allocation64_spill] sm:$0xff] %v14353_v32  ;;  %v6133_v49 = vshrl.u32 %v6132_v13, 23  ;;  %v6236_v19 = vand.u32 2139095040, %v14353_v32  ;;  %v6136_v15 = vand.u32 8388607, %v6129_v57  ;;  %v14366_v26 = vadd.f32 %v6023_v56, %v14360_v34 }
 0x7f7   : > { %v16205_v6 = vand.u32 2147483647, %v14353_v32 }
 0x7f8   : > { %v8346_v41 = vadd.s32 4294967169, %v6133_v49  ;;  %v6237_v53 = vshrl.u32 %v6236_v19, 23  ;;  %v6137_v21 = vor.u32 8388608, %v6136_v15  ;;  %16780 = vst [vmem:[#allocation57_spill] sm:$0xff] %v14366_v26 }
 0x7fa   : > { %v6139_v44 = vadd.s32 1, %v8346_v41  ;;  %v8350_v38 = vadd.s32 4294967169, %v6237_v53  ;;  %v14362_v48 = vshll.u32 %v6137_v21, 8  ;;  %v14401_v21 = vand.u32 8388607, %v16205_v6 }
 0x7fc   : > { %vm6140_vm9 = vcmp.gt.s32.totalorder %v6139_v44, 0  ;;  %v6243_v18 = vadd.s32 1, %v8350_v38 }
 0x7fd   : > { %v6141_v7 = vsel %vm6140_vm9, %v6139_v44, 0 }
 0x7fe   : > { %v6143_v61 = vand.u32 31, %v6141_v7  ;;  %v6142_v62 = vshrl.u32 %v6141_v7, 5  ;;  %vm6244_vm5 = vcmp.gt.s32.totalorder %v6243_v18, 0  ;;  %v6548_v7 = vand.u32 2139095040, %v14366_v26 }
 0x7ff   : > { %v6245_v25 = vsel %vm6244_vm5, %v6243_v18, 0 }
 0x800   : > { %v6144_v10 = vsub.s32 32, %v6143_v61  ;;  %v6146_v36 = vshll.u32 %v16300_v28, %v6143_v61  ;;  %v6149_v14 = vshll.u32 %v16293_v16, %v6143_v61  ;;  %v6106_v23 = vpop.f32.mrf.mxu1  ;;  %v6152_v20 = vshll.u32 %v16431_v29, %v6143_v61 }
 0x801   : > { %v6155_v31 = vshll.u32 %v16432_v60, %v6143_v61  ;;  %v6158_v9 = vshll.u32 %v16303_v12, %v6143_v61  ;;  %v14379_v63 = vadd.f32 %v6106_v23, %v14345_v24  ;;  %vm6161_vm15 = vcmp.lt.s32.totalorder %v6142_v62, 1 }
 0x802   : > { %v6147_v46 = vshrl.u32 %v16293_v16, %v6144_v10  ;;  %v6150_v35 = vshrl.u32 %v16431_v29, %v6144_v10  ;;  %v6153_v27 = vshrl.u32 %v16432_v60, %v6144_v10  ;;  %v6156_v51 = vshrl.u32 %v16303_v12, %v6144_v10  ;;  %v6108_v41 = vpop.f32.mrf.mxu1 }
 0x803   : > { %v6159_v3 = vshrl.u32 %v16294_v58, %v6144_v10  ;;  %16781 = vst [vmem:[#allocation70_spill] sm:$0xff] %v14379_v63  ;;  %vm6164_vm1 = vcmp.lt.s32.totalorder %v6142_v62, 4  ;;  %vm6162_vm3 = vcmp.lt.s32.totalorder %v6142_v62, 2  ;;  %v6145_v8 = vshrl.u32 %v16300_v28, %v6144_v10 }
 0x804   : > { %v6148_v42 = vor.u32 %v6147_v46, %v6146_v36  ;;  %v6151_v47 = vor.u32 %v6150_v35, %v6149_v14  ;;  %v6154_v50 = vor.u32 %v6153_v27, %v6152_v20  ;;  %v6157_v4 = vor.u32 %v6156_v51, %v6155_v31 }
 0x805   : > { %v6160_v0 = vor.u32 %v6159_v3, %v6158_v9  ;;  %vm6163_vm11 = vcmp.lt.s32.totalorder %v6142_v62, 3  ;;  %v16209_v45 = vand.u32 2147483647, %v14379_v63  ;;  %v6340_v15 = vand.u32 2139095040, %v14379_v63 }
 0x806   : > { %v6166_v59 = vsel %vm6164_vm1, %v6154_v50, 2102212464  ;;  %v6169_v33 = vsel %vm6161_vm15, %v6148_v42, %v6151_v47  ;;  %v6173_v40 = vsel %vm6161_vm15, %v6151_v47, %v6154_v50  ;;  %v6170_v1 = vsel %vm6164_vm1, %v6157_v4, 920167782 }
 0x807   : > { %v6174_v37 = vsel %vm6164_vm1, %v6160_v0, 1326507024  ;;  %v6171_v54 = vsel %vm6163_vm11, %v6154_v50, %v6170_v1  ;;  %v6165_v43 = vsel %vm6161_vm15, %v6145_v8, %v6148_v42  ;;  %v6167_v39 = vsel %vm6163_vm11, %v6151_v47, %v6166_v59 }
 0x808   : > { %v6175_v30 = vsel %vm6163_vm11, %v6157_v4, %v6174_v37  ;;  %v6172_v11 = vsel %vm6162_vm3, %v6169_v33, %v6171_v54  ;;  %v6247_v53 = vand.u32 31, %v6245_v25  ;;  %v6168_v44 = vsel %vm6162_vm3, %v6165_v43, %v6167_v39 }
 0x809   : > { %v6176_v52 = vsel %vm6162_vm3, %v6173_v40, %v6175_v30  ;;  %v14391_v49 = vmul.u32.u64.low %v14362_v48, %v6172_v11  ;;  %v14392_v19 = vmul.u32.u64.high %v14362_v48, %v6172_v11, %v14391_v49  ;;  %v6344_v38 = vand.u32 8388607, %v16209_v45 }
 0x80a   : > { %v14387_v5 = vmul.u32.u64.low %v14362_v48, %v6176_v52  ;;  %v14388_v13 = vmul.u32.u64.high %v14362_v48, %v6176_v52, %v14387_v5  ;;  %v6341_v18 = vshrl.u32 %v6340_v15, 23  ;;  %v14405_v56 = vadd.f32 %v6108_v41, %v14345_v24 }
 0x80b   : > { %v6187_v61 = vadd.s32 1, %v14392_v19  ;;  %v6248_v10 = vsub.s32 32, %v6247_v53  ;;  %v6184_v62 = vmul.u32 %v14362_v48, %v6168_v44  ;;  %v6345_v23 = vor.u32 8388608, %v6344_v38 }
 0x80c   : > { %16782 = vst [vmem:[#allocation6_spill] sm:$0xff] %v14405_v56  ;;  %vm6186_vm10 = vc.u32 %v14388_v13, %v14391_v49  ;;  %v8354_v36 = vadd.s32 4294967169, %v6341_v18  ;;  %v6241_v46 = vor.u32 8388608, %v14401_v21  ;;  %v14413_v35 = vshrl.u32 %v6548_v7, 23  ;;  %v6025_v21 = vpop.f32.mrf.mxu0 }
 0x80d   : > { %v6188_v14 = vsel %vm6186_vm10, %v6187_v61, %v14392_v19  ;;  %v14415_v24 = vshrl.u32 %v6245_v25, 5  ;;  %v6444_v31 = vand.u32 2139095040, %v14405_v56  ;;  %v6250_v51 = vshll.u32 %v16300_v28, %v6247_v53 }
 0x80e   : > { %v6189_v20 = vadd.s32 %v6188_v14, %v6184_v62  ;;  %v6347_v27 = vadd.s32 1, %v8354_v36  ;;  %v6251_v9 = vshrl.u32 %v16293_v16, %v6248_v10  ;;  %v6254_v48 = vshrl.u32 %v16431_v29, %v6248_v10 }
 0x80f   : > { %v6257_v3 = vshrl.u32 %v16432_v60, %v6248_v10  ;;  %v6253_v47 = vshll.u32 %v16293_v16, %v6247_v53  ;;  %v6260_v50 = vshrl.u32 %v16303_v12, %v6248_v10  ;;  %v14424_v0 = vshll.u32 %v6345_v23, 8 }
 0x810   : > { %v6190_v42 = vadd.s32 536870912, %v6189_v20  ;;  %vm6348_vm2 = vcmp.gt.s32.totalorder %v6347_v27, 0  ;;  %v6256_v59 = vshll.u32 %v16431_v29, %v6247_v53  ;;  %v6263_v33 = vshrl.u32 %v16294_v58, %v6248_v10 }
 0x811   : > { %v6349_v4 = vsel %vm6348_vm2, %v6347_v27, 0  ;;  %v14431_v1 = vshrl.u32 %v16300_v28, %v6248_v10  ;;  %v6259_v37 = vshll.u32 %v16432_v60, %v6247_v53  ;;  %v14434_v54 = vor.u32 %v6251_v9, %v6250_v51 }
 0x812   : > { %v14428_v40 = vshrl.u32 %v6190_v42, 30  ;;  %v6351_v8 = vand.u32 31, %v6349_v4  ;;  %v14436_v30 = vor.u32 %v6254_v48, %v6253_v47  ;;  %v6258_v25 = vor.u32 %v6257_v3, %v6256_v59 }
 0x813   : > { %v6262_v43 = vshll.u32 %v16303_v12, %v6247_v53  ;;  %v6350_v11 = vshrl.u32 %v6349_v4, 5  ;;  %v6261_v5 = vor.u32 %v6260_v50, %v6259_v37  ;;  %vm6265_vm4 = vcmp.lt.s32.totalorder %v14415_v24, 1 }
 0x814   : > { %16783 = vst [vmem:[#allocation25_spill] sm:$0xff] %v14428_v40  ;;  %v6192_v39 = vshll.u32 %v14428_v40, 30  ;;  %v6352_v52 = vsub.s32 32, %v6351_v8  ;;  %v6354_v19 = vshll.u32 %v16300_v28, %v6351_v8  ;;  %v6357_v41 = vshll.u32 %v16293_v16, %v6351_v8 }
 0x815   : > { %v6360_v15 = vshll.u32 %v16431_v29, %v6351_v8  ;;  %v6264_v44 = vor.u32 %v6263_v33, %v6262_v43  ;;  %v6363_v53 = vshll.u32 %v16432_v60, %v6351_v8  ;;  %v6366_v62 = vshll.u32 %v16303_v12, %v6351_v8 }
 0x816   : > { %v14443_v38 = vsub.s32 %v6189_v20, %v6192_v39  ;;  %v6355_v7 = vshrl.u32 %v16293_v16, %v6352_v52  ;;  %v6358_v18 = vshrl.u32 %v16431_v29, %v6352_v52  ;;  %v6361_v61 = vshrl.u32 %v16432_v60, %v6352_v52 }
 0x817   : > { %v6364_v10 = vshrl.u32 %v16303_v12, %v6352_v52  ;;  %v6367_v36 = vshrl.u32 %v16294_v58, %v6352_v52  ;;  %vm6267_vm7 = vcmp.lt.s32.totalorder %v14415_v24, 3  ;;  %vm6369_vm14 = vcmp.lt.s32.totalorder %v6350_v11, 1 }
 0x818   : > { %v6195_v14 = vsub.s32 0, %v14443_v38  ;;  %v6356_v23 = vor.u32 %v6355_v7, %v6354_v19  ;;  %v6359_v20 = vor.u32 %v6358_v18, %v6357_v41  ;;  %v6353_v27 = vshrl.u32 %v16300_v28, %v6352_v52 }
 0x819   : > { %v6362_v51 = vor.u32 %v6361_v61, %v6360_v15  ;;  %v6365_v9 = vor.u32 %v6364_v10, %v6363_v53  ;;  %v6368_v48 = vor.u32 %v6367_v36, %v6366_v62  ;;  %vm6371_vm8 = vcmp.lt.s32.totalorder %v6350_v11, 3 }
 0x81a   : > { %v8347_v3 = vmin.u32 %v6195_v14, %v14443_v38  ;;  %vm6372_vm13 = vcmp.lt.s32.totalorder %v6350_v11, 4  ;;  %v6377_v42 = vsel %vm6369_vm14, %v6356_v23, %v6359_v20  ;;  %vm6370_vm6 = vcmp.lt.s32.totalorder %v6350_v11, 2 }
 0x81b   : > { %v6374_v47 = vsel %vm6372_vm13, %v6362_v51, 2102212464  ;;  %v6378_v50 = vsel %vm6372_vm13, %v6365_v9, 920167782  ;;  %v6381_v4 = vsel %vm6369_vm14, %v6359_v20, %v6362_v51  ;;  %v6382_v59 = vsel %vm6372_vm13, %v6368_v48, 1326507024 }
 0x81c   : > { %v6197_v33 = vclz %v8347_v3  ;;  %v6379_v8 = vsel %vm6371_vm8, %v6362_v51, %v6378_v50  ;;  %v6383_v37 = vsel %vm6371_vm8, %v6365_v9, %v6382_v59  ;;  %v6373_v43 = vsel %vm6369_vm14, %v6353_v27, %v6356_v23 }
 0x81d   : > { %v6380_v39 = vsel %vm6370_vm6, %v6377_v42, %v6379_v8  ;;  %v6384_v52 = vsel %vm6370_vm6, %v6381_v4, %v6383_v37  ;;  %vm6268_vm0 = vcmp.lt.s32.totalorder %v14415_v24, 4  ;;  %v6375_v41 = vsel %vm6371_vm8, %v6359_v20, %v6374_v47 }
 0x81e   : > { %v8348_v19 = vadd.s32 4294967294, %v6197_v33  ;;  %v14467_v15 = vmul.u32.u64.low %v14424_v0, %v6384_v52  ;;  %v14468_v7 = vmul.u32.u64.high %v14424_v0, %v6384_v52, %v14467_v15  ;;  %v6273_v61 = vsel %vm6265_vm4, %v14434_v54, %v14436_v30 }
 0x81f   : > { %v14471_v18 = vmul.u32.u64.low %v14424_v0, %v6380_v39  ;;  %v14472_v53 = vmul.u32.u64.high %v14424_v0, %v6380_v39, %v14471_v18  ;;  %v6274_v10 = vsel %vm6268_vm0, %v6261_v5, 920167782  ;;  %vm6266_vm12 = vcmp.lt.s32.totalorder %v14415_v24, 2 }
 0x820   : > { %v6275_v62 = vsel %vm6267_vm7, %v6258_v25, %v6274_v10  ;;  %v6277_v36 = vsel %vm6265_vm4, %v14436_v30, %v6258_v25  ;;  %v6278_v14 = vsel %vm6268_vm0, %v6264_v44, 1326507024  ;;  %v6376_v23 = vsel %vm6370_vm6, %v6373_v43, %v6375_v41 }
 0x821   : > { %v6270_v20 = vsel %vm6268_vm0, %v6258_v25, 2102212464  ;;  %v6279_v27 = vsel %vm6267_vm7, %v6261_v5, %v6278_v14  ;;  %v6445_v51 = vshrl.u32 %v6444_v31, 23  ;;  %vm8349_vm9 = vcmp.lt.s32.totalorder %v8348_v19, 0 }
 0x822   : > { %v6269_v9 = vsel %vm6265_vm4, %v14431_v1, %v14434_v54  ;;  %v6276_v48 = vsel %vm6266_vm12, %v6273_v61, %v6275_v62  ;;  %v6281_v11 = vshll.u32 %v6241_v46, 8  ;;  %vm6394_vm5 = vc.u32 %v14468_v7, %v14471_v18 }
 0x823   : > { %v6395_v25 = vadd.s32 1, %v14472_v53  ;;  %v6280_v31 = vsel %vm6266_vm12, %v6277_v36, %v6279_v27  ;;  %v8358_v5 = vadd.s32 4294967169, %v6445_v51  ;;  %v6392_v44 = vmul.u32 %v14424_v0, %v6376_v23 }
 0x824   : > { %v6271_v1 = vsel %vm6267_vm7, %v14436_v30, %v6270_v20  ;;  %v14507_v54 = vmul.u32.u64.low %v6281_v11, %v6280_v31  ;;  %v14508_v3 = vmul.u32.u64.high %v6281_v11, %v6280_v31, %v14507_v54  ;;  %v14515_v50 = vsel %vm8349_vm9, 0, %v8348_v19 }
 0x825   : > { %v6396_v46 = vsel %vm6394_vm5, %v6395_v25, %v14472_v53  ;;  %v14511_v42 = vmul.u32.u64.low %v6281_v11, %v6276_v48  ;;  %v14512_v47 = vmul.u32.u64.high %v6281_v11, %v6276_v48, %v14511_v42  ;;  %v6451_v59 = vadd.s32 1, %v8358_v5 }
 0x826   : > { %v6397_v4 = vadd.s32 %v6396_v46, %v6392_v44  ;;  %v6272_v0 = vsel %vm6266_vm12, %v6269_v9, %v6271_v1  ;;  %v16208_v33 = vand.u32 2147483647, %v14366_v26  ;;  %v14521_v30 = vadd.f32 %v6025_v21, %v14360_v34 }
 0x827   : > { %v16204_v37 = vand.u32 2147483647, %v14405_v56  ;;  %v8362_v43 = vadd.s32 4294967169, %v14413_v35  ;;  %v6205_v39 = vsub.s32 4294967266, %v14515_v50  ;;  %vm6290_vm15 = vc.u32 %v14508_v3, %v14511_v42 }
 0x828   : > { %v6398_v8 = vadd.s32 536870912, %v6397_v4  ;;  %v6291_v52 = vadd.s32 1, %v14512_v47  ;;  %vm6452_vm1 = vcmp.gt.s32.totalorder %v6451_v59, 0  ;;  %v6288_v19 = vmul.u32 %v6281_v11, %v6272_v0 }
 0x829   : > { %v6453_v41 = vsel %vm6452_vm1, %v6451_v59, 0  ;;  %v14534_v61 = vand.u32 8388607, %v16208_v33  ;;  %v6652_v35 = vand.u32 2139095040, %v14521_v30  ;;  %v6185_v10 = vadd.s32 %v14391_v49, %v14388_v13 }
 0x82a   : > { %v14529_v24 = vshrl.u32 %v6398_v8, 30  ;;  %v6292_v15 = vsel %vm6290_vm15, %v6291_v52, %v14512_v47  ;;  %v6455_v53 = vand.u32 31, %v6453_v41  ;;  %v6555_v14 = vadd.s32 1, %v8362_v43 }
 0x82b   : > { %v6293_v36 = vadd.s32 %v6292_v15, %v6288_v19  ;;  %v6201_v23 = vsub.s32 32, %v14515_v50  ;;  %v6206_v20 = vadd.s32 127, %v6205_v39  ;;  %v6448_v27 = vand.u32 8388607, %v16204_v37 }
 0x82c   : > { %16784 = vst [vmem:[#allocation54_spill] sm:$0xff] %v14529_v24  ;;  %v6400_v62 = vshll.u32 %v14529_v24, 30  ;;  %v6456_v51 = vsub.s32 32, %v6455_v53  ;;  %v6454_v11 = vshrl.u32 %v6453_v41, 5  ;;  %v6458_v25 = vshll.u32 %v16300_v28, %v6455_v53 }
 0x82d   : > { %v6294_v48 = vadd.s32 536870912, %v6293_v36  ;;  %v6461_v13 = vshll.u32 %v16293_v16, %v6455_v53  ;;  %v6467_v54 = vshll.u32 %v16432_v60, %v6455_v53  ;;  %v6449_v46 = vor.u32 8388608, %v6448_v27 }
 0x82e   : > { %v14543_v9 = vsub.s32 %v6397_v4, %v6400_v62  ;;  %v6459_v31 = vshrl.u32 %v16293_v16, %v6456_v51  ;;  %v6462_v49 = vshrl.u32 %v16431_v29, %v6456_v51  ;;  %v6465_v5 = vshrl.u32 %v16432_v60, %v6456_v51 }
 0x82f   : > { %v14551_v1 = vshrl.u32 %v6294_v48, 30  ;;  %v6468_v21 = vshrl.u32 %v16303_v12, %v6456_v51  ;;  %v6464_v59 = vshll.u32 %v16431_v29, %v6455_v53  ;;  %v6203_v0 = vshrl.u32 %v6185_v10, %v6201_v23 }
 0x830   : > { %v6403_v44 = vsub.s32 0, %v14543_v9  ;;  %v6460_v47 = vor.u32 %v6459_v31, %v6458_v25  ;;  %v6463_v4 = vor.u32 %v6462_v49, %v6461_v13  ;;  %v6470_v19 = vshll.u32 %v16303_v12, %v6455_v53 }
 0x831   : > { %16785 = vst [vmem:[#allocation66_spill] sm:$0xff] %v14551_v1  ;;  %v6296_v43 = vshll.u32 %v14551_v1, 30  ;;  %v6469_v39 = vor.u32 %v6468_v21, %v6467_v54  ;;  %v6466_v52 = vor.u32 %v6465_v5, %v6464_v59  ;;  %v6471_v41 = vshrl.u32 %v16294_v58, %v6456_v51 }
 0x832   : > { %v8355_v8 = vmin.u32 %v6403_v44, %v14543_v9  ;;  %vm6556_vm3 = vcmp.gt.s32.totalorder %v6555_v14, 0  ;;  %v6207_v15 = vshll.u32 %v6206_v20, 23  ;;  %vm6473_vm11 = vcmp.lt.s32.totalorder %v6454_v11, 1 }
 0x833   : > { %v14560_v48 = vsub.s32 %v6293_v36, %v6296_v43  ;;  %v6472_v27 = vor.u32 %v6471_v41, %v6470_v19  ;;  %vm6476_vm10 = vcmp.lt.s32.totalorder %v6454_v11, 4  ;;  %v6481_v10 = vsel %vm6473_vm11, %v6460_v47, %v6463_v4 }
 0x834   : > { %v6405_v62 = vclz %v8355_v8  ;;  %v6489_v23 = vshll.u32 %v6449_v46, 8  ;;  %vm6474_vm2 = vcmp.lt.s32.totalorder %v6454_v11, 2  ;;  %vm6475_vm4 = vcmp.lt.s32.totalorder %v6454_v11, 3 }
 0x835   : > { %v6482_v25 = vsel %vm6476_vm10, %v6469_v39, 920167782  ;;  %v6557_v31 = vsel %vm6556_vm3, %v6555_v14, 0  ;;  %v6299_v53 = vsub.s32 0, %v14560_v48  ;;  %v6486_v5 = vsel %vm6476_vm10, %v6472_v27, 1326507024 }
 0x836   : > { %v8356_v13 = vadd.s32 4294967294, %v6405_v62  ;;  %v6483_v49 = vsel %vm6475_vm4, %v6466_v52, %v6482_v25  ;;  %v6457_v20 = vshrl.u32 %v16300_v28, %v6456_v51  ;;  %v6478_v36 = vsel %vm6476_vm10, %v6466_v52, 2102212464 }
 0x837   : > { %v6484_v44 = vsel %vm6474_vm2, %v6481_v10, %v6483_v49  ;;  %v6485_v54 = vsel %vm6473_vm11, %v6463_v4, %v6466_v52  ;;  %v6487_v21 = vsel %vm6475_vm4, %v6469_v39, %v6486_v5  ;;  %v6559_v14 = vand.u32 31, %v6557_v31 }
 0x838   : > { %v14569_v46 = vmul.u32.u64.low %v6489_v23, %v6484_v44  ;;  %v14570_v59 = vmul.u32.u64.high %v6489_v23, %v6484_v44, %v14569_v46  ;;  %v6202_v8 = vshll.u32 %v14443_v38, %v14515_v50  ;;  %v6208_v43 = vor.u32 4788187, %v6207_v15 }
 0x839   : > { %v6477_v19 = vsel %vm6473_vm11, %v6457_v20, %v6460_v47  ;;  %v6553_v51 = vor.u32 8388608, %v14534_v61  ;;  %vm8357_vm7 = vcmp.lt.s32.totalorder %v8356_v13, 0  ;;  %v8351_v41 = vmin.u32 %v6299_v53, %v14560_v48 }
 0x83a   : > { %v6479_v52 = vsel %vm6475_vm4, %v6463_v4, %v6478_v36  ;;  %v6488_v39 = vsel %vm6474_vm2, %v6485_v54, %v6487_v21  ;;  %v6204_v62 = vor.u32 %v6203_v0, %v6202_v8  ;;  %v16206_v27 = vand.u32 2147483647, %v14521_v30 }
 0x83b   : > { %v14581_v10 = vmul.u32.u64.low %v6489_v23, %v6488_v39  ;;  %v14582_v25 = vmul.u32.u64.high %v6489_v23, %v6488_v39, %v14581_v10  ;;  %v6560_v49 = vsub.s32 32, %v6559_v14  ;;  %v6209_v38 = vand.u32 2147483647, %v6208_v43 }
 0x83c   : > { %v14584_v50 = vsel %vm8357_vm7, 0, %v8356_v13  ;;  %v6480_v47 = vsel %vm6474_vm2, %v6477_v19, %v6479_v52  ;;  %v6499_v61 = vadd.s32 1, %v14570_v59  ;;  %v6301_v15 = vclz %v8351_v41  ;;  %v6112_v52 = vpop.f32.mrf.mxu1 }
 0x83d   : > { %v14588_v53 = vshll.u32 %v6553_v51, 8  ;;  %v6653_v4 = vshrl.u32 %v6652_v35, 23  ;;  %v6211_v0 = vcvt.s32.f32 %v6204_v62  ;;  %v6393_v5 = vadd.s32 %v14471_v18, %v14468_v7 }
 0x83e   : > { %v14594_v20 = vshrl.u32 %v6557_v31, 5  ;;  %v14598_v13 = vand.u32 8388607, %v16206_v27  ;;  %v6413_v11 = vsub.s32 4294967266, %v14584_v50  ;;  %v6496_v36 = vmul.u32 %v6489_v23, %v6480_v47 }
 0x83f   : > { %vm6498_vm14 = vc.u32 %v14582_v25, %v14569_v46  ;;  %v6563_v44 = vshrl.u32 %v16293_v16, %v6560_v49  ;;  %v14604_v54 = vmul.f32 %v6211_v0, %v6209_v38  ;;  %v6566_v7 = vshrl.u32 %v16431_v29, %v6560_v49 }
 0x840   : > { %v6500_v35 = vsel %vm6498_vm14, %v6499_v61, %v14570_v59  ;;  %v6569_v18 = vshrl.u32 %v16432_v60, %v6560_v49  ;;  %v6409_v31 = vsub.s32 32, %v14584_v50  ;;  %v8352_v21 = vadd.s32 4294967294, %v6301_v15 }
 0x841   : > { %v6501_v8 = vadd.s32 %v6500_v35, %v6496_v36  ;;  %v6562_v43 = vshll.u32 %v16300_v28, %v6559_v14  ;;  %v6565_v23 = vshll.u32 %v16293_v16, %v6559_v14  ;;  %v6568_v19 = vshll.u32 %v16431_v29, %v6559_v14 }
 0x842   : > { %v6571_v51 = vshll.u32 %v16432_v60, %v6559_v14  ;;  %v6572_v41 = vshrl.u32 %v16303_v12, %v6560_v49  ;;  %v6414_v59 = vadd.s32 127, %v6413_v11  ;;  %v6575_v10 = vshrl.u32 %v16294_v58, %v6560_v49 }
 0x843   : > { %v6502_v39 = vadd.s32 536870912, %v6501_v8  ;;  %v6564_v62 = vor.u32 %v6563_v44, %v6562_v43  ;;  %v6567_v38 = vor.u32 %v6566_v7, %v6565_v23  ;;  %v6570_v47 = vor.u32 %v6569_v18, %v6568_v19 }
 0x844   : > { %v6573_v61 = vor.u32 %v6572_v41, %v6571_v51  ;;  %v6574_v15 = vshll.u32 %v16303_v12, %v6559_v14  ;;  %v6213_v0 = vxor.u32 2147483648, %v14604_v54  ;;  %v14621_v35 = vadd.f32 %v6112_v52, %v14360_v34 }
 0x845   : > { %v14618_v36 = vshrl.u32 %v6502_v39, 30  ;;  %v8366_v37 = vadd.s32 4294967169, %v6653_v4  ;;  %vm16242_vm8 = vcmp.lt.s32.totalorder %v14348_v2, 0  ;;  %v6410_v11 = vshll.u32 %v14543_v9, %v14584_v50 }
 0x846   : > { %16787 = vst [vmem:[#allocation49_spill] sm:$0xff] %v14621_v35  ;;  %v6411_v44 = vshrl.u32 %v6393_v5, %v6409_v31  ;;  %vm8353_vm13 = vcmp.lt.s32.totalorder %v8352_v21, 0  ;;  %v6576_v7 = vor.u32 %v6575_v10, %v6574_v15  ;;  %v6561_v14 = vshrl.u32 %v16300_v28, %v6560_v49 }
 0x847   : > { %16786 = vst [vmem:[#allocation69_spill] sm:$0xff] %v14618_v36  ;;  %v6504_v18 = vshll.u32 %v14618_v36, 30  ;;  %vm6577_vm6 = vcmp.lt.s32.totalorder %v14594_v20, 1  ;;  %vm6580_vm0 = vcmp.lt.s32.totalorder %v14594_v20, 4  ;;  %v6415_v43 = vshll.u32 %v6414_v59, 23 }
 0x848   : > { %v6582_v23 = vsel %vm6580_vm0, %v6570_v47, 2102212464  ;;  %v6585_v19 = vsel %vm6577_vm6, %v6564_v62, %v6567_v38  ;;  %v6586_v4 = vsel %vm6580_vm0, %v6573_v61, 920167782  ;;  %vm14632_vm12 = vcmp.le.f32.partialorder %v6129_v57, 0.7853982 }
 0x849   : > { %v16788_v51 = vmov 0  ;;  %v6304_v9 = vsel %vm8353_vm13, 0, %v8352_v21  ;;  %v14636_v50 = vsub.s32 %v6501_v8, %v6504_v18  ;;  %vm6579_vm9 = vcmp.lt.s32.totalorder %v14594_v20, 3 }
 0x84a   : > { %v16789_v51 = vsel %vm14632_vm12, 4294967295, %v16788_v51  ;;  %v6589_v49 = vsel %vm6577_vm6, %v6567_v38, %v6570_v47  ;;  %vm6578_vm5 = vcmp.lt.s32.totalorder %v14594_v20, 2  ;;  %v6581_v5 = vsel %vm6577_vm6, %v6561_v14, %v6564_v62 }
 0x84b   : > { %16790 = vst [vmem:[#allocation26_spill] sm:$0xff] %v16789_v51  ;;  %v6587_v31 = vsel %vm6579_vm9, %v6570_v47, %v6586_v4  ;;  %v6590_v41 = vsel %vm6580_vm0, %v6576_v7, 1326507024  ;;  %v6507_v52 = vsub.s32 0, %v14636_v50  ;;  %v6583_v59 = vsel %vm6579_vm9, %v6567_v38, %v6582_v23 }
 0x84c   : > { %v6588_v57 = vsel %vm6578_vm5, %v6585_v19, %v6587_v31  ;;  %v6591_v39 = vsel %vm6579_vm9, %v6573_v61, %v6590_v41  ;;  %v6416_v10 = vor.u32 4788187, %v6415_v43  ;;  %v16207_v38 = vand.u32 2147483647, %v14621_v35 }
 0x84d   : > { %v6592_v21 = vsel %vm6578_vm5, %v6589_v49, %v6591_v39  ;;  %v14646_v8 = vmul.u32.u64.low %v14588_v53, %v6588_v57  ;;  %v14647_v15 = vmul.u32.u64.high %v14588_v53, %v6588_v57, %v14646_v8  ;;  %v8359_v18 = vmin.u32 %v6507_v52, %v14636_v50 }
 0x84e   : > { %v14651_v62 = vmul.u32.u64.low %v14588_v53, %v6592_v21  ;;  %v14652_v47 = vmul.u32.u64.high %v14588_v53, %v6592_v21, %v14651_v62  ;;  %v6412_v7 = vor.u32 %v6411_v44, %v6410_v11  ;;  %v6289_v61 = vadd.s32 %v14511_v42, %v14508_v3  ;;  %v6029_v42 = vpop.f32.mrf.mxu0 }
 0x84f   : > { %v6584_v14 = vsel %vm6578_vm5, %v6581_v5, %v6583_v59  ;;  %v6756_v43 = vand.u32 2139095040, %v14621_v35  ;;  %v6214_v23 = vsel %vm16242_vm8, %v6213_v0, %v14604_v54  ;;  %v6305_v19 = vsub.s32 32, %v6304_v9 }
 0x850   : > { %v6509_v4 = vclz %v8359_v18  ;;  %v6659_v49 = vadd.s32 1, %v8366_v37  ;;  %v6417_v31 = vand.u32 2147483647, %v6416_v10  ;;  %v6309_v41 = vsub.s32 4294967266, %v6304_v9 }
 0x851   : > { %v6603_v52 = vadd.s32 1, %v14647_v15  ;;  %v6757_v11 = vshrl.u32 %v6756_v43, 23  ;;  %v6600_v44 = vmul.u32 %v14588_v53, %v6584_v14  ;;  %vm6602_vm15 = vc.u32 %v14652_v47, %v14646_v8 }
 0x852   : > { %v6760_v3 = vand.u32 8388607, %v16207_v38  ;;  %vm6660_vm1 = vcmp.gt.s32.totalorder %v6659_v49, 0  ;;  %v14671_v20 = vsel %vm14632_vm12, %v14348_v2, %v6214_v23  ;;  %v6419_v37 = vcvt.s32.f32 %v6412_v7 }
 0x853   : > { %v6604_v54 = vsel %vm6602_vm15, %v6603_v52, %v14647_v15  ;;  %v8370_v0 = vadd.s32 4294967169, %v6757_v11  ;;  %v6307_v5 = vshrl.u32 %v6289_v61, %v6305_v19  ;;  %v8360_v59 = vadd.s32 4294967294, %v6509_v4  ;;  %v6114_v15 = vpop.f32.mrf.mxu1 }
 0x854   : > { %v6605_v57 = vadd.s32 %v6604_v54, %v6600_v44  ;;  %v6661_v53 = vsel %vm6660_vm1, %v6659_v49, 0  ;;  %v14674_v39 = vmul.f32 %v6419_v37, %v6417_v31  ;;  %v14676_v10 = vadd.s32 127, %v6309_v41 }
 0x855   : > { %v6763_v21 = vadd.s32 1, %v8370_v0  ;;  %v14679_v18 = vadd.f32 %v6029_v42, %v14343_v55  ;;  %v6306_v62 = vshll.u32 %v14560_v48, %v6304_v9  ;;  %v6761_v43 = vor.u32 8388608, %v6760_v3 }
 0x856   : > { %v6606_v14 = vadd.s32 536870912, %v6605_v57  ;;  %v6657_v7 = vor.u32 8388608, %v14598_v13  ;;  %8929 = vcosq.f32 %v14671_v20  ;;  %v14686_v61 = vadd.s32 %v14569_v46, %v14582_v25 }
 0x857   : > { %vm6764_vm3 = vcmp.gt.s32.totalorder %v6763_v21, 0  ;;  %v14688_v23 = vand.u32 31, %v6661_v53  ;;  %v14690_v19 = vor.u32 %v6307_v5, %v6306_v62  ;;  %vm8361_vm11 = vcmp.lt.s32.totalorder %v8360_v59, 0 }
 0x858   : > { %v14692_v4 = vshrl.u32 %v6606_v14, 30  ;;  %v6765_v48 = vsel %vm6764_vm3, %v6763_v21, 0  ;;  %v14697_v31 = vadd.f32 %v6114_v15, %v14360_v34  ;;  %v14700_v46 = vadd.s32 %v14646_v8, %v14652_v47 }
 0x859   : > { %v6767_v49 = vand.u32 31, %v6765_v48  ;;  %v14703_v41 = vshll.u32 %v6761_v43, 8  ;;  %v14705_v52 = vshll.u32 %v6657_v7, 8  ;;  %v14707_v11 = vsel %vm8361_vm11, 0, %v8360_v59 }
 0x85a   : > { %16791 = vst [vmem:[#allocation62_spill] sm:$0xff] %v14692_v4  ;;  %v6608_v25 = vshll.u32 %v14692_v4, 30  ;;  %v14709_v3 = vshrl.u32 %v6661_v53, 5  ;;  %v14712_v42 = vsub.s32 32, %v14688_v23  ;;  %v6766_v34 = vshrl.u32 %v6765_v48, 5 }
 0x85b   : > { %v6768_v44 = vsub.s32 32, %v6767_v49  ;;  %v6770_v8 = vshll.u32 %v16300_v28, %v6767_v49  ;;  %v6773_v47 = vshll.u32 %v16293_v16, %v6767_v49  ;;  %v6776_v5 = vshll.u32 %v16431_v29, %v6767_v49 }
 0x85c   : > { %v14714_v37 = vsub.s32 %v6605_v57, %v6608_v25  ;;  %v6779_v21 = vshll.u32 %v16432_v60, %v6767_v49  ;;  %v6782_v62 = vshll.u32 %v16303_v12, %v6767_v49  ;;  %v6517_v25 = vsub.s32 4294967266, %v14707_v11 }
 0x85d   : > { %v6771_v54 = vshrl.u32 %v16293_v16, %v6768_v44  ;;  %v6774_v0 = vshrl.u32 %v16431_v29, %v6768_v44  ;;  %v6777_v59 = vshrl.u32 %v16432_v60, %v6768_v44  ;;  %v6780_v57 = vshrl.u32 %v16303_v12, %v6768_v44 }
 0x85e   : > { %v6611_v53 = vsub.s32 0, %v14714_v37  ;;  %v6783_v15 = vshrl.u32 %v16294_v58, %v6768_v44  ;;  %vm6788_vm10 = vcmp.lt.s32.totalorder %v6766_v34, 4  ;;  %v6666_v33 = vshll.u32 %v16300_v28, %v14688_v23 }
 0x85f   : > { %v6772_v14 = vor.u32 %v6771_v54, %v6770_v8  ;;  %v6775_v43 = vor.u32 %v6774_v0, %v6773_v47  ;;  %v6778_v7 = vor.u32 %v6777_v59, %v6776_v5  ;;  %v6781_v27 = vor.u32 %v6780_v57, %v6779_v21 }
 0x860   : > { %v8363_v6 = vmin.u32 %v6611_v53, %v14714_v37  ;;  %v6784_v38 = vor.u32 %v6783_v15, %v6782_v62  ;;  %v6667_v49 = vshrl.u32 %v16293_v16, %v14712_v42  ;;  %vm6785_vm2 = vcmp.lt.s32.totalorder %v6766_v34, 1 }
 0x861   : > { %v6790_v47 = vsel %vm6788_vm10, %v6778_v7, 2102212464  ;;  %v6670_v54 = vshrl.u32 %v16431_v29, %v14712_v42  ;;  %v6769_v0 = vshrl.u32 %v16300_v28, %v6768_v44  ;;  %vm6787_vm4 = vcmp.lt.s32.totalorder %v6766_v34, 3 }
 0x862   : > { %v6613_v8 = vclz %v8363_v6  ;;  %v6793_v5 = vsel %vm6785_vm2, %v6772_v14, %v6775_v43  ;;  %v6794_v59 = vsel %vm6788_vm10, %v6781_v27, 920167782  ;;  %vm6786_vm7 = vcmp.lt.s32.totalorder %v6766_v34, 2 }
 0x863   : > { %v14739_v53 = vpop.eup %8929  ;;  %v6795_v57 = vsel %vm6787_vm4, %v6778_v7, %v6794_v59  ;;  %v6797_v62 = vsel %vm6785_vm2, %v6775_v43, %v6778_v7  ;;  %v6789_v15 = vsel %vm6785_vm2, %v6769_v0, %v6772_v14  ;;  %v6791_v6 = vsel %vm6787_vm4, %v6775_v43, %v6790_v47 }
 0x864   : > { %16792 = vst [vmem:[#allocation58_spill] sm:$0xff] %v14739_v53  ;;  %v8364_v21 = vadd.s32 4294967294, %v6613_v8  ;;  %v6796_v9 = vsel %vm6786_vm7, %v6793_v5, %v6795_v57  ;;  %v6798_v13 = vsel %vm6788_vm10, %v6784_v38, 1326507024  ;;  %v14747_v17 = vadd.s32 127, %v6517_v25 }
 0x865   : > { %v6799_v48 = vsel %vm6787_vm4, %v6781_v27, %v6798_v13  ;;  %v14743_v45 = vmul.u32.u64.low %v14703_v41, %v6796_v9  ;;  %v14744_v44 = vmul.u32.u64.high %v14703_v41, %v6796_v9, %v14743_v45  ;;  %v6669_v8 = vshll.u32 %v16293_v16, %v14688_v23 }
 0x866   : > { %vm8365_vm14 = vcmp.lt.s32.totalorder %v8364_v21, 0  ;;  %v6800_v53 = vsel %vm6786_vm7, %v6797_v62, %v6799_v48  ;;  %v6792_v14 = vsel %vm6786_vm7, %v6789_v15, %v6791_v6  ;;  %v6672_v34 = vshll.u32 %v16431_v29, %v14688_v23 }
 0x867   : > { %v6616_v51 = vsel %vm8365_vm14, 0, %v8364_v21  ;;  %v6673_v27 = vshrl.u32 %v16432_v60, %v14712_v42  ;;  %v14756_v38 = vmul.u32.u64.low %v14703_v41, %v6800_v53  ;;  %v14757_v9 = vmul.u32.u64.high %v14703_v41, %v6800_v53, %v14756_v38 }
 0x868   : > { %v6621_v7 = vsub.s32 4294967266, %v6616_v51  ;;  %v6675_v13 = vshll.u32 %v16432_v60, %v14688_v23  ;;  %v6676_v43 = vshrl.u32 %v16303_v12, %v14712_v42  ;;  %v6811_v25 = vadd.s32 1, %v14744_v44 }
 0x869   : > { %v6668_v47 = vor.u32 %v6667_v49, %v6666_v33  ;;  %v6671_v0 = vor.u32 %v6670_v54, %v6669_v8  ;;  %v6674_v5 = vor.u32 %v6673_v27, %v6672_v34  ;;  %v6678_v21 = vshll.u32 %v16303_v12, %v14688_v23 }
 0x86a   : > { %v6622_v48 = vadd.s32 127, %v6621_v7  ;;  %v6677_v59 = vor.u32 %v6676_v43, %v6675_v13  ;;  %v6679_v53 = vshrl.u32 %v16294_v58, %v14712_v42  ;;  %v6519_v57 = vshll.u32 %v14747_v17, 23 }
 0x86b   : > { %v6617_v62 = vsub.s32 32, %v6616_v51  ;;  %v6808_v15 = vmul.u32 %v14703_v41, %v6792_v14  ;;  %v6665_v6 = vshrl.u32 %v16300_v28, %v14712_v42  ;;  %v6618_v7 = vshll.u32 %v14714_v37, %v6616_v51 }
 0x86c   : > { %vm6810_vm13 = vc.u32 %v14757_v9, %v14743_v45  ;;  %v6680_v33 = vor.u32 %v6679_v53, %v6678_v21  ;;  %vm6681_vm6 = vcmp.lt.s32.totalorder %v14709_v3, 1  ;;  %v6623_v23 = vshll.u32 %v6622_v48, 23 }
 0x86d   : > { %v6812_v49 = vsel %vm6810_vm13, %v6811_v25, %v14744_v44  ;;  %vm6683_vm0 = vcmp.lt.s32.totalorder %v14709_v3, 3  ;;  %vm6684_vm9 = vcmp.lt.s32.totalorder %v14709_v3, 4  ;;  %v6689_v54 = vsel %vm6681_vm6, %v6668_v47, %v6671_v0 }
 0x86e   : > { %v6813_v17 = vadd.s32 %v6812_v49, %v6808_v15  ;;  %v6686_v41 = vsel %vm6684_vm9, %v6674_v5, 2102212464  ;;  %v6690_v8 = vsel %vm6684_vm9, %v6677_v59, 920167782  ;;  %v6619_v42 = vshrl.u32 %v14700_v46, %v6617_v62 }
 0x86f   : > { %vm6682_vm5 = vcmp.lt.s32.totalorder %v14709_v3, 2  ;;  %v6691_v51 = vsel %vm6683_vm0, %v6674_v5, %v6690_v8  ;;  %v6693_v37 = vsel %vm6681_vm6, %v6671_v0, %v6674_v5  ;;  %vm16241_vm15 = vcmp.lt.s32.totalorder %v14379_v63, 0 }
 0x870   : > { %v6814_v14 = vadd.s32 536870912, %v6813_v17  ;;  %v6685_v44 = vsel %vm6681_vm6, %v6665_v6, %v6668_v47  ;;  %v6692_v34 = vsel %vm6682_vm5, %v6689_v54, %v6691_v51  ;;  %v6694_v27 = vsel %vm6684_vm9, %v6680_v33, 1326507024 }
 0x871   : > { %v6687_v38 = vsel %vm6683_vm0, %v6671_v0, %v6686_v41  ;;  %v6695_v46 = vsel %vm6683_vm0, %v6677_v59, %v6694_v27  ;;  %v14791_v13 = vmul.u32.u64.low %v14705_v52, %v6692_v34  ;;  %v14792_v43 = vmul.u32.u64.high %v14705_v52, %v6692_v34, %v14791_v13 }
 0x872   : > { %v6624_v48 = vor.u32 4788187, %v6623_v23  ;;  %v14795_v25 = vshrl.u32 %v6814_v14, 30  ;;  %v6696_v47 = vsel %vm6682_vm5, %v6693_v37, %v6695_v46  ;;  %v6860_v5 = vand.u32 2139095040, %v14697_v31 }
 0x873   : > { %v16794_v21 = vand.u32 2147483647, %v14379_v63  ;;  %v16795_v0 = vmov 0  ;;  %v6315_v59 = vcvt.s32.f32 %v14690_v19  ;;  %v16798_v53 = vsub.s32 32, %v14707_v11 }
 0x874   : > { %16793 = vst [vmem:[#allocation63_spill] sm:$0xff] %v14795_v25  ;;  %v14811_v15 = vmul.u32.u64.low %v14705_v52, %v6696_v47  ;;  %v14812_v6 = vmul.u32.u64.high %v14705_v52, %v6696_v47, %v14811_v15  ;;  %v6620_v33 = vor.u32 %v6619_v42, %v6618_v7  ;;  %v6816_v23 = vshll.u32 %v14795_v25, 30 }
 0x875   : > { %vm14802_vm1 = vcmp.le.f32.partialorder %v16794_v21, 0.7853982  ;;  %v6515_v62 = vshrl.u32 %v14686_v61, %v16798_v53  ;;  %v6688_v49 = vsel %vm6682_vm5, %v6685_v44, %v6687_v38  ;;  %v6861_v41 = vshrl.u32 %v6860_v5, 23 }
 0x876   : > { %v16796_v0 = vsel %vm14802_vm1, 4294967295, %v16795_v0  ;;  %v16799_v54 = vshll.u32 %v14676_v10, 23  ;;  %v6514_v19 = vshll.u32 %v14636_v50, %v14707_v11  ;;  %v6520_v51 = vor.u32 4788187, %v6519_v57 }
 0x877   : > { %16797 = vst [vmem:[#allocation67_spill] sm:$0xff] %v16796_v0  ;;  %v6707_v61 = vadd.s32 1, %v14792_v43  ;;  %v6625_v37 = vand.u32 2147483647, %v6624_v48  ;;  %v14822_v14 = vsub.s32 %v6813_v17, %v6816_v23  ;;  %v16213_v7 = vand.u32 2147483647, %v14697_v31 }
 0x878   : > { %v6312_v8 = vor.u32 4788187, %v16799_v54  ;;  %v8374_v42 = vadd.s32 4294967169, %v6861_v41  ;;  %v6516_v34 = vor.u32 %v6515_v62, %v6514_v19  ;;  %v6704_v3 = vmul.u32 %v14705_v52, %v6688_v49 }
 0x879   : > { %vm6706_vm3 = vc.u32 %v14812_v6, %v14791_v13  ;;  %v6964_v10 = vand.u32 2139095040, %v14679_v18  ;;  %v6627_v44 = vcvt.s32.f32 %v6620_v33  ;;  %v6819_v50 = vsub.s32 0, %v14822_v14 }
 0x87a   : > { %v6708_v11 = vsel %vm6706_vm3, %v6707_v61, %v14792_v43  ;;  %v6867_v57 = vadd.s32 1, %v8374_v42  ;;  %v16800_v17 = vxor.u32 2147483648, %v14674_v39  ;;  %v6313_v38 = vand.u32 2147483647, %v6312_v8 }
 0x87b   : > { %v6521_v46 = vand.u32 2147483647, %v6520_v51  ;;  %v6709_v52 = vadd.s32 %v6708_v11, %v6704_v3  ;;  %v6628_v48 = vmul.f32 %v6627_v44, %v6625_v37  ;;  %v8371_v47 = vmin.u32 %v6819_v50, %v14822_v14 }
 0x87c   : > { %v6422_v27 = vsel %vm16241_vm15, %v16800_v17, %v14674_v39  ;;  %v6864_v5 = vand.u32 8388607, %v16213_v7  ;;  %vm6868_vm11 = vcmp.gt.s32.totalorder %v6867_v57, 0  ;;  %v6523_v21 = vcvt.s32.f32 %v6516_v34 }
 0x87d   : > { %v6710_v53 = vadd.s32 536870912, %v6709_v52  ;;  %v6869_v43 = vsel %vm6868_vm11, %v6867_v57, 0  ;;  %v6965_v62 = vshrl.u32 %v6964_v10, 23  ;;  %8931 = vsinq.f32 %v14671_v20 }
 0x87e   : > { %v14843_v39 = vsel %vm14802_vm1, %v14379_v63, %v6422_v27  ;;  %vm16260_vm10 = vcmp.lt.s32.totalorder %v14366_v26, 0  ;;  %v6821_v15 = vclz %v8371_v47  ;;  %v6871_v33 = vand.u32 31, %v6869_v43 }
 0x87f   : > { %v14846_v23 = vmul.f32 %v6315_v59, %v6313_v38  ;;  %v14848_v49 = vmul.f32 %v6523_v21, %v6521_v46  ;;  %v14850_v41 = vshrl.u32 %v6710_v53, 30  ;;  %v16214_v54 = vand.u32 2147483647, %v14679_v18 }
 0x880   : > { %v6629_v8 = vxor.u32 2147483648, %v6628_v48  ;;  %v8372_v19 = vadd.s32 4294967294, %v6821_v15  ;;  %v6865_v20 = vor.u32 8388608, %v6864_v5  ;;  %v6872_v51 = vsub.s32 32, %v6871_v33 }
 0x881   : > { %16801 = vst [vmem:[#allocation68_spill] sm:$0xff] %v14850_v41  ;;  %v6712_v61 = vshll.u32 %v14850_v41, 30  ;;  %v6874_v37 = vshll.u32 %v16300_v28, %v6871_v33  ;;  %v6877_v42 = vshll.u32 %v16293_v16, %v6871_v33  ;;  %v8378_v34 = vadd.s32 4294967169, %v6965_v62 }
 0x882   : > { %vm8373_vm2 = vcmp.lt.s32.totalorder %v8372_v19, 0  ;;  %v6875_v59 = vshrl.u32 %v16293_v16, %v6872_v51  ;;  %v6878_v3 = vshrl.u32 %v16431_v29, %v6872_v51  ;;  %v6883_v10 = vshll.u32 %v16432_v60, %v6871_v33 }
 0x883   : > { %v6824_v44 = vsel %vm8373_vm2, 0, %v8372_v19  ;;  %v14859_v50 = vsub.s32 %v6709_v52, %v6712_v61  ;;  %v6881_v11 = vshrl.u32 %v16432_v60, %v6872_v51  ;;  %v6884_v57 = vshrl.u32 %v16303_v12, %v6872_v51 }
 0x884   : > { %v6809_v17 = vadd.s32 %v14743_v45, %v14757_v9  ;;  %v6829_v27 = vsub.s32 4294967266, %v6824_v44  ;;  %v6870_v38 = vshrl.u32 %v6869_v43, 5  ;;  %v6880_v46 = vshll.u32 %v16431_v29, %v6871_v33 }
 0x885   : > { %v6715_v47 = vsub.s32 0, %v14859_v50  ;;  %v6876_v5 = vor.u32 %v6875_v59, %v6874_v37  ;;  %v6879_v21 = vor.u32 %v6878_v3, %v6877_v42  ;;  %v6885_v53 = vor.u32 %v6884_v57, %v6883_v10 }
 0x886   : > { %v16802_v62 = vand.u32 2147483647, %v14366_v26  ;;  %v16803_v52 = vmov 0  ;;  %v6830_v15 = vadd.s32 127, %v6829_v27  ;;  %v6882_v19 = vor.u32 %v6881_v11, %v6880_v46 }
 0x887   : > { %v6886_v61 = vshll.u32 %v16303_v12, %v6871_v33  ;;  %v6887_v45 = vshrl.u32 %v16294_v58, %v6872_v51  ;;  %v6630_v9 = vsel %vm16260_vm10, %v6629_v8, %v6628_v48  ;;  %v14877_v43 = vshll.u32 %v6865_v20, 8 }
 0x888   : > { %vm14869_vm4 = vcmp.le.f32.partialorder %v16802_v62, 0.7853982  ;;  %v6968_v37 = vand.u32 8388607, %v16214_v54  ;;  %v6971_v42 = vadd.s32 1, %v8378_v34  ;;  %v6825_v59 = vsub.s32 32, %v6824_v44  ;;  %v6118_v54 = vpop.f32.mrf.mxu1 }
 0x889   : > { %v16804_v52 = vsel %vm14869_vm4, 4294967295, %v16803_v52  ;;  %v6888_v3 = vor.u32 %v6887_v45, %v6886_v61  ;;  %vm6889_vm7 = vcmp.lt.s32.totalorder %v6870_v38, 1  ;;  %vm6892_vm14 = vcmp.lt.s32.totalorder %v6870_v38, 4 }
 0x88a   : > { %16805 = vst [vmem:[#allocation51_spill] sm:$0xff] %v16804_v52  ;;  %v8367_v10 = vmin.u32 %v6715_v47, %v14859_v50  ;;  %vm6891_vm13 = vcmp.lt.s32.totalorder %v6870_v38, 3  ;;  %v6897_v33 = vsel %vm6889_vm7, %v6876_v5, %v6879_v21  ;;  %v6898_v11 = vsel %vm6892_vm14, %v6885_v53, 920167782  ;;  %v14885_v8 = vpop.eup %8931 }
 0x88b   : > { %v6831_v57 = vshll.u32 %v6830_v15, 23  ;;  %v6873_v27 = vshrl.u32 %v16300_v28, %v6872_v51  ;;  %vm6890_vm6 = vcmp.lt.s32.totalorder %v6870_v38, 2  ;;  %v6899_v48 = vsel %vm6891_vm13, %v6882_v19, %v6898_v11  ;;  %16806 = vst [vmem:[#allocation27_spill] sm:$0xff] %v14885_v8 }
 0x88c   : > { %v6826_v20 = vshll.u32 %v14822_v14, %v6824_v44  ;;  %v6894_v34 = vsel %vm6892_vm14, %v6882_v19, 2102212464  ;;  %v6900_v46 = vsel %vm6890_vm6, %v6897_v33, %v6899_v48  ;;  %v6901_v62 = vsel %vm6889_vm7, %v6879_v21, %v6882_v19 }
 0x88d   : > { %v6827_v47 = vshrl.u32 %v6809_v17, %v6825_v59  ;;  %v6902_v61 = vsel %vm6892_vm14, %v6888_v3, 1326507024  ;;  %v14891_v45 = vmul.u32.u64.low %v14877_v43, %v6900_v46  ;;  %v14892_v7 = vmul.u32.u64.high %v14877_v43, %v6900_v46, %v14891_v45 }
 0x88e   : > { %v6717_v51 = vclz %v8367_v10  ;;  %v6893_v15 = vsel %vm6889_vm7, %v6873_v27, %v6876_v5  ;;  %v6903_v11 = vsel %vm6891_vm13, %v6885_v53, %v6902_v61  ;;  %vm6972_vm0 = vcmp.gt.s32.totalorder %v6971_v42, 0 }
 0x88f   : > { %v6832_v14 = vor.u32 4788187, %v6831_v57  ;;  %v6895_v44 = vsel %vm6891_vm13, %v6879_v21, %v6894_v34  ;;  %v6904_v33 = vsel %vm6890_vm6, %v6901_v62, %v6903_v11  ;;  %v6973_v19 = vsel %vm6972_vm0, %v6971_v42, 0  ;;  %v6031_v21 = vpop.f32.mrf.mxu0 }
 0x890   : > { %8933 = vcosq.f32 %v14843_v39  ;;  %v14903_v17 = vsel %vm14869_vm4, %v14366_v26, %v6630_v9  ;;  %v6969_v59 = vor.u32 8388608, %v6968_v37  ;;  %v6828_v3 = vor.u32 %v6827_v47, %v6826_v20 }
 0x891   : > { %v14906_v5 = vmul.u32.u64.low %v14877_v43, %v6904_v33  ;;  %v14907_v53 = vmul.u32.u64.high %v14877_v43, %v6904_v33, %v14906_v5  ;;  %v14910_v10 = vadd.f32 %v6118_v54, %v14343_v55  ;;  %v8368_v57 = vadd.s32 4294967294, %v6717_v51 }
 0x892   : > { %v6896_v42 = vsel %vm6890_vm6, %v6893_v15, %v6895_v44  ;;  %v6915_v27 = vadd.s32 1, %v14892_v7  ;;  %v6975_v48 = vand.u32 31, %v6973_v19  ;;  %8935 = vsinq.f32 %v14843_v39 }
 0x893   : > { %v6833_v20 = vand.u32 2147483647, %v6832_v14  ;;  %8937 = vcosq.f32 %v14903_v17  ;;  %v14918_v46 = vshll.u32 %v6969_v59, 8  ;;  %v14921_v54 = vadd.f32 %v6031_v21, %v14343_v55 }
 0x894   : > { %v6976_v34 = vsub.s32 32, %v6975_v48  ;;  %v6835_v38 = vcvt.s32.f32 %v6828_v3  ;;  %v6912_v62 = vmul.u32 %v14877_v43, %v6896_v42  ;;  %vm6914_vm9 = vc.u32 %v14907_v53, %v14891_v45 }
 0x895   : > { %vm8369_vm5 = vcmp.lt.s32.totalorder %v8368_v57, 0  ;;  %v6916_v47 = vsel %vm6914_vm9, %v6915_v27, %v14892_v7  ;;  %v6974_v61 = vshrl.u32 %v6973_v19, 5  ;;  %v7172_v51 = vand.u32 2139095040, %v14910_v10 }
 0x896   : > { %v14929_v15 = vmul.f32 %v6835_v38, %v6833_v20  ;;  %v6917_v11 = vadd.s32 %v6916_v47, %v6912_v62  ;;  %v6978_v14 = vshll.u32 %v16300_v28, %v6975_v48  ;;  %v6979_v44 = vshrl.u32 %v16293_v16, %v6976_v34 }
 0x897   : > { %v6981_v43 = vshll.u32 %v16293_v16, %v6975_v48  ;;  %v6982_v33 = vshrl.u32 %v16431_v29, %v6976_v34  ;;  %v6984_v59 = vshll.u32 %v16431_v29, %v6975_v48  ;;  %v6985_v3 = vshrl.u32 %v16432_v60, %v6976_v34 }
 0x898   : > { %v6918_v5 = vadd.s32 536870912, %v6917_v11  ;;  %v6980_v7 = vor.u32 %v6979_v44, %v6978_v14  ;;  %v6987_v19 = vshll.u32 %v16432_v60, %v6975_v48  ;;  %v6988_v21 = vshrl.u32 %v16303_v12, %v6976_v34 }
 0x899   : > { %v6983_v42 = vor.u32 %v6982_v33, %v6981_v43  ;;  %v6986_v27 = vor.u32 %v6985_v3, %v6984_v59  ;;  %vm6993_vm3 = vcmp.lt.s32.totalorder %v6974_v61, 1  ;;  %vm6996_vm11 = vcmp.lt.s32.totalorder %v6974_v61, 4 }
 0x89a   : > { %v14939_v20 = vshrl.u32 %v6918_v5, 30  ;;  %v6989_v38 = vor.u32 %v6988_v21, %v6987_v19  ;;  %v6990_v62 = vshll.u32 %v16303_v12, %v6975_v48  ;;  %v6991_v47 = vshrl.u32 %v16294_v58, %v6976_v34 }
 0x89b   : > { %v14944_v37 = vsel %vm8369_vm5, 0, %v8368_v57  ;;  %v6977_v14 = vshrl.u32 %v16300_v28, %v6976_v34  ;;  %v6998_v44 = vsel %vm6996_vm11, %v6986_v27, 2102212464  ;;  %v7001_v9 = vsel %vm6993_vm3, %v6980_v7, %v6983_v42 }
 0x89c   : > { %16807 = vst [vmem:[#allocation33_spill] sm:$0xff] %v14939_v20  ;;  %vm16259_vm2 = vcmp.lt.s32.totalorder %v14621_v35, 0  ;;  %v6920_v33 = vshll.u32 %v14939_v20, 30  ;;  %v6992_v59 = vor.u32 %v6991_v47, %v6990_v62  ;;  %vm6995_vm7 = vcmp.lt.s32.totalorder %v6974_v61, 3 }
 0x89d   : > { %v14949_v43 = vpop.eup %8933  ;;  %v7002_v48 = vsel %vm6996_vm11, %v6989_v38, 920167782  ;;  %vm6994_vm14 = vcmp.lt.s32.totalorder %v6974_v61, 2  ;;  %v6997_v57 = vsel %vm6993_vm3, %v6977_v14, %v6980_v7  ;;  %v7005_v34 = vsel %vm6993_vm3, %v6983_v42, %v6986_v27 }
 0x89e   : > { %16808 = vst [vmem:[#allocation20_spill] sm:$0xff] %v14949_v43  ;;  %v7003_v3 = vsel %vm6995_vm7, %v6986_v27, %v7002_v48  ;;  %v14956_v5 = vsub.s32 %v6917_v11, %v6920_v33  ;;  %v6999_v19 = vsel %vm6995_vm7, %v6983_v42, %v6998_v44  ;;  %v7006_v39 = vsel %vm6996_vm11, %v6992_v59, 1326507024  ;;  %v6120_v33 = vpop.f32.mrf.mxu1 }
 0x89f   : > { %v7004_v21 = vsel %vm6994_vm14, %v7001_v9, %v7003_v3  ;;  %v14960_v43 = vpop.eup %8935  ;;  %vm16258_vm13 = vcmp.lt.s32.totalorder %v14353_v32, 0  ;;  %vm16250_vm6 = vcmp.lt.s32.totalorder %v14405_v56, 0  ;;  %v7007_v62 = vsel %vm6995_vm7, %v6989_v38, %v7006_v39 }
 0x8a0   : > { %16809 = vst [vmem:[#allocation61_spill] sm:$0xff] %v14960_v43  ;;  %v14965_v47 = vmul.u32.u64.low %v14918_v46, %v7004_v21  ;;  %v14966_v7 = vmul.u32.u64.high %v14918_v46, %v7004_v21, %v14965_v47  ;;  %v7173_v27 = vshrl.u32 %v7172_v51, 23  ;;  %v14969_v11 = vpop.eup %8937  ;;  %v16811_v42 = vand.u32 2147483647, %v14621_v35 }
 0x8a1   : > { %16810 = vst [vmem:[#allocation55_spill] sm:$0xff] %v14969_v11  ;;  %v16812_v9 = vmov 0  ;;  %v6721_v14 = vsub.s32 32, %v14944_v37  ;;  %v6725_v44 = vsub.s32 4294967266, %v14944_v37  ;;  %v6923_v39 = vsub.s32 0, %v14956_v5 }
 0x8a2   : > { %vm14973_vm0 = vcmp.le.f32.partialorder %v16811_v42, 0.7853982  ;;  %v7008_v38 = vsel %vm6994_vm14, %v7005_v34, %v7007_v62  ;;  %v6837_v59 = vxor.u32 2147483648, %v14929_v15  ;;  %v8386_v3 = vadd.s32 4294967169, %v7173_v27 }
 0x8a3   : > { %v16813_v9 = vsel %vm14973_vm0, 4294967295, %v16812_v9  ;;  %v14983_v51 = vmul.u32.u64.low %v14918_v46, %v7008_v38  ;;  %v14984_v48 = vmul.u32.u64.high %v14918_v46, %v7008_v38, %v14983_v51  ;;  %v6705_v21 = vadd.s32 %v14791_v13, %v14812_v6 }
 0x8a4   : > { %16814 = vst [vmem:[#allocation60_spill] sm:$0xff] %v16813_v9  ;;  %v8375_v42 = vmin.u32 %v6923_v39, %v14956_v5  ;;  %v7000_v43 = vsel %vm6994_vm14, %v6997_v57, %v6999_v19  ;;  %v16815_v8 = vand.u32 2147483647, %v14910_v10  ;;  %v7019_v34 = vadd.s32 1, %v14966_v7 }
 0x8a5   : > { %v7179_v62 = vadd.s32 1, %v8386_v3  ;;  %v16223_v63 = vand.u32 2147483647, %v14921_v54  ;;  %v14995_v24 = vadd.f32 %v6120_v33, %v14343_v55  ;;  %v6723_v38 = vshrl.u32 %v6705_v21, %v6721_v14 }
 0x8a6   : > { %v7176_v0 = vand.u32 8388607, %v16815_v8  ;;  %v14997_v27 = vadd.s32 127, %v6725_v44  ;;  %v6925_v51 = vclz %v8375_v42  ;;  %v7068_v13 = vand.u32 2139095040, %v14921_v54 }
 0x8a7   : > { %v6838_v6 = vsel %vm16259_vm2, %v6837_v59, %v14929_v15  ;;  %v7016_v8 = vmul.u32 %v14918_v46, %v7000_v43  ;;  %vm7018_vm9 = vc.u32 %v14984_v48, %v14965_v47  ;;  %vm7180_vm5 = vcmp.gt.s32.totalorder %v7179_v62, 0 }
 0x8a8   : > { %v8376_v61 = vadd.s32 4294967294, %v6925_v51  ;;  %v7020_v55 = vsel %vm7018_vm9, %v7019_v34, %v14966_v7  ;;  %v7177_v57 = vor.u32 8388608, %v7176_v0  ;;  %v7181_v19 = vsel %vm7180_vm5, %v7179_v62, 0 }
 0x8a9   : > { %v6722_v14 = vshll.u32 %v14859_v50, %v14944_v37  ;;  %v7021_v44 = vadd.s32 %v7020_v55, %v7016_v8  ;;  %v7183_v39 = vand.u32 31, %v7181_v19  ;;  %v15011_v33 = vand.u32 8388607, %v16223_v63 }
 0x8aa   : > { %v16816_v46 = vxor.u32 2147483648, %v14846_v23  ;;  %v16818_v0 = vxor.u32 2147483648, %v14848_v49  ;;  %8939 = vsinq.f32 %v14903_v17  ;;  %v7069_v50 = vshrl.u32 %v7068_v13, 23 }
 0x8ab   : > { %v15031_v37 = vsel %vm14973_vm0, %v14621_v35, %v6838_v6  ;;  %v15033_v7 = vor.u32 %v6723_v38, %v6722_v14  ;;  %v7022_v59 = vadd.s32 536870912, %v7021_v44  ;;  %v6727_v3 = vshll.u32 %v14997_v27, 23 }
 0x8ac   : > { %v15018_v15 = vsel %vm16258_vm13, %v16816_v46, %v14846_v23  ;;  %v15025_v43 = vsel %vm16250_vm6, %v16818_v0, %v14848_v49  ;;  %v7184_v23 = vsub.s32 32, %v7183_v39  ;;  %vm8377_vm3 = vcmp.lt.s32.totalorder %v8376_v61, 0 }
 0x8ad   : > { %16817 = vst [vmem:[#allocation35_spill] sm:$0xff] %v15018_v15  ;;  %16819 = vst [vmem:[#allocation59_spill] sm:$0xff] %v15025_v43  ;;  %v15036_v21 = vshll.u32 %v7177_v57, 8  ;;  %v15039_v42 = vshrl.u32 %v7022_v59, 30  ;;  %v7073_v62 = vor.u32 8388608, %v15011_v33  ;;  %v7186_v38 = vshll.u32 %v16300_v28, %v7183_v39 }
 0x8ae   : > { %v7187_v17 = vshrl.u32 %v16293_v16, %v7184_v23  ;;  %v7190_v34 = vshrl.u32 %v16431_v29, %v7184_v23  ;;  %v7189_v51 = vshll.u32 %v16293_v16, %v7183_v39  ;;  %v7193_v13 = vshrl.u32 %v16432_v60, %v7184_v23 }
 0x8af   : > { %v8382_v27 = vadd.s32 4294967169, %v7069_v50  ;;  %v15047_v6 = vsel %vm8377_vm3, 0, %v8376_v61  ;;  %v7024_v8 = vshll.u32 %v15039_v42, 30  ;;  %v7182_v55 = vshrl.u32 %v7181_v19, 5 }
 0x8b0   : > { %v7192_v57 = vshll.u32 %v16431_v29, %v7183_v39  ;;  %v7188_v14 = vor.u32 %v7187_v17, %v7186_v38  ;;  %v7191_v46 = vor.u32 %v7190_v34, %v7189_v51  ;;  %v7195_v0 = vshll.u32 %v16432_v60, %v7183_v39 }
 0x8b1   : > { %v7196_v33 = vshrl.u32 %v16303_v12, %v7184_v23  ;;  %v15053_v59 = vsub.s32 %v7021_v44, %v7024_v8  ;;  %v7198_v49 = vshll.u32 %v16303_v12, %v7183_v39  ;;  %v7199_v50 = vshrl.u32 %v16294_v58, %v7184_v23 }
 0x8b2   : > { %v7194_v63 = vor.u32 %v7193_v13, %v7192_v57  ;;  %v6933_v61 = vsub.s32 4294967266, %v15047_v6  ;;  %v7075_v40 = vadd.s32 1, %v8382_v27  ;;  %v7276_v19 = vand.u32 2139095040, %v14995_v24 }
 0x8b3   : > { %v7197_v2 = vor.u32 %v7196_v33, %v7195_v0  ;;  %v6929_v17 = vsub.s32 32, %v15047_v6  ;;  %v7027_v34 = vsub.s32 0, %v15053_v59  ;;  %v7200_v38 = vor.u32 %v7199_v50, %v7198_v49 }
 0x8b4   : > { %vm7201_vm11 = vcmp.lt.s32.totalorder %v7182_v55, 1  ;;  %v7185_v44 = vshrl.u32 %v16300_v28, %v7184_v23  ;;  %vm7203_vm7 = vcmp.lt.s32.totalorder %v7182_v55, 3  ;;  %vm7204_vm14 = vcmp.lt.s32.totalorder %v7182_v55, 4 }
 0x8b5   : > { %v7209_v51 = vsel %vm7201_vm11, %v7188_v14, %v7191_v46  ;;  %v8379_v39 = vmin.u32 %v7027_v34, %v15053_v59  ;;  %v7206_v13 = vsel %vm7204_vm14, %v7194_v63, 2102212464  ;;  %v7210_v8 = vsel %vm7204_vm14, %v7197_v2, 920167782 }
 0x8b6   : > { %v7213_v57 = vsel %vm7201_vm11, %v7191_v46, %v7194_v63  ;;  %v15063_v0 = vadd.s32 127, %v6933_v61  ;;  %vm7202_vm9 = vcmp.lt.s32.totalorder %v7182_v55, 2  ;;  %v7211_v27 = vsel %vm7203_vm7, %v7194_v63, %v7210_v8 }
 0x8b7   : > { %v7214_v33 = vsel %vm7204_vm14, %v7200_v38, 1326507024  ;;  %v15066_v43 = vpop.eup %8939  ;;  %v7029_v49 = vclz %v8379_v39  ;;  %v7205_v50 = vsel %vm7201_vm11, %v7185_v44, %v7188_v14  ;;  %v7212_v23 = vsel %vm7202_vm9, %v7209_v51, %v7211_v27 }
 0x8b8   : > { %16820 = vst [vmem:[#allocation53_spill] sm:$0xff] %v15066_v43  ;;  %v7215_v36 = vsel %vm7203_vm7, %v7197_v2, %v7214_v33  ;;  %v7207_v56 = vsel %vm7203_vm7, %v7191_v46, %v7206_v13  ;;  %v15073_v15 = vmul.u32.u64.low %v15036_v21, %v7212_v23  ;;  %v15074_v61 = vmul.u32.u64.high %v15036_v21, %v7212_v23, %v15073_v15 }
 0x8b9   : > { %v7216_v34 = vsel %vm7202_vm9, %v7213_v57, %v7215_v36  ;;  %v8380_v9 = vadd.s32 4294967294, %v7029_v49  ;;  %vm7076_vm5 = vcmp.gt.s32.totalorder %v7075_v40, 0  ;;  %v15081_v14 = vor.u32 4788187, %v6727_v3 }
 0x8ba   : > { %v15078_v63 = vmul.u32.u64.low %v15036_v21, %v7216_v34  ;;  %v15079_v38 = vmul.u32.u64.high %v15036_v21, %v7216_v34, %v15078_v63  ;;  %v6913_v2 = vadd.s32 %v14891_v45, %v14907_v53  ;;  %v7077_v44 = vsel %vm7076_vm5, %v7075_v40, 0 }
 0x8bb   : > { %v7277_v46 = vshrl.u32 %v7276_v19, 23  ;;  %v7017_v36 = vadd.s32 %v14965_v47, %v14984_v48  ;;  %vm8381_vm3 = vcmp.lt.s32.totalorder %v8380_v9, 0  ;;  %v7208_v51 = vsel %vm7202_vm9, %v7205_v50, %v7207_v56 }
 0x8bc   : > { %v7079_v39 = vand.u32 31, %v7077_v44  ;;  %v7032_v13 = vsel %vm8381_vm3, 0, %v8380_v9  ;;  %v7227_v8 = vadd.s32 1, %v15074_v61  ;;  %v15089_v57 = vshll.u32 %v7073_v62, 8 }
 0x8bd   : > { %v16821_v3 = vand.u32 2147483647, %v14995_v24  ;;  %v15095_v33 = vshrl.u32 %v6913_v2, %v6929_v17  ;;  %v7033_v45 = vsub.s32 32, %v7032_v13  ;;  %v7037_v53 = vsub.s32 4294967266, %v7032_v13 }
 0x8be   : > { %v7224_v47 = vmul.u32 %v15036_v21, %v7208_v51  ;;  %vm7226_vm11 = vc.u32 %v15079_v38, %v15073_v15  ;;  %v7080_v56 = vsub.s32 32, %v7079_v39  ;;  %v8390_v9 = vadd.s32 4294967169, %v7277_v46 }
 0x8bf   : > { %v15093_v27 = vand.u32 8388607, %v16821_v3  ;;  %v7038_v48 = vadd.s32 127, %v7037_v53  ;;  %v7228_v62 = vsel %vm7226_vm11, %v7227_v8, %v15074_v61  ;;  %v7078_v55 = vshrl.u32 %v7077_v44, 5 }
 0x8c0   : > { %v7082_v19 = vshll.u32 %v16300_v28, %v7079_v39  ;;  %v7229_v49 = vadd.s32 %v7228_v62, %v7224_v47  ;;  %v7083_v17 = vshrl.u32 %v16293_v16, %v7080_v56  ;;  %v7085_v50 = vshll.u32 %v16293_v16, %v7079_v39 }
 0x8c1   : > { %v7086_v23 = vshrl.u32 %v16431_v29, %v7080_v56  ;;  %v7035_v34 = vshrl.u32 %v7017_v36, %v7033_v45  ;;  %v7039_v21 = vshll.u32 %v7038_v48, 23  ;;  %v7088_v63 = vshll.u32 %v16431_v29, %v7079_v39 }
 0x8c2   : > { %v7089_v2 = vshrl.u32 %v16432_v60, %v7080_v56  ;;  %v7034_v46 = vshll.u32 %v15053_v59, %v7032_v13  ;;  %v7230_v51 = vadd.s32 536870912, %v7229_v49  ;;  %v7091_v61 = vshll.u32 %v16432_v60, %v7079_v39 }
 0x8c3   : > { %v7092_v44 = vshrl.u32 %v16303_v12, %v7080_v56  ;;  %v7040_v8 = vor.u32 4788187, %v7039_v21  ;;  %v7084_v3 = vor.u32 %v7083_v17, %v7082_v19  ;;  %v7087_v53 = vor.u32 %v7086_v23, %v7085_v50 }
 0x8c4   : > { %v7090_v47 = vor.u32 %v7089_v2, %v7088_v63  ;;  %v15111_v62 = vshrl.u32 %v7230_v51, 30  ;;  %v7094_v36 = vshll.u32 %v16303_v12, %v7079_v39  ;;  %v7095_v45 = vshrl.u32 %v16294_v58, %v7080_v56 }
 0x8c5   : > { %v7093_v40 = vor.u32 %v7092_v44, %v7091_v61  ;;  %v7036_v48 = vor.u32 %v7035_v34, %v7034_v46  ;;  %v7081_v1 = vshrl.u32 %v16300_v28, %v7080_v56  ;;  %vm7100_vm7 = vcmp.lt.s32.totalorder %v7078_v55, 4 }
 0x8c6   : > { %v7283_v59 = vadd.s32 1, %v8390_v9  ;;  %v7232_v13 = vshll.u32 %v15111_v62, 30  ;;  %v7096_v35 = vor.u32 %v7095_v45, %v7094_v36  ;;  %vm7097_vm14 = vcmp.lt.s32.totalorder %v7078_v55, 1 }
 0x8c7   : > { %v7102_v19 = vsel %vm7100_vm7, %v7090_v47, 2102212464  ;;  %v7041_v17 = vand.u32 2147483647, %v7040_v8  ;;  %vm7099_vm9 = vcmp.lt.s32.totalorder %v7078_v55, 3  ;;  %v7105_v50 = vsel %vm7097_vm14, %v7084_v3, %v7087_v53  ;;  %v6035_v8 = vpop.f32.mrf.mxu0 }
 0x8c8   : > { %v7106_v23 = vsel %vm7100_vm7, %v7093_v40, 920167782  ;;  %v15119_v21 = vsub.s32 %v7229_v49, %v7232_v13  ;;  %vm7098_vm5 = vcmp.lt.s32.totalorder %v7078_v55, 2  ;;  %v7109_v34 = vsel %vm7097_vm14, %v7087_v53, %v7090_v47 }
 0x8c9   : > { %v7107_v39 = vsel %vm7099_vm9, %v7090_v47, %v7106_v23  ;;  %v7101_v63 = vsel %vm7097_vm14, %v7081_v1, %v7084_v3  ;;  %v7103_v56 = vsel %vm7099_vm9, %v7087_v53, %v7102_v19  ;;  %v7110_v2 = vsel %vm7100_vm7, %v7096_v35, 1326507024 }
 0x8ca   : > { %v7108_v9 = vsel %vm7098_vm5, %v7105_v50, %v7107_v39  ;;  %v7235_v46 = vsub.s32 0, %v15119_v21  ;;  %v7111_v51 = vsel %vm7099_vm9, %v7093_v40, %v7110_v2  ;;  %v7043_v49 = vcvt.s32.f32 %v7036_v48 }
 0x8cb   : > { %v15125_v61 = vmul.u32.u64.low %v15089_v57, %v7108_v9  ;;  %v15126_v44 = vmul.u32.u64.high %v15089_v57, %v7108_v9, %v15125_v61  ;;  %v7112_v36 = vsel %vm7098_vm5, %v7109_v34, %v7111_v51  ;;  %v7281_v47 = vor.u32 8388608, %v15093_v27 }
 0x8cc   : > { %vm7284_vm3 = vcmp.gt.s32.totalorder %v7283_v59, 0  ;;  %v6930_v1 = vshll.u32 %v14956_v5, %v15047_v6  ;;  %v8387_v35 = vmin.u32 %v7235_v46, %v15119_v21  ;;  %v15138_v53 = vmul.f32 %v7043_v49, %v7041_v17 }
 0x8cd   : > { %v15135_v3 = vmul.u32.u64.low %v15089_v57, %v7112_v36  ;;  %v15136_v40 = vmul.u32.u64.high %v15089_v57, %v7112_v36, %v15135_v3  ;;  %v7104_v45 = vsel %vm7098_vm5, %v7101_v63, %v7103_v56  ;;  %v7285_v13 = vsel %vm7284_vm3, %v7283_v59, 0 }
 0x8ce   : > { %v15142_v48 = vadd.f32 %v6035_v8, %v14358_v22  ;;  %v7237_v50 = vclz %v8387_v35  ;;  %v7123_v5 = vadd.s32 1, %v15126_v44  ;;  %v15148_v6 = vor.u32 %v15095_v33, %v6930_v1 }
 0x8cf   : > { %v16822_v23 = vshll.u32 %v15063_v0, 23  ;;  %v7287_v55 = vand.u32 31, %v7285_v13  ;;  %v15154_v39 = vshll.u32 %v7281_v47, 8  ;;  %v7225_v59 = vadd.s32 %v15073_v15, %v15079_v38 }
 0x8d0   : > { %v8388_v34 = vadd.s32 4294967294, %v7237_v50  ;;  %v7120_v63 = vmul.u32 %v15089_v57, %v7104_v45  ;;  %vm7122_vm11 = vc.u32 %v15136_v40, %v15125_v61  ;;  %v15164_v46 = vshrl.u32 %v7285_v13, 5 }
 0x8d1   : > { %v15152_v17 = vor.u32 4788187, %v16822_v23  ;;  %v7124_v33 = vsel %vm7122_vm11, %v7123_v5, %v15126_v44  ;;  %v7288_v9 = vsub.s32 32, %v7287_v55  ;;  %v7380_v51 = vand.u32 2139095040, %v15142_v48 }
 0x8d2   : > { %vm8389_vm7 = vcmp.lt.s32.totalorder %v8388_v34, 0  ;;  %v7125_v2 = vadd.s32 %v7124_v33, %v7120_v63  ;;  %v7290_v38 = vshll.u32 %v16300_v28, %v7287_v55  ;;  %v7293_v44 = vshll.u32 %v16293_v16, %v7287_v55 }
 0x8d3   : > { %v7240_v15 = vsel %vm8389_vm7, 0, %v8388_v34  ;;  %v7291_v57 = vshrl.u32 %v16293_v16, %v7288_v9  ;;  %v7294_v8 = vshrl.u32 %v16431_v29, %v7288_v9  ;;  %v7296_v1 = vshll.u32 %v16431_v29, %v7287_v55 }
 0x8d4   : > { %v7241_v49 = vsub.s32 32, %v7240_v15  ;;  %v7245_v36 = vsub.s32 4294967266, %v7240_v15  ;;  %v7126_v47 = vadd.s32 536870912, %v7125_v2  ;;  %v7297_v35 = vshrl.u32 %v16432_v60, %v7288_v9 }
 0x8d5   : > { %v7299_v3 = vshll.u32 %v16432_v60, %v7287_v55  ;;  %v7300_v45 = vshrl.u32 %v16303_v12, %v7288_v9  ;;  %v7292_v5 = vor.u32 %v7291_v57, %v7290_v38  ;;  %v7295_v23 = vor.u32 %v7294_v8, %v7293_v44 }
 0x8d6   : > { %v7246_v13 = vadd.s32 127, %v7245_v36  ;;  %v15175_v50 = vshrl.u32 %v7126_v47, 30  ;;  %v7298_v34 = vor.u32 %v7297_v35, %v7296_v1  ;;  %v7302_v33 = vshll.u32 %v16303_v12, %v7287_v55 }
 0x8d7   : > { %v7301_v63 = vor.u32 %v7300_v45, %v7299_v3  ;;  %v7303_v56 = vshrl.u32 %v16294_v58, %v7288_v9  ;;  %v7243_v19 = vshrl.u32 %v7225_v59, %v7241_v49  ;;  %vm7305_vm14 = vcmp.lt.s32.totalorder %v15164_v46, 1 }
 0x8d8   : > { %v7247_v27 = vshll.u32 %v7246_v13, 23  ;;  %v7128_v0 = vshll.u32 %v15175_v50, 30  ;;  %vm6963_vm9 = vcmp.lt.s32.totalorder %v14679_v18, 0  ;;  %v7242_v36 = vshll.u32 %v15119_v21, %v7240_v15 }
 0x8d9   : > { %v7289_v47 = vshrl.u32 %v16300_v28, %v7288_v9  ;;  %v7304_v38 = vor.u32 %v7303_v56, %v7302_v33  ;;  %vm7307_vm5 = vcmp.lt.s32.totalorder %v15164_v46, 3  ;;  %vm7308_vm3 = vcmp.lt.s32.totalorder %v15164_v46, 4 }
 0x8da   : > { %v7248_v57 = vor.u32 4788187, %v7247_v27  ;;  %v15185_v8 = vsub.s32 %v7125_v2, %v7128_v0  ;;  %v7313_v55 = vsel %vm7305_vm14, %v7292_v5, %v7295_v23  ;;  %v7310_v59 = vsel %vm7308_vm3, %v7298_v34, 2102212464 }
 0x8db   : > { %v7314_v49 = vsel %vm7308_vm3, %v7301_v63, 920167782  ;;  %v7317_v44 = vsel %vm7305_vm14, %v7295_v23, %v7298_v34  ;;  %v7318_v1 = vsel %vm7308_vm3, %v7304_v38, 1326507024  ;;  %v7244_v21 = vor.u32 %v7243_v19, %v7242_v36 }
 0x8dc   : > { %v7131_v9 = vsub.s32 0, %v15185_v8  ;;  %vm7306_vm11 = vcmp.lt.s32.totalorder %v15164_v46, 2  ;;  %v7315_v27 = vsel %vm7307_vm5, %v7298_v34, %v7314_v49  ;;  %v7309_v56 = vsel %vm7305_vm14, %v7289_v47, %v7292_v5 }
 0x8dd   : > { %v7316_v0 = vsel %vm7306_vm11, %v7313_v55, %v7315_v27  ;;  %v7319_v2 = vsel %vm7307_vm5, %v7301_v63, %v7318_v1  ;;  %v7381_v15 = vshrl.u32 %v7380_v51, 23  ;;  %v16823_v35 = vand.u32 2147483647, %v14679_v18 }
 0x8de   : > { %v7249_v3 = vand.u32 2147483647, %v7248_v57  ;;  %v8383_v45 = vmin.u32 %v7131_v9, %v15185_v8  ;;  %v7311_v13 = vsel %vm7307_vm5, %v7295_v23, %v7310_v59  ;;  %v7320_v5 = vsel %vm7306_vm11, %v7317_v44, %v7319_v2  ;;  %v6124_v23 = vpop.f32.mrf.mxu1 }
 0x8df   : > { %vm15204_vm7 = vcmp.le.f32.partialorder %v16823_v35, 0.7853982  ;;  %v15214_v34 = vmul.u32.u64.low %v15154_v39, %v7320_v5  ;;  %v15215_v33 = vmul.u32.u64.high %v15154_v39, %v7320_v5, %v15214_v34  ;;  %8941 = vcosq.f32 %v15031_v37 }
 0x8e0   : > { %v15218_v51 = vmul.u32.u64.low %v15154_v39, %v7316_v0  ;;  %v15219_v63 = vmul.u32.u64.high %v15154_v39, %v7316_v0, %v15218_v51  ;;  %v7133_v36 = vclz %v8383_v45  ;;  %v8394_v47 = vadd.s32 4294967169, %v7381_v15  ;;  %v6037_v34 = vpop.f32.mrf.mxu0 }
 0x8e1   : > { %v16826_v38 = vand.u32 2147483647, %v15142_v48  ;;  %v16827_v55 = vand.u32 2147483647, %v15081_v14  ;;  %v16828_v59 = vcvt.s32.f32 %v15033_v7  ;;  %v6939_v44 = vcvt.s32.f32 %v15148_v6 }
 0x8e2   : > { %v7251_v1 = vcvt.s32.f32 %v7244_v21  ;;  %v7312_v9 = vsel %vm7306_vm11, %v7309_v56, %v7311_v13  ;;  %v6937_v27 = vand.u32 2147483647, %v15152_v17  ;;  %v16829_v0 = vxor.u32 2147483648, %v15138_v53 }
 0x8e3   : > { %v7384_v57 = vand.u32 8388607, %v16826_v38  ;;  %v15229_v49 = vmul.f32 %v16828_v59, %v16827_v55  ;;  %v8384_v15 = vadd.s32 4294967294, %v7133_v36  ;;  %v7387_v14 = vadd.s32 1, %v8394_v47 }
 0x8e4   : > { %v7046_v2 = vsel %vm6963_vm9, %v16829_v0, %v15138_v53  ;;  %v15240_v35 = vmul.f32 %v7251_v1, %v7249_v3  ;;  %vm7330_vm14 = vc.u32 %v15215_v33, %v15218_v51  ;;  %v7331_v7 = vadd.s32 1, %v15219_v63 }
 0x8e5   : > { %v15246_v6 = vadd.f32 %v6124_v23, %v14358_v22  ;;  %vm8385_vm5 = vcmp.lt.s32.totalorder %v8384_v15, 0  ;;  %v7328_v17 = vmul.u32 %v15154_v39, %v7312_v9  ;;  %v7385_v46 = vor.u32 8388608, %v7384_v57 }
 0x8e6   : > { %vm7388_vm3 = vcmp.gt.s32.totalorder %v7387_v14, 0  ;;  %8943 = vsinq.f32 %v15031_v37  ;;  %v7136_v53 = vsel %vm8385_vm5, 0, %v8384_v15  ;;  %v7332_v21 = vsel %vm7330_vm14, %v7331_v7, %v15219_v63 }
 0x8e7   : > { %v7389_v56 = vsel %vm7388_vm3, %v7387_v14, 0  ;;  %v15252_v45 = vmul.f32 %v6939_v44, %v6937_v27  ;;  %v7141_v13 = vsub.s32 4294967266, %v7136_v53  ;;  %v7333_v5 = vadd.s32 %v7332_v21, %v7328_v17 }
 0x8e8   : > { %v15257_v36 = vsel %vm15204_vm7, %v14679_v18, %v7046_v2  ;;  %v7121_v37 = vadd.s32 %v15125_v61, %v15136_v40  ;;  %v7391_v47 = vand.u32 31, %v7389_v56  ;;  %v15262_v38 = vshll.u32 %v7385_v46, 8 }
 0x8e9   : > { %v7334_v63 = vadd.s32 536870912, %v7333_v5  ;;  %v7588_v23 = vand.u32 2139095040, %v15246_v6  ;;  %v7137_v55 = vsub.s32 32, %v7136_v53  ;;  %v7138_v59 = vshll.u32 %v15185_v8, %v7136_v53 }
 0x8ea   : > { %v7392_v44 = vsub.s32 32, %v7391_v47  ;;  %v15268_v1 = vadd.f32 %v6037_v34, %v14358_v22  ;;  %v7142_v9 = vadd.s32 127, %v7141_v13  ;;  %v7394_v61 = vshll.u32 %v16300_v28, %v7391_v47 }
 0x8eb   : > { %v15270_v27 = vshrl.u32 %v7334_v63, 30  ;;  %v7397_v40 = vshll.u32 %v16293_v16, %v7391_v47  ;;  %v7400_v15 = vshll.u32 %v16431_v29, %v7391_v47  ;;  %v7390_v7 = vshrl.u32 %v7389_v56, 5 }
 0x8ec   : > { %v7395_v0 = vshrl.u32 %v16293_v16, %v7392_v44  ;;  %v7398_v2 = vshrl.u32 %v16431_v29, %v7392_v44  ;;  %v7401_v14 = vshrl.u32 %v16432_v60, %v7392_v44  ;;  %v7403_v17 = vshll.u32 %v16432_v60, %v7391_v47  ;;  %v15281_v53 = vpop.eup %8941 }
 0x8ed   : > { %v7336_v8 = vshll.u32 %v15270_v27, 30  ;;  %v7404_v46 = vshrl.u32 %v16303_v12, %v7392_v44  ;;  %16830 = vst [vmem:[#allocation18_spill] sm:$0xff] %v15281_v53  ;;  %v7589_v63 = vshrl.u32 %v7588_v23, 23  ;;  %vm16261_vm11 = vcmp.lt.s32.totalorder %v14521_v30, 0 }
 0x8ee   : > { %v7396_v21 = vor.u32 %v7395_v0, %v7394_v61  ;;  %v7399_v13 = vor.u32 %v7398_v2, %v7397_v40  ;;  %v7402_v34 = vor.u32 %v7401_v14, %v7400_v15  ;;  %v7406_v57 = vshll.u32 %v16303_v12, %v7391_v47 }
 0x8ef   : > { %v15284_v39 = vsub.s32 %v7333_v5, %v7336_v8  ;;  %v7405_v3 = vor.u32 %v7404_v46, %v7403_v17  ;;  %v7407_v32 = vshrl.u32 %v16294_v58, %v7392_v44  ;;  %vm16262_vm14 = vcmp.lt.s32.totalorder %v14910_v10, 0 }
 0x8f0   : > { %v7139_v56 = vshrl.u32 %v7121_v37, %v7137_v55  ;;  %v7143_v11 = vshll.u32 %v7142_v9, 23  ;;  %v7393_v43 = vshrl.u32 %v16300_v28, %v7392_v44  ;;  %v16831_v61 = vand.u32 2147483647, %v15246_v6 }
 0x8f1   : > { %v7339_v23 = vsub.s32 0, %v15284_v39  ;;  %v7408_v0 = vor.u32 %v7407_v32, %v7406_v57  ;;  %vm7409_vm5 = vcmp.lt.s32.totalorder %v7390_v7, 1  ;;  %vm7412_vm3 = vcmp.lt.s32.totalorder %v7390_v7, 4 }
 0x8f2   : > { %v7592_v40 = vand.u32 8388607, %v16831_v61  ;;  %vm7410_vm15 = vcmp.lt.s32.totalorder %v7390_v7, 2  ;;  %vm7411_vm8 = vcmp.lt.s32.totalorder %v7390_v7, 3  ;;  %v7417_v5 = vsel %vm7409_vm5, %v7396_v21, %v7399_v13 }
 0x8f3   : > { %v7418_v47 = vsel %vm7412_vm3, %v7405_v3, 920167782  ;;  %v15294_v2 = vpop.eup %8943  ;;  %v8391_v37 = vmin.u32 %v7339_v23, %v15284_v39  ;;  %v7414_v55 = vsel %vm7412_vm3, %v7402_v34, 2102212464  ;;  %v7421_v9 = vsel %vm7409_vm5, %v7399_v13, %v7402_v34 }
 0x8f4   : > { %16832 = vst [vmem:[#allocation56_spill] sm:$0xff] %v15294_v2  ;;  %v7419_v44 = vsel %vm7411_vm8, %v7402_v34, %v7418_v47  ;;  %v7140_v15 = vor.u32 %v7139_v56, %v7138_v59  ;;  %v7422_v32 = vsel %vm7412_vm3, %v7408_v0, 1326507024  ;;  %v8402_v57 = vadd.s32 4294967169, %v7589_v63  ;;  %v6126_v0 = vpop.f32.mrf.mxu1 }
 0x8f5   : > { %v7420_v14 = vsel %vm7410_vm15, %v7417_v5, %v7419_v44  ;;  %v7144_v8 = vor.u32 4788187, %v7143_v11  ;;  %v7341_v17 = vclz %v8391_v37  ;;  %v7413_v46 = vsel %vm7409_vm5, %v7393_v43, %v7396_v21 }
 0x8f6   : > { %v7423_v61 = vsel %vm7411_vm8, %v7405_v3, %v7422_v32  ;;  %v7415_v53 = vsel %vm7411_vm8, %v7399_v13, %v7414_v55  ;;  %v15305_v2 = vmul.u32.u64.low %v15262_v38, %v7420_v14  ;;  %v15306_v47 = vmul.u32.u64.high %v15262_v38, %v7420_v14, %v15305_v2 }
 0x8f7   : > { %v7424_v23 = vsel %vm7410_vm15, %v7421_v9, %v7423_v61  ;;  %v8392_v59 = vadd.s32 4294967294, %v7341_v17  ;;  %v7595_v11 = vadd.s32 1, %v8402_v57  ;;  %v16833_v43 = vxor.u32 2147483648, %v15229_v49 }
 0x8f8   : > { %v15310_v34 = vmul.u32.u64.low %v15262_v38, %v7424_v23  ;;  %v15311_v56 = vmul.u32.u64.high %v15262_v38, %v7424_v23, %v15310_v34  ;;  %8945 = vcosq.f32 %v15257_v36  ;;  %v16835_v13 = vand.u32 2147483647, %v14910_v10 }
 0x8f9   : > { %v15318_v3 = vsel %vm16261_vm11, %v16833_v43, %v15229_v49  ;;  %v16838_v5 = vxor.u32 2147483648, %v15240_v35  ;;  %vm8393_vm5 = vcmp.lt.s32.totalorder %v8392_v59, 0  ;;  %v7416_v49 = vsel %vm7410_vm15, %v7413_v46, %v7415_v53 }
 0x8fa   : > { %16834 = vst [vmem:[#allocation50_spill] sm:$0xff] %v15318_v3  ;;  %vm15324_vm8 = vcmp.le.f32.partialorder %v16835_v13, 0.7853982  ;;  %vm7596_vm3 = vcmp.gt.s32.totalorder %v7595_v11, 0  ;;  %v7145_v55 = vand.u32 2147483647, %v7144_v8  ;;  %8947 = vsinq.f32 %v15257_v36 }
 0x8fb   : > { %v7254_v37 = vsel %vm16262_vm14, %v16838_v5, %v15240_v35  ;;  %v7435_v44 = vadd.s32 1, %v15306_v47  ;;  %v7593_v9 = vor.u32 8388608, %v7592_v40  ;;  %v7597_v14 = vsel %vm7596_vm3, %v7595_v11, 0 }
 0x8fc   : > { %v7147_v32 = vcvt.s32.f32 %v7140_v15  ;;  %v7484_v57 = vand.u32 2139095040, %v15268_v1  ;;  %v15338_v17 = vadd.f32 %v6126_v0, %v14358_v22  ;;  %v15340_v61 = vsel %vm8393_vm5, 0, %v8392_v59 }
 0x8fd   : > { %v7432_v35 = vmul.u32 %v15262_v38, %v7416_v49  ;;  %vm7434_vm15 = vc.u32 %v15311_v56, %v15305_v2  ;;  %v7599_v7 = vand.u32 31, %v7597_v14  ;;  %v15348_v53 = vsel %vm15324_vm8, %v14910_v10, %v7254_v37 }
 0x8fe   : > { %v15352_v36 = vadd.s32 %v15218_v51, %v15215_v33  ;;  %v7436_v22 = vsel %vm7434_vm15, %v7435_v44, %v15306_v47  ;;  %v16251_v40 = vand.u32 2147483647, %v15268_v1  ;;  %v15356_v15 = vmul.f32 %v7147_v32, %v7145_v55 }
 0x8ff   : > { %v7437_v38 = vadd.s32 %v7436_v22, %v7432_v35  ;;  %v7600_v8 = vsub.s32 32, %v7599_v7  ;;  %v15358_v46 = vshll.u32 %v7593_v9, 8  ;;  %v7349_v23 = vsub.s32 4294967266, %v15340_v61 }
 0x900   : > { %v7598_v59 = vshrl.u32 %v7597_v14, 5  ;;  %v7602_v34 = vshll.u32 %v16300_v28, %v7599_v7  ;;  %v7485_v11 = vshrl.u32 %v7484_v57, 23  ;;  %v7605_v51 = vshll.u32 %v16293_v16, %v7599_v7 }
 0x901   : > { %v7438_v43 = vadd.s32 536870912, %v7437_v38  ;;  %v7603_v33 = vshrl.u32 %v16293_v16, %v7600_v8  ;;  %v7606_v47 = vshrl.u32 %v16431_v29, %v7600_v8  ;;  %v7608_v13 = vshll.u32 %v16431_v29, %v7599_v7 }
 0x902   : > { %v7609_v0 = vshrl.u32 %v16432_v60, %v7600_v8  ;;  %v7611_v5 = vshll.u32 %v16432_v60, %v7599_v7  ;;  %v7612_v37 = vshrl.u32 %v16303_v12, %v7600_v8  ;;  %v7488_v9 = vand.u32 8388607, %v16251_v40 }
 0x903   : > { %v15369_v49 = vshrl.u32 %v7438_v43, 30  ;;  %v7604_v55 = vor.u32 %v7603_v33, %v7602_v34  ;;  %v7607_v44 = vor.u32 %v7606_v47, %v7605_v51  ;;  %v7614_v57 = vshll.u32 %v16303_v12, %v7599_v7 }
 0x904   : > { %v7610_v14 = vor.u32 %v7609_v0, %v7608_v13  ;;  %v7613_v32 = vor.u32 %v7612_v37, %v7611_v5  ;;  %v7615_v35 = vshrl.u32 %v16294_v58, %v7600_v8  ;;  %v7350_v22 = vadd.s32 127, %v7349_v23 }
 0x905   : > { %v7440_v21 = vshll.u32 %v15369_v49, 30  ;;  %v7601_v52 = vshrl.u32 %v16300_v28, %v7600_v8  ;;  %v8398_v25 = vadd.s32 4294967169, %v7485_v11  ;;  %v15377_v26 = vpop.eup %8945  ;;  %vm7617_vm5 = vcmp.lt.s32.totalorder %v7598_v59, 1 }
 0x906   : > { %v7616_v43 = vor.u32 %v7615_v35, %v7614_v57  ;;  %vm7619_vm3 = vcmp.lt.s32.totalorder %v7598_v59, 3  ;;  %vm7620_vm15 = vcmp.lt.s32.totalorder %v7598_v59, 4  ;;  %v7625_v51 = vsel %vm7617_vm5, %v7604_v55, %v7607_v44 }
 0x907   : > { %v15379_v34 = vsub.s32 %v7437_v38, %v7440_v21  ;;  %v7622_v33 = vsel %vm7620_vm15, %v7610_v14, 2102212464  ;;  %v7626_v47 = vsel %vm7620_vm15, %v7613_v32, 920167782  ;;  %v7345_v7 = vsub.s32 32, %v15340_v61  ;;  %v15383_v0 = vpop.eup %8947 }
 0x908   : > { %vm7618_vm6 = vcmp.lt.s32.totalorder %v7598_v59, 2  ;;  %v7627_v23 = vsel %vm7619_vm3, %v7610_v14, %v7626_v47  ;;  %v7629_v13 = vsel %vm7617_vm5, %v7607_v44, %v7610_v14  ;;  %v7621_v11 = vsel %vm7617_vm5, %v7601_v52, %v7604_v55 }
 0x909   : > { %v7443_v8 = vsub.s32 0, %v15379_v34  ;;  %v7628_v5 = vsel %vm7618_vm6, %v7625_v51, %v7627_v23  ;;  %v7630_v37 = vsel %vm7620_vm15, %v7616_v43, 1326507024  ;;  %v7623_v21 = vsel %vm7619_vm3, %v7607_v44, %v7622_v33 }
 0x90a   : > { %v7631_v38 = vsel %vm7619_vm3, %v7613_v32, %v7630_v37  ;;  %v15390_v57 = vmul.u32.u64.low %v15358_v46, %v7628_v5  ;;  %v15391_v35 = vmul.u32.u64.high %v15358_v46, %v7628_v5, %v15390_v57  ;;  %v7351_v40 = vshll.u32 %v7350_v22, 23 }
 0x90b   : > { %v8395_v14 = vmin.u32 %v7443_v8, %v15379_v34  ;;  %v7632_v47 = vsel %vm7618_vm6, %v7629_v13, %v7631_v38  ;;  %v7491_v4 = vadd.s32 1, %v8398_v25  ;;  %v7489_v43 = vor.u32 8388608, %v7488_v9 }
 0x90c   : > { %v15397_v52 = vmul.u32.u64.low %v15358_v46, %v7632_v47  ;;  %v15398_v55 = vmul.u32.u64.high %v15358_v46, %v7632_v47, %v15397_v52  ;;  %v7692_v44 = vand.u32 2139095040, %v15338_v17  ;;  %v7624_v32 = vsel %vm7618_vm6, %v7621_v11, %v7623_v21 }
 0x90d   : > { %v7445_v33 = vclz %v8395_v14  ;;  %vm7492_vm5 = vcmp.gt.s32.totalorder %v7491_v4, 0  ;;  %v7433_v23 = vadd.s32 %v15305_v2, %v15311_v56  ;;  %v7643_v25 = vadd.s32 1, %v15391_v35 }
 0x90e   : > { %v7493_v13 = vsel %vm7492_vm5, %v7491_v4, 0  ;;  %v15409_v8 = vshrl.u32 %v15352_v36, %v7345_v7  ;;  %v15411_v9 = vor.u32 4788187, %v7351_v40  ;;  %v7640_v11 = vmul.u32 %v15358_v46, %v7624_v32 }
 0x90f   : > { %v8396_v5 = vadd.s32 4294967294, %v7445_v33  ;;  %v7495_v59 = vand.u32 31, %v7493_v13  ;;  %vm7642_vm6 = vc.u32 %v15398_v55, %v15390_v57  ;;  %v15416_v37 = vshll.u32 %v7489_v43, 8 }
 0x910   : > { %v7693_v21 = vshrl.u32 %v7692_v44, 23  ;;  %v7644_v2 = vsel %vm7642_vm6, %v7643_v25, %v15391_v35  ;;  %v15419_v56 = vshrl.u32 %v7493_v13, 5  ;;  %vm7379_vm15 = vcmp.lt.s32.totalorder %v15142_v48, 0 }
 0x911   : > { %vm8397_vm3 = vcmp.lt.s32.totalorder %v8396_v5, 0  ;;  %v7496_v4 = vsub.s32 32, %v7495_v59  ;;  %v7645_v7 = vadd.s32 %v7644_v2, %v7640_v11  ;;  %v7498_v40 = vshll.u32 %v16300_v28, %v7495_v59 }
 0x912   : > { %v7448_v36 = vsel %vm8397_vm3, 0, %v8396_v5  ;;  %v7501_v38 = vshll.u32 %v16293_v16, %v7495_v59  ;;  %v7504_v52 = vshll.u32 %v16431_v29, %v7495_v59  ;;  %v7507_v13 = vshll.u32 %v16432_v60, %v7495_v59 }
 0x913   : > { %v7449_v14 = vsub.s32 32, %v7448_v36  ;;  %v7450_v46 = vshll.u32 %v15379_v34, %v7448_v36  ;;  %v7453_v47 = vsub.s32 4294967266, %v7448_v36  ;;  %v7646_v43 = vadd.s32 536870912, %v7645_v7 }
 0x914   : > { %v7499_v44 = vshrl.u32 %v16293_v16, %v7496_v4  ;;  %v7502_v35 = vshrl.u32 %v16431_v29, %v7496_v4  ;;  %v7505_v33 = vshrl.u32 %v16432_v60, %v7496_v4  ;;  %v7508_v5 = vshrl.u32 %v16303_v12, %v7496_v4 }
 0x915   : > { %v7451_v32 = vshrl.u32 %v7433_v23, %v7449_v14  ;;  %v7454_v25 = vadd.s32 127, %v7453_v47  ;;  %v15430_v11 = vshrl.u32 %v7646_v43, 30  ;;  %v8406_v36 = vadd.s32 4294967169, %v7693_v21 }
 0x916   : > { %v7500_v2 = vor.u32 %v7499_v44, %v7498_v40  ;;  %v7506_v34 = vor.u32 %v7505_v33, %v7504_v52  ;;  %v7503_v20 = vor.u32 %v7502_v35, %v7501_v38  ;;  %v7509_v3 = vor.u32 %v7508_v5, %v7507_v13 }
 0x917   : > { %v7452_v22 = vor.u32 %v7451_v32, %v7450_v46  ;;  %v7455_v51 = vshll.u32 %v7454_v25, 23  ;;  %v7648_v41 = vshll.u32 %v15430_v11, 30  ;;  %v7497_v23 = vshrl.u32 %v16300_v28, %v7496_v4 }
 0x918   : > { %v7510_v14 = vshll.u32 %v16303_v12, %v7495_v59  ;;  %v7511_v47 = vshrl.u32 %v16294_v58, %v7496_v4  ;;  %v16839_v43 = vand.u32 2147483647, %v15142_v48  ;;  %vm7513_vm6 = vcmp.lt.s32.totalorder %v15419_v56, 1 }
 0x919   : > { %v7456_v21 = vor.u32 4788187, %v7455_v51  ;;  %vm7514_vm3 = vcmp.lt.s32.totalorder %v15419_v56, 2  ;;  %vm7516_vm13 = vcmp.lt.s32.totalorder %v15419_v56, 4  ;;  %v7459_v38 = vcvt.s32.f32 %v7452_v22 }
 0x91a   : > { %vm15439_vm5 = vcmp.le.f32.partialorder %v16839_v43, 0.7853982  ;;  %v15446_v46 = vsub.s32 %v7645_v7, %v7648_v41  ;;  %v7512_v52 = vor.u32 %v7511_v47, %v7510_v14  ;;  %v7518_v59 = vsel %vm7516_vm13, %v7506_v34, 2102212464 }
 0x91b   : > { %v7457_v4 = vand.u32 2147483647, %v7456_v21  ;;  %vm7515_vm2 = vcmp.lt.s32.totalorder %v15419_v56, 3  ;;  %v7521_v44 = vsel %vm7513_vm6, %v7500_v2, %v7503_v20  ;;  %v7522_v51 = vsel %vm7516_vm13, %v7509_v3, 920167782 }
 0x91c   : > { %v7651_v35 = vsub.s32 0, %v15446_v46  ;;  %v7517_v33 = vsel %vm7513_vm6, %v7497_v23, %v7500_v2  ;;  %v7523_v32 = vsel %vm7515_vm2, %v7506_v34, %v7522_v51  ;;  %v7525_v25 = vsel %vm7513_vm6, %v7503_v20, %v7506_v34 }
 0x91d   : > { %v7460_v13 = vmul.f32 %v7459_v38, %v7457_v4  ;;  %v7519_v22 = vsel %vm7515_vm2, %v7503_v20, %v7518_v59  ;;  %v7524_v41 = vsel %vm7514_vm3, %v7521_v44, %v7523_v32  ;;  %v7526_v7 = vsel %vm7516_vm13, %v7512_v52, 1326507024 }
 0x91e   : > { %v8403_v5 = vmin.u32 %v7651_v35, %v15446_v46  ;;  %v7527_v14 = vsel %vm7515_vm2, %v7509_v3, %v7526_v7  ;;  %v15460_v47 = vmul.u32.u64.low %v15416_v37, %v7524_v41  ;;  %v15461_v43 = vmul.u32.u64.high %v15416_v37, %v7524_v41, %v15460_v47 }
 0x91f   : > { %v7461_v21 = vxor.u32 2147483648, %v7460_v13  ;;  %v7528_v2 = vsel %vm7514_vm3, %v7525_v25, %v7527_v14  ;;  %v16842_v20 = vand.u32 2147483647, %v15338_v17  ;;  %v7699_v23 = vadd.s32 1, %v8406_v36 }
 0x920   : > { %v7149_v38 = vxor.u32 2147483648, %v15356_v15  ;;  %v7653_v52 = vclz %v8403_v5  ;;  %v15472_v59 = vmul.u32.u64.low %v15416_v37, %v7528_v2  ;;  %v15473_v3 = vmul.u32.u64.high %v15416_v37, %v7528_v2, %v15472_v59 }
 0x921   : > { %v15468_v34 = vand.u32 8388607, %v16842_v20  ;;  %v16843_v4 = vshll.u32 %v15284_v39, %v15340_v61  ;;  %v7462_v51 = vsel %vm7379_vm15, %v7461_v21, %v7460_v13  ;;  %v7520_v35 = vsel %vm7514_vm3, %v7517_v33, %v7519_v22 }
 0x922   : > { %vm7700_vm2 = vcmp.gt.s32.totalorder %v7699_v23, 0  ;;  %v7465_v36 = vsel %vm15439_vm5, %v15142_v48, %v7462_v51  ;;  %v8404_v32 = vadd.s32 4294967294, %v7653_v52  ;;  %v7539_v25 = vadd.s32 1, %v15461_v43 }
 0x923   : > { %v15479_v44 = vor.u32 %v15409_v8, %v16843_v4  ;;  %v7701_v41 = vsel %vm7700_vm2, %v7699_v23, 0  ;;  %v7353_v39 = vand.u32 2147483647, %v15411_v9  ;;  %v7641_v61 = vadd.s32 %v15390_v57, %v15398_v55 }
 0x924   : > { %v7697_v8 = vor.u32 8388608, %v15468_v34  ;;  %v7703_v13 = vand.u32 31, %v7701_v41  ;;  %vm8405_vm13 = vcmp.lt.s32.totalorder %v8404_v32, 0  ;;  %v7536_v56 = vmul.u32 %v15416_v37, %v7520_v35 }
 0x925   : > { %vm7538_vm6 = vc.u32 %v15473_v3, %v15460_v47  ;;  %v7463_v33 = vsub.s32 4, %v15369_v49  ;;  %8949 = vcosq.f32 %v7465_v36  ;;  %v7656_v22 = vsel %vm8405_vm13, 0, %v8404_v32 }
 0x926   : > { %v7540_v7 = vsel %vm7538_vm6, %v7539_v25, %v15461_v43  ;;  %v7704_v5 = vsub.s32 32, %v7703_v13  ;;  %v7657_v14 = vsub.s32 32, %v7656_v22  ;;  %v7661_v21 = vsub.s32 4294967266, %v7656_v22 }
 0x927   : > { %v7541_v2 = vadd.s32 %v7540_v7, %v7536_v56  ;;  %v15498_v57 = vshrl.u32 %v7701_v41, 5  ;;  %v7658_v55 = vshll.u32 %v15446_v46, %v7656_v22  ;;  %v7706_v20 = vshll.u32 %v16300_v28, %v7703_v13 }
 0x928   : > { %v7707_v37 = vshrl.u32 %v16293_v16, %v7704_v5  ;;  %v7710_v34 = vshrl.u32 %v16431_v29, %v7704_v5  ;;  %v7659_v23 = vshrl.u32 %v7641_v61, %v7657_v14  ;;  %v7662_v52 = vadd.s32 127, %v7661_v21 }
 0x929   : > { %v7542_v59 = vadd.s32 536870912, %v7541_v2  ;;  %v7709_v4 = vshll.u32 %v16293_v16, %v7703_v13  ;;  %v7712_v51 = vshll.u32 %v16431_v29, %v7703_v13  ;;  %v7713_v35 = vshrl.u32 %v16432_v60, %v7704_v5 }
 0x92a   : > { %v7708_v43 = vor.u32 %v7707_v37, %v7706_v20  ;;  %v7715_v32 = vshll.u32 %v16432_v60, %v7703_v13  ;;  %v7660_v25 = vor.u32 %v7659_v23, %v7658_v55  ;;  %v7663_v46 = vshll.u32 %v7662_v52, 23 }
 0x92b   : > { %v15508_v41 = vshrl.u32 %v7542_v59, 30  ;;  %v7716_v56 = vshrl.u32 %v16303_v12, %v7704_v5  ;;  %vm7587_vm3 = vcmp.lt.s32.totalorder %v15246_v6, 0  ;;  %v7711_v61 = vor.u32 %v7710_v34, %v7709_v4 }
 0x92c   : > { %v7714_v22 = vor.u32 %v7713_v35, %v7712_v51  ;;  %v7718_v7 = vshll.u32 %v16303_v12, %v7703_v13  ;;  %v7719_v16 = vshrl.u32 %v16294_v58, %v7704_v5  ;;  %vm16263_vm2 = vcmp.lt.s32.totalorder %v14697_v31, 0 }
 0x92d   : > { %8951 = vsinq.f32 %v7465_v36  ;;  %v7664_v29 = vor.u32 4788187, %v7663_v46  ;;  %v7544_v60 = vshll.u32 %v15508_v41, 30  ;;  %v7717_v14 = vor.u32 %v7716_v56, %v7715_v32 }
 0x92e   : > { %vm7067_vm13 = vcmp.lt.s32.totalorder %v14921_v54, 0  ;;  %v7667_v21 = vcvt.s32.f32 %v7660_v25  ;;  %v7705_v55 = vshrl.u32 %v16300_v28, %v7704_v5  ;;  %v7720_v20 = vor.u32 %v7719_v16, %v7718_v7 }
 0x92f   : > { %vm7721_vm6 = vcmp.lt.s32.totalorder %v15498_v57, 1  ;;  %v7665_v37 = vand.u32 2147483647, %v7664_v29  ;;  %v15519_v34 = vsub.s32 %v7541_v2, %v7544_v60  ;;  %vm7722_vm10 = vcmp.lt.s32.totalorder %v15498_v57, 2 }
 0x930   : > { %vm7724_vm11 = vcmp.lt.s32.totalorder %v15498_v57, 4  ;;  %vm7723_vm14 = vcmp.lt.s32.totalorder %v15498_v57, 3  ;;  %v7729_v12 = vsel %vm7721_vm6, %v7708_v43, %v7711_v61  ;;  %v7733_v5 = vsel %vm7721_vm6, %v7711_v61, %v7714_v22 }
 0x931   : > { %v7726_v58 = vsel %vm7724_vm11, %v7714_v22, 2102212464  ;;  %v7730_v36 = vsel %vm7724_vm11, %v7717_v14, 920167782  ;;  %v7668_v13 = vmul.f32 %v7667_v21, %v7665_v37  ;;  %v7547_v23 = vsub.s32 0, %v15519_v34 }
 0x932   : > { %v7731_v28 = vsel %vm7723_vm14, %v7714_v22, %v7730_v36  ;;  %v7725_v52 = vsel %vm7721_vm6, %v7705_v55, %v7708_v43  ;;  %v7734_v59 = vsel %vm7724_vm11, %v7720_v20, 1326507024  ;;  %v7737_v4 = vshll.u32 %v7697_v8, 8  ;;  %v15529_v51 = vpop.eup %8949 }
 0x933   : > { %v7732_v2 = vsel %vm7722_vm10, %v7729_v12, %v7731_v28  ;;  %v7669_v35 = vxor.u32 2147483648, %v7668_v13  ;;  %v8399_v32 = vmin.u32 %v7547_v23, %v15519_v34  ;;  %v7727_v25 = vsel %vm7723_vm14, %v7711_v61, %v7726_v58 }
 0x934   : > { %v7735_v46 = vsel %vm7723_vm14, %v7717_v14, %v7734_v59  ;;  %v15538_v43 = vmul.u32.u64.low %v7737_v4, %v7732_v2  ;;  %v15539_v22 = vmul.u32.u64.high %v7737_v4, %v7732_v2, %v15538_v43  ;;  %v7464_v8 = vsel %vm7379_vm15, %v7463_v33, %v15369_v49 }
 0x935   : > { %v7736_v56 = vsel %vm7722_vm10, %v7733_v5, %v7735_v46  ;;  %v7670_v7 = vsel %vm7587_vm3, %v7669_v35, %v7668_v13  ;;  %v7549_v61 = vclz %v8399_v32  ;;  %v16844_v60 = vxor.u32 2147483648, %v15252_v45 }
 0x936   : > { %v15549_v16 = vmul.u32.u64.low %v7737_v4, %v7736_v56  ;;  %v15550_v29 = vmul.u32.u64.high %v7737_v4, %v7736_v56, %v15549_v16  ;;  %8953 = vcosq.f32 %v15348_v53  ;;  %v7355_v21 = vcvt.s32.f32 %v15479_v44 }
 0x937   : > { %v15557_v14 = vsel %vm16263_vm2, %v16844_v60, %v15252_v45  ;;  %v7728_v49 = vsel %vm7722_vm10, %v7725_v52, %v7727_v25  ;;  %v7150_v33 = vsel %vm7067_vm13, %v7149_v38, %v15356_v15  ;;  %v16845_v55 = vand.u32 2147483647, %v15246_v6 }
 0x938   : > { %v8400_v45 = vadd.s32 4294967294, %v7549_v61  ;;  %v7466_v37 = vsel %vm15439_vm5, 0, %v7464_v8  ;;  %v15578_v44 = vmul.f32 %v7355_v21, %v7353_v39  ;;  %v7537_v15 = vadd.s32 %v15460_v47, %v15473_v3 }
 0x939   : > { %vm15570_vm11 = vcmp.le.f32.partialorder %v16845_v55, 0.7853982  ;;  %v7747_v38 = vadd.s32 1, %v15539_v22  ;;  %v7744_v58 = vmul.u32 %v7737_v4, %v7728_v49  ;;  %vm7746_vm14 = vc.u32 %v15550_v29, %v15538_v43 }
 0x93a   : > { %v7673_v57 = vsel %vm15570_vm11, %v15246_v6, %v7670_v7  ;;  %vm8401_vm10 = vcmp.lt.s32.totalorder %v8400_v45, 0  ;;  %v7567_v40 = vsub.s32 4, %v15508_v41  ;;  %v8952_v12 = vpop.eup %8951  ;;  %v7470_v36 = vadd.s32 3, %v7466_v37 }
 0x93b   : > { %v7552_v9 = vsel %vm8401_vm10, 0, %v8400_v45  ;;  %v7748_v39 = vsel %vm7746_vm14, %v7747_v38, %v15539_v22  ;;  %v7671_v13 = vsub.s32 4, %v15430_v11  ;;  %8955 = vcosq.f32 %v7673_v57 }
 0x93c   : > { %v7553_v23 = vsub.s32 32, %v7552_v9  ;;  %v7557_v28 = vsub.s32 4294967266, %v7552_v9  ;;  %v7749_v47 = vadd.s32 %v7748_v39, %v7744_v58  ;;  %v7357_v3 = vxor.u32 2147483648, %v15578_v44 }
 0x93d   : > { %8957 = vsinq.f32 %v7673_v57  ;;  %vm7483_vm15 = vcmp.lt.s32.totalorder %v15268_v1, 0  ;;  %vm7691_vm5 = vcmp.lt.s32.totalorder %v15338_v17, 0  ;;  %v7554_v5 = vshll.u32 %v15519_v34, %v7552_v9 }
 0x93e   : > { %v7555_v52 = vshrl.u32 %v7537_v15, %v7553_v23  ;;  %v7558_v2 = vadd.s32 127, %v7557_v28  ;;  %v7750_v59 = vadd.s32 536870912, %v7749_v47  ;;  %v16848_v4 = vand.u32 2147483647, %v15268_v1 }
 0x93f   : > { %v7568_v32 = vsel %vm7483_vm15, %v7567_v40, %v15508_v41  ;;  %v7471_v25 = vand.u32 3, %v7470_v36  ;;  %v7672_v46 = vsel %vm7587_vm3, %v7671_v13, %v15430_v11  ;;  %vm7275_vm10 = vcmp.lt.s32.totalorder %v14995_v24, 0 }
 0x940   : > { %vm15597_vm6 = vcmp.le.f32.partialorder %v16848_v4, 0.7853982  ;;  %v7556_v34 = vor.u32 %v7555_v52, %v7554_v5  ;;  %v7559_v56 = vshll.u32 %v7558_v2, 23  ;;  %v7751_v22 = vshrl.u32 %v7750_v59, 30 }
 0x941   : > { %v16851_v8 = vand.u32 2147483647, %v14921_v54  ;;  %v7474_v61 = vxor.u32 2147483648, %v8952_v12  ;;  %v7477_v16 = vxor.u32 2147483648, %v15529_v51  ;;  %v7151_v41 = vsub.s32 4, %v15175_v50 }
 0x942   : > { %v7560_v60 = vor.u32 4788187, %v7559_v56  ;;  %v7752_v21 = vshll.u32 %v7751_v22, 30  ;;  %v7570_v49 = vsel %vm15597_vm6, 0, %v7568_v32  ;;  %v7775_v55 = vsub.s32 4, %v7751_v22 }
 0x943   : > { %vm15610_vm14 = vcmp.le.f32.partialorder %v16851_v8, 0.7853982  ;;  %vm7473_vm3 = vcmp.eq.s32.totalorder %v7471_v25, 0  ;;  %vm7476_vm2 = vcmp.eq.s32.totalorder %v7471_v25, 2  ;;  %v7674_v45 = vsel %vm15570_vm11, 0, %v7672_v46  ;;  %v15623_v37 = vpop.eup %8953 }
 0x944   : > { %v7153_v11 = vsel %vm15610_vm14, %v14921_v54, %v7150_v33  ;;  %v7561_v57 = vand.u32 2147483647, %v7560_v60  ;;  %v7563_v15 = vcvt.s32.f32 %v7556_v34  ;;  %v15625_v38 = vsub.s32 %v7749_v47, %v7752_v21 }
 0x945   : > { %8959 = vcosq.f32 %v7153_v11  ;;  %v7152_v33 = vsel %vm7067_vm13, %v7151_v41, %v15175_v50  ;;  %v7776_v58 = vsel %vm7691_vm5, %v7775_v55, %v7751_v22  ;;  %v7475_v40 = vsel %vm7473_vm3, %v15529_v51, %v7474_v61 }
 0x946   : > { %v7478_v9 = vsel %vm7476_vm2, %v7477_v16, %v8952_v12  ;;  %8961 = vsinq.f32 %v7153_v11  ;;  %v7564_v20 = vmul.f32 %v7563_v15, %v7561_v57  ;;  %v7755_v39 = vsub.s32 0, %v15625_v38 }
 0x947   : > { %8963 = vsinq.f32 %v15348_v53  ;;  %v7574_v36 = vadd.s32 3, %v7570_v49  ;;  %v16854_v13 = vand.u32 2147483647, %v15338_v17  ;;  %vm7472_vm13 = vcmp.lt.s32.totalorder %v7471_v25, 2 }
 0x948   : > { %v7678_v50 = vadd.s32 3, %v7674_v45  ;;  %v7154_v28 = vsel %vm15610_vm14, 0, %v7152_v33  ;;  %v7565_v51 = vxor.u32 2147483648, %v7564_v20  ;;  %v8407_v12 = vmin.u32 %v7755_v39, %v15625_v38  ;;  %v8956_v5 = vpop.eup %8955 }
 0x949   : > { %vm15637_vm11 = vcmp.le.f32.partialorder %v16854_v13, 0.7853982  ;;  %v7479_v47 = vsel %vm7472_vm13, %v7475_v40, %v7478_v9  ;;  %v7358_v52 = vsel %vm7275_vm10, %v7357_v3, %v15578_v44  ;;  %v7745_v2 = vadd.s32 %v15538_v43, %v15550_v29 }
 0x94a   : > { %v7778_v53 = vsel %vm15637_vm11, 0, %v7776_v58  ;;  %vm7469_vm2 = vweird.f32 %v15142_v48  ;;  %v7359_v59 = vsub.s32 4, %v15270_v27  ;;  %v8958_v4 = vpop.eup %8957  ;;  %v7566_v32 = vsel %vm7483_vm15, %v7565_v51, %v7564_v20 }
 0x94b   : > { %v7757_v25 = vclz %v8407_v12  ;;  %v15655_v46 = vand.u32 3, %v7574_v36  ;;  %v7158_v34 = vadd.s32 3, %v7154_v28  ;;  %v7569_v56 = vsel %vm15597_vm6, %v15268_v1, %v7566_v32 }
 0x94c   : > { %v7782_v44 = vadd.s32 3, %v7778_v53  ;;  %v15660_v3 = vsel %vm7469_vm2, nan, %v7479_v47  ;;  %v7679_v43 = vand.u32 3, %v7678_v50  ;;  %8965 = vcosq.f32 %v7569_v56 }
 0x94d   : > { %v8408_v29 = vadd.s32 4294967294, %v7757_v25  ;;  %v7685_v48 = vxor.u32 2147483648, %v8956_v5  ;;  %v16857_v22 = vand.u32 2147483647, %v14995_v24  ;;  %8967 = vsinq.f32 %v7569_v56 }
 0x94e   : > { %v7682_v8 = vxor.u32 2147483648, %v8958_v4  ;;  %v7360_v7 = vsel %vm7275_vm10, %v7359_v59, %v15270_v27  ;;  %v7159_v35 = vand.u32 3, %v7158_v34  ;;  %v7047_v60 = vsub.s32 4, %v15039_v42 }
 0x94f   : > { %vm7274_vm14 = vcmp.le.f32.partialorder %v16857_v22, 0.7853982  ;;  %vm8409_vm15 = vcmp.lt.s32.totalorder %v8408_v29, 0  ;;  %vm7680_vm6 = vcmp.lt.s32.totalorder %v7679_v43, 2  ;;  %vm7684_vm3 = vcmp.eq.s32.totalorder %v7679_v43, 2 }
 0x950   : > { %v7361_v61 = vsel %vm7274_vm14, %v14995_v24, %v7358_v52  ;;  %v7362_v16 = vsel %vm7274_vm14, 0, %v7360_v7  ;;  %v7760_v41 = vsel %vm8409_vm15, 0, %v8408_v29  ;;  %vm7681_vm13 = vcmp.eq.s32.totalorder %v7679_v43, 0  ;;  %v16879_v43 = vld [vmem:[#allocation55_spill] sm:$0xff] }
 0x951   : > { %8969 = vcosq.f32 %v7361_v61  ;;  %v7366_v11 = vadd.s32 3, %v7362_v16  ;;  %v7761_v49 = vsub.s32 32, %v7760_v41  ;;  %v7765_v55 = vsub.s32 4294967266, %v7760_v41 }
 0x952   : > { %8971 = vsinq.f32 %v7361_v61  ;;  %v8960_v21 = vpop.eup %8959  ;;  %v7686_v45 = vsel %vm7684_vm3, %v7685_v48, %v8958_v4  ;;  %v7048_v27 = vsel %vm6963_vm9, %v7047_v60, %v15039_v42  ;;  %v7762_v33 = vshll.u32 %v15625_v38, %v7760_v41  ;;  %v16863_v41 = vld [vmem:[#allocation50_spill] sm:$0xff] }
 0x953   : > { %v7165_v57 = vxor.u32 2147483648, %v8960_v21  ;;  %v8962_v15 = vpop.eup %8961  ;;  %v7763_v58 = vshrl.u32 %v7745_v2, %v7761_v49  ;;  %v7766_v40 = vadd.s32 127, %v7765_v55  ;;  %v7050_v9 = vsel %vm15204_vm7, 0, %v7048_v27 }
 0x954   : > { %v15675_v20 = vpop.eup %8963  ;;  %vm7580_vm10 = vcmp.eq.s32.totalorder %v15655_v46, 2  ;;  %v7683_v39 = vsel %vm7681_vm13, %v8956_v5, %v7682_v8  ;;  %vm7161_vm2 = vcmp.eq.s32.totalorder %v7159_v35, 0  ;;  %v7162_v36 = vxor.u32 2147483648, %v8962_v15 }
 0x955   : > { %v15678_v13 = vand.u32 3, %v7366_v11  ;;  %v7764_v50 = vor.u32 %v7763_v58, %v7762_v33  ;;  %v7767_v28 = vshll.u32 %v7766_v40, 23  ;;  %vm7577_vm9 = vcmp.eq.s32.totalorder %v15655_v46, 0 }
 0x956   : > { %vm7164_vm14 = vcmp.eq.s32.totalorder %v7159_v35, 2  ;;  %v7054_v42 = vadd.s32 3, %v7050_v9  ;;  %v15682_v38 = vand.u32 3, %v7782_v44  ;;  %v7163_v19 = vsel %vm7161_vm2, %v8960_v21, %v7162_v36 }
 0x957   : > { %v7166_v51 = vsel %vm7164_vm14, %v7165_v57, %v8962_v15  ;;  %v7255_v12 = vsub.s32 4, %v15111_v62  ;;  %v7768_v53 = vor.u32 4788187, %v7767_v28  ;;  %v15687_v47 = vsel %vm7680_vm6, %v7683_v39, %v7686_v45 }
 0x958   : > { %vm7160_vm3 = vcmp.lt.s32.totalorder %v7159_v35, 2  ;;  %v7055_v5 = vand.u32 3, %v7054_v42  ;;  %v7058_v52 = vxor.u32 2147483648, %v15383_v0  ;;  %v7061_v2 = vxor.u32 2147483648, %v15377_v26 }
 0x959   : > { %vm16858_vm2 = vcmp.lt.s32.totalorder %v14910_v10, 0  ;;  %v7769_v4 = vand.u32 2147483647, %v7768_v53  ;;  %v7771_v32 = vcvt.s32.f32 %v7764_v50  ;;  %vm7157_vm14 = vweird.f32 %v14921_v54  ;;  %v8966_v34 = vpop.eup %8965  ;;  %v16871_v54 = vld [vmem:[#allocation33_spill] sm:$0xff]  ;;  %v16872_v53 = vld [vmem:[#allocation62_spill] sm:$0xff] }
 0x95a   : > { %v7256_v59 = vsel %vm16858_vm2, %v7255_v12, %v15111_v62  ;;  %v7167_v25 = vsel %vm7160_vm3, %v7163_v19, %v7166_v51  ;;  %vm7372_vm6 = vcmp.eq.s32.totalorder %v15678_v13, 2  ;;  %vm7053_vm7 = vweird.f32 %v14679_v18  ;;  %v16862_v62 = vld [vmem:[#allocation68_spill] sm:$0xff]  ;;  %v8968_v48 = vpop.eup %8967 }
 0x95b   : > { %vm7057_vm15 = vcmp.eq.s32.totalorder %v7055_v5, 0  ;;  %v7258_v56 = vsel %vm15324_vm8, 0, %v7256_v59  ;;  %v16859_v44 = vand.u32 2147483647, %v14521_v30  ;;  %v6735_v29 = vsub.s32 4, %v16862_v62 }
 0x95c   : > { %v7772_v22 = vmul.f32 %v7771_v32, %v7769_v4  ;;  %v7581_v8 = vxor.u32 2147483648, %v8966_v34  ;;  %vm7060_vm3 = vcmp.eq.s32.totalorder %v7055_v5, 2  ;;  %v7262_v7 = vadd.s32 3, %v7258_v56  ;;  %v16874_v4 = vld [vmem:[#allocation57_spill] sm:$0xff] }
 0x95d   : > { %vm15702_vm13 = vcmp.le.f32.partialorder %v16859_v44, 0.7853982  ;;  %v7578_v35 = vxor.u32 2147483648, %v8968_v48  ;;  %v7059_v16 = vsel %vm7057_vm15, %v15377_v26, %v7058_v52  ;;  %v7062_v63 = vsel %vm7060_vm3, %v7061_v2, %v15383_v0  ;;  %v16878_v56 = vld [vmem:[#allocation53_spill] sm:$0xff] }
 0x95e   : > { %v8970_v61 = vpop.eup %8969  ;;  %v6737_v11 = vsel %vm15702_vm13, %v14521_v30, %v16863_v41  ;;  %v7773_v21 = vxor.u32 2147483648, %v7772_v22  ;;  %v7582_v49 = vsel %vm7580_vm10, %v7581_v8, %v8968_v48  ;;  %vm16864_vm8 = vcmp.lt.s32.totalorder %v14521_v30, 0 }
 0x95f   : > { %v8972_v60 = vpop.eup %8971  ;;  %v7373_v55 = vxor.u32 2147483648, %v8970_v61  ;;  %v6736_v45 = vsel %vm16864_vm8, %v6735_v29, %v16862_v62  ;;  %v7579_v26 = vsel %vm7577_vm9, %v8966_v34, %v7578_v35  ;;  %vm7677_vm15 = vweird.f32 %v15246_v6  ;;  %v16880_v29 = vld [vmem:[#allocation64_spill] sm:$0xff] }
 0x960   : > { %v7370_v0 = vxor.u32 2147483648, %v8972_v60  ;;  %vm7056_vm2 = vcmp.lt.s32.totalorder %v7055_v5, 2  ;;  %8973 = vcosq.f32 %v6737_v11  ;;  %v7774_v57 = vsel %vm7691_vm5, %v7773_v21, %v7772_v22  ;;  %v16888_v21 = vld [vmem:[#allocation56_spill] sm:$0xff] }
 0x961   : > { %vm16865_vm3 = vcmp.lt.s32.totalorder %v15655_v46, 2  ;;  %v7063_v15 = vsel %vm7056_vm2, %v7059_v16, %v7062_v63  ;;  %v7263_v33 = vand.u32 3, %v7262_v7  ;;  %vm16866_vm10 = vweird.f32 %v15268_v1  ;;  %v16886_v16 = vld [vmem:[#allocation66_spill] sm:$0xff] }
 0x962   : > { %v7583_v27 = vsel %vm16865_vm3, %v7579_v26, %v7582_v49  ;;  %v7777_v40 = vsel %vm15637_vm11, %v15338_v17, %v7774_v57  ;;  %v7266_v9 = vxor.u32 2147483648, %v15675_v20  ;;  %v6738_v39 = vsel %vm15702_vm13, 0, %v6736_v45 }
 0x963   : > { %v7584_v58 = vsel %vm16866_vm10, nan, %v7583_v27  ;;  %8975 = vcosq.f32 %v7777_v40  ;;  %vm16867_vm5 = vcmp.eq.s32.totalorder %v15678_v13, 0  ;;  %v7374_v36 = vsel %vm7372_vm6, %v7373_v55, %v8972_v60  ;;  %v16889_v55 = vld [vmem:[#allocation35_spill] sm:$0xff]  ;;  %v16891_v27 = vld [vmem:[#allocation6_spill] sm:$0xff] }
 0x964   : > { %7856 = vmatprep.subr.mxu0 %v7584_v58  ;;  %v7371_v46 = vsel %vm16867_vm5, %v8970_v61, %v7370_v0  ;;  %v7269_v1 = vxor.u32 2147483648, %v15623_v37  ;;  %8977 = vsinq.f32 %v7777_v40  ;;  %v7168_v23 = vsel %vm7157_vm14, nan, %v7167_v25  ;;  %v16876_v25 = vld [vmem:[#allocation63_spill] sm:$0xff]  ;;  %v16884_v61 = vld [vmem:[#allocation49_spill] sm:$0xff]  ;;  %v16890_v0 = vld [vmem:[#allocation18_spill] sm:$0xff] }
 0x965   : > { %7857 = vmatpush1.msra.mxu0 %v15660_v3  ;;  %vm7368_vm11 = vcmp.lt.s32.totalorder %v15678_v13, 2  ;;  %v7064_v50 = vsel %vm7053_vm7, nan, %v7063_v15  ;;  %vm7265_vm9 = vcmp.eq.s32.totalorder %v7263_v33, 0  ;;  %8979 = vsinq.f32 %v6737_v11 }
 0x966   : > { %7858 = vmatprep.subr.mxu0 %v7168_v23  ;;  %v6742_v28 = vadd.s32 3, %v6738_v39  ;;  %v16868_v42 = vand.u32 2147483647, %v14697_v31  ;;  %v7375_v51 = vsel %vm7368_vm11, %v7371_v46, %v7374_v36  ;;  %vm7268_vm6 = vcmp.eq.s32.totalorder %v7263_v33, 2  ;;  %v16896_v36 = vld [vmem:[#allocation69_spill] sm:$0xff]  ;;  %v16897_v23 = vld [vmem:[#allocation59_spill] sm:$0xff] }
 0x967   : > { %7859 = vmatpush1.msra.mxu0 %v7064_v50  ;;  %v6943_v3 = vsub.s32 4, %v16871_v54  ;;  %v7267_v13 = vsel %vm7265_vm9, %v15623_v37, %v7266_v9  ;;  %v7270_v12 = vsel %vm7268_vm6, %v7269_v1, %v15675_v20  ;;  %v6631_v5 = vsub.s32 4, %v16872_v53 }
 0x968   : > { %vm15746_vm13 = vcmp.le.f32.partialorder %v16868_v42, 0.7853982  ;;  %vm7365_vm7 = vweird.f32 %v14995_v24  ;;  %v15759_v52 = vand.u32 3, %v6742_v28  ;;  %vm16873_vm14 = vcmp.lt.s32.totalorder %v14697_v31, 0 }
 0x969   : > { %v6945_v18 = vsel %vm15746_vm13, %v14697_v31, %v15557_v14  ;;  %v6944_v2 = vsel %vm16873_vm14, %v6943_v3, %v16871_v54  ;;  %v15767_v14 = vsel %vm7677_vm15, nan, %v15687_v47  ;;  %v15769_v37 = vsel %vm7365_vm7, nan, %v7375_v51 }
 0x96a   : > { %8981 = vcosq.f32 %v6945_v18  ;;  %vm7264_vm8 = vcmp.lt.s32.totalorder %v7263_v33, 2  ;;  %v6946_v20 = vsel %vm15746_vm13, 0, %v6944_v2  ;;  %vm7788_vm2 = vcmp.eq.s32.totalorder %v15682_v38, 2 }
 0x96b   : > { %8983 = vsinq.f32 %v6945_v18  ;;  %v15774_v24 = vsel %vm7264_vm8, %v7267_v13, %v7270_v12  ;;  %v6950_v59 = vadd.s32 3, %v6946_v20  ;;  %vm16875_vm3 = vcmp.lt.s32.totalorder %v16874_v4, 0 }
 0x96c   : > { %v6632_v32 = vsel %vm16875_vm3, %v6631_v5, %v16872_v53  ;;  %v6839_v34 = vsub.s32 4, %v16876_v25  ;;  %vm7785_vm15 = vcmp.eq.s32.totalorder %v15682_v38, 0  ;;  %vm6637_vm10 = vweird.f32 %v16874_v4 }
 0x96d   : > { %v6634_v47 = vsel %vm14869_vm4, 0, %v6632_v32  ;;  %v6642_v44 = vxor.u32 2147483648, %v16878_v56  ;;  %v6645_v62 = vxor.u32 2147483648, %v16879_v43  ;;  %v16881_v48 = vand.u32 2147483647, %v16880_v29  ;;  %v8974_v41 = vpop.eup %8973 }
 0x96e   : > { %vm7784_vm11 = vcmp.lt.s32.totalorder %v15682_v38, 2  ;;  %vm6745_vm9 = vcmp.eq.s32.totalorder %v15759_v52, 0  ;;  %v15794_v8 = vand.u32 3, %v6950_v59  ;;  %v6638_v7 = vadd.s32 3, %v6634_v47 }
 0x96f   : > { %vm15788_vm5 = vcmp.le.f32.partialorder %v16881_v48, 0.7853982  ;;  %vm16885_vm4 = vcmp.lt.s32.totalorder %v16884_v61, 0  ;;  %v6319_v63 = vsub.s32 4, %v16886_v16  ;;  %vm7781_vm13 = vweird.f32 %v15338_v17 }
 0x970   : > { %v6840_v35 = vsel %vm16885_vm4, %v6839_v34, %v16876_v25  ;;  %vm6748_vm7 = vcmp.eq.s32.totalorder %v15759_v52, 2  ;;  %v6850_v49 = vxor.u32 2147483648, %v16888_v21  ;;  %v6321_v45 = vsel %vm15788_vm5, %v16880_v29, %v16889_v55  ;;  %v8976_v39 = vpop.eup %8975 }
 0x971   : > { %v6842_v60 = vsel %vm14973_vm0, 0, %v6840_v35  ;;  %v6749_v26 = vxor.u32 2147483648, %v8974_v41  ;;  %v6853_v57 = vxor.u32 2147483648, %v16890_v0  ;;  %v16892_v15 = vand.u32 2147483647, %v16891_v27  ;;  %v8978_v28 = vpop.eup %8977 }
 0x972   : > { %v6639_v58 = vand.u32 3, %v6638_v7  ;;  %v6846_v40 = vadd.s32 3, %v6842_v60  ;;  %vm16895_vm4 = vcmp.lt.s32.totalorder %v16880_v29, 0  ;;  %8985 = vcosq.f32 %v6321_v45  ;;  %v8980_v19 = vpop.eup %8979  ;;  %v16906_v60 = vld [vmem:[#allocation54_spill] sm:$0xff] }
 0x973   : > { %vm15815_vm3 = vcmp.le.f32.partialorder %v16892_v15, 0.7853982  ;;  %v6320_v9 = vsel %vm16895_vm4, %v6319_v63, %v16886_v16  ;;  %vm7261_vm8 = vweird.f32 %v14910_v10  ;;  %vm6952_vm14 = vcmp.lt.s32.totalorder %v15794_v8, 2  ;;  %v16903_v63 = vld [vmem:[#allocation25_spill] sm:$0xff] }
 0x974   : > { %v6322_v46 = vsel %vm15788_vm5, 0, %v6320_v9  ;;  %8987 = vsinq.f32 %v6321_v45  ;;  %v6527_v1 = vsub.s32 4, %v16896_v36  ;;  %v6529_v50 = vsel %vm15815_vm3, %v16891_v27, %v16897_v23 }
 0x975   : > { %v7789_v42 = vxor.u32 2147483648, %v8976_v39  ;;  %vm6640_vm4 = vcmp.lt.s32.totalorder %v6639_v58, 2  ;;  %vm6641_vm0 = vcmp.eq.s32.totalorder %v6639_v58, 0  ;;  %vm6644_vm6 = vcmp.eq.s32.totalorder %v6639_v58, 2 }
 0x976   : > { %v7786_v51 = vxor.u32 2147483648, %v8978_v28  ;;  %v6643_v54 = vsel %vm6641_vm0, %v16879_v43, %v6642_v44  ;;  %v6646_v3 = vsel %vm6644_vm6, %v6645_v62, %v16878_v56  ;;  %v6847_v18 = vand.u32 3, %v6846_v40 }
 0x977   : > { %v7790_v13 = vsel %vm7788_vm2, %v7789_v42, %v8978_v28  ;;  %v6746_v12 = vxor.u32 2147483648, %v8980_v19  ;;  %v6750_v53 = vsel %vm6748_vm7, %v6749_v26, %v8980_v19  ;;  %v6647_v5 = vsel %vm6640_vm4, %v6643_v54, %v6646_v3  ;;  %v8982_v2 = vpop.eup %8981  ;;  %v16914_v3 = vld [vmem:[#allocation20_spill] sm:$0xff] }
 0x978   : > { %v7787_v20 = vsel %vm7785_vm15, %v8976_v39, %v7786_v51  ;;  %v6648_v59 = vsel %vm6637_vm10, nan, %v6647_v5  ;;  %vm6848_vm5 = vcmp.lt.s32.totalorder %v6847_v18, 2  ;;  %vm6849_vm0 = vcmp.eq.s32.totalorder %v6847_v18, 0  ;;  %v8984_v32 = vpop.eup %8983  ;;  %v16911_v39 = vld [vmem:[#allocation27_spill] sm:$0xff]  ;;  %v16913_v51 = vld [vmem:[#allocation61_spill] sm:$0xff] }
 0x979   : > { %v7791_v25 = vsel %vm7784_vm11, %v7787_v20, %v7790_v13  ;;  %v6747_v34 = vsel %vm6745_vm9, %v8974_v41, %v6746_v12  ;;  %v6957_v6 = vxor.u32 2147483648, %v8982_v2  ;;  %v6851_v47 = vsel %vm6849_vm0, %v16890_v0, %v6850_v49  ;;  %v16908_v0 = vld [vmem:[#allocation70_spill] sm:$0xff] }
 0x97a   : > { %v7792_v56 = vsel %vm7781_vm13, nan, %v7791_v25  ;;  %vm16898_vm2 = vcmp.lt.s32.totalorder %v15759_v52, 2  ;;  %v6954_v4 = vxor.u32 2147483648, %v8984_v32  ;;  %vm6852_vm15 = vcmp.eq.s32.totalorder %v6847_v18, 2 }
 0x97b   : > { %v6751_v44 = vsel %vm16898_vm2, %v6747_v34, %v6750_v53  ;;  %7939 = vmatprep.subr.mxu1 %v7792_v56  ;;  %vm16899_vm10 = vweird.f32 %v14521_v30  ;;  %vm16900_vm11 = vcmp.eq.s32.totalorder %v15794_v8, 2  ;;  %v6854_v62 = vsel %vm6852_vm15, %v6853_v57, %v16888_v21 }
 0x97c   : > { %v6752_v43 = vsel %vm16899_vm10, nan, %v6751_v44  ;;  %v6958_v38 = vsel %vm16900_vm11, %v6957_v6, %v8984_v32  ;;  %v6326_v48 = vadd.s32 3, %v6322_v46  ;;  %7940 = vmatpush1.msra.mxu1 %v15767_v14  ;;  %vm16901_vm9 = vcmp.eq.s32.totalorder %v15794_v8, 0  ;;  %v16904_v8 = vld [vmem:[#allocation65_spill] sm:$0xff] }
 0x97d   : > { %7860 = vmatprep.subr.mxu0 %v6752_v43  ;;  %v6955_v17 = vsel %vm16901_vm9, %v8982_v2, %v6954_v4  ;;  %v6855_v52 = vsel %vm6848_vm5, %v6851_v47, %v6854_v62  ;;  %vm16902_vm13 = vcmp.lt.s32.totalorder %v16891_v27, 0  ;;  %8989 = vcosq.f32 %v6529_v50  ;;  %7941 = vmatprep.subr.mxu1 %v15769_v37  ;;  %v8410_v2 = vld [vmem:[%s15975_s2 + $0x60] sm:$0xff]  ;;  %v8411_v4 = vld [vmem:[%s15975_s2 + $0x68] sm:$0xff] }
 0x97e   : > { %v6528_v22 = vsel %vm16902_vm13, %v6527_v1, %v16896_v36  ;;  %v7272_v30 = vsel %vm7261_vm8, nan, %v15774_v24  ;;  %vm6949_vm6 = vweird.f32 %v14697_v31  ;;  %v6959_v14 = vsel %vm6952_vm14, %v6955_v17, %v6958_v38  ;;  %7861 = vmatpush1.msra.mxu0 %v6648_v59  ;;  %v16912_v36 = vld [vmem:[#allocation58_spill] sm:$0xff]  ;;  %v7806_v17 = vpop.permute.xlu0 %7805 }
 0x97f   : > { %7942 = vmatpush1.msra.mxu1 %v7272_v30  ;;  %v6960_v7 = vsel %vm6949_vm6, nan, %v6959_v14  ;;  %vm6845_vm7 = vweird.f32 %v16884_v61  ;;  %v6327_v35 = vand.u32 3, %v6326_v48  ;;  %8991 = vsinq.f32 %v6529_v50  ;;  %v8986_v24 = vpop.eup %8985  ;;  %v8412_v48 = vld [vmem:[%s15975_s2 + $0x70] sm:$0xff] }
 0x980   : > { %7943 = vmatprep.subr.mxu1 %v6960_v7  ;;  %v6856_v16 = vsel %vm6845_vm7, nan, %v6855_v52  ;;  %v6530_v37 = vsel %vm15815_vm3, 0, %v6528_v22  ;;  %v6215_v10 = vsub.s32 4, %v16903_v63  ;;  %v6333_v41 = vxor.u32 2147483648, %v8986_v24 }
 0x981   : > { %7944 = vmatpush1.msra.mxu1 %v6856_v16  ;;  %v8988_v31 = vpop.eup %8987  ;;  %vm16905_vm14 = vcmp.lt.s32.totalorder %v16904_v8, 0  ;;  %v6423_v21 = vsub.s32 4, %v16906_v60  ;;  %vm6325_vm8 = vweird.f32 %v16880_v29  ;;  %vm6332_vm4 = vcmp.eq.s32.totalorder %v6327_v35, 2 }
 0x982   : > { %v6216_v11 = vsel %vm16905_vm14, %v6215_v10, %v16903_v63  ;;  %v6330_v61 = vxor.u32 2147483648, %v8988_v31  ;;  %v6534_v49 = vadd.s32 3, %v6530_v37  ;;  %vm6329_vm5 = vcmp.eq.s32.totalorder %v6327_v35, 0 }
 0x983   : > { %v6334_v55 = vsel %vm6332_vm4, %v6333_v41, %v8988_v31  ;;  %v6218_v26 = vsel %vm14632_vm12, 0, %v6216_v11  ;;  %vm16909_vm3 = vcmp.lt.s32.totalorder %v16908_v0, 0  ;;  %vm6328_vm0 = vcmp.lt.s32.totalorder %v6327_v35, 2 }
 0x984   : > { %v6424_v57 = vsel %vm16909_vm3, %v6423_v21, %v16906_v60  ;;  %v6331_v15 = vsel %vm6329_vm5, %v8986_v24, %v6330_v61  ;;  %v6222_v33 = vadd.s32 3, %v6218_v26  ;;  %v6226_v46 = vxor.u32 2147483648, %v16911_v39 }
 0x985   : > { %v6426_v40 = vsel %vm14802_vm1, 0, %v6424_v57  ;;  %v6335_v9 = vsel %vm6328_vm0, %v6331_v15, %v6334_v55  ;;  %v6229_v1 = vxor.u32 2147483648, %v16912_v36  ;;  %v6535_v42 = vand.u32 3, %v6534_v49 }
 0x986   : > { %v6430_v23 = vadd.s32 3, %v6426_v40  ;;  %v6336_v50 = vsel %vm6325_vm8, nan, %v6335_v9  ;;  %v6223_v28 = vand.u32 3, %v6222_v33  ;;  %v6434_v54 = vxor.u32 2147483648, %v16913_v51 }
 0x987   : > { %7862 = vmatprep.subr.mxu0 %v6336_v50  ;;  %v6437_v18 = vxor.u32 2147483648, %v16914_v3  ;;  %vm6221_vm1 = vweird.f32 %v16904_v8  ;;  %vm6540_vm9 = vcmp.eq.s32.totalorder %v6535_v42, 2  ;;  %vm6537_vm13 = vcmp.eq.s32.totalorder %v6535_v42, 0 }
 0x988   : > { %v6431_v19 = vand.u32 3, %v6430_v23  ;;  %vm6225_vm12 = vcmp.eq.s32.totalorder %v6223_v28, 0  ;;  %vm6228_vm2 = vcmp.eq.s32.totalorder %v6223_v28, 2  ;;  %vm6224_vm15 = vcmp.lt.s32.totalorder %v6223_v28, 2 }
 0x989   : > { %v6227_v12 = vsel %vm6225_vm12, %v16912_v36, %v6226_v46  ;;  %v6230_v53 = vsel %vm6228_vm2, %v6229_v1, %v16911_v39  ;;  %vm16915_vm7 = vcmask 261120   ;;  %vm6536_vm14 = vcmp.lt.s32.totalorder %v6535_v42, 2 }
 0x98a   : > { %v8990_v13 = vpop.eup %8989  ;;  %v6231_v5 = vsel %vm6224_vm15, %v6227_v12, %v6230_v53  ;;  %vm6433_vm10 = vcmp.eq.s32.totalorder %v6431_v19, 0  ;;  %vm6436_vm11 = vcmp.eq.s32.totalorder %v6431_v19, 2  ;;  %vm6432_vm6 = vcmp.lt.s32.totalorder %v6431_v19, 2  ;;  %vm16917_vm5 = vmmov %vm16915_vm7 }
 0x98b   : > { %v6541_v29 = vxor.u32 2147483648, %v8990_v13  ;;  %v6232_v59 = vsel %vm6221_vm1, nan, %v6231_v5  ;;  %v6435_v32 = vsel %vm6433_vm10, %v16914_v3, %v6434_v54  ;;  %v6438_v25 = vsel %vm6436_vm11, %v6437_v18, %v16913_v51  ;;  %vm16918_vm3 = vmmov %vm16917_vm5 }
 0x98c   : > { %v8992_v20 = vpop.eup %8991  ;;  %7863 = vmatpush1.msra.mxu0 %v6232_v59  ;;  %v6439_v56 = vsel %vm6432_vm6, %v6435_v32, %v6438_v25  ;;  %v16916_v44 = vmov 0.0   ;;  %vm6533_vm8 = vweird.f32 %v16891_v27  ;;  %vm6429_vm4 = vweird.f32 %v16908_v0  ;;  %vm16919_vm0 = vmmov %vm16918_vm3  ;;  %v8413_v27 = vld [vmem:[%s15975_s2 + $0x78] sm:$0xff] }
 0x98d   : > { %v6538_v34 = vxor.u32 2147483648, %v8992_v20  ;;  %v6542_v6 = vsel %vm6540_vm9, %v6541_v29, %v8992_v20  ;;  %8418 = vmatmul.mubr.msk.f32.vlgmr.msra.gmra.mxu0 %vm16915_vm7, %v8410_v2  ;;  %v6440_v62 = vsel %vm6429_vm4, nan, %v6439_v56  ;;  %vm16920_vm12 = vmmov %vm16919_vm0  ;;  %v7998_v24 = vlaneseq }
 0x98e   : > { %7902 = vmatprep.mubr.f32.mxu0 %v16916_v44  ;;  %vm16921_vm2 = vmmov %vm16919_vm0 }
 0x98f   : > { %v6539_v47 = vsel %vm6537_vm13, %v8990_v13, %v6538_v34  ;;  %vm16922_vm1 = vmmov %vm16919_vm0  ;;  %v7999_v49 = vshrl.u32 %v7998_v24, 7 }
 0x990   : > { %v6543_v43 = vsel %vm6536_vm14, %v6539_v47, %v6542_v6  ;;  %vm16923_vm15 = vmmov %vm16919_vm0 }
 0x991   : > { %v6544_v38 = vsel %vm6533_vm8, nan, %v6543_v43  ;;  %8419 = vmatmul.mubr.msk.f32.gmra.mxu0 %vm16917_vm5, %v8411_v4  ;;  %vm8000_vm10 = vcmp.lt.s32.totalorder %v7999_v49, 4 }
 0x992   : > { %7945 = vmatprep.subr.mxu1 %v6544_v38  ;;  %7906 = vmatprep.mubr.f32.mxu0 %v16916_v44 }
 0x993   : > { %7946 = vmatpush1.msra.mxu1 %v6440_v62 }
 0x994   : > { %8422 = vmatmul.mubr.msk.f32.vlgmr.msra.gmra.mxu1 %vm16918_vm3, %v8410_v2 }
 0x995   : > { %7985 = vmatprep.mubr.f32.mxu1 %v16916_v44  ;;  %8420 = vmatmul.mubr.msk.f32.gmra.mxu0 %vm16919_vm0, %v8412_v48 }
 0x996   : > { %7910 = vmatprep.mubr.f32.mxu0 %v16916_v44 }
 0x998   : > { %8423 = vmatmul.mubr.msk.f32.gmra.mxu1 %vm16920_vm12, %v8411_v4 }
 0x999   : > { %7989 = vmatprep.mubr.f32.mxu1 %v16916_v44  ;;  %8421 = vmatmul.mubr.msk.f32.gmra.mxu0 %vm16921_vm2, %v8413_v27 }
 0x99c   : > { %8424 = vmatmul.mubr.msk.f32.gmra.mxu1 %vm16922_vm1, %v8412_v48 }
 0x99d   : > { %7993 = vmatprep.mubr.f32.mxu1 %v16916_v44 }
 0x9a0   : > { %8425 = vmatmul.mubr.msk.f32.gmra.mxu1 %vm16923_vm15, %v8413_v27 }
 0xa4d   : > { %v7898_v52 = vpop.f32.mrf.mxu0 }
 0xa4e   : > { %v7899_v22 = vadd.f32 %v7898_v52, %v7806_v17 }
 0xa4f   : > { %v7900_v30 = vpop.f32.mrf.mxu0 }
 0xa50   : > { %v8001_v14 = vmul.f32 1.442695, %v7899_v22  ;;  %v7901_v7 = vadd.f32 %v7900_v30, %v7806_v17 }
 0xa51   : > { %v7904_v35 = vpop.f32.mrf.mxu0 }
 0xa52   : > { %8993 = vpow2.f32 %v8001_v14  ;;  %v8003_v16 = vmul.f32 1.442695, %v7901_v7 }
 0xa53   : > { %v7905_v63 = vpop.f32.mrf.mxu0 }
 0xa54   : > { %v7981_v37 = vpop.f32.mrf.mxu1  ;;  %8995 = vpow2.f32 %v8003_v16 }
 0xa55   : > { %v7982_v10 = vadd.f32 %v7981_v37, %v7806_v17  ;;  %v7908_v41 = vpop.f32.mrf.mxu0 }
 0xa56   : > { %v7983_v31 = vpop.f32.mrf.mxu1 }
 0xa57   : > { %v8005_v8 = vmul.f32 1.442695, %v7982_v10  ;;  %v7984_v11 = vadd.f32 %v7983_v31, %v7806_v17  ;;  %v7909_v21 = vpop.f32.mrf.mxu0 }
 0xa58   : > { %v7987_v60 = vpop.f32.mrf.mxu1 }
 0xa59   : > { %8997 = vpow2.f32 %v8005_v8  ;;  %v8007_v61 = vmul.f32 1.442695, %v7984_v11  ;;  %v7912_v45 = vpop.f32.mrf.mxu0 }
 0xa5a   : > { %v7988_v55 = vpop.f32.mrf.mxu1 }
 0xa5b   : > { %8999 = vpow2.f32 %v8007_v61  ;;  %v7913_v0 = vpop.f32.mrf.mxu0 }
 0xa5c   : > { %v7991_v26 = vpop.f32.mrf.mxu1 }
 0xa5e   : > { %v7992_v57 = vpop.f32.mrf.mxu1 }
 0xa5f   : > { %v8994_v15 = vpop.eup %8993 }
 0xa60   : > { %v7995_v33 = vpop.f32.mrf.mxu1  ;;  %v8009_v58 = vsel %vm8000_vm10, %v7899_v22, %v8994_v15 }
 0xa61   : > { %v8996_v40 = vpop.eup %8995  ;;  %8013 = vst [vmem:[%s191_s14] sm:$0xff] %v8009_v58 }
 0xa62   : > { %v7996_v9 = vpop.f32.mrf.mxu1  ;;  %v8010_v39 = vsel %vm8000_vm10, %v7901_v7, %v8996_v40 }
 0xa63   : > { %8014 = vst [vmem:[%s191_s14 + $0x8] sm:$0xff] %v8010_v39 }
 0xa66   : > { %v8998_v46 = vpop.eup %8997 }
 0xa67   : > { %v8011_v36 = vsel %vm8000_vm10, %v7982_v10, %v8998_v46 }
 0xa68   : > { %v9000_v1 = vpop.eup %8999  ;;  %8015 = vst [vmem:[%s191_s14 + $0x10] sm:$0xff] %v8011_v36 }
 0xa69   : > { %v8012_v23 = vsel %vm8000_vm10, %v7984_v11, %v9000_v1 }
 0xa6a   : > { %8016 = vst [vmem:[%s191_s14 + $0x18] sm:$0xff] %v8012_v23 }
 0xa6b   : > { %9014 = shalt.err (!%p9011_p3)
}
 0xa6c   : > { %s9015_s7 = scalar_lea.hbm %s15935_s28, 512  ;;  %s9019_s10 = scalar_lea.hbm %s15977_s4, 1024 }
 0xa6d   : > { %p9016_p4 = scmp.ne.s32.totalorder %s15935_s28, %s9015_s7  ;;  %p9020_p9 = scmp.lt.s32.totalorder %s15935_s28, %s15977_s4 }
 0xa6e   : > { %p9021_p10 = scmp.lt.s32.totalorder %s9019_s10, %s9015_s7 }
 0xa6f   : > { %p9017_p7 = pnand %p9016_p4, %p9135_p5 }
 0xa70   : > { %p9022_p11 = por %p9021_p10, %p9020_p9 }
 0xa71   : > { %p9018_p8 = pneg %p9017_p7 }
 0xa73   : > { %p9023_p12 = pnand %p9022_p11, %p9018_p8 }
 0xa75   : > { %9026 = shalt.err (!%p9023_p12)
}
 0xa76   : > { %8688 = dma.vmem_to_hbm [thread:$0]  (%p9135_p5), %s8033_s22, 512, %s15935_s28, %s8018_s29  }
 0xa77 PF: > { %p8694_p13 = scmp.ge.s32.totalorder %s9061_s18, 2  ;;  %s8044_s13 = sand.u32 1, %s9049_s15  }
 0xa78   : > { %s8045_s14 = scalar_lea.sflag [#allocation3], %s8044_s13 }
 0xa79   : > { %p8691_p0 = pnand %p8694_p13, %p9139_p6 }
 0xa7b   : > { %p8692_p1 = pneg %p8691_p0 }
 0xa7d   : > { %9044 = dma.done.wait (%p8692_p1), %s8045_s14, 512  }
 0xa7e   : > { %9046 = vsyncadd (%p8692_p1), %s8045_s14, 4294966784  ;;  %p14_p2 = scmp.ge.s32.totalorder %s9122_s21, 4   ;;  %s16924_s15 = smov %s9053_s16 }
 0xa7f   : > { %s16925_s16 = smov %s9057_s17  ;;  %s16926_s17 = smov %s9133_s24 }
 0xa80   : > { %s16927_s18 = smov %s9122_s21  ;;  %16 = sbr.rel (!%p14_p2) target bundleno = 3 (0x3), region = 77 }
 0xa85   :  { %8050 = vsyncpa [#allocation3], 1 }
 0xa86   :  { %8052 = vsyncpa [#allocation3 + $0x1], 1 }

</bundles_post_ra>
